<compile_context>
chip_gen: v7x
topology: tpu7x:2x2x1
jax: 0.10.0
libtpu: 0.0.40
codegen_flags: <defaults>
</compile_context>

<pallas_src>
import functools

import jax
import jax.numpy as jnp
from jax.experimental import pallas as pl
from jax.experimental.pallas import tpu as pltpu

EXPANSION = 4
BN_EPS = 1e-5
_ROW_HALO = 8          # sublane-aligned top/bottom halo rows in the k/v slab


def _round_up(x, m):
    return (x + m - 1) // m * m


@functools.lru_cache(maxsize=None)
def _vmem_limit_bytes():
    # 128 MiB parts (v5e/v6e) -> 64 MiB scoped limit; v7x (64 MiB) -> 32 MiB.
    try:
        cap = int(pltpu.get_tpu_info().vmem_capacity_bytes)
    except Exception:
        cap = 64 * 1024 * 1024
    return int(min(cap // 2, 64 * 1024 * 1024))


# ---------------------------------------------------------------------------
# Kernel 1: conv1 (1x1 conv + folded BN + ReLU) fused with q/k/v projections
# ---------------------------------------------------------------------------

def _conv1_qkv_kernel(x_ref, w1_ref, s1_ref, b1_ref, wqkv_ref,
                      q_ref, k_ref, v_ref, h_scr, *, width):
    # 1x1 conv -> folded BN -> ReLU, kept in a VMEM scratch (never hits HBM).
    h = jnp.dot(x_ref[...], w1_ref[...], preferred_element_type=jnp.float32)
    h = jnp.maximum(h * s1_ref[...] + b1_ref[...], 0.0)
    h_scr[...] = h.astype(h_scr.dtype)
    # Fused q/k/v projection: one matmul against the concatenated weight.
    y = jnp.dot(h_scr[...], wqkv_ref[...], preferred_element_type=jnp.float32)
    q_ref[...] = y[:, 0 * width:1 * width].astype(q_ref.dtype)
    k_ref[...] = y[:, 1 * width:2 * width].astype(k_ref.dtype)
    v_ref[...] = y[:, 2 * width:3 * width].astype(v_ref.dtype)


def conv1_qkv_projection(x2d, w1, s1, b1, wqkv, *, tm):
    n, cin = x2d.shape
    width = w1.shape[1]
    kern = functools.partial(_conv1_qkv_kernel, width=width)
    out_sds = jax.ShapeDtypeStruct((n, width), jnp.bfloat16)
    return pl.pallas_call(
        kern,
        out_shape=(out_sds, out_sds, out_sds),
        grid=(pl.cdiv(n, tm),),
        in_specs=[
            pl.BlockSpec((tm, cin), lambda i: (i, 0)),
            pl.BlockSpec((cin, width), lambda i: (0, 0)),
            pl.BlockSpec((1, width), lambda i: (0, 0)),
            pl.BlockSpec((1, width), lambda i: (0, 0)),
            pl.BlockSpec((width, 3 * width), lambda i: (0, 0)),
        ],
        out_specs=tuple(pl.BlockSpec((tm, width), lambda i: (i, 0))
                        for _ in range(3)),
        scratch_shapes=[pltpu.VMEM((tm, width), jnp.bfloat16)],
        compiler_params=pltpu.CompilerParams(
            dimension_semantics=("parallel",),
            vmem_limit_bytes=_vmem_limit_bytes()),
    )(x2d, w1,
      s1.reshape(1, width).astype(jnp.float32),
      b1.reshape(1, width).astype(jnp.float32),
      wqkv)


# ---------------------------------------------------------------------------
# Kernel 2: AttentionConv window compute + folded BN + ReLU
# Layout: last dim is W*C (lane-dense); grid = (batch, H row-tiles), both
# "parallel"; k/v arrive per tile via direct HBM->padded-VMEM-slab DMA.
# ---------------------------------------------------------------------------

def _attention_kernel(q_ref, k_hbm, v_hbm, rel_ref, scale_ref, shift_ref,
                      o_ref, kpad, vpad, sem,
                      *, W, C, K, pad, TH, LB, LANE_OFF, PADC_AL):
    WC = W * C
    slab_rows, slab_lanes = kpad.shape
    wide = LB + 2 * PADC_AL
    n_lb = WC // LB

    b = pl.program_id(0)
    th = pl.program_id(1)
    n_th = pl.num_programs(1)
    row0 = th * TH

    # ---- per-tile halo-slab DMA: HBM k/v -> zero-padded bf16 VMEM scratch ----
    def slab_copies(src_row, dst_row, rows, idx):
        return [pltpu.make_async_copy(
                    hbm.at[b, pl.ds(src_row, rows)],
                    dst.at[pl.ds(dst_row, rows), pl.ds(LANE_OFF, WC)],
                    sem.at[j, idx])
                for j, (hbm, dst) in enumerate(((k_hbm, kpad), (v_hbm, vpad)))]

    for cp in slab_copies(row0, _ROW_HALO, TH, 0):                   # core rows
        cp.start()

    @pl.when(th > 0)
    def _():
        for cp in slab_copies(row0 - _ROW_HALO, 0, _ROW_HALO, 1):    # top halo
            cp.start()

    @pl.when(th < n_th - 1)
    def _():
        for cp in slab_copies(row0 + TH, _ROW_HALO + TH, _ROW_HALO, 2):  # bottom
            cp.start()

    # ---- zero only the halo strips this step's DMAs do not overwrite ----
    lzero = jnp.zeros((slab_rows, LANE_OFF), kpad.dtype)
    rzero = jnp.zeros((slab_rows, slab_lanes - LANE_OFF - WC), kpad.dtype)
    hzero = jnp.zeros((_ROW_HALO, WC), kpad.dtype)
    for dst in (kpad, vpad):
        dst[:, 0:LANE_OFF] = lzero
        dst[:, LANE_OFF + WC:slab_lanes] = rzero

    @pl.when(th == 0)
    def _():
        for dst in (kpad, vpad):
            dst[0:_ROW_HALO, LANE_OFF:LANE_OFF + WC] = hzero

    @pl.when(th == n_th - 1)
    def _():
        for dst in (kpad, vpad):
            dst[_ROW_HALO + TH:_ROW_HALO + TH + _ROW_HALO,
                LANE_OFF:LANE_OFF + WC] = hzero

    # ---- wait for the slab DMAs ----
    for cp in slab_copies(row0, _ROW_HALO, TH, 0):
        cp.wait()

    @pl.when(th > 0)
    def _():
        for cp in slab_copies(row0 - _ROW_HALO, 0, _ROW_HALO, 1):
            cp.wait()

    @pl.when(th < n_th - 1)
    def _():
        for cp in slab_copies(row0 + TH, _ROW_HALO + TH, _ROW_HALO, 2):
            cp.wait()

    # ---- per-channel softmax over the KxK window, folded BN + ReLU ----
    # Lane dim in <=512-lane blocks to stay inside the vreg file; two passes
    # (max, then exp/accumulate) so there are no rescale exps and at most one
    # logit is live at a time.  The dx shifts come from slicing one aligned
    # wide slab value loaded per window row (not K unaligned wide reloads).
    rbase = _ROW_HALO - pad
    for lb in range(n_lb):
        lsl = slice(lb * LB, (lb + 1) * LB)
        wstart = LANE_OFF + lb * LB - PADC_AL
        q_blk = q_ref[0, :, lsl].astype(jnp.float32)             # (TH, LB)

        # pass 1: window max
        m = jnp.full((TH, LB), -jnp.inf, jnp.float32)
        for dy in range(K):
            r0 = rbase + dy
            kw = kpad[r0:r0 + TH, wstart:wstart + wide].astype(jnp.float32)
            for dx in range(K):
                off = PADC_AL - pad * C + dx * C
                rel = rel_ref[dy * K + dx, lsl].astype(jnp.float32)
                m = jnp.maximum(m, q_blk * (kw[:, off:off + LB] + rel))

        # pass 2: exp + accumulate
        s = jnp.zeros((TH, LB), jnp.float32)
        acc = jnp.zeros((TH, LB), jnp.float32)
        for dy in range(K):
            r0 = rbase + dy
            kw = kpad[r0:r0 + TH, wstart:wstart + wide].astype(jnp.float32)
            vw = vpad[r0:r0 + TH, wstart:wstart + wide].astype(jnp.float32)
            for dx in range(K):
                off = PADC_AL - pad * C + dx * C
                rel = rel_ref[dy * K + dx, lsl].astype(jnp.float32)
                e = jnp.exp(q_blk * (kw[:, off:off + LB] + rel) - m)
                s = s + e
                acc = acc + e * vw[:, off:off + LB]

        # Softmax normalisation on the EUP slot; eval-mode BN folded into the
        # same multiply, then fused ReLU.  Zero-padded k positions still
        # contribute exp(q*rel) to the softmax, matching the reference.
        inv = pl.reciprocal(s, approx=True)
        out = acc * (inv * scale_ref[0, lsl]) + shift_ref[0, lsl]
        o_ref[0, :, lsl] = jnp.maximum(out, 0.0).astype(o_ref.dtype)


def _pick_row_tile(h):
    if h <= 32:
        return h
    for t in (32, 16, 8):
        if h % t == 0:
            return t
    return h


def _pick_lane_block(wc):
    for t in (512, 256, 128):
        if wc % t == 0:
            return t
    return wc


def attention_conv_bn_relu(q3, k3, v3, rel, scale_f, shift_f, *, H, W, C, K, pad):
    # q3/k3/v3: (B, H, W*C) bf16 ; rel: (K*K, W*C) bf16 ; scale/shift: (1, W*C)
    B = q3.shape[0]
    WC = W * C
    TH = _pick_row_tile(H)
    n_th = H // TH
    assert H % TH == 0
    assert n_th == 1 or (TH % 8 == 0 and TH >= _ROW_HALO)
    LB = _pick_lane_block(WC)
    PADC_AL = _round_up(pad * C, 128)
    LANE_OFF = PADC_AL
    slab_rows = TH + 2 * _ROW_HALO
    slab_lanes = LANE_OFF + WC + PADC_AL
    kern = functools.partial(_attention_kernel, W=W, C=C, K=K, pad=pad, TH=TH,
                             LB=LB, LANE_OFF=LANE_OFF, PADC_AL=PADC_AL)
    return pl.pallas_call(
        kern,
        out_shape=jax.ShapeDtypeStruct((B, H, WC), jnp.bfloat16),
        grid=(B, n_th),
        in_specs=[
            pl.BlockSpec((1, TH, WC), lambda b, t: (b, t, 0)),
            pl.BlockSpec(memory_space=pl.ANY),        # k: raw HBM, manual DMA
            pl.BlockSpec(memory_space=pl.ANY),        # v: raw HBM, manual DMA
            pl.BlockSpec((K * K, WC), lambda b, t: (0, 0)),
            pl.BlockSpec((1, WC), lambda b, t: (0, 0)),
            pl.BlockSpec((1, WC), lambda b, t: (0, 0)),
        ],
        out_specs=pl.BlockSpec((1, TH, WC), lambda b, t: (b, t, 0)),
        scratch_shapes=[pltpu.VMEM((slab_rows, slab_lanes), jnp.bfloat16),
                        pltpu.VMEM((slab_rows, slab_lanes), jnp.bfloat16),
                        pltpu.SemaphoreType.DMA((2, 3))],
        compiler_params=pltpu.CompilerParams(
            dimension_semantics=("parallel", "parallel"),
            vmem_limit_bytes=_vmem_limit_bytes()),
    )(q3, k3, v3, rel, scale_f, shift_f)


# ---------------------------------------------------------------------------
# Kernel 3: conv3 + BN3 + shortcut(1x1 conv + BN | identity) + add + ReLU
# ---------------------------------------------------------------------------

def _conv3_shortcut_kernel(*refs, has_proj):
    if has_proj:
        (h_ref, x_ref, w3_ref, wsc_ref, s3_ref, b3_ref, ssc_ref, bsc_ref,
         o_ref) = refs
    else:
        h_ref, x_ref, w3_ref, s3_ref, b3_ref, o_ref = refs
    y = jnp.dot(h_ref[...], w3_ref[...], preferred_element_type=jnp.float32)
    y = y * s3_ref[...] + b3_ref[...]
    if has_proj:
        sc = jnp.dot(x_ref[...], wsc_ref[...], preferred_element_type=jnp.float32)
        sc = sc * ssc_ref[...] + bsc_ref[...]
    else:
        sc = x_ref[...].astype(jnp.float32)
    o_ref[...] = jnp.maximum(y + sc, 0.0).astype(o_ref.dtype)


def fused_conv3_shortcut_add_relu(h2d, x2d, w3, s3, b3,
                                  wsc=None, ssc=None, bsc=None, *, tm):
    n, width = h2d.shape
    cin = x2d.shape[1]
    cout = w3.shape[1]
    has_proj = wsc is not None
    kern = functools.partial(_conv3_shortcut_kernel, has_proj=has_proj)

    def row_spec(c):
        return pl.BlockSpec((tm, c), lambda i: (i, 0))

    def full_spec(r, c):
        return pl.BlockSpec((r, c), lambda i: (0, 0))

    def vec_spec(c):
        return pl.BlockSpec((1, c), lambda i: (0, 0))

    in_specs = [row_spec(width), row_spec(cin), full_spec(width, cout)]
    args = [h2d, x2d, w3]
    if has_proj:
        in_specs.append(full_spec(cin, cout))
        args.append(wsc)
    in_specs += [vec_spec(cout), vec_spec(cout)]
    args += [s3.reshape(1, cout).astype(jnp.float32),
             b3.reshape(1, cout).astype(jnp.float32)]
    if has_proj:
        in_specs += [vec_spec(cout), vec_spec(cout)]
        args += [ssc.reshape(1, cout).astype(jnp.float32),
                 bsc.reshape(1, cout).astype(jnp.float32)]

    return pl.pallas_call(
        kern,
        out_shape=jax.ShapeDtypeStruct((n, cout), jnp.bfloat16),
        grid=(pl.cdiv(n, tm),),
        in_specs=in_specs,
        out_specs=pl.BlockSpec((tm, cout), lambda i: (i, 0)),
        compiler_params=pltpu.CompilerParams(
            dimension_semantics=("parallel",),
            vmem_limit_bytes=_vmem_limit_bytes()),
    )(*args)


# ---------------------------------------------------------------------------
# Parameter setup & forward glue (plain JAX)
# ---------------------------------------------------------------------------

def fold_bn(gamma, beta, mean, var, eps=BN_EPS):
    scale = gamma / jnp.sqrt(var + eps)
    shift = beta - mean * scale
    return scale, shift


def _build_rel(rel_h, rel_w, width, K, W):
    # rel[ky*K + kx, w*C + c]: first C/2 channels take rel_h[c, ky], second
    # half rel_w[c, kx] (reference unfold order ky*K + kx), tiled along W for
    # the lane-folded (last dim = W*C) attention layout; stored bf16.
    rel_hf = jnp.broadcast_to(rel_h[:, :, None], (width // 2, K, K))
    rel_wf = jnp.broadcast_to(rel_w[:, None, :], (width // 2, K, K))
    rel = jnp.concatenate([rel_hf, rel_wf], axis=0)          # (C, K, K)
    rel = jnp.transpose(rel, (1, 2, 0))                      # (K, K, C)
    rel = jnp.tile(rel, (1, 1, W))                           # (K, K, W*C)
    return rel.reshape(K * K, W * width).astype(jnp.bfloat16)


def init_bottleneck_params(key, in_channels, out_channels, *, attention_k=7,
                           groups=1, base_width=64):
    width = int(out_channels * (base_width / 64.0)) * groups
    out_exp = EXPANSION * out_channels
    keys = jax.random.split(key, 12)

    def conv_w(k, cin, cout):
        return (0.1 * jax.random.normal(k, (cin, cout), jnp.float32)).astype(jnp.bfloat16)

    def bn(k, c):
        k1, k2, k3, k4 = jax.random.split(k, 4)
        gamma = 1.0 + 0.1 * jax.random.normal(k1, (c,), jnp.float32)
        beta = 0.1 * jax.random.normal(k2, (c,), jnp.float32)
        mean = 0.1 * jax.random.normal(k3, (c,), jnp.float32)
        var = jax.random.uniform(k4, (c,), jnp.float32, minval=0.5, maxval=1.5)
        return gamma, beta, mean, var

    wq = conv_w(keys[2], width, width)
    wk = conv_w(keys[3], width, width)
    wv = conv_w(keys[4], width, width)
    p = {
        "w1": conv_w(keys[0], in_channels, width),
        "bn1": bn(keys[1], width),
        "wqkv": jnp.concatenate([wq, wk, wv], axis=1),        # fused q/k/v weight
        "rel_h": jax.random.normal(keys[5], (width // 2, attention_k), jnp.float32),
        "rel_w": jax.random.normal(keys[6], (width // 2, attention_k), jnp.float32),
        "bn2": bn(keys[7], width),
        "w3": conv_w(keys[8], width, out_exp),
        "bn3": bn(keys[9], out_exp),
        "w_sc": conv_w(keys[10], in_channels, out_exp),
        "bn_sc": bn(keys[11], out_exp),
    }
    return p, width


def bottleneck_forward(x_nchw, params, *, stride=1, attention_k=7,
                       attention_pad=3, attn_groups=8):
    x = jnp.transpose(x_nchw, (0, 2, 3, 1))                  # NCHW -> NHWC
    B, H, W, Cin = x.shape
    width = params["w1"].shape[1]
    out_exp = params["w3"].shape[1]
    K, pad = attention_k, attention_pad
    # groups only reshape the view around a per-channel softmax in AttentionConv.
    assert width % attn_groups == 0 and width % 2 == 0
    assert 2 * pad == K - 1, "same-size attention window expected"

    xb = x.astype(jnp.bfloat16)                              # bf16 MXU operands
    N = B * H * W
    TM = min(1024, N)                                        # larger row tiles

    # conv1 (1x1 conv -> BN -> ReLU) fused with q/k/v projections; h1 stays
    # in VMEM.  NOTE: a trailing partial row block wastes a little MXU work
    # when N % TM != 0 (outputs are masked, results stay correct).
    s1, b1 = fold_bn(*params["bn1"])
    q2d, k2d, v2d = conv1_qkv_projection(xb.reshape(N, Cin), params["w1"],
                                         s1, b1, params["wqkv"], tm=TM)
    WC = W * width
    # (N, width) -> (B, H, W*width) is a free, contiguous (lane-dense) reshape.
    q3, k3, v3 = (t.reshape(B, H, WC) for t in (q2d, k2d, v2d))

    # conv2: AttentionConv -> BN -> ReLU, fully fused; key/value zero padding
    # lives in a per-row-tile bf16 VMEM slab filled by direct HBM DMA.
    rel = _build_rel(params["rel_h"], params["rel_w"], width, K, W)
    s2, b2 = fold_bn(*params["bn2"])
    s2f = jnp.tile(s2, W).reshape(1, WC).astype(jnp.float32)
    b2f = jnp.tile(b2, W).reshape(1, WC).astype(jnp.float32)
    h2 = attention_conv_bn_relu(q3, k3, v3, rel, s2f, b2f,
                                H=H, W=W, C=width, K=K, pad=pad)

    # F.avg_pool2d(out, (stride, stride)) commutes with the (linear) conv3 + BN,
    # so pool h2 first and keep conv3/shortcut/add/ReLU fused in one kernel.
    if stride >= 2:
        # TODO(synk): fold this average pool into the conv3 kernel prologue
        # (strided BlockSpec + in-kernel row averaging) to avoid the extra
        # full-tensor HBM round trip on strided blocks.
        Ho, Wo = H // stride, W // stride
        h2p = h2.reshape(B, H, W, width)[:, :Ho * stride, :Wo * stride, :]
        h2p = h2p.reshape(B, Ho, stride, Wo, stride, width)
        h2p = h2p.astype(jnp.float32).mean(axis=(2, 4))
        h2d = h2p.astype(jnp.bfloat16).reshape(B * Ho * Wo, width)
        xs = xb[:, ::stride, ::stride, :]
    else:
        Ho, Wo = H, W
        h2d = h2.reshape(N, width)
        xs = xb
    Nout = B * Ho * Wo
    TMo = min(1024, Nout)

    # conv3 + BN + shortcut + residual add + ReLU, fused; bf16 writeback.
    s3, b3 = fold_bn(*params["bn3"])
    if stride != 1 or Cin != out_exp:
        ssc, bsc = fold_bn(*params["bn_sc"])
        out2d = fused_conv3_shortcut_add_relu(
            h2d, xs.reshape(Nout, Cin), params["w3"], s3, b3,
            params["w_sc"], ssc, bsc, tm=TMo)
    else:
        out2d = fused_conv3_shortcut_add_relu(
            h2d, xs.reshape(Nout, Cin), params["w3"], s3, b3, tm=TMo)

    out = out2d.reshape(B, Ho, Wo, out_exp)
    return jnp.transpose(out, (0, 3, 1, 2))                  # NHWC -> NCHW (bf16)


# ---------------------------------------------------------------------------

if __name__ == "__main__":
    key = jax.random.PRNGKey(0)
    kx, kp = jax.random.split(key)

    B, Cin, H, W = 2, 16, 8, 8
    out_channels = 16        # width = 16 -> attention lane width W*width = 128
    x = jax.random.normal(kx, (B, Cin, H, W), jnp.float32)

    params, width = init_bottleneck_params(kp, Cin, out_channels, attention_k=7)
    fwd = jax.jit(functools.partial(bottleneck_forward, stride=1,
                                    attention_k=7, attention_pad=3))
    y = jax.block_until_ready(fwd(x, params))

    assert y.shape == (B, EXPANSION * out_channels, H, W), y.shape
    yf = y.astype(jnp.float32)
    assert bool(jnp.all(jnp.isfinite(yf))) and bool(jnp.all(yf >= 0.0))
    print("KERNEL_OK")
</pallas_src>

<mosaic_0001>
module attributes {stable_mosaic.version = 11 : i64} {
  func.func @_conv1_qkv_kernel(%arg0: i32, %arg1: memref<128x16xbf16, #tpu.memory_space<vmem>>, %arg2: memref<16x16xbf16, #tpu.memory_space<vmem>>, %arg3: memref<1x16xf32, #tpu.memory_space<vmem>>, %arg4: memref<1x16xf32, #tpu.memory_space<vmem>>, %arg5: memref<16x48xbf16, #tpu.memory_space<vmem>>, %arg6: memref<128x16xbf16, #tpu.memory_space<vmem>>, %arg7: memref<128x16xbf16, #tpu.memory_space<vmem>>, %arg8: memref<128x16xbf16, #tpu.memory_space<vmem>>, %arg9: memref<128x16xbf16, #tpu.memory_space<vmem>>) attributes {dimension_semantics = [#tpu.dimension_semantics<parallel>], iteration_bounds = array<i64: 1>, scalar_prefetch = 0 : i64, scratch_operands = 1 : i64, tpu.core_type = #tpu.core_type<tc>, window_params = [{transform_indices = @transform_0, window_bounds = array<i64: 128, 16>}, {pipeline_mode = #tpu.pipeline_mode<synchronous>, transform_indices = @transform_1, window_bounds = array<i64: 16, 16>}, {pipeline_mode = #tpu.pipeline_mode<synchronous>, transform_indices = @transform_2, window_bounds = array<i64: 1, 16>}, {pipeline_mode = #tpu.pipeline_mode<synchronous>, transform_indices = @transform_3, window_bounds = array<i64: 1, 16>}, {pipeline_mode = #tpu.pipeline_mode<synchronous>, transform_indices = @transform_4, window_bounds = array<i64: 16, 48>}, {transform_indices = @transform_5, window_bounds = array<i64: 128, 16>}, {transform_indices = @transform_6, window_bounds = array<i64: 128, 16>}, {transform_indices = @transform_7, window_bounds = array<i64: 128, 16>}]} {
    %c0 = arith.constant 0 : index
    %c0_0 = arith.constant 0 : index
    %0 = vector.load %arg1[%c0, %c0_0] : memref<128x16xbf16, #tpu.memory_space<vmem>>, vector<128x16xbf16>
    %c0_1 = arith.constant 0 : index
    %c0_2 = arith.constant 0 : index
    %1 = vector.load %arg2[%c0_1, %c0_2] : memref<16x16xbf16, #tpu.memory_space<vmem>>, vector<16x16xbf16>
    %cst = arith.constant dense<0.000000e+00> : vector<128x16xf32>
    %2 = tpu.matmul %0, %1, %cst {dimension_numbers = #tpu.dot_dimension_numbers<[1], [0], [0], [1], [0, 0, 1, 1], [], []>} : vector<128x16xbf16>, vector<16x16xbf16>, vector<128x16xf32> -> vector<128x16xf32>
    %c0_3 = arith.constant 0 : index
    %c0_4 = arith.constant 0 : index
    %3 = vector.load %arg3[%c0_3, %c0_4] : memref<1x16xf32, #tpu.memory_space<vmem>>, vector<1x16xf32>
    %4 = vector.broadcast %3 : vector<1x16xf32> to vector<128x16xf32>
    %5 = arith.mulf %2, %4 : vector<128x16xf32>
    %c0_5 = arith.constant 0 : index
    %c0_6 = arith.constant 0 : index
    %6 = vector.load %arg4[%c0_5, %c0_6] : memref<1x16xf32, #tpu.memory_space<vmem>>, vector<1x16xf32>
    %7 = vector.broadcast %6 : vector<1x16xf32> to vector<128x16xf32>
    %8 = arith.addf %5, %7 : vector<128x16xf32>
    %cst_7 = arith.constant 0.000000e+00 : f32
    %9 = vector.broadcast %cst_7 : f32 to vector<128x16xf32>
    %10 = arith.maximumf %8, %9 : vector<128x16xf32>
    %11 = arith.truncf %10 : vector<128x16xf32> to vector<128x16xbf16>
    %c0_8 = arith.constant 0 : index
    %c0_9 = arith.constant 0 : index
    %12 = vector.load %arg9[%c0_8, %c0_9] : memref<128x16xbf16, #tpu.memory_space<vmem>>, vector<128x16xbf16>
    tpu.vector_store %arg9[%c0_8, %c0_9], %11 {strides = array<i32>} : memref<128x16xbf16, #tpu.memory_space<vmem>>, vector<128x16xbf16>,
    %c0_10 = arith.constant 0 : index
    %c0_11 = arith.constant 0 : index
    %13 = vector.load %arg9[%c0_10, %c0_11] : memref<128x16xbf16, #tpu.memory_space<vmem>>, vector<128x16xbf16>
    %c0_12 = arith.constant 0 : index
    %c0_13 = arith.constant 0 : index
    %14 = vector.load %arg5[%c0_12, %c0_13] : memref<16x48xbf16, #tpu.memory_space<vmem>>, vector<16x48xbf16>
    %cst_14 = arith.constant dense<0.000000e+00> : vector<128x48xf32>
    %15 = tpu.matmul %13, %14, %cst_14 {dimension_numbers = #tpu.dot_dimension_numbers<[1], [0], [0], [1], [0, 0, 1, 1], [], []>} : vector<128x16xbf16>, vector<16x48xbf16>, vector<128x48xf32> -> vector<128x48xf32>
    %16 = vector.extract_strided_slice %15 {offsets = [0, 0], sizes = [128, 16], strides = [1, 1]} : vector<128x48xf32> to vector<128x16xf32>
    %17 = arith.truncf %16 : vector<128x16xf32> to vector<128x16xbf16>
    %c0_15 = arith.constant 0 : index
    %c0_16 = arith.constant 0 : index
    %18 = vector.load %arg6[%c0_15, %c0_16] : memref<128x16xbf16, #tpu.memory_space<vmem>>, vector<128x16xbf16>
    tpu.vector_store %arg6[%c0_15, %c0_16], %17 {strides = array<i32>} : memref<128x16xbf16, #tpu.memory_space<vmem>>, vector<128x16xbf16>,
    %19 = vector.extract_strided_slice %15 {offsets = [0, 16], sizes = [128, 16], strides = [1, 1]} : vector<128x48xf32> to vector<128x16xf32>
    %20 = arith.truncf %19 : vector<128x16xf32> to vector<128x16xbf16>
    %c0_17 = arith.constant 0 : index
    %c0_18 = arith.constant 0 : index
    %21 = vector.load %arg7[%c0_17, %c0_18] : memref<128x16xbf16, #tpu.memory_space<vmem>>, vector<128x16xbf16>
    tpu.vector_store %arg7[%c0_17, %c0_18], %20 {strides = array<i32>} : memref<128x16xbf16, #tpu.memory_space<vmem>>, vector<128x16xbf16>,
    %22 = vector.extract_strided_slice %15 {offsets = [0, 32], sizes = [128, 16], strides = [1, 1]} : vector<128x48xf32> to vector<128x16xf32>
    %23 = arith.truncf %22 : vector<128x16xf32> to vector<128x16xbf16>
    %c0_19 = arith.constant 0 : index
    %c0_20 = arith.constant 0 : index
    %24 = vector.load %arg8[%c0_19, %c0_20] : memref<128x16xbf16, #tpu.memory_space<vmem>>, vector<128x16xbf16>
    tpu.vector_store %arg8[%c0_19, %c0_20], %23 {strides = array<i32>} : memref<128x16xbf16, #tpu.memory_space<vmem>>, vector<128x16xbf16>,
    return
  }
  func.func @transform_0(%arg0: i32) -> (i32, i32) {
    %c0_i32 = arith.constant 0 : i32
    %c0_i32_0 = arith.constant 0 : i32
    return %arg0, %c0_i32 : i32, i32
  }
  func.func @transform_1(%arg0: i32) -> (i32, i32) {
    %c0_i32 = arith.constant 0 : i32
    %c0_i32_0 = arith.constant 0 : i32
    %c0_i32_1 = arith.constant 0 : i32
    return %c0_i32, %c0_i32_0 : i32, i32
  }
  func.func @transform_2(%arg0: i32) -> (i32, i32) {
    %c0_i32 = arith.constant 0 : i32
    %c0_i32_0 = arith.constant 0 : i32
    %c0_i32_1 = arith.constant 0 : i32
    return %c0_i32, %c0_i32_0 : i32, i32
  }
  func.func @transform_3(%arg0: i32) -> (i32, i32) {
    %c0_i32 = arith.constant 0 : i32
    %c0_i32_0 = arith.constant 0 : i32
    %c0_i32_1 = arith.constant 0 : i32
    return %c0_i32, %c0_i32_0 : i32, i32
  }
  func.func @transform_4(%arg0: i32) -> (i32, i32) {
    %c0_i32 = arith.constant 0 : i32
    %c0_i32_0 = arith.constant 0 : i32
    %c0_i32_1 = arith.constant 0 : i32
    return %c0_i32, %c0_i32_0 : i32, i32
  }
  func.func @transform_5(%arg0: i32) -> (i32, i32) {
    %c0_i32 = arith.constant 0 : i32
    %c0_i32_0 = arith.constant 0 : i32
    return %arg0, %c0_i32 : i32, i32
  }
  func.func @transform_6(%arg0: i32) -> (i32, i32) {
    %c0_i32 = arith.constant 0 : i32
    %c0_i32_0 = arith.constant 0 : i32
    return %arg0, %c0_i32 : i32, i32
  }
  func.func @transform_7(%arg0: i32) -> (i32, i32) {
    %c0_i32 = arith.constant 0 : i32
    %c0_i32_0 = arith.constant 0 : i32
    return %arg0, %c0_i32 : i32, i32
  }
}

module attributes {stable_mosaic.version = 11 : i64} {
  func.func @_conv3_shortcut_kernel(%arg0: i32, %arg1: memref<128x16xbf16, #tpu.memory_space<vmem>>, %arg2: memref<128x16xbf16, #tpu.memory_space<vmem>>, %arg3: memref<16x64xbf16, #tpu.memory_space<vmem>>, %arg4: memref<16x64xbf16, #tpu.memory_space<vmem>>, %arg5: memref<1x64xf32, #tpu.memory_space<vmem>>, %arg6: memref<1x64xf32, #tpu.memory_space<vmem>>, %arg7: memref<1x64xf32, #tpu.memory_space<vmem>>, %arg8: memref<1x64xf32, #tpu.memory_space<vmem>>, %arg9: memref<128x64xbf16, #tpu.memory_space<vmem>>) attributes {dimension_semantics = [#tpu.dimension_semantics<parallel>], iteration_bounds = array<i64: 1>, scalar_prefetch = 0 : i64, scratch_operands = 0 : i64, tpu.core_type = #tpu.core_type<tc>, window_params = [{transform_indices = @transform_0, window_bounds = array<i64: 128, 16>}, {transform_indices = @transform_1, window_bounds = array<i64: 128, 16>}, {pipeline_mode = #tpu.pipeline_mode<synchronous>, transform_indices = @transform_2, window_bounds = array<i64: 16, 64>}, {pipeline_mode = #tpu.pipeline_mode<synchronous>, transform_indices = @transform_3, window_bounds = array<i64: 16, 64>}, {pipeline_mode = #tpu.pipeline_mode<synchronous>, transform_indices = @transform_4, window_bounds = array<i64: 1, 64>}, {pipeline_mode = #tpu.pipeline_mode<synchronous>, transform_indices = @transform_5, window_bounds = array<i64: 1, 64>}, {pipeline_mode = #tpu.pipeline_mode<synchronous>, transform_indices = @transform_6, window_bounds = array<i64: 1, 64>}, {pipeline_mode = #tpu.pipeline_mode<synchronous>, transform_indices = @transform_7, window_bounds = array<i64: 1, 64>}, {transform_indices = @transform_8, window_bounds = array<i64: 128, 64>}]} {
    %c0 = arith.constant 0 : index
    %c0_0 = arith.constant 0 : index
    %0 = vector.load %arg1[%c0, %c0_0] : memref<128x16xbf16, #tpu.memory_space<vmem>>, vector<128x16xbf16>
    %c0_1 = arith.constant 0 : index
    %c0_2 = arith.constant 0 : index
    %1 = vector.load %arg3[%c0_1, %c0_2] : memref<16x64xbf16, #tpu.memory_space<vmem>>, vector<16x64xbf16>
    %cst = arith.constant dense<0.000000e+00> : vector<128x64xf32>
    %2 = tpu.matmul %0, %1, %cst {dimension_numbers = #tpu.dot_dimension_numbers<[1], [0], [0], [1], [0, 0, 1, 1], [], []>} : vector<128x16xbf16>, vector<16x64xbf16>, vector<128x64xf32> -> vector<128x64xf32>
    %c0_3 = arith.constant 0 : index
    %c0_4 = arith.constant 0 : index
    %3 = vector.load %arg5[%c0_3, %c0_4] : memref<1x64xf32, #tpu.memory_space<vmem>>, vector<1x64xf32>
    %4 = vector.broadcast %3 : vector<1x64xf32> to vector<128x64xf32>
    %5 = arith.mulf %2, %4 : vector<128x64xf32>
    %c0_5 = arith.constant 0 : index
    %c0_6 = arith.constant 0 : index
    %6 = vector.load %arg6[%c0_5, %c0_6] : memref<1x64xf32, #tpu.memory_space<vmem>>, vector<1x64xf32>
    %7 = vector.broadcast %6 : vector<1x64xf32> to vector<128x64xf32>
    %8 = arith.addf %5, %7 : vector<128x64xf32>
    %c0_7 = arith.constant 0 : index
    %c0_8 = arith.constant 0 : index
    %9 = vector.load %arg2[%c0_7, %c0_8] : memref<128x16xbf16, #tpu.memory_space<vmem>>, vector<128x16xbf16>
    %c0_9 = arith.constant 0 : index
    %c0_10 = arith.constant 0 : index
    %10 = vector.load %arg4[%c0_9, %c0_10] : memref<16x64xbf16, #tpu.memory_space<vmem>>, vector<16x64xbf16>
    %cst_11 = arith.constant dense<0.000000e+00> : vector<128x64xf32>
    %11 = tpu.matmul %9, %10, %cst_11 {dimension_numbers = #tpu.dot_dimension_numbers<[1], [0], [0], [1], [0, 0, 1, 1], [], []>} : vector<128x16xbf16>, vector<16x64xbf16>, vector<128x64xf32> -> vector<128x64xf32>
    %c0_12 = arith.constant 0 : index
    %c0_13 = arith.constant 0 : index
    %12 = vector.load %arg7[%c0_12, %c0_13] : memref<1x64xf32, #tpu.memory_space<vmem>>, vector<1x64xf32>
    %13 = vector.broadcast %12 : vector<1x64xf32> to vector<128x64xf32>
    %14 = arith.mulf %11, %13 : vector<128x64xf32>
    %c0_14 = arith.constant 0 : index
    %c0_15 = arith.constant 0 : index
    %15 = vector.load %arg8[%c0_14, %c0_15] : memref<1x64xf32, #tpu.memory_space<vmem>>, vector<1x64xf32>
    %16 = vector.broadcast %15 : vector<1x64xf32> to vector<128x64xf32>
    %17 = arith.addf %14, %16 : vector<128x64xf32>
    %18 = arith.addf %8, %17 : vector<128x64xf32>
    %cst_16 = arith.constant 0.000000e+00 : f32
    %19 = vector.broadcast %cst_16 : f32 to vector<128x64xf32>
    %20 = arith.maximumf %18, %19 : vector<128x64xf32>
    %21 = arith.truncf %20 : vector<128x64xf32> to vector<128x64xbf16>
    %c0_17 = arith.constant 0 : index
    %c0_18 = arith.constant 0 : index
    %22 = vector.load %arg9[%c0_17, %c0_18] : memref<128x64xbf16, #tpu.memory_space<vmem>>, vector<128x64xbf16>
    tpu.vector_store %arg9[%c0_17, %c0_18], %21 {strides = array<i32>} : memref<128x64xbf16, #tpu.memory_space<vmem>>, vector<128x64xbf16>,
    return
  }
  func.func @transform_0(%arg0: i32) -> (i32, i32) {
    %c0_i32 = arith.constant 0 : i32
    %c0_i32_0 = arith.constant 0 : i32
    return %arg0, %c0_i32 : i32, i32
  }
  func.func @transform_1(%arg0: i32) -> (i32, i32) {
    %c0_i32 = arith.constant 0 : i32
    %c0_i32_0 = arith.constant 0 : i32
    return %arg0, %c0_i32 : i32, i32
  }
  func.func @transform_2(%arg0: i32) -> (i32, i32) {
    %c0_i32 = arith.constant 0 : i32
    %c0_i32_0 = arith.constant 0 : i32
    %c0_i32_1 = arith.constant 0 : i32
    return %c0_i32, %c0_i32_0 : i32, i32
  }
  func.func @transform_3(%arg0: i32) -> (i32, i32) {
    %c0_i32 = arith.constant 0 : i32
    %c0_i32_0 = arith.constant 0 : i32
    %c0_i32_1 = arith.constant 0 : i32
    return %c0_i32, %c0_i32_0 : i32, i32
  }
  func.func @transform_4(%arg0: i32) -> (i32, i32) {
    %c0_i32 = arith.constant 0 : i32
    %c0_i32_0 = arith.constant 0 : i32
    %c0_i32_1 = arith.constant 0 : i32
    return %c0_i32, %c0_i32_0 : i32, i32
  }
  func.func @transform_5(%arg0: i32) -> (i32, i32) {
    %c0_i32 = arith.constant 0 : i32
    %c0_i32_0 = arith.constant 0 : i32
    %c0_i32_1 = arith.constant 0 : i32
    return %c0_i32, %c0_i32_0 : i32, i32
  }
  func.func @transform_6(%arg0: i32) -> (i32, i32) {
    %c0_i32 = arith.constant 0 : i32
    %c0_i32_0 = arith.constant 0 : i32
    %c0_i32_1 = arith.constant 0 : i32
    return %c0_i32, %c0_i32_0 : i32, i32
  }
  func.func @transform_7(%arg0: i32) -> (i32, i32) {
    %c0_i32 = arith.constant 0 : i32
    %c0_i32_0 = arith.constant 0 : i32
    %c0_i32_1 = arith.constant 0 : i32
    return %c0_i32, %c0_i32_0 : i32, i32
  }
  func.func @transform_8(%arg0: i32) -> (i32, i32) {
    %c0_i32 = arith.constant 0 : i32
    %c0_i32_0 = arith.constant 0 : i32
    return %arg0, %c0_i32 : i32, i32
  }
}

module attributes {stable_mosaic.version = 11 : i64} {
  func.func @_attention_kernel(%arg0: i32, %arg1: i32, %arg2: memref<1x8x128xbf16, #tpu.memory_space<vmem>>, %arg3: memref<2x8x128xbf16, #tpu.memory_space<any>>, %arg4: memref<2x8x128xbf16, #tpu.memory_space<any>>, %arg5: memref<49x128xbf16, #tpu.memory_space<vmem>>, %arg6: memref<1x128xf32, #tpu.memory_space<vmem>>, %arg7: memref<1x128xf32, #tpu.memory_space<vmem>>, %arg8: memref<1x8x128xbf16, #tpu.memory_space<vmem>>, %arg9: memref<24x384xbf16, #tpu.memory_space<vmem>>, %arg10: memref<24x384xbf16, #tpu.memory_space<vmem>>, %arg11: memref<2x3x!tpu.dma_semaphore, #tpu.memory_space<semaphore_mem>>) attributes {dimension_semantics = [#tpu.dimension_semantics<parallel>, #tpu.dimension_semantics<parallel>], iteration_bounds = array<i64: 2, 1>, scalar_prefetch = 0 : i64, scratch_operands = 3 : i64, tpu.core_type = #tpu.core_type<tc>, window_params = [{transform_indices = @transform_0, window_bounds = array<i64: 1, 8, 128>}, {}, {}, {pipeline_mode = #tpu.pipeline_mode<synchronous>, transform_indices = @transform_3, window_bounds = array<i64: 49, 128>}, {pipeline_mode = #tpu.pipeline_mode<synchronous>, transform_indices = @transform_4, window_bounds = array<i64: 1, 128>}, {pipeline_mode = #tpu.pipeline_mode<synchronous>, transform_indices = @transform_5, window_bounds = array<i64: 1, 128>}, {transform_indices = @transform_6, window_bounds = array<i64: 1, 8, 128>}]} {
    %c8_i32 = arith.constant 8 : i32
    %0 = arith.muli %arg1, %c8_i32 : i32
    %c0_i32 = arith.constant 0 : i32
    %c0_i32_0 = arith.constant 0 : i32
    %c0_i32_1 = arith.constant 0 : i32
    %1 = tpu.memref_slice %arg3[%arg0, %0, %c0_i32_1] : memref<2x8x128xbf16, #tpu.memory_space<any>> -> memref<1x8x128xbf16, #tpu.memory_space<any>>
    %2 = tpu.memref_squeeze %1 : memref<1x8x128xbf16, #tpu.memory_space<any>> -> memref<8x128xbf16, #tpu.memory_space<any>>
    %c8_i32_2 = arith.constant 8 : i32
    %c128_i32 = arith.constant 128 : i32
    %3 = tpu.memref_slice %arg9[%c8_i32_2, %c128_i32] : memref<24x384xbf16, #tpu.memory_space<vmem>> -> memref<8x128xbf16, #tpu.memory_space<vmem>>
    %4 = tpu.memref_slice %arg11[%c0_i32, %c0_i32_0] : memref<2x3x!tpu.dma_semaphore, #tpu.memory_space<semaphore_mem>> -> memref<1x1x!tpu.dma_semaphore, #tpu.memory_space<semaphore_mem>>
    %5 = tpu.memref_squeeze %4 : memref<1x1x!tpu.dma_semaphore, #tpu.memory_space<semaphore_mem>> -> memref<!tpu.dma_semaphore, #tpu.memory_space<semaphore_mem>>
    tpu.enqueue_dma source(%2 : memref<8x128xbf16, #tpu.memory_space<any>>) target(%3 : memref<8x128xbf16, #tpu.memory_space<vmem>>) target_semaphore(%5 : memref<!tpu.dma_semaphore, #tpu.memory_space<semaphore_mem>>)
    %c1_i32 = arith.constant 1 : i32
    %c0_i32_3 = arith.constant 0 : i32
    %c0_i32_4 = arith.constant 0 : i32
    %6 = tpu.memref_slice %arg4[%arg0, %0, %c0_i32_4] : memref<2x8x128xbf16, #tpu.memory_space<any>> -> memref<1x8x128xbf16, #tpu.memory_space<any>>
    %7 = tpu.memref_squeeze %6 : memref<1x8x128xbf16, #tpu.memory_space<any>> -> memref<8x128xbf16, #tpu.memory_space<any>>
    %c8_i32_5 = arith.constant 8 : i32
    %c128_i32_6 = arith.constant 128 : i32
    %8 = tpu.memref_slice %arg10[%c8_i32_5, %c128_i32_6] : memref<24x384xbf16, #tpu.memory_space<vmem>> -> memref<8x128xbf16, #tpu.memory_space<vmem>>
    %9 = tpu.memref_slice %arg11[%c1_i32, %c0_i32_3] : memref<2x3x!tpu.dma_semaphore, #tpu.memory_space<semaphore_mem>> -> memref<1x1x!tpu.dma_semaphore, #tpu.memory_space<semaphore_mem>>
    %10 = tpu.memref_squeeze %9 : memref<1x1x!tpu.dma_semaphore, #tpu.memory_space<semaphore_mem>> -> memref<!tpu.dma_semaphore, #tpu.memory_space<semaphore_mem>>
    tpu.enqueue_dma source(%7 : memref<8x128xbf16, #tpu.memory_space<any>>) target(%8 : memref<8x128xbf16, #tpu.memory_space<vmem>>) target_semaphore(%10 : memref<!tpu.dma_semaphore, #tpu.memory_space<semaphore_mem>>)
    %c0_i32_7 = arith.constant 0 : i32
    %11 = arith.cmpi sgt, %arg1, %c0_i32_7 : i32
    %12 = arith.extui %11 : i1 to i32
    %c0_i32_8 = arith.constant 0 : i32
    %13 = arith.cmpi ne, %12, %c0_i32_8 : i32
    scf.if %13 {
      %c8_i32_241 = arith.constant 8 : i32
      %1239 = arith.subi %0, %c8_i32_241 : i32
      %c0_i32_242 = arith.constant 0 : i32
      %c1_i32_243 = arith.constant 1 : i32
      %c0_i32_244 = arith.constant 0 : i32
      %1240 = tpu.memref_slice %arg3[%arg0, %1239, %c0_i32_244] : memref<2x8x128xbf16, #tpu.memory_space<any>> -> memref<1x8x128xbf16, #tpu.memory_space<any>>
      %1241 = tpu.memref_squeeze %1240 : memref<1x8x128xbf16, #tpu.memory_space<any>> -> memref<8x128xbf16, #tpu.memory_space<any>>
      %c0_i32_245 = arith.constant 0 : i32
      %c128_i32_246 = arith.constant 128 : i32
      %1242 = tpu.memref_slice %arg9[%c0_i32_245, %c128_i32_246] : memref<24x384xbf16, #tpu.memory_space<vmem>> -> memref<8x128xbf16, #tpu.memory_space<vmem>>
      %1243 = tpu.memref_slice %arg11[%c0_i32_242, %c1_i32_243] : memref<2x3x!tpu.dma_semaphore, #tpu.memory_space<semaphore_mem>> -> memref<1x1x!tpu.dma_semaphore, #tpu.memory_space<semaphore_mem>>
      %1244 = tpu.memref_squeeze %1243 : memref<1x1x!tpu.dma_semaphore, #tpu.memory_space<semaphore_mem>> -> memref<!tpu.dma_semaphore, #tpu.memory_space<semaphore_mem>>
      tpu.enqueue_dma source(%1241 : memref<8x128xbf16, #tpu.memory_space<any>>) target(%1242 : memref<8x128xbf16, #tpu.memory_space<vmem>>) target_semaphore(%1244 : memref<!tpu.dma_semaphore, #tpu.memory_space<semaphore_mem>>)
      %c1_i32_247 = arith.constant 1 : i32
      %c1_i32_248 = arith.constant 1 : i32
      %c0_i32_249 = arith.constant 0 : i32
      %1245 = tpu.memref_slice %arg4[%arg0, %1239, %c0_i32_249] : memref<2x8x128xbf16, #tpu.memory_space<any>> -> memref<1x8x128xbf16, #tpu.memory_space<any>>
      %1246 = tpu.memref_squeeze %1245 : memref<1x8x128xbf16, #tpu.memory_space<any>> -> memref<8x128xbf16, #tpu.memory_space<any>>
      %c0_i32_250 = arith.constant 0 : i32
      %c128_i32_251 = arith.constant 128 : i32
      %1247 = tpu.memref_slice %arg10[%c0_i32_250, %c128_i32_251] : memref<24x384xbf16, #tpu.memory_space<vmem>> -> memref<8x128xbf16, #tpu.memory_space<vmem>>
      %1248 = tpu.memref_slice %arg11[%c1_i32_247, %c1_i32_248] : memref<2x3x!tpu.dma_semaphore, #tpu.memory_space<semaphore_mem>> -> memref<1x1x!tpu.dma_semaphore, #tpu.memory_space<semaphore_mem>>
      %1249 = tpu.memref_squeeze %1248 : memref<1x1x!tpu.dma_semaphore, #tpu.memory_space<semaphore_mem>> -> memref<!tpu.dma_semaphore, #tpu.memory_space<semaphore_mem>>
      tpu.enqueue_dma source(%1246 : memref<8x128xbf16, #tpu.memory_space<any>>) target(%1247 : memref<8x128xbf16, #tpu.memory_space<vmem>>) target_semaphore(%1249 : memref<!tpu.dma_semaphore, #tpu.memory_space<semaphore_mem>>)
    } else {
    }
    %c0_i32_9 = arith.constant 0 : i32
    %14 = arith.cmpi slt, %arg1, %c0_i32_9 : i32
    %15 = arith.extui %14 : i1 to i32
    %c0_i32_10 = arith.constant 0 : i32
    %16 = arith.cmpi ne, %15, %c0_i32_10 : i32
    scf.if %16 {
      %c8_i32_241 = arith.constant 8 : i32
      %1239 = arith.addi %0, %c8_i32_241 : i32
      %c0_i32_242 = arith.constant 0 : i32
      %c2_i32 = arith.constant 2 : i32
      %c0_i32_243 = arith.constant 0 : i32
      %1240 = tpu.memref_slice %arg3[%arg0, %1239, %c0_i32_243] : memref<2x8x128xbf16, #tpu.memory_space<any>> -> memref<1x8x128xbf16, #tpu.memory_space<any>>
      %1241 = tpu.memref_squeeze %1240 : memref<1x8x128xbf16, #tpu.memory_space<any>> -> memref<8x128xbf16, #tpu.memory_space<any>>
      %c16_i32 = arith.constant 16 : i32
      %c128_i32_244 = arith.constant 128 : i32
      %1242 = tpu.memref_slice %arg9[%c16_i32, %c128_i32_244] : memref<24x384xbf16, #tpu.memory_space<vmem>> -> memref<8x128xbf16, #tpu.memory_space<vmem>>
      %1243 = tpu.memref_slice %arg11[%c0_i32_242, %c2_i32] : memref<2x3x!tpu.dma_semaphore, #tpu.memory_space<semaphore_mem>> -> memref<1x1x!tpu.dma_semaphore, #tpu.memory_space<semaphore_mem>>
      %1244 = tpu.memref_squeeze %1243 : memref<1x1x!tpu.dma_semaphore, #tpu.memory_space<semaphore_mem>> -> memref<!tpu.dma_semaphore, #tpu.memory_space<semaphore_mem>>
      tpu.enqueue_dma source(%1241 : memref<8x128xbf16, #tpu.memory_space<any>>) target(%1242 : memref<8x128xbf16, #tpu.memory_space<vmem>>) target_semaphore(%1244 : memref<!tpu.dma_semaphore, #tpu.memory_space<semaphore_mem>>)
      %c1_i32_245 = arith.constant 1 : i32
      %c2_i32_246 = arith.constant 2 : i32
      %c0_i32_247 = arith.constant 0 : i32
      %1245 = tpu.memref_slice %arg4[%arg0, %1239, %c0_i32_247] : memref<2x8x128xbf16, #tpu.memory_space<any>> -> memref<1x8x128xbf16, #tpu.memory_space<any>>
      %1246 = tpu.memref_squeeze %1245 : memref<1x8x128xbf16, #tpu.memory_space<any>> -> memref<8x128xbf16, #tpu.memory_space<any>>
      %c16_i32_248 = arith.constant 16 : i32
      %c128_i32_249 = arith.constant 128 : i32
      %1247 = tpu.memref_slice %arg10[%c16_i32_248, %c128_i32_249] : memref<24x384xbf16, #tpu.memory_space<vmem>> -> memref<8x128xbf16, #tpu.memory_space<vmem>>
      %1248 = tpu.memref_slice %arg11[%c1_i32_245, %c2_i32_246] : memref<2x3x!tpu.dma_semaphore, #tpu.memory_space<semaphore_mem>> -> memref<1x1x!tpu.dma_semaphore, #tpu.memory_space<semaphore_mem>>
      %1249 = tpu.memref_squeeze %1248 : memref<1x1x!tpu.dma_semaphore, #tpu.memory_space<semaphore_mem>> -> memref<!tpu.dma_semaphore, #tpu.memory_space<semaphore_mem>>
      tpu.enqueue_dma source(%1246 : memref<8x128xbf16, #tpu.memory_space<any>>) target(%1247 : memref<8x128xbf16, #tpu.memory_space<vmem>>) target_semaphore(%1249 : memref<!tpu.dma_semaphore, #tpu.memory_space<semaphore_mem>>)
    } else {
    }
    %cst = arith.constant 0.000000e+00 : bf16
    %17 = vector.broadcast %cst : bf16 to vector<24x128xbf16>
    %cst_11 = arith.constant 0.000000e+00 : bf16
    %18 = vector.broadcast %cst_11 : bf16 to vector<24x128xbf16>
    %cst_12 = arith.constant 0.000000e+00 : bf16
    %19 = vector.broadcast %cst_12 : bf16 to vector<8x128xbf16>
    %c0 = arith.constant 0 : index
    %c0_13 = arith.constant 0 : index
    %20 = vector.load %arg9[%c0, %c0_13] : memref<24x384xbf16, #tpu.memory_space<vmem>>, vector<24x128xbf16>
    tpu.vector_store %arg9[%c0, %c0_13], %17 {strides = array<i32>} : memref<24x384xbf16, #tpu.memory_space<vmem>>, vector<24x128xbf16>,
    %c0_14 = arith.constant 0 : index
    %c256 = arith.constant 256 : index
    %21 = vector.load %arg9[%c0_14, %c256] : memref<24x384xbf16, #tpu.memory_space<vmem>>, vector<24x128xbf16>
    tpu.vector_store %arg9[%c0_14, %c256], %18 {strides = array<i32>} : memref<24x384xbf16, #tpu.memory_space<vmem>>, vector<24x128xbf16>,
    %c0_15 = arith.constant 0 : index
    %c0_16 = arith.constant 0 : index
    %22 = vector.load %arg10[%c0_15, %c0_16] : memref<24x384xbf16, #tpu.memory_space<vmem>>, vector<24x128xbf16>
    tpu.vector_store %arg10[%c0_15, %c0_16], %17 {strides = array<i32>} : memref<24x384xbf16, #tpu.memory_space<vmem>>, vector<24x128xbf16>,
    %c0_17 = arith.constant 0 : index
    %c256_18 = arith.constant 256 : index
    %23 = vector.load %arg10[%c0_17, %c256_18] : memref<24x384xbf16, #tpu.memory_space<vmem>>, vector<24x128xbf16>
    tpu.vector_store %arg10[%c0_17, %c256_18], %18 {strides = array<i32>} : memref<24x384xbf16, #tpu.memory_space<vmem>>, vector<24x128xbf16>,
    %c0_i32_19 = arith.constant 0 : i32
    %24 = arith.cmpi eq, %arg1, %c0_i32_19 : i32
    %25 = arith.extui %24 : i1 to i32
    %c0_i32_20 = arith.constant 0 : i32
    %26 = arith.cmpi ne, %25, %c0_i32_20 : i32
    scf.if %26 {
      %c0_241 = arith.constant 0 : index
      %c128 = arith.constant 128 : index
      %1239 = vector.load %arg9[%c0_241, %c128] : memref<24x384xbf16, #tpu.memory_space<vmem>>, vector<8x128xbf16>
      tpu.vector_store %arg9[%c0_241, %c128], %19 {strides = array<i32>} : memref<24x384xbf16, #tpu.memory_space<vmem>>, vector<8x128xbf16>,
      %c0_242 = arith.constant 0 : index
      %c128_243 = arith.constant 128 : index
      %1240 = vector.load %arg10[%c0_242, %c128_243] : memref<24x384xbf16, #tpu.memory_space<vmem>>, vector<8x128xbf16>
      tpu.vector_store %arg10[%c0_242, %c128_243], %19 {strides = array<i32>} : memref<24x384xbf16, #tpu.memory_space<vmem>>, vector<8x128xbf16>,
    } else {
    }
    %c0_i32_21 = arith.constant 0 : i32
    %27 = arith.cmpi eq, %arg1, %c0_i32_21 : i32
    %28 = arith.extui %27 : i1 to i32
    %c0_i32_22 = arith.constant 0 : i32
    %29 = arith.cmpi ne, %28, %c0_i32_22 : i32
    scf.if %29 {
      %c16_241 = arith.constant 16 : index
      %c128 = arith.constant 128 : index
      %1239 = vector.load %arg9[%c16_241, %c128] : memref<24x384xbf16, #tpu.memory_space<vmem>>, vector<8x128xbf16>
      tpu.vector_store %arg9[%c16_241, %c128], %19 {strides = array<i32>} : memref<24x384xbf16, #tpu.memory_space<vmem>>, vector<8x128xbf16>,
      %c16_242 = arith.constant 16 : index
      %c128_243 = arith.constant 128 : index
      %1240 = vector.load %arg10[%c16_242, %c128_243] : memref<24x384xbf16, #tpu.memory_space<vmem>>, vector<8x128xbf16>
      tpu.vector_store %arg10[%c16_242, %c128_243], %19 {strides = array<i32>} : memref<24x384xbf16, #tpu.memory_space<vmem>>, vector<8x128xbf16>,
    } else {
    }
    %c0_i32_23 = arith.constant 0 : i32
    %c0_i32_24 = arith.constant 0 : i32
    %c0_i32_25 = arith.constant 0 : i32
    %30 = tpu.memref_slice %arg3[%arg0, %0, %c0_i32_25] : memref<2x8x128xbf16, #tpu.memory_space<any>> -> memref<1x8x128xbf16, #tpu.memory_space<any>>
    %31 = tpu.memref_squeeze %30 : memref<1x8x128xbf16, #tpu.memory_space<any>> -> memref<8x128xbf16, #tpu.memory_space<any>>
    %c8_i32_26 = arith.constant 8 : i32
    %c128_i32_27 = arith.constant 128 : i32
    %32 = tpu.memref_slice %arg9[%c8_i32_26, %c128_i32_27] : memref<24x384xbf16, #tpu.memory_space<vmem>> -> memref<8x128xbf16, #tpu.memory_space<vmem>>
    %33 = tpu.memref_slice %arg11[%c0_i32_23, %c0_i32_24] : memref<2x3x!tpu.dma_semaphore, #tpu.memory_space<semaphore_mem>> -> memref<1x1x!tpu.dma_semaphore, #tpu.memory_space<semaphore_mem>>
    %34 = tpu.memref_squeeze %33 : memref<1x1x!tpu.dma_semaphore, #tpu.memory_space<semaphore_mem>> -> memref<!tpu.dma_semaphore, #tpu.memory_space<semaphore_mem>>
    tpu.wait_dma2 semaphore(%34 : memref<!tpu.dma_semaphore, #tpu.memory_space<semaphore_mem>>) src(%31 : memref<8x128xbf16, #tpu.memory_space<any>>) dst(%32 : memref<8x128xbf16, #tpu.memory_space<vmem>>)
    %c1_i32_28 = arith.constant 1 : i32
    %c0_i32_29 = arith.constant 0 : i32
    %c0_i32_30 = arith.constant 0 : i32
    %35 = tpu.memref_slice %arg4[%arg0, %0, %c0_i32_30] : memref<2x8x128xbf16, #tpu.memory_space<any>> -> memref<1x8x128xbf16, #tpu.memory_space<any>>
    %36 = tpu.memref_squeeze %35 : memref<1x8x128xbf16, #tpu.memory_space<any>> -> memref<8x128xbf16, #tpu.memory_space<any>>
    %c8_i32_31 = arith.constant 8 : i32
    %c128_i32_32 = arith.constant 128 : i32
    %37 = tpu.memref_slice %arg10[%c8_i32_31, %c128_i32_32] : memref<24x384xbf16, #tpu.memory_space<vmem>> -> memref<8x128xbf16, #tpu.memory_space<vmem>>
    %38 = tpu.memref_slice %arg11[%c1_i32_28, %c0_i32_29] : memref<2x3x!tpu.dma_semaphore, #tpu.memory_space<semaphore_mem>> -> memref<1x1x!tpu.dma_semaphore, #tpu.memory_space<semaphore_mem>>
    %39 = tpu.memref_squeeze %38 : memref<1x1x!tpu.dma_semaphore, #tpu.memory_space<semaphore_mem>> -> memref<!tpu.dma_semaphore, #tpu.memory_space<semaphore_mem>>
    tpu.wait_dma2 semaphore(%39 : memref<!tpu.dma_semaphore, #tpu.memory_space<semaphore_mem>>) src(%36 : memref<8x128xbf16, #tpu.memory_space<any>>) dst(%37 : memref<8x128xbf16, #tpu.memory_space<vmem>>)
    %c0_i32_33 = arith.constant 0 : i32
    %40 = arith.cmpi sgt, %arg1, %c0_i32_33 : i32
    %41 = arith.extui %40 : i1 to i32
    %c0_i32_34 = arith.constant 0 : i32
    %42 = arith.cmpi ne, %41, %c0_i32_34 : i32
    scf.if %42 {
      %c8_i32_241 = arith.constant 8 : i32
      %1239 = arith.subi %0, %c8_i32_241 : i32
      %c0_i32_242 = arith.constant 0 : i32
      %c1_i32_243 = arith.constant 1 : i32
      %c0_i32_244 = arith.constant 0 : i32
      %1240 = tpu.memref_slice %arg3[%arg0, %1239, %c0_i32_244] : memref<2x8x128xbf16, #tpu.memory_space<any>> -> memref<1x8x128xbf16, #tpu.memory_space<any>>
      %1241 = tpu.memref_squeeze %1240 : memref<1x8x128xbf16, #tpu.memory_space<any>> -> memref<8x128xbf16, #tpu.memory_space<any>>
      %c0_i32_245 = arith.constant 0 : i32
      %c128_i32_246 = arith.constant 128 : i32
      %1242 = tpu.memref_slice %arg9[%c0_i32_245, %c128_i32_246] : memref<24x384xbf16, #tpu.memory_space<vmem>> -> memref<8x128xbf16, #tpu.memory_space<vmem>>
      %1243 = tpu.memref_slice %arg11[%c0_i32_242, %c1_i32_243] : memref<2x3x!tpu.dma_semaphore, #tpu.memory_space<semaphore_mem>> -> memref<1x1x!tpu.dma_semaphore, #tpu.memory_space<semaphore_mem>>
      %1244 = tpu.memref_squeeze %1243 : memref<1x1x!tpu.dma_semaphore, #tpu.memory_space<semaphore_mem>> -> memref<!tpu.dma_semaphore, #tpu.memory_space<semaphore_mem>>
      tpu.wait_dma2 semaphore(%1244 : memref<!tpu.dma_semaphore, #tpu.memory_space<semaphore_mem>>) src(%1241 : memref<8x128xbf16, #tpu.memory_space<any>>) dst(%1242 : memref<8x128xbf16, #tpu.memory_space<vmem>>)
      %c1_i32_247 = arith.constant 1 : i32
      %c1_i32_248 = arith.constant 1 : i32
      %c0_i32_249 = arith.constant 0 : i32
      %1245 = tpu.memref_slice %arg4[%arg0, %1239, %c0_i32_249] : memref<2x8x128xbf16, #tpu.memory_space<any>> -> memref<1x8x128xbf16, #tpu.memory_space<any>>
      %1246 = tpu.memref_squeeze %1245 : memref<1x8x128xbf16, #tpu.memory_space<any>> -> memref<8x128xbf16, #tpu.memory_space<any>>
      %c0_i32_250 = arith.constant 0 : i32
      %c128_i32_251 = arith.constant 128 : i32
      %1247 = tpu.memref_slice %arg10[%c0_i32_250, %c128_i32_251] : memref<24x384xbf16, #tpu.memory_space<vmem>> -> memref<8x128xbf16, #tpu.memory_space<vmem>>
      %1248 = tpu.memref_slice %arg11[%c1_i32_247, %c1_i32_248] : memref<2x3x!tpu.dma_semaphore, #tpu.memory_space<semaphore_mem>> -> memref<1x1x!tpu.dma_semaphore, #tpu.memory_space<semaphore_mem>>
      %1249 = tpu.memref_squeeze %1248 : memref<1x1x!tpu.dma_semaphore, #tpu.memory_space<semaphore_mem>> -> memref<!tpu.dma_semaphore, #tpu.memory_space<semaphore_mem>>
      tpu.wait_dma2 semaphore(%1249 : memref<!tpu.dma_semaphore, #tpu.memory_space<semaphore_mem>>) src(%1246 : memref<8x128xbf16, #tpu.memory_space<any>>) dst(%1247 : memref<8x128xbf16, #tpu.memory_space<vmem>>)
    } else {
    }
    %c0_i32_35 = arith.constant 0 : i32
    %43 = arith.cmpi slt, %arg1, %c0_i32_35 : i32
    %44 = arith.extui %43 : i1 to i32
    %c0_i32_36 = arith.constant 0 : i32
    %45 = arith.cmpi ne, %44, %c0_i32_36 : i32
    scf.if %45 {
      %c8_i32_241 = arith.constant 8 : i32
      %1239 = arith.addi %0, %c8_i32_241 : i32
      %c0_i32_242 = arith.constant 0 : i32
      %c2_i32 = arith.constant 2 : i32
      %c0_i32_243 = arith.constant 0 : i32
      %1240 = tpu.memref_slice %arg3[%arg0, %1239, %c0_i32_243] : memref<2x8x128xbf16, #tpu.memory_space<any>> -> memref<1x8x128xbf16, #tpu.memory_space<any>>
      %1241 = tpu.memref_squeeze %1240 : memref<1x8x128xbf16, #tpu.memory_space<any>> -> memref<8x128xbf16, #tpu.memory_space<any>>
      %c16_i32 = arith.constant 16 : i32
      %c128_i32_244 = arith.constant 128 : i32
      %1242 = tpu.memref_slice %arg9[%c16_i32, %c128_i32_244] : memref<24x384xbf16, #tpu.memory_space<vmem>> -> memref<8x128xbf16, #tpu.memory_space<vmem>>
      %1243 = tpu.memref_slice %arg11[%c0_i32_242, %c2_i32] : memref<2x3x!tpu.dma_semaphore, #tpu.memory_space<semaphore_mem>> -> memref<1x1x!tpu.dma_semaphore, #tpu.memory_space<semaphore_mem>>
      %1244 = tpu.memref_squeeze %1243 : memref<1x1x!tpu.dma_semaphore, #tpu.memory_space<semaphore_mem>> -> memref<!tpu.dma_semaphore, #tpu.memory_space<semaphore_mem>>
      tpu.wait_dma2 semaphore(%1244 : memref<!tpu.dma_semaphore, #tpu.memory_space<semaphore_mem>>) src(%1241 : memref<8x128xbf16, #tpu.memory_space<any>>) dst(%1242 : memref<8x128xbf16, #tpu.memory_space<vmem>>)
      %c1_i32_245 = arith.constant 1 : i32
      %c2_i32_246 = arith.constant 2 : i32
      %c0_i32_247 = arith.constant 0 : i32
      %1245 = tpu.memref_slice %arg4[%arg0, %1239, %c0_i32_247] : memref<2x8x128xbf16, #tpu.memory_space<any>> -> memref<1x8x128xbf16, #tpu.memory_space<any>>
      %1246 = tpu.memref_squeeze %1245 : memref<1x8x128xbf16, #tpu.memory_space<any>> -> memref<8x128xbf16, #tpu.memory_space<any>>
      %c16_i32_248 = arith.constant 16 : i32
      %c128_i32_249 = arith.constant 128 : i32
      %1247 = tpu.memref_slice %arg10[%c16_i32_248, %c128_i32_249] : memref<24x384xbf16, #tpu.memory_space<vmem>> -> memref<8x128xbf16, #tpu.memory_space<vmem>>
      %1248 = tpu.memref_slice %arg11[%c1_i32_245, %c2_i32_246] : memref<2x3x!tpu.dma_semaphore, #tpu.memory_space<semaphore_mem>> -> memref<1x1x!tpu.dma_semaphore, #tpu.memory_space<semaphore_mem>>
      %1249 = tpu.memref_squeeze %1248 : memref<1x1x!tpu.dma_semaphore, #tpu.memory_space<semaphore_mem>> -> memref<!tpu.dma_semaphore, #tpu.memory_space<semaphore_mem>>
      tpu.wait_dma2 semaphore(%1249 : memref<!tpu.dma_semaphore, #tpu.memory_space<semaphore_mem>>) src(%1246 : memref<8x128xbf16, #tpu.memory_space<any>>) dst(%1247 : memref<8x128xbf16, #tpu.memory_space<vmem>>)
    } else {
    }
    %c0_37 = arith.constant 0 : index
    %c0_38 = arith.constant 0 : index
    %c0_39 = arith.constant 0 : index
    %46 = vector.load %arg2[%c0_37, %c0_38, %c0_39] : memref<1x8x128xbf16, #tpu.memory_space<vmem>>, vector<1x8x128xbf16>
    %47 = vector.shape_cast %46 : vector<1x8x128xbf16> to vector<8x128xbf16>
    %48 = arith.extf %47 : vector<8x128xbf16> to vector<8x128xf32>
    %cst_40 = arith.constant 0xFF800000 : f32
    %49 = vector.broadcast %cst_40 : f32 to vector<8x128xf32>
    %c5 = arith.constant 5 : index
    %c0_41 = arith.constant 0 : index
    %50 = vector.load %arg9[%c5, %c0_41] : memref<24x384xbf16, #tpu.memory_space<vmem>>, vector<8x384xbf16>
    %51 = arith.extf %50 : vector<8x384xbf16> to vector<8x384xf32>
    %c0_42 = arith.constant 0 : index
    %c0_43 = arith.constant 0 : index
    %52 = vector.load %arg5[%c0_42, %c0_43] : memref<49x128xbf16, #tpu.memory_space<vmem>>, vector<1x128xbf16>
    %53 = vector.shape_cast %52 : vector<1x128xbf16> to vector<128xbf16>
    %54 = arith.extf %53 : vector<128xbf16> to vector<128xf32>
    %55 = vector.extract_strided_slice %51 {offsets = [0, 80], sizes = [8, 128], strides = [1, 1]} : vector<8x384xf32> to vector<8x128xf32>
    %56 = vector.shape_cast %54 : vector<128xf32> to vector<1x128xf32>
    %57 = vector.broadcast %56 : vector<1x128xf32> to vector<8x128xf32>
    %58 = arith.addf %55, %57 : vector<8x128xf32>
    %59 = arith.mulf %48, %58 : vector<8x128xf32>
    %60 = arith.maximumf %49, %59 : vector<8x128xf32>
    %c1 = arith.constant 1 : index
    %c0_44 = arith.constant 0 : index
    %61 = vector.load %arg5[%c1, %c0_44] : memref<49x128xbf16, #tpu.memory_space<vmem>>, vector<1x128xbf16>
    %62 = vector.shape_cast %61 : vector<1x128xbf16> to vector<128xbf16>
    %63 = arith.extf %62 : vector<128xbf16> to vector<128xf32>
    %64 = vector.extract_strided_slice %51 {offsets = [0, 96], sizes = [8, 128], strides = [1, 1]} : vector<8x384xf32> to vector<8x128xf32>
    %65 = vector.shape_cast %63 : vector<128xf32> to vector<1x128xf32>
    %66 = vector.broadcast %65 : vector<1x128xf32> to vector<8x128xf32>
    %67 = arith.addf %64, %66 : vector<8x128xf32>
    %68 = arith.mulf %48, %67 : vector<8x128xf32>
    %69 = arith.maximumf %60, %68 : vector<8x128xf32>
    %c2 = arith.constant 2 : index
    %c0_45 = arith.constant 0 : index
    %70 = vector.load %arg5[%c2, %c0_45] : memref<49x128xbf16, #tpu.memory_space<vmem>>, vector<1x128xbf16>
    %71 = vector.shape_cast %70 : vector<1x128xbf16> to vector<128xbf16>
    %72 = arith.extf %71 : vector<128xbf16> to vector<128xf32>
    %73 = vector.extract_strided_slice %51 {offsets = [0, 112], sizes = [8, 128], strides = [1, 1]} : vector<8x384xf32> to vector<8x128xf32>
    %74 = vector.shape_cast %72 : vector<128xf32> to vector<1x128xf32>
    %75 = vector.broadcast %74 : vector<1x128xf32> to vector<8x128xf32>
    %76 = arith.addf %73, %75 : vector<8x128xf32>
    %77 = arith.mulf %48, %76 : vector<8x128xf32>
    %78 = arith.maximumf %69, %77 : vector<8x128xf32>
    %c3 = arith.constant 3 : index
    %c0_46 = arith.constant 0 : index
    %79 = vector.load %arg5[%c3, %c0_46] : memref<49x128xbf16, #tpu.memory_space<vmem>>, vector<1x128xbf16>
    %80 = vector.shape_cast %79 : vector<1x128xbf16> to vector<128xbf16>
    %81 = arith.extf %80 : vector<128xbf16> to vector<128xf32>
    %82 = vector.extract_strided_slice %51 {offsets = [0, 128], sizes = [8, 128], strides = [1, 1]} : vector<8x384xf32> to vector<8x128xf32>
    %83 = vector.shape_cast %81 : vector<128xf32> to vector<1x128xf32>
    %84 = vector.broadcast %83 : vector<1x128xf32> to vector<8x128xf32>
    %85 = arith.addf %82, %84 : vector<8x128xf32>
    %86 = arith.mulf %48, %85 : vector<8x128xf32>
    %87 = arith.maximumf %78, %86 : vector<8x128xf32>
    %c4 = arith.constant 4 : index
    %c0_47 = arith.constant 0 : index
    %88 = vector.load %arg5[%c4, %c0_47] : memref<49x128xbf16, #tpu.memory_space<vmem>>, vector<1x128xbf16>
    %89 = vector.shape_cast %88 : vector<1x128xbf16> to vector<128xbf16>
    %90 = arith.extf %89 : vector<128xbf16> to vector<128xf32>
    %91 = vector.extract_strided_slice %51 {offsets = [0, 144], sizes = [8, 128], strides = [1, 1]} : vector<8x384xf32> to vector<8x128xf32>
    %92 = vector.shape_cast %90 : vector<128xf32> to vector<1x128xf32>
    %93 = vector.broadcast %92 : vector<1x128xf32> to vector<8x128xf32>
    %94 = arith.addf %91, %93 : vector<8x128xf32>
    %95 = arith.mulf %48, %94 : vector<8x128xf32>
    %96 = arith.maximumf %87, %95 : vector<8x128xf32>
    %c5_48 = arith.constant 5 : index
    %c0_49 = arith.constant 0 : index
    %97 = vector.load %arg5[%c5_48, %c0_49] : memref<49x128xbf16, #tpu.memory_space<vmem>>, vector<1x128xbf16>
    %98 = vector.shape_cast %97 : vector<1x128xbf16> to vector<128xbf16>
    %99 = arith.extf %98 : vector<128xbf16> to vector<128xf32>
    %100 = vector.extract_strided_slice %51 {offsets = [0, 160], sizes = [8, 128], strides = [1, 1]} : vector<8x384xf32> to vector<8x128xf32>
    %101 = vector.shape_cast %99 : vector<128xf32> to vector<1x128xf32>
    %102 = vector.broadcast %101 : vector<1x128xf32> to vector<8x128xf32>
    %103 = arith.addf %100, %102 : vector<8x128xf32>
    %104 = arith.mulf %48, %103 : vector<8x128xf32>
    %105 = arith.maximumf %96, %104 : vector<8x128xf32>
    %c6 = arith.constant 6 : index
    %c0_50 = arith.constant 0 : index
    %106 = vector.load %arg5[%c6, %c0_50] : memref<49x128xbf16, #tpu.memory_space<vmem>>, vector<1x128xbf16>
    %107 = vector.shape_cast %106 : vector<1x128xbf16> to vector<128xbf16>
    %108 = arith.extf %107 : vector<128xbf16> to vector<128xf32>
    %109 = vector.extract_strided_slice %51 {offsets = [0, 176], sizes = [8, 128], strides = [1, 1]} : vector<8x384xf32> to vector<8x128xf32>
    %110 = vector.shape_cast %108 : vector<128xf32> to vector<1x128xf32>
    %111 = vector.broadcast %110 : vector<1x128xf32> to vector<8x128xf32>
    %112 = arith.addf %109, %111 : vector<8x128xf32>
    %113 = arith.mulf %48, %112 : vector<8x128xf32>
    %114 = arith.maximumf %105, %113 : vector<8x128xf32>
    %c6_51 = arith.constant 6 : index
    %c0_52 = arith.constant 0 : index
    %115 = vector.load %arg9[%c6_51, %c0_52] : memref<24x384xbf16, #tpu.memory_space<vmem>>, vector<8x384xbf16>
    %116 = arith.extf %115 : vector<8x384xbf16> to vector<8x384xf32>
    %c7 = arith.constant 7 : index
    %c0_53 = arith.constant 0 : index
    %117 = vector.load %arg5[%c7, %c0_53] : memref<49x128xbf16, #tpu.memory_space<vmem>>, vector<1x128xbf16>
    %118 = vector.shape_cast %117 : vector<1x128xbf16> to vector<128xbf16>
    %119 = arith.extf %118 : vector<128xbf16> to vector<128xf32>
    %120 = vector.extract_strided_slice %116 {offsets = [0, 80], sizes = [8, 128], strides = [1, 1]} : vector<8x384xf32> to vector<8x128xf32>
    %121 = vector.shape_cast %119 : vector<128xf32> to vector<1x128xf32>
    %122 = vector.broadcast %121 : vector<1x128xf32> to vector<8x128xf32>
    %123 = arith.addf %120, %122 : vector<8x128xf32>
    %124 = arith.mulf %48, %123 : vector<8x128xf32>
    %125 = arith.maximumf %114, %124 : vector<8x128xf32>
    %c8 = arith.constant 8 : index
    %c0_54 = arith.constant 0 : index
    %126 = vector.load %arg5[%c8, %c0_54] : memref<49x128xbf16, #tpu.memory_space<vmem>>, vector<1x128xbf16>
    %127 = vector.shape_cast %126 : vector<1x128xbf16> to vector<128xbf16>
    %128 = arith.extf %127 : vector<128xbf16> to vector<128xf32>
    %129 = vector.extract_strided_slice %116 {offsets = [0, 96], sizes = [8, 128], strides = [1, 1]} : vector<8x384xf32> to vector<8x128xf32>
    %130 = vector.shape_cast %128 : vector<128xf32> to vector<1x128xf32>
    %131 = vector.broadcast %130 : vector<1x128xf32> to vector<8x128xf32>
    %132 = arith.addf %129, %131 : vector<8x128xf32>
    %133 = arith.mulf %48, %132 : vector<8x128xf32>
    %134 = arith.maximumf %125, %133 : vector<8x128xf32>
    %c9 = arith.constant 9 : index
    %c0_55 = arith.constant 0 : index
    %135 = vector.load %arg5[%c9, %c0_55] : memref<49x128xbf16, #tpu.memory_space<vmem>>, vector<1x128xbf16>
    %136 = vector.shape_cast %135 : vector<1x128xbf16> to vector<128xbf16>
    %137 = arith.extf %136 : vector<128xbf16> to vector<128xf32>
    %138 = vector.extract_strided_slice %116 {offsets = [0, 112], sizes = [8, 128], strides = [1, 1]} : vector<8x384xf32> to vector<8x128xf32>
    %139 = vector.shape_cast %137 : vector<128xf32> to vector<1x128xf32>
    %140 = vector.broadcast %139 : vector<1x128xf32> to vector<8x128xf32>
    %141 = arith.addf %138, %140 : vector<8x128xf32>
    %142 = arith.mulf %48, %141 : vector<8x128xf32>
    %143 = arith.maximumf %134, %142 : vector<8x128xf32>
    %c10 = arith.constant 10 : index
    %c0_56 = arith.constant 0 : index
    %144 = vector.load %arg5[%c10, %c0_56] : memref<49x128xbf16, #tpu.memory_space<vmem>>, vector<1x128xbf16>
    %145 = vector.shape_cast %144 : vector<1x128xbf16> to vector<128xbf16>
    %146 = arith.extf %145 : vector<128xbf16> to vector<128xf32>
    %147 = vector.extract_strided_slice %116 {offsets = [0, 128], sizes = [8, 128], strides = [1, 1]} : vector<8x384xf32> to vector<8x128xf32>
    %148 = vector.shape_cast %146 : vector<128xf32> to vector<1x128xf32>
    %149 = vector.broadcast %148 : vector<1x128xf32> to vector<8x128xf32>
    %150 = arith.addf %147, %149 : vector<8x128xf32>
    %151 = arith.mulf %48, %150 : vector<8x128xf32>
    %152 = arith.maximumf %143, %151 : vector<8x128xf32>
    %c11 = arith.constant 11 : index
    %c0_57 = arith.constant 0 : index
    %153 = vector.load %arg5[%c11, %c0_57] : memref<49x128xbf16, #tpu.memory_space<vmem>>, vector<1x128xbf16>
    %154 = vector.shape_cast %153 : vector<1x128xbf16> to vector<128xbf16>
    %155 = arith.extf %154 : vector<128xbf16> to vector<128xf32>
    %156 = vector.extract_strided_slice %116 {offsets = [0, 144], sizes = [8, 128], strides = [1, 1]} : vector<8x384xf32> to vector<8x128xf32>
    %157 = vector.shape_cast %155 : vector<128xf32> to vector<1x128xf32>
    %158 = vector.broadcast %157 : vector<1x128xf32> to vector<8x128xf32>
    %159 = arith.addf %156, %158 : vector<8x128xf32>
    %160 = arith.mulf %48, %159 : vector<8x128xf32>
    %161 = arith.maximumf %152, %160 : vector<8x128xf32>
    %c12 = arith.constant 12 : index
    %c0_58 = arith.constant 0 : index
    %162 = vector.load %arg5[%c12, %c0_58] : memref<49x128xbf16, #tpu.memory_space<vmem>>, vector<1x128xbf16>
    %163 = vector.shape_cast %162 : vector<1x128xbf16> to vector<128xbf16>
    %164 = arith.extf %163 : vector<128xbf16> to vector<128xf32>
    %165 = vector.extract_strided_slice %116 {offsets = [0, 160], sizes = [8, 128], strides = [1, 1]} : vector<8x384xf32> to vector<8x128xf32>
    %166 = vector.shape_cast %164 : vector<128xf32> to vector<1x128xf32>
    %167 = vector.broadcast %166 : vector<1x128xf32> to vector<8x128xf32>
    %168 = arith.addf %165, %167 : vector<8x128xf32>
    %169 = arith.mulf %48, %168 : vector<8x128xf32>
    %170 = arith.maximumf %161, %169 : vector<8x128xf32>
    %c13 = arith.constant 13 : index
    %c0_59 = arith.constant 0 : index
    %171 = vector.load %arg5[%c13, %c0_59] : memref<49x128xbf16, #tpu.memory_space<vmem>>, vector<1x128xbf16>
    %172 = vector.shape_cast %171 : vector<1x128xbf16> to vector<128xbf16>
    %173 = arith.extf %172 : vector<128xbf16> to vector<128xf32>
    %174 = vector.extract_strided_slice %116 {offsets = [0, 176], sizes = [8, 128], strides = [1, 1]} : vector<8x384xf32> to vector<8x128xf32>
    %175 = vector.shape_cast %173 : vector<128xf32> to vector<1x128xf32>
    %176 = vector.broadcast %175 : vector<1x128xf32> to vector<8x128xf32>
    %177 = arith.addf %174, %176 : vector<8x128xf32>
    %178 = arith.mulf %48, %177 : vector<8x128xf32>
    %179 = arith.maximumf %170, %178 : vector<8x128xf32>
    %c7_60 = arith.constant 7 : index
    %c0_61 = arith.constant 0 : index
    %180 = vector.load %arg9[%c7_60, %c0_61] : memref<24x384xbf16, #tpu.memory_space<vmem>>, vector<8x384xbf16>
    %181 = arith.extf %180 : vector<8x384xbf16> to vector<8x384xf32>
    %c14 = arith.constant 14 : index
    %c0_62 = arith.constant 0 : index
    %182 = vector.load %arg5[%c14, %c0_62] : memref<49x128xbf16, #tpu.memory_space<vmem>>, vector<1x128xbf16>
    %183 = vector.shape_cast %182 : vector<1x128xbf16> to vector<128xbf16>
    %184 = arith.extf %183 : vector<128xbf16> to vector<128xf32>
    %185 = vector.extract_strided_slice %181 {offsets = [0, 80], sizes = [8, 128], strides = [1, 1]} : vector<8x384xf32> to vector<8x128xf32>
    %186 = vector.shape_cast %184 : vector<128xf32> to vector<1x128xf32>
    %187 = vector.broadcast %186 : vector<1x128xf32> to vector<8x128xf32>
    %188 = arith.addf %185, %187 : vector<8x128xf32>
    %189 = arith.mulf %48, %188 : vector<8x128xf32>
    %190 = arith.maximumf %179, %189 : vector<8x128xf32>
    %c15 = arith.constant 15 : index
    %c0_63 = arith.constant 0 : index
    %191 = vector.load %arg5[%c15, %c0_63] : memref<49x128xbf16, #tpu.memory_space<vmem>>, vector<1x128xbf16>
    %192 = vector.shape_cast %191 : vector<1x128xbf16> to vector<128xbf16>
    %193 = arith.extf %192 : vector<128xbf16> to vector<128xf32>
    %194 = vector.extract_strided_slice %181 {offsets = [0, 96], sizes = [8, 128], strides = [1, 1]} : vector<8x384xf32> to vector<8x128xf32>
    %195 = vector.shape_cast %193 : vector<128xf32> to vector<1x128xf32>
    %196 = vector.broadcast %195 : vector<1x128xf32> to vector<8x128xf32>
    %197 = arith.addf %194, %196 : vector<8x128xf32>
    %198 = arith.mulf %48, %197 : vector<8x128xf32>
    %199 = arith.maximumf %190, %198 : vector<8x128xf32>
    %c16 = arith.constant 16 : index
    %c0_64 = arith.constant 0 : index
    %200 = vector.load %arg5[%c16, %c0_64] : memref<49x128xbf16, #tpu.memory_space<vmem>>, vector<1x128xbf16>
    %201 = vector.shape_cast %200 : vector<1x128xbf16> to vector<128xbf16>
    %202 = arith.extf %201 : vector<128xbf16> to vector<128xf32>
    %203 = vector.extract_strided_slice %181 {offsets = [0, 112], sizes = [8, 128], strides = [1, 1]} : vector<8x384xf32> to vector<8x128xf32>
    %204 = vector.shape_cast %202 : vector<128xf32> to vector<1x128xf32>
    %205 = vector.broadcast %204 : vector<1x128xf32> to vector<8x128xf32>
    %206 = arith.addf %203, %205 : vector<8x128xf32>
    %207 = arith.mulf %48, %206 : vector<8x128xf32>
    %208 = arith.maximumf %199, %207 : vector<8x128xf32>
    %c17 = arith.constant 17 : index
    %c0_65 = arith.constant 0 : index
    %209 = vector.load %arg5[%c17, %c0_65] : memref<49x128xbf16, #tpu.memory_space<vmem>>, vector<1x128xbf16>
    %210 = vector.shape_cast %209 : vector<1x128xbf16> to vector<128xbf16>
    %211 = arith.extf %210 : vector<128xbf16> to vector<128xf32>
    %212 = vector.extract_strided_slice %181 {offsets = [0, 128], sizes = [8, 128], strides = [1, 1]} : vector<8x384xf32> to vector<8x128xf32>
    %213 = vector.shape_cast %211 : vector<128xf32> to vector<1x128xf32>
    %214 = vector.broadcast %213 : vector<1x128xf32> to vector<8x128xf32>
    %215 = arith.addf %212, %214 : vector<8x128xf32>
    %216 = arith.mulf %48, %215 : vector<8x128xf32>
    %217 = arith.maximumf %208, %216 : vector<8x128xf32>
    %c18 = arith.constant 18 : index
    %c0_66 = arith.constant 0 : index
    %218 = vector.load %arg5[%c18, %c0_66] : memref<49x128xbf16, #tpu.memory_space<vmem>>, vector<1x128xbf16>
    %219 = vector.shape_cast %218 : vector<1x128xbf16> to vector<128xbf16>
    %220 = arith.extf %219 : vector<128xbf16> to vector<128xf32>
    %221 = vector.extract_strided_slice %181 {offsets = [0, 144], sizes = [8, 128], strides = [1, 1]} : vector<8x384xf32> to vector<8x128xf32>
    %222 = vector.shape_cast %220 : vector<128xf32> to vector<1x128xf32>
    %223 = vector.broadcast %222 : vector<1x128xf32> to vector<8x128xf32>
    %224 = arith.addf %221, %223 : vector<8x128xf32>
    %225 = arith.mulf %48, %224 : vector<8x128xf32>
    %226 = arith.maximumf %217, %225 : vector<8x128xf32>
    %c19 = arith.constant 19 : index
    %c0_67 = arith.constant 0 : index
    %227 = vector.load %arg5[%c19, %c0_67] : memref<49x128xbf16, #tpu.memory_space<vmem>>, vector<1x128xbf16>
    %228 = vector.shape_cast %227 : vector<1x128xbf16> to vector<128xbf16>
    %229 = arith.extf %228 : vector<128xbf16> to vector<128xf32>
    %230 = vector.extract_strided_slice %181 {offsets = [0, 160], sizes = [8, 128], strides = [1, 1]} : vector<8x384xf32> to vector<8x128xf32>
    %231 = vector.shape_cast %229 : vector<128xf32> to vector<1x128xf32>
    %232 = vector.broadcast %231 : vector<1x128xf32> to vector<8x128xf32>
    %233 = arith.addf %230, %232 : vector<8x128xf32>
    %234 = arith.mulf %48, %233 : vector<8x128xf32>
    %235 = arith.maximumf %226, %234 : vector<8x128xf32>
    %c20 = arith.constant 20 : index
    %c0_68 = arith.constant 0 : index
    %236 = vector.load %arg5[%c20, %c0_68] : memref<49x128xbf16, #tpu.memory_space<vmem>>, vector<1x128xbf16>
    %237 = vector.shape_cast %236 : vector<1x128xbf16> to vector<128xbf16>
    %238 = arith.extf %237 : vector<128xbf16> to vector<128xf32>
    %239 = vector.extract_strided_slice %181 {offsets = [0, 176], sizes = [8, 128], strides = [1, 1]} : vector<8x384xf32> to vector<8x128xf32>
    %240 = vector.shape_cast %238 : vector<128xf32> to vector<1x128xf32>
    %241 = vector.broadcast %240 : vector<1x128xf32> to vector<8x128xf32>
    %242 = arith.addf %239, %241 : vector<8x128xf32>
    %243 = arith.mulf %48, %242 : vector<8x128xf32>
    %244 = arith.maximumf %235, %243 : vector<8x128xf32>
    %c8_69 = arith.constant 8 : index
    %c0_70 = arith.constant 0 : index
    %245 = vector.load %arg9[%c8_69, %c0_70] : memref<24x384xbf16, #tpu.memory_space<vmem>>, vector<8x384xbf16>
    %246 = arith.extf %245 : vector<8x384xbf16> to vector<8x384xf32>
    %c21 = arith.constant 21 : index
    %c0_71 = arith.constant 0 : index
    %247 = vector.load %arg5[%c21, %c0_71] : memref<49x128xbf16, #tpu.memory_space<vmem>>, vector<1x128xbf16>
    %248 = vector.shape_cast %247 : vector<1x128xbf16> to vector<128xbf16>
    %249 = arith.extf %248 : vector<128xbf16> to vector<128xf32>
    %250 = vector.extract_strided_slice %246 {offsets = [0, 80], sizes = [8, 128], strides = [1, 1]} : vector<8x384xf32> to vector<8x128xf32>
    %251 = vector.shape_cast %249 : vector<128xf32> to vector<1x128xf32>
    %252 = vector.broadcast %251 : vector<1x128xf32> to vector<8x128xf32>
    %253 = arith.addf %250, %252 : vector<8x128xf32>
    %254 = arith.mulf %48, %253 : vector<8x128xf32>
    %255 = arith.maximumf %244, %254 : vector<8x128xf32>
    %c22 = arith.constant 22 : index
    %c0_72 = arith.constant 0 : index
    %256 = vector.load %arg5[%c22, %c0_72] : memref<49x128xbf16, #tpu.memory_space<vmem>>, vector<1x128xbf16>
    %257 = vector.shape_cast %256 : vector<1x128xbf16> to vector<128xbf16>
    %258 = arith.extf %257 : vector<128xbf16> to vector<128xf32>
    %259 = vector.extract_strided_slice %246 {offsets = [0, 96], sizes = [8, 128], strides = [1, 1]} : vector<8x384xf32> to vector<8x128xf32>
    %260 = vector.shape_cast %258 : vector<128xf32> to vector<1x128xf32>
    %261 = vector.broadcast %260 : vector<1x128xf32> to vector<8x128xf32>
    %262 = arith.addf %259, %261 : vector<8x128xf32>
    %263 = arith.mulf %48, %262 : vector<8x128xf32>
    %264 = arith.maximumf %255, %263 : vector<8x128xf32>
    %c23 = arith.constant 23 : index
    %c0_73 = arith.constant 0 : index
    %265 = vector.load %arg5[%c23, %c0_73] : memref<49x128xbf16, #tpu.memory_space<vmem>>, vector<1x128xbf16>
    %266 = vector.shape_cast %265 : vector<1x128xbf16> to vector<128xbf16>
    %267 = arith.extf %266 : vector<128xbf16> to vector<128xf32>
    %268 = vector.extract_strided_slice %246 {offsets = [0, 112], sizes = [8, 128], strides = [1, 1]} : vector<8x384xf32> to vector<8x128xf32>
    %269 = vector.shape_cast %267 : vector<128xf32> to vector<1x128xf32>
    %270 = vector.broadcast %269 : vector<1x128xf32> to vector<8x128xf32>
    %271 = arith.addf %268, %270 : vector<8x128xf32>
    %272 = arith.mulf %48, %271 : vector<8x128xf32>
    %273 = arith.maximumf %264, %272 : vector<8x128xf32>
    %c24 = arith.constant 24 : index
    %c0_74 = arith.constant 0 : index
    %274 = vector.load %arg5[%c24, %c0_74] : memref<49x128xbf16, #tpu.memory_space<vmem>>, vector<1x128xbf16>
    %275 = vector.shape_cast %274 : vector<1x128xbf16> to vector<128xbf16>
    %276 = arith.extf %275 : vector<128xbf16> to vector<128xf32>
    %277 = vector.extract_strided_slice %246 {offsets = [0, 128], sizes = [8, 128], strides = [1, 1]} : vector<8x384xf32> to vector<8x128xf32>
    %278 = vector.shape_cast %276 : vector<128xf32> to vector<1x128xf32>
    %279 = vector.broadcast %278 : vector<1x128xf32> to vector<8x128xf32>
    %280 = arith.addf %277, %279 : vector<8x128xf32>
    %281 = arith.mulf %48, %280 : vector<8x128xf32>
    %282 = arith.maximumf %273, %281 : vector<8x128xf32>
    %c25 = arith.constant 25 : index
    %c0_75 = arith.constant 0 : index
    %283 = vector.load %arg5[%c25, %c0_75] : memref<49x128xbf16, #tpu.memory_space<vmem>>, vector<1x128xbf16>
    %284 = vector.shape_cast %283 : vector<1x128xbf16> to vector<128xbf16>
    %285 = arith.extf %284 : vector<128xbf16> to vector<128xf32>
    %286 = vector.extract_strided_slice %246 {offsets = [0, 144], sizes = [8, 128], strides = [1, 1]} : vector<8x384xf32> to vector<8x128xf32>
    %287 = vector.shape_cast %285 : vector<128xf32> to vector<1x128xf32>
    %288 = vector.broadcast %287 : vector<1x128xf32> to vector<8x128xf32>
    %289 = arith.addf %286, %288 : vector<8x128xf32>
    %290 = arith.mulf %48, %289 : vector<8x128xf32>
    %291 = arith.maximumf %282, %290 : vector<8x128xf32>
    %c26 = arith.constant 26 : index
    %c0_76 = arith.constant 0 : index
    %292 = vector.load %arg5[%c26, %c0_76] : memref<49x128xbf16, #tpu.memory_space<vmem>>, vector<1x128xbf16>
    %293 = vector.shape_cast %292 : vector<1x128xbf16> to vector<128xbf16>
    %294 = arith.extf %293 : vector<128xbf16> to vector<128xf32>
    %295 = vector.extract_strided_slice %246 {offsets = [0, 160], sizes = [8, 128], strides = [1, 1]} : vector<8x384xf32> to vector<8x128xf32>
    %296 = vector.shape_cast %294 : vector<128xf32> to vector<1x128xf32>
    %297 = vector.broadcast %296 : vector<1x128xf32> to vector<8x128xf32>
    %298 = arith.addf %295, %297 : vector<8x128xf32>
    %299 = arith.mulf %48, %298 : vector<8x128xf32>
    %300 = arith.maximumf %291, %299 : vector<8x128xf32>
    %c27 = arith.constant 27 : index
    %c0_77 = arith.constant 0 : index
    %301 = vector.load %arg5[%c27, %c0_77] : memref<49x128xbf16, #tpu.memory_space<vmem>>, vector<1x128xbf16>
    %302 = vector.shape_cast %301 : vector<1x128xbf16> to vector<128xbf16>
    %303 = arith.extf %302 : vector<128xbf16> to vector<128xf32>
    %304 = vector.extract_strided_slice %246 {offsets = [0, 176], sizes = [8, 128], strides = [1, 1]} : vector<8x384xf32> to vector<8x128xf32>
    %305 = vector.shape_cast %303 : vector<128xf32> to vector<1x128xf32>
    %306 = vector.broadcast %305 : vector<1x128xf32> to vector<8x128xf32>
    %307 = arith.addf %304, %306 : vector<8x128xf32>
    %308 = arith.mulf %48, %307 : vector<8x128xf32>
    %309 = arith.maximumf %300, %308 : vector<8x128xf32>
    %c9_78 = arith.constant 9 : index
    %c0_79 = arith.constant 0 : index
    %310 = vector.load %arg9[%c9_78, %c0_79] : memref<24x384xbf16, #tpu.memory_space<vmem>>, vector<8x384xbf16>
    %311 = arith.extf %310 : vector<8x384xbf16> to vector<8x384xf32>
    %c28 = arith.constant 28 : index
    %c0_80 = arith.constant 0 : index
    %312 = vector.load %arg5[%c28, %c0_80] : memref<49x128xbf16, #tpu.memory_space<vmem>>, vector<1x128xbf16>
    %313 = vector.shape_cast %312 : vector<1x128xbf16> to vector<128xbf16>
    %314 = arith.extf %313 : vector<128xbf16> to vector<128xf32>
    %315 = vector.extract_strided_slice %311 {offsets = [0, 80], sizes = [8, 128], strides = [1, 1]} : vector<8x384xf32> to vector<8x128xf32>
    %316 = vector.shape_cast %314 : vector<128xf32> to vector<1x128xf32>
    %317 = vector.broadcast %316 : vector<1x128xf32> to vector<8x128xf32>
    %318 = arith.addf %315, %317 : vector<8x128xf32>
    %319 = arith.mulf %48, %318 : vector<8x128xf32>
    %320 = arith.maximumf %309, %319 : vector<8x128xf32>
    %c29 = arith.constant 29 : index
    %c0_81 = arith.constant 0 : index
    %321 = vector.load %arg5[%c29, %c0_81] : memref<49x128xbf16, #tpu.memory_space<vmem>>, vector<1x128xbf16>
    %322 = vector.shape_cast %321 : vector<1x128xbf16> to vector<128xbf16>
    %323 = arith.extf %322 : vector<128xbf16> to vector<128xf32>
    %324 = vector.extract_strided_slice %311 {offsets = [0, 96], sizes = [8, 128], strides = [1, 1]} : vector<8x384xf32> to vector<8x128xf32>
    %325 = vector.shape_cast %323 : vector<128xf32> to vector<1x128xf32>
    %326 = vector.broadcast %325 : vector<1x128xf32> to vector<8x128xf32>
    %327 = arith.addf %324, %326 : vector<8x128xf32>
    %328 = arith.mulf %48, %327 : vector<8x128xf32>
    %329 = arith.maximumf %320, %328 : vector<8x128xf32>
    %c30 = arith.constant 30 : index
    %c0_82 = arith.constant 0 : index
    %330 = vector.load %arg5[%c30, %c0_82] : memref<49x128xbf16, #tpu.memory_space<vmem>>, vector<1x128xbf16>
    %331 = vector.shape_cast %330 : vector<1x128xbf16> to vector<128xbf16>
    %332 = arith.extf %331 : vector<128xbf16> to vector<128xf32>
    %333 = vector.extract_strided_slice %311 {offsets = [0, 112], sizes = [8, 128], strides = [1, 1]} : vector<8x384xf32> to vector<8x128xf32>
    %334 = vector.shape_cast %332 : vector<128xf32> to vector<1x128xf32>
    %335 = vector.broadcast %334 : vector<1x128xf32> to vector<8x128xf32>
    %336 = arith.addf %333, %335 : vector<8x128xf32>
    %337 = arith.mulf %48, %336 : vector<8x128xf32>
    %338 = arith.maximumf %329, %337 : vector<8x128xf32>
    %c31 = arith.constant 31 : index
    %c0_83 = arith.constant 0 : index
    %339 = vector.load %arg5[%c31, %c0_83] : memref<49x128xbf16, #tpu.memory_space<vmem>>, vector<1x128xbf16>
    %340 = vector.shape_cast %339 : vector<1x128xbf16> to vector<128xbf16>
    %341 = arith.extf %340 : vector<128xbf16> to vector<128xf32>
    %342 = vector.extract_strided_slice %311 {offsets = [0, 128], sizes = [8, 128], strides = [1, 1]} : vector<8x384xf32> to vector<8x128xf32>
    %343 = vector.shape_cast %341 : vector<128xf32> to vector<1x128xf32>
    %344 = vector.broadcast %343 : vector<1x128xf32> to vector<8x128xf32>
    %345 = arith.addf %342, %344 : vector<8x128xf32>
    %346 = arith.mulf %48, %345 : vector<8x128xf32>
    %347 = arith.maximumf %338, %346 : vector<8x128xf32>
    %c32 = arith.constant 32 : index
    %c0_84 = arith.constant 0 : index
    %348 = vector.load %arg5[%c32, %c0_84] : memref<49x128xbf16, #tpu.memory_space<vmem>>, vector<1x128xbf16>
    %349 = vector.shape_cast %348 : vector<1x128xbf16> to vector<128xbf16>
    %350 = arith.extf %349 : vector<128xbf16> to vector<128xf32>
    %351 = vector.extract_strided_slice %311 {offsets = [0, 144], sizes = [8, 128], strides = [1, 1]} : vector<8x384xf32> to vector<8x128xf32>
    %352 = vector.shape_cast %350 : vector<128xf32> to vector<1x128xf32>
    %353 = vector.broadcast %352 : vector<1x128xf32> to vector<8x128xf32>
    %354 = arith.addf %351, %353 : vector<8x128xf32>
    %355 = arith.mulf %48, %354 : vector<8x128xf32>
    %356 = arith.maximumf %347, %355 : vector<8x128xf32>
    %c33 = arith.constant 33 : index
    %c0_85 = arith.constant 0 : index
    %357 = vector.load %arg5[%c33, %c0_85] : memref<49x128xbf16, #tpu.memory_space<vmem>>, vector<1x128xbf16>
    %358 = vector.shape_cast %357 : vector<1x128xbf16> to vector<128xbf16>
    %359 = arith.extf %358 : vector<128xbf16> to vector<128xf32>
    %360 = vector.extract_strided_slice %311 {offsets = [0, 160], sizes = [8, 128], strides = [1, 1]} : vector<8x384xf32> to vector<8x128xf32>
    %361 = vector.shape_cast %359 : vector<128xf32> to vector<1x128xf32>
    %362 = vector.broadcast %361 : vector<1x128xf32> to vector<8x128xf32>
    %363 = arith.addf %360, %362 : vector<8x128xf32>
    %364 = arith.mulf %48, %363 : vector<8x128xf32>
    %365 = arith.maximumf %356, %364 : vector<8x128xf32>
    %c34 = arith.constant 34 : index
    %c0_86 = arith.constant 0 : index
    %366 = vector.load %arg5[%c34, %c0_86] : memref<49x128xbf16, #tpu.memory_space<vmem>>, vector<1x128xbf16>
    %367 = vector.shape_cast %366 : vector<1x128xbf16> to vector<128xbf16>
    %368 = arith.extf %367 : vector<128xbf16> to vector<128xf32>
    %369 = vector.extract_strided_slice %311 {offsets = [0, 176], sizes = [8, 128], strides = [1, 1]} : vector<8x384xf32> to vector<8x128xf32>
    %370 = vector.shape_cast %368 : vector<128xf32> to vector<1x128xf32>
    %371 = vector.broadcast %370 : vector<1x128xf32> to vector<8x128xf32>
    %372 = arith.addf %369, %371 : vector<8x128xf32>
    %373 = arith.mulf %48, %372 : vector<8x128xf32>
    %374 = arith.maximumf %365, %373 : vector<8x128xf32>
    %c10_87 = arith.constant 10 : index
    %c0_88 = arith.constant 0 : index
    %375 = vector.load %arg9[%c10_87, %c0_88] : memref<24x384xbf16, #tpu.memory_space<vmem>>, vector<8x384xbf16>
    %376 = arith.extf %375 : vector<8x384xbf16> to vector<8x384xf32>
    %c35 = arith.constant 35 : index
    %c0_89 = arith.constant 0 : index
    %377 = vector.load %arg5[%c35, %c0_89] : memref<49x128xbf16, #tpu.memory_space<vmem>>, vector<1x128xbf16>
    %378 = vector.shape_cast %377 : vector<1x128xbf16> to vector<128xbf16>
    %379 = arith.extf %378 : vector<128xbf16> to vector<128xf32>
    %380 = vector.extract_strided_slice %376 {offsets = [0, 80], sizes = [8, 128], strides = [1, 1]} : vector<8x384xf32> to vector<8x128xf32>
    %381 = vector.shape_cast %379 : vector<128xf32> to vector<1x128xf32>
    %382 = vector.broadcast %381 : vector<1x128xf32> to vector<8x128xf32>
    %383 = arith.addf %380, %382 : vector<8x128xf32>
    %384 = arith.mulf %48, %383 : vector<8x128xf32>
    %385 = arith.maximumf %374, %384 : vector<8x128xf32>
    %c36 = arith.constant 36 : index
    %c0_90 = arith.constant 0 : index
    %386 = vector.load %arg5[%c36, %c0_90] : memref<49x128xbf16, #tpu.memory_space<vmem>>, vector<1x128xbf16>
    %387 = vector.shape_cast %386 : vector<1x128xbf16> to vector<128xbf16>
    %388 = arith.extf %387 : vector<128xbf16> to vector<128xf32>
    %389 = vector.extract_strided_slice %376 {offsets = [0, 96], sizes = [8, 128], strides = [1, 1]} : vector<8x384xf32> to vector<8x128xf32>
    %390 = vector.shape_cast %388 : vector<128xf32> to vector<1x128xf32>
    %391 = vector.broadcast %390 : vector<1x128xf32> to vector<8x128xf32>
    %392 = arith.addf %389, %391 : vector<8x128xf32>
    %393 = arith.mulf %48, %392 : vector<8x128xf32>
    %394 = arith.maximumf %385, %393 : vector<8x128xf32>
    %c37 = arith.constant 37 : index
    %c0_91 = arith.constant 0 : index
    %395 = vector.load %arg5[%c37, %c0_91] : memref<49x128xbf16, #tpu.memory_space<vmem>>, vector<1x128xbf16>
    %396 = vector.shape_cast %395 : vector<1x128xbf16> to vector<128xbf16>
    %397 = arith.extf %396 : vector<128xbf16> to vector<128xf32>
    %398 = vector.extract_strided_slice %376 {offsets = [0, 112], sizes = [8, 128], strides = [1, 1]} : vector<8x384xf32> to vector<8x128xf32>
    %399 = vector.shape_cast %397 : vector<128xf32> to vector<1x128xf32>
    %400 = vector.broadcast %399 : vector<1x128xf32> to vector<8x128xf32>
    %401 = arith.addf %398, %400 : vector<8x128xf32>
    %402 = arith.mulf %48, %401 : vector<8x128xf32>
    %403 = arith.maximumf %394, %402 : vector<8x128xf32>
    %c38 = arith.constant 38 : index
    %c0_92 = arith.constant 0 : index
    %404 = vector.load %arg5[%c38, %c0_92] : memref<49x128xbf16, #tpu.memory_space<vmem>>, vector<1x128xbf16>
    %405 = vector.shape_cast %404 : vector<1x128xbf16> to vector<128xbf16>
    %406 = arith.extf %405 : vector<128xbf16> to vector<128xf32>
    %407 = vector.extract_strided_slice %376 {offsets = [0, 128], sizes = [8, 128], strides = [1, 1]} : vector<8x384xf32> to vector<8x128xf32>
    %408 = vector.shape_cast %406 : vector<128xf32> to vector<1x128xf32>
    %409 = vector.broadcast %408 : vector<1x128xf32> to vector<8x128xf32>
    %410 = arith.addf %407, %409 : vector<8x128xf32>
    %411 = arith.mulf %48, %410 : vector<8x128xf32>
    %412 = arith.maximumf %403, %411 : vector<8x128xf32>
    %c39 = arith.constant 39 : index
    %c0_93 = arith.constant 0 : index
    %413 = vector.load %arg5[%c39, %c0_93] : memref<49x128xbf16, #tpu.memory_space<vmem>>, vector<1x128xbf16>
    %414 = vector.shape_cast %413 : vector<1x128xbf16> to vector<128xbf16>
    %415 = arith.extf %414 : vector<128xbf16> to vector<128xf32>
    %416 = vector.extract_strided_slice %376 {offsets = [0, 144], sizes = [8, 128], strides = [1, 1]} : vector<8x384xf32> to vector<8x128xf32>
    %417 = vector.shape_cast %415 : vector<128xf32> to vector<1x128xf32>
    %418 = vector.broadcast %417 : vector<1x128xf32> to vector<8x128xf32>
    %419 = arith.addf %416, %418 : vector<8x128xf32>
    %420 = arith.mulf %48, %419 : vector<8x128xf32>
    %421 = arith.maximumf %412, %420 : vector<8x128xf32>
    %c40 = arith.constant 40 : index
    %c0_94 = arith.constant 0 : index
    %422 = vector.load %arg5[%c40, %c0_94] : memref<49x128xbf16, #tpu.memory_space<vmem>>, vector<1x128xbf16>
    %423 = vector.shape_cast %422 : vector<1x128xbf16> to vector<128xbf16>
    %424 = arith.extf %423 : vector<128xbf16> to vector<128xf32>
    %425 = vector.extract_strided_slice %376 {offsets = [0, 160], sizes = [8, 128], strides = [1, 1]} : vector<8x384xf32> to vector<8x128xf32>
    %426 = vector.shape_cast %424 : vector<128xf32> to vector<1x128xf32>
    %427 = vector.broadcast %426 : vector<1x128xf32> to vector<8x128xf32>
    %428 = arith.addf %425, %427 : vector<8x128xf32>
    %429 = arith.mulf %48, %428 : vector<8x128xf32>
    %430 = arith.maximumf %421, %429 : vector<8x128xf32>
    %c41 = arith.constant 41 : index
    %c0_95 = arith.constant 0 : index
    %431 = vector.load %arg5[%c41, %c0_95] : memref<49x128xbf16, #tpu.memory_space<vmem>>, vector<1x128xbf16>
    %432 = vector.shape_cast %431 : vector<1x128xbf16> to vector<128xbf16>
    %433 = arith.extf %432 : vector<128xbf16> to vector<128xf32>
    %434 = vector.extract_strided_slice %376 {offsets = [0, 176], sizes = [8, 128], strides = [1, 1]} : vector<8x384xf32> to vector<8x128xf32>
    %435 = vector.shape_cast %433 : vector<128xf32> to vector<1x128xf32>
    %436 = vector.broadcast %435 : vector<1x128xf32> to vector<8x128xf32>
    %437 = arith.addf %434, %436 : vector<8x128xf32>
    %438 = arith.mulf %48, %437 : vector<8x128xf32>
    %439 = arith.maximumf %430, %438 : vector<8x128xf32>
    %c11_96 = arith.constant 11 : index
    %c0_97 = arith.constant 0 : index
    %440 = vector.load %arg9[%c11_96, %c0_97] : memref<24x384xbf16, #tpu.memory_space<vmem>>, vector<8x384xbf16>
    %441 = arith.extf %440 : vector<8x384xbf16> to vector<8x384xf32>
    %c42 = arith.constant 42 : index
    %c0_98 = arith.constant 0 : index
    %442 = vector.load %arg5[%c42, %c0_98] : memref<49x128xbf16, #tpu.memory_space<vmem>>, vector<1x128xbf16>
    %443 = vector.shape_cast %442 : vector<1x128xbf16> to vector<128xbf16>
    %444 = arith.extf %443 : vector<128xbf16> to vector<128xf32>
    %445 = vector.extract_strided_slice %441 {offsets = [0, 80], sizes = [8, 128], strides = [1, 1]} : vector<8x384xf32> to vector<8x128xf32>
    %446 = vector.shape_cast %444 : vector<128xf32> to vector<1x128xf32>
    %447 = vector.broadcast %446 : vector<1x128xf32> to vector<8x128xf32>
    %448 = arith.addf %445, %447 : vector<8x128xf32>
    %449 = arith.mulf %48, %448 : vector<8x128xf32>
    %450 = arith.maximumf %439, %449 : vector<8x128xf32>
    %c43 = arith.constant 43 : index
    %c0_99 = arith.constant 0 : index
    %451 = vector.load %arg5[%c43, %c0_99] : memref<49x128xbf16, #tpu.memory_space<vmem>>, vector<1x128xbf16>
    %452 = vector.shape_cast %451 : vector<1x128xbf16> to vector<128xbf16>
    %453 = arith.extf %452 : vector<128xbf16> to vector<128xf32>
    %454 = vector.extract_strided_slice %441 {offsets = [0, 96], sizes = [8, 128], strides = [1, 1]} : vector<8x384xf32> to vector<8x128xf32>
    %455 = vector.shape_cast %453 : vector<128xf32> to vector<1x128xf32>
    %456 = vector.broadcast %455 : vector<1x128xf32> to vector<8x128xf32>
    %457 = arith.addf %454, %456 : vector<8x128xf32>
    %458 = arith.mulf %48, %457 : vector<8x128xf32>
    %459 = arith.maximumf %450, %458 : vector<8x128xf32>
    %c44 = arith.constant 44 : index
    %c0_100 = arith.constant 0 : index
    %460 = vector.load %arg5[%c44, %c0_100] : memref<49x128xbf16, #tpu.memory_space<vmem>>, vector<1x128xbf16>
    %461 = vector.shape_cast %460 : vector<1x128xbf16> to vector<128xbf16>
    %462 = arith.extf %461 : vector<128xbf16> to vector<128xf32>
    %463 = vector.extract_strided_slice %441 {offsets = [0, 112], sizes = [8, 128], strides = [1, 1]} : vector<8x384xf32> to vector<8x128xf32>
    %464 = vector.shape_cast %462 : vector<128xf32> to vector<1x128xf32>
    %465 = vector.broadcast %464 : vector<1x128xf32> to vector<8x128xf32>
    %466 = arith.addf %463, %465 : vector<8x128xf32>
    %467 = arith.mulf %48, %466 : vector<8x128xf32>
    %468 = arith.maximumf %459, %467 : vector<8x128xf32>
    %c45 = arith.constant 45 : index
    %c0_101 = arith.constant 0 : index
    %469 = vector.load %arg5[%c45, %c0_101] : memref<49x128xbf16, #tpu.memory_space<vmem>>, vector<1x128xbf16>
    %470 = vector.shape_cast %469 : vector<1x128xbf16> to vector<128xbf16>
    %471 = arith.extf %470 : vector<128xbf16> to vector<128xf32>
    %472 = vector.extract_strided_slice %441 {offsets = [0, 128], sizes = [8, 128], strides = [1, 1]} : vector<8x384xf32> to vector<8x128xf32>
    %473 = vector.shape_cast %471 : vector<128xf32> to vector<1x128xf32>
    %474 = vector.broadcast %473 : vector<1x128xf32> to vector<8x128xf32>
    %475 = arith.addf %472, %474 : vector<8x128xf32>
    %476 = arith.mulf %48, %475 : vector<8x128xf32>
    %477 = arith.maximumf %468, %476 : vector<8x128xf32>
    %c46 = arith.constant 46 : index
    %c0_102 = arith.constant 0 : index
    %478 = vector.load %arg5[%c46, %c0_102] : memref<49x128xbf16, #tpu.memory_space<vmem>>, vector<1x128xbf16>
    %479 = vector.shape_cast %478 : vector<1x128xbf16> to vector<128xbf16>
    %480 = arith.extf %479 : vector<128xbf16> to vector<128xf32>
    %481 = vector.extract_strided_slice %441 {offsets = [0, 144], sizes = [8, 128], strides = [1, 1]} : vector<8x384xf32> to vector<8x128xf32>
    %482 = vector.shape_cast %480 : vector<128xf32> to vector<1x128xf32>
    %483 = vector.broadcast %482 : vector<1x128xf32> to vector<8x128xf32>
    %484 = arith.addf %481, %483 : vector<8x128xf32>
    %485 = arith.mulf %48, %484 : vector<8x128xf32>
    %486 = arith.maximumf %477, %485 : vector<8x128xf32>
    %c47 = arith.constant 47 : index
    %c0_103 = arith.constant 0 : index
    %487 = vector.load %arg5[%c47, %c0_103] : memref<49x128xbf16, #tpu.memory_space<vmem>>, vector<1x128xbf16>
    %488 = vector.shape_cast %487 : vector<1x128xbf16> to vector<128xbf16>
    %489 = arith.extf %488 : vector<128xbf16> to vector<128xf32>
    %490 = vector.extract_strided_slice %441 {offsets = [0, 160], sizes = [8, 128], strides = [1, 1]} : vector<8x384xf32> to vector<8x128xf32>
    %491 = vector.shape_cast %489 : vector<128xf32> to vector<1x128xf32>
    %492 = vector.broadcast %491 : vector<1x128xf32> to vector<8x128xf32>
    %493 = arith.addf %490, %492 : vector<8x128xf32>
    %494 = arith.mulf %48, %493 : vector<8x128xf32>
    %495 = arith.maximumf %486, %494 : vector<8x128xf32>
    %c48 = arith.constant 48 : index
    %c0_104 = arith.constant 0 : index
    %496 = vector.load %arg5[%c48, %c0_104] : memref<49x128xbf16, #tpu.memory_space<vmem>>, vector<1x128xbf16>
    %497 = vector.shape_cast %496 : vector<1x128xbf16> to vector<128xbf16>
    %498 = arith.extf %497 : vector<128xbf16> to vector<128xf32>
    %499 = vector.extract_strided_slice %441 {offsets = [0, 176], sizes = [8, 128], strides = [1, 1]} : vector<8x384xf32> to vector<8x128xf32>
    %500 = vector.shape_cast %498 : vector<128xf32> to vector<1x128xf32>
    %501 = vector.broadcast %500 : vector<1x128xf32> to vector<8x128xf32>
    %502 = arith.addf %499, %501 : vector<8x128xf32>
    %503 = arith.mulf %48, %502 : vector<8x128xf32>
    %504 = arith.maximumf %495, %503 : vector<8x128xf32>
    %cst_105 = arith.constant 0.000000e+00 : f32
    %505 = vector.broadcast %cst_105 : f32 to vector<8x128xf32>
    %cst_106 = arith.constant 0.000000e+00 : f32
    %506 = vector.broadcast %cst_106 : f32 to vector<8x128xf32>
    %c5_107 = arith.constant 5 : index
    %c0_108 = arith.constant 0 : index
    %507 = vector.load %arg9[%c5_107, %c0_108] : memref<24x384xbf16, #tpu.memory_space<vmem>>, vector<8x384xbf16>
    %508 = arith.extf %507 : vector<8x384xbf16> to vector<8x384xf32>
    %c5_109 = arith.constant 5 : index
    %c0_110 = arith.constant 0 : index
    %509 = vector.load %arg10[%c5_109, %c0_110] : memref<24x384xbf16, #tpu.memory_space<vmem>>, vector<8x384xbf16>
    %510 = arith.extf %509 : vector<8x384xbf16> to vector<8x384xf32>
    %c0_111 = arith.constant 0 : index
    %c0_112 = arith.constant 0 : index
    %511 = vector.load %arg5[%c0_111, %c0_112] : memref<49x128xbf16, #tpu.memory_space<vmem>>, vector<1x128xbf16>
    %512 = vector.shape_cast %511 : vector<1x128xbf16> to vector<128xbf16>
    %513 = arith.extf %512 : vector<128xbf16> to vector<128xf32>
    %514 = vector.extract_strided_slice %508 {offsets = [0, 80], sizes = [8, 128], strides = [1, 1]} : vector<8x384xf32> to vector<8x128xf32>
    %515 = vector.shape_cast %513 : vector<128xf32> to vector<1x128xf32>
    %516 = vector.broadcast %515 : vector<1x128xf32> to vector<8x128xf32>
    %517 = arith.addf %514, %516 : vector<8x128xf32>
    %518 = arith.mulf %48, %517 : vector<8x128xf32>
    %519 = arith.subf %518, %504 : vector<8x128xf32>
    %520 = math.exp %519 : vector<8x128xf32>
    %521 = arith.addf %505, %520 : vector<8x128xf32>
    %522 = vector.extract_strided_slice %510 {offsets = [0, 80], sizes = [8, 128], strides = [1, 1]} : vector<8x384xf32> to vector<8x128xf32>
    %523 = arith.mulf %520, %522 : vector<8x128xf32>
    %524 = arith.addf %506, %523 : vector<8x128xf32>
    %c1_113 = arith.constant 1 : index
    %c0_114 = arith.constant 0 : index
    %525 = vector.load %arg5[%c1_113, %c0_114] : memref<49x128xbf16, #tpu.memory_space<vmem>>, vector<1x128xbf16>
    %526 = vector.shape_cast %525 : vector<1x128xbf16> to vector<128xbf16>
    %527 = arith.extf %526 : vector<128xbf16> to vector<128xf32>
    %528 = vector.extract_strided_slice %508 {offsets = [0, 96], sizes = [8, 128], strides = [1, 1]} : vector<8x384xf32> to vector<8x128xf32>
    %529 = vector.shape_cast %527 : vector<128xf32> to vector<1x128xf32>
    %530 = vector.broadcast %529 : vector<1x128xf32> to vector<8x128xf32>
    %531 = arith.addf %528, %530 : vector<8x128xf32>
    %532 = arith.mulf %48, %531 : vector<8x128xf32>
    %533 = arith.subf %532, %504 : vector<8x128xf32>
    %534 = math.exp %533 : vector<8x128xf32>
    %535 = arith.addf %521, %534 : vector<8x128xf32>
    %536 = vector.extract_strided_slice %510 {offsets = [0, 96], sizes = [8, 128], strides = [1, 1]} : vector<8x384xf32> to vector<8x128xf32>
    %537 = arith.mulf %534, %536 : vector<8x128xf32>
    %538 = arith.addf %524, %537 : vector<8x128xf32>
    %c2_115 = arith.constant 2 : index
    %c0_116 = arith.constant 0 : index
    %539 = vector.load %arg5[%c2_115, %c0_116] : memref<49x128xbf16, #tpu.memory_space<vmem>>, vector<1x128xbf16>
    %540 = vector.shape_cast %539 : vector<1x128xbf16> to vector<128xbf16>
    %541 = arith.extf %540 : vector<128xbf16> to vector<128xf32>
    %542 = vector.extract_strided_slice %508 {offsets = [0, 112], sizes = [8, 128], strides = [1, 1]} : vector<8x384xf32> to vector<8x128xf32>
    %543 = vector.shape_cast %541 : vector<128xf32> to vector<1x128xf32>
    %544 = vector.broadcast %543 : vector<1x128xf32> to vector<8x128xf32>
    %545 = arith.addf %542, %544 : vector<8x128xf32>
    %546 = arith.mulf %48, %545 : vector<8x128xf32>
    %547 = arith.subf %546, %504 : vector<8x128xf32>
    %548 = math.exp %547 : vector<8x128xf32>
    %549 = arith.addf %535, %548 : vector<8x128xf32>
    %550 = vector.extract_strided_slice %510 {offsets = [0, 112], sizes = [8, 128], strides = [1, 1]} : vector<8x384xf32> to vector<8x128xf32>
    %551 = arith.mulf %548, %550 : vector<8x128xf32>
    %552 = arith.addf %538, %551 : vector<8x128xf32>
    %c3_117 = arith.constant 3 : index
    %c0_118 = arith.constant 0 : index
    %553 = vector.load %arg5[%c3_117, %c0_118] : memref<49x128xbf16, #tpu.memory_space<vmem>>, vector<1x128xbf16>
    %554 = vector.shape_cast %553 : vector<1x128xbf16> to vector<128xbf16>
    %555 = arith.extf %554 : vector<128xbf16> to vector<128xf32>
    %556 = vector.extract_strided_slice %508 {offsets = [0, 128], sizes = [8, 128], strides = [1, 1]} : vector<8x384xf32> to vector<8x128xf32>
    %557 = vector.shape_cast %555 : vector<128xf32> to vector<1x128xf32>
    %558 = vector.broadcast %557 : vector<1x128xf32> to vector<8x128xf32>
    %559 = arith.addf %556, %558 : vector<8x128xf32>
    %560 = arith.mulf %48, %559 : vector<8x128xf32>
    %561 = arith.subf %560, %504 : vector<8x128xf32>
    %562 = math.exp %561 : vector<8x128xf32>
    %563 = arith.addf %549, %562 : vector<8x128xf32>
    %564 = vector.extract_strided_slice %510 {offsets = [0, 128], sizes = [8, 128], strides = [1, 1]} : vector<8x384xf32> to vector<8x128xf32>
    %565 = arith.mulf %562, %564 : vector<8x128xf32>
    %566 = arith.addf %552, %565 : vector<8x128xf32>
    %c4_119 = arith.constant 4 : index
    %c0_120 = arith.constant 0 : index
    %567 = vector.load %arg5[%c4_119, %c0_120] : memref<49x128xbf16, #tpu.memory_space<vmem>>, vector<1x128xbf16>
    %568 = vector.shape_cast %567 : vector<1x128xbf16> to vector<128xbf16>
    %569 = arith.extf %568 : vector<128xbf16> to vector<128xf32>
    %570 = vector.extract_strided_slice %508 {offsets = [0, 144], sizes = [8, 128], strides = [1, 1]} : vector<8x384xf32> to vector<8x128xf32>
    %571 = vector.shape_cast %569 : vector<128xf32> to vector<1x128xf32>
    %572 = vector.broadcast %571 : vector<1x128xf32> to vector<8x128xf32>
    %573 = arith.addf %570, %572 : vector<8x128xf32>
    %574 = arith.mulf %48, %573 : vector<8x128xf32>
    %575 = arith.subf %574, %504 : vector<8x128xf32>
    %576 = math.exp %575 : vector<8x128xf32>
    %577 = arith.addf %563, %576 : vector<8x128xf32>
    %578 = vector.extract_strided_slice %510 {offsets = [0, 144], sizes = [8, 128], strides = [1, 1]} : vector<8x384xf32> to vector<8x128xf32>
    %579 = arith.mulf %576, %578 : vector<8x128xf32>
    %580 = arith.addf %566, %579 : vector<8x128xf32>
    %c5_121 = arith.constant 5 : index
    %c0_122 = arith.constant 0 : index
    %581 = vector.load %arg5[%c5_121, %c0_122] : memref<49x128xbf16, #tpu.memory_space<vmem>>, vector<1x128xbf16>
    %582 = vector.shape_cast %581 : vector<1x128xbf16> to vector<128xbf16>
    %583 = arith.extf %582 : vector<128xbf16> to vector<128xf32>
    %584 = vector.extract_strided_slice %508 {offsets = [0, 160], sizes = [8, 128], strides = [1, 1]} : vector<8x384xf32> to vector<8x128xf32>
    %585 = vector.shape_cast %583 : vector<128xf32> to vector<1x128xf32>
    %586 = vector.broadcast %585 : vector<1x128xf32> to vector<8x128xf32>
    %587 = arith.addf %584, %586 : vector<8x128xf32>
    %588 = arith.mulf %48, %587 : vector<8x128xf32>
    %589 = arith.subf %588, %504 : vector<8x128xf32>
    %590 = math.exp %589 : vector<8x128xf32>
    %591 = arith.addf %577, %590 : vector<8x128xf32>
    %592 = vector.extract_strided_slice %510 {offsets = [0, 160], sizes = [8, 128], strides = [1, 1]} : vector<8x384xf32> to vector<8x128xf32>
    %593 = arith.mulf %590, %592 : vector<8x128xf32>
    %594 = arith.addf %580, %593 : vector<8x128xf32>
    %c6_123 = arith.constant 6 : index
    %c0_124 = arith.constant 0 : index
    %595 = vector.load %arg5[%c6_123, %c0_124] : memref<49x128xbf16, #tpu.memory_space<vmem>>, vector<1x128xbf16>
    %596 = vector.shape_cast %595 : vector<1x128xbf16> to vector<128xbf16>
    %597 = arith.extf %596 : vector<128xbf16> to vector<128xf32>
    %598 = vector.extract_strided_slice %508 {offsets = [0, 176], sizes = [8, 128], strides = [1, 1]} : vector<8x384xf32> to vector<8x128xf32>
    %599 = vector.shape_cast %597 : vector<128xf32> to vector<1x128xf32>
    %600 = vector.broadcast %599 : vector<1x128xf32> to vector<8x128xf32>
    %601 = arith.addf %598, %600 : vector<8x128xf32>
    %602 = arith.mulf %48, %601 : vector<8x128xf32>
    %603 = arith.subf %602, %504 : vector<8x128xf32>
    %604 = math.exp %603 : vector<8x128xf32>
    %605 = arith.addf %591, %604 : vector<8x128xf32>
    %606 = vector.extract_strided_slice %510 {offsets = [0, 176], sizes = [8, 128], strides = [1, 1]} : vector<8x384xf32> to vector<8x128xf32>
    %607 = arith.mulf %604, %606 : vector<8x128xf32>
    %608 = arith.addf %594, %607 : vector<8x128xf32>
    %c6_125 = arith.constant 6 : index
    %c0_126 = arith.constant 0 : index
    %609 = vector.load %arg9[%c6_125, %c0_126] : memref<24x384xbf16, #tpu.memory_space<vmem>>, vector<8x384xbf16>
    %610 = arith.extf %609 : vector<8x384xbf16> to vector<8x384xf32>
    %c6_127 = arith.constant 6 : index
    %c0_128 = arith.constant 0 : index
    %611 = vector.load %arg10[%c6_127, %c0_128] : memref<24x384xbf16, #tpu.memory_space<vmem>>, vector<8x384xbf16>
    %612 = arith.extf %611 : vector<8x384xbf16> to vector<8x384xf32>
    %c7_129 = arith.constant 7 : index
    %c0_130 = arith.constant 0 : index
    %613 = vector.load %arg5[%c7_129, %c0_130] : memref<49x128xbf16, #tpu.memory_space<vmem>>, vector<1x128xbf16>
    %614 = vector.shape_cast %613 : vector<1x128xbf16> to vector<128xbf16>
    %615 = arith.extf %614 : vector<128xbf16> to vector<128xf32>
    %616 = vector.extract_strided_slice %610 {offsets = [0, 80], sizes = [8, 128], strides = [1, 1]} : vector<8x384xf32> to vector<8x128xf32>
    %617 = vector.shape_cast %615 : vector<128xf32> to vector<1x128xf32>
    %618 = vector.broadcast %617 : vector<1x128xf32> to vector<8x128xf32>
    %619 = arith.addf %616, %618 : vector<8x128xf32>
    %620 = arith.mulf %48, %619 : vector<8x128xf32>
    %621 = arith.subf %620, %504 : vector<8x128xf32>
    %622 = math.exp %621 : vector<8x128xf32>
    %623 = arith.addf %605, %622 : vector<8x128xf32>
    %624 = vector.extract_strided_slice %612 {offsets = [0, 80], sizes = [8, 128], strides = [1, 1]} : vector<8x384xf32> to vector<8x128xf32>
    %625 = arith.mulf %622, %624 : vector<8x128xf32>
    %626 = arith.addf %608, %625 : vector<8x128xf32>
    %c8_131 = arith.constant 8 : index
    %c0_132 = arith.constant 0 : index
    %627 = vector.load %arg5[%c8_131, %c0_132] : memref<49x128xbf16, #tpu.memory_space<vmem>>, vector<1x128xbf16>
    %628 = vector.shape_cast %627 : vector<1x128xbf16> to vector<128xbf16>
    %629 = arith.extf %628 : vector<128xbf16> to vector<128xf32>
    %630 = vector.extract_strided_slice %610 {offsets = [0, 96], sizes = [8, 128], strides = [1, 1]} : vector<8x384xf32> to vector<8x128xf32>
    %631 = vector.shape_cast %629 : vector<128xf32> to vector<1x128xf32>
    %632 = vector.broadcast %631 : vector<1x128xf32> to vector<8x128xf32>
    %633 = arith.addf %630, %632 : vector<8x128xf32>
    %634 = arith.mulf %48, %633 : vector<8x128xf32>
    %635 = arith.subf %634, %504 : vector<8x128xf32>
    %636 = math.exp %635 : vector<8x128xf32>
    %637 = arith.addf %623, %636 : vector<8x128xf32>
    %638 = vector.extract_strided_slice %612 {offsets = [0, 96], sizes = [8, 128], strides = [1, 1]} : vector<8x384xf32> to vector<8x128xf32>
    %639 = arith.mulf %636, %638 : vector<8x128xf32>
    %640 = arith.addf %626, %639 : vector<8x128xf32>
    %c9_133 = arith.constant 9 : index
    %c0_134 = arith.constant 0 : index
    %641 = vector.load %arg5[%c9_133, %c0_134] : memref<49x128xbf16, #tpu.memory_space<vmem>>, vector<1x128xbf16>
    %642 = vector.shape_cast %641 : vector<1x128xbf16> to vector<128xbf16>
    %643 = arith.extf %642 : vector<128xbf16> to vector<128xf32>
    %644 = vector.extract_strided_slice %610 {offsets = [0, 112], sizes = [8, 128], strides = [1, 1]} : vector<8x384xf32> to vector<8x128xf32>
    %645 = vector.shape_cast %643 : vector<128xf32> to vector<1x128xf32>
    %646 = vector.broadcast %645 : vector<1x128xf32> to vector<8x128xf32>
    %647 = arith.addf %644, %646 : vector<8x128xf32>
    %648 = arith.mulf %48, %647 : vector<8x128xf32>
    %649 = arith.subf %648, %504 : vector<8x128xf32>
    %650 = math.exp %649 : vector<8x128xf32>
    %651 = arith.addf %637, %650 : vector<8x128xf32>
    %652 = vector.extract_strided_slice %612 {offsets = [0, 112], sizes = [8, 128], strides = [1, 1]} : vector<8x384xf32> to vector<8x128xf32>
    %653 = arith.mulf %650, %652 : vector<8x128xf32>
    %654 = arith.addf %640, %653 : vector<8x128xf32>
    %c10_135 = arith.constant 10 : index
    %c0_136 = arith.constant 0 : index
    %655 = vector.load %arg5[%c10_135, %c0_136] : memref<49x128xbf16, #tpu.memory_space<vmem>>, vector<1x128xbf16>
    %656 = vector.shape_cast %655 : vector<1x128xbf16> to vector<128xbf16>
    %657 = arith.extf %656 : vector<128xbf16> to vector<128xf32>
    %658 = vector.extract_strided_slice %610 {offsets = [0, 128], sizes = [8, 128], strides = [1, 1]} : vector<8x384xf32> to vector<8x128xf32>
    %659 = vector.shape_cast %657 : vector<128xf32> to vector<1x128xf32>
    %660 = vector.broadcast %659 : vector<1x128xf32> to vector<8x128xf32>
    %661 = arith.addf %658, %660 : vector<8x128xf32>
    %662 = arith.mulf %48, %661 : vector<8x128xf32>
    %663 = arith.subf %662, %504 : vector<8x128xf32>
    %664 = math.exp %663 : vector<8x128xf32>
    %665 = arith.addf %651, %664 : vector<8x128xf32>
    %666 = vector.extract_strided_slice %612 {offsets = [0, 128], sizes = [8, 128], strides = [1, 1]} : vector<8x384xf32> to vector<8x128xf32>
    %667 = arith.mulf %664, %666 : vector<8x128xf32>
    %668 = arith.addf %654, %667 : vector<8x128xf32>
    %c11_137 = arith.constant 11 : index
    %c0_138 = arith.constant 0 : index
    %669 = vector.load %arg5[%c11_137, %c0_138] : memref<49x128xbf16, #tpu.memory_space<vmem>>, vector<1x128xbf16>
    %670 = vector.shape_cast %669 : vector<1x128xbf16> to vector<128xbf16>
    %671 = arith.extf %670 : vector<128xbf16> to vector<128xf32>
    %672 = vector.extract_strided_slice %610 {offsets = [0, 144], sizes = [8, 128], strides = [1, 1]} : vector<8x384xf32> to vector<8x128xf32>
    %673 = vector.shape_cast %671 : vector<128xf32> to vector<1x128xf32>
    %674 = vector.broadcast %673 : vector<1x128xf32> to vector<8x128xf32>
    %675 = arith.addf %672, %674 : vector<8x128xf32>
    %676 = arith.mulf %48, %675 : vector<8x128xf32>
    %677 = arith.subf %676, %504 : vector<8x128xf32>
    %678 = math.exp %677 : vector<8x128xf32>
    %679 = arith.addf %665, %678 : vector<8x128xf32>
    %680 = vector.extract_strided_slice %612 {offsets = [0, 144], sizes = [8, 128], strides = [1, 1]} : vector<8x384xf32> to vector<8x128xf32>
    %681 = arith.mulf %678, %680 : vector<8x128xf32>
    %682 = arith.addf %668, %681 : vector<8x128xf32>
    %c12_139 = arith.constant 12 : index
    %c0_140 = arith.constant 0 : index
    %683 = vector.load %arg5[%c12_139, %c0_140] : memref<49x128xbf16, #tpu.memory_space<vmem>>, vector<1x128xbf16>
    %684 = vector.shape_cast %683 : vector<1x128xbf16> to vector<128xbf16>
    %685 = arith.extf %684 : vector<128xbf16> to vector<128xf32>
    %686 = vector.extract_strided_slice %610 {offsets = [0, 160], sizes = [8, 128], strides = [1, 1]} : vector<8x384xf32> to vector<8x128xf32>
    %687 = vector.shape_cast %685 : vector<128xf32> to vector<1x128xf32>
    %688 = vector.broadcast %687 : vector<1x128xf32> to vector<8x128xf32>
    %689 = arith.addf %686, %688 : vector<8x128xf32>
    %690 = arith.mulf %48, %689 : vector<8x128xf32>
    %691 = arith.subf %690, %504 : vector<8x128xf32>
    %692 = math.exp %691 : vector<8x128xf32>
    %693 = arith.addf %679, %692 : vector<8x128xf32>
    %694 = vector.extract_strided_slice %612 {offsets = [0, 160], sizes = [8, 128], strides = [1, 1]} : vector<8x384xf32> to vector<8x128xf32>
    %695 = arith.mulf %692, %694 : vector<8x128xf32>
    %696 = arith.addf %682, %695 : vector<8x128xf32>
    %c13_141 = arith.constant 13 : index
    %c0_142 = arith.constant 0 : index
    %697 = vector.load %arg5[%c13_141, %c0_142] : memref<49x128xbf16, #tpu.memory_space<vmem>>, vector<1x128xbf16>
    %698 = vector.shape_cast %697 : vector<1x128xbf16> to vector<128xbf16>
    %699 = arith.extf %698 : vector<128xbf16> to vector<128xf32>
    %700 = vector.extract_strided_slice %610 {offsets = [0, 176], sizes = [8, 128], strides = [1, 1]} : vector<8x384xf32> to vector<8x128xf32>
    %701 = vector.shape_cast %699 : vector<128xf32> to vector<1x128xf32>
    %702 = vector.broadcast %701 : vector<1x128xf32> to vector<8x128xf32>
    %703 = arith.addf %700, %702 : vector<8x128xf32>
    %704 = arith.mulf %48, %703 : vector<8x128xf32>
    %705 = arith.subf %704, %504 : vector<8x128xf32>
    %706 = math.exp %705 : vector<8x128xf32>
    %707 = arith.addf %693, %706 : vector<8x128xf32>
    %708 = vector.extract_strided_slice %612 {offsets = [0, 176], sizes = [8, 128], strides = [1, 1]} : vector<8x384xf32> to vector<8x128xf32>
    %709 = arith.mulf %706, %708 : vector<8x128xf32>
    %710 = arith.addf %696, %709 : vector<8x128xf32>
    %c7_143 = arith.constant 7 : index
    %c0_144 = arith.constant 0 : index
    %711 = vector.load %arg9[%c7_143, %c0_144] : memref<24x384xbf16, #tpu.memory_space<vmem>>, vector<8x384xbf16>
    %712 = arith.extf %711 : vector<8x384xbf16> to vector<8x384xf32>
    %c7_145 = arith.constant 7 : index
    %c0_146 = arith.constant 0 : index
    %713 = vector.load %arg10[%c7_145, %c0_146] : memref<24x384xbf16, #tpu.memory_space<vmem>>, vector<8x384xbf16>
    %714 = arith.extf %713 : vector<8x384xbf16> to vector<8x384xf32>
    %c14_147 = arith.constant 14 : index
    %c0_148 = arith.constant 0 : index
    %715 = vector.load %arg5[%c14_147, %c0_148] : memref<49x128xbf16, #tpu.memory_space<vmem>>, vector<1x128xbf16>
    %716 = vector.shape_cast %715 : vector<1x128xbf16> to vector<128xbf16>
    %717 = arith.extf %716 : vector<128xbf16> to vector<128xf32>
    %718 = vector.extract_strided_slice %712 {offsets = [0, 80], sizes = [8, 128], strides = [1, 1]} : vector<8x384xf32> to vector<8x128xf32>
    %719 = vector.shape_cast %717 : vector<128xf32> to vector<1x128xf32>
    %720 = vector.broadcast %719 : vector<1x128xf32> to vector<8x128xf32>
    %721 = arith.addf %718, %720 : vector<8x128xf32>
    %722 = arith.mulf %48, %721 : vector<8x128xf32>
    %723 = arith.subf %722, %504 : vector<8x128xf32>
    %724 = math.exp %723 : vector<8x128xf32>
    %725 = arith.addf %707, %724 : vector<8x128xf32>
    %726 = vector.extract_strided_slice %714 {offsets = [0, 80], sizes = [8, 128], strides = [1, 1]} : vector<8x384xf32> to vector<8x128xf32>
    %727 = arith.mulf %724, %726 : vector<8x128xf32>
    %728 = arith.addf %710, %727 : vector<8x128xf32>
    %c15_149 = arith.constant 15 : index
    %c0_150 = arith.constant 0 : index
    %729 = vector.load %arg5[%c15_149, %c0_150] : memref<49x128xbf16, #tpu.memory_space<vmem>>, vector<1x128xbf16>
    %730 = vector.shape_cast %729 : vector<1x128xbf16> to vector<128xbf16>
    %731 = arith.extf %730 : vector<128xbf16> to vector<128xf32>
    %732 = vector.extract_strided_slice %712 {offsets = [0, 96], sizes = [8, 128], strides = [1, 1]} : vector<8x384xf32> to vector<8x128xf32>
    %733 = vector.shape_cast %731 : vector<128xf32> to vector<1x128xf32>
    %734 = vector.broadcast %733 : vector<1x128xf32> to vector<8x128xf32>
    %735 = arith.addf %732, %734 : vector<8x128xf32>
    %736 = arith.mulf %48, %735 : vector<8x128xf32>
    %737 = arith.subf %736, %504 : vector<8x128xf32>
    %738 = math.exp %737 : vector<8x128xf32>
    %739 = arith.addf %725, %738 : vector<8x128xf32>
    %740 = vector.extract_strided_slice %714 {offsets = [0, 96], sizes = [8, 128], strides = [1, 1]} : vector<8x384xf32> to vector<8x128xf32>
    %741 = arith.mulf %738, %740 : vector<8x128xf32>
    %742 = arith.addf %728, %741 : vector<8x128xf32>
    %c16_151 = arith.constant 16 : index
    %c0_152 = arith.constant 0 : index
    %743 = vector.load %arg5[%c16_151, %c0_152] : memref<49x128xbf16, #tpu.memory_space<vmem>>, vector<1x128xbf16>
    %744 = vector.shape_cast %743 : vector<1x128xbf16> to vector<128xbf16>
    %745 = arith.extf %744 : vector<128xbf16> to vector<128xf32>
    %746 = vector.extract_strided_slice %712 {offsets = [0, 112], sizes = [8, 128], strides = [1, 1]} : vector<8x384xf32> to vector<8x128xf32>
    %747 = vector.shape_cast %745 : vector<128xf32> to vector<1x128xf32>
    %748 = vector.broadcast %747 : vector<1x128xf32> to vector<8x128xf32>
    %749 = arith.addf %746, %748 : vector<8x128xf32>
    %750 = arith.mulf %48, %749 : vector<8x128xf32>
    %751 = arith.subf %750, %504 : vector<8x128xf32>
    %752 = math.exp %751 : vector<8x128xf32>
    %753 = arith.addf %739, %752 : vector<8x128xf32>
    %754 = vector.extract_strided_slice %714 {offsets = [0, 112], sizes = [8, 128], strides = [1, 1]} : vector<8x384xf32> to vector<8x128xf32>
    %755 = arith.mulf %752, %754 : vector<8x128xf32>
    %756 = arith.addf %742, %755 : vector<8x128xf32>
    %c17_153 = arith.constant 17 : index
    %c0_154 = arith.constant 0 : index
    %757 = vector.load %arg5[%c17_153, %c0_154] : memref<49x128xbf16, #tpu.memory_space<vmem>>, vector<1x128xbf16>
    %758 = vector.shape_cast %757 : vector<1x128xbf16> to vector<128xbf16>
    %759 = arith.extf %758 : vector<128xbf16> to vector<128xf32>
    %760 = vector.extract_strided_slice %712 {offsets = [0, 128], sizes = [8, 128], strides = [1, 1]} : vector<8x384xf32> to vector<8x128xf32>
    %761 = vector.shape_cast %759 : vector<128xf32> to vector<1x128xf32>
    %762 = vector.broadcast %761 : vector<1x128xf32> to vector<8x128xf32>
    %763 = arith.addf %760, %762 : vector<8x128xf32>
    %764 = arith.mulf %48, %763 : vector<8x128xf32>
    %765 = arith.subf %764, %504 : vector<8x128xf32>
    %766 = math.exp %765 : vector<8x128xf32>
    %767 = arith.addf %753, %766 : vector<8x128xf32>
    %768 = vector.extract_strided_slice %714 {offsets = [0, 128], sizes = [8, 128], strides = [1, 1]} : vector<8x384xf32> to vector<8x128xf32>
    %769 = arith.mulf %766, %768 : vector<8x128xf32>
    %770 = arith.addf %756, %769 : vector<8x128xf32>
    %c18_155 = arith.constant 18 : index
    %c0_156 = arith.constant 0 : index
    %771 = vector.load %arg5[%c18_155, %c0_156] : memref<49x128xbf16, #tpu.memory_space<vmem>>, vector<1x128xbf16>
    %772 = vector.shape_cast %771 : vector<1x128xbf16> to vector<128xbf16>
    %773 = arith.extf %772 : vector<128xbf16> to vector<128xf32>
    %774 = vector.extract_strided_slice %712 {offsets = [0, 144], sizes = [8, 128], strides = [1, 1]} : vector<8x384xf32> to vector<8x128xf32>
    %775 = vector.shape_cast %773 : vector<128xf32> to vector<1x128xf32>
    %776 = vector.broadcast %775 : vector<1x128xf32> to vector<8x128xf32>
    %777 = arith.addf %774, %776 : vector<8x128xf32>
    %778 = arith.mulf %48, %777 : vector<8x128xf32>
    %779 = arith.subf %778, %504 : vector<8x128xf32>
    %780 = math.exp %779 : vector<8x128xf32>
    %781 = arith.addf %767, %780 : vector<8x128xf32>
    %782 = vector.extract_strided_slice %714 {offsets = [0, 144], sizes = [8, 128], strides = [1, 1]} : vector<8x384xf32> to vector<8x128xf32>
    %783 = arith.mulf %780, %782 : vector<8x128xf32>
    %784 = arith.addf %770, %783 : vector<8x128xf32>
    %c19_157 = arith.constant 19 : index
    %c0_158 = arith.constant 0 : index
    %785 = vector.load %arg5[%c19_157, %c0_158] : memref<49x128xbf16, #tpu.memory_space<vmem>>, vector<1x128xbf16>
    %786 = vector.shape_cast %785 : vector<1x128xbf16> to vector<128xbf16>
    %787 = arith.extf %786 : vector<128xbf16> to vector<128xf32>
    %788 = vector.extract_strided_slice %712 {offsets = [0, 160], sizes = [8, 128], strides = [1, 1]} : vector<8x384xf32> to vector<8x128xf32>
    %789 = vector.shape_cast %787 : vector<128xf32> to vector<1x128xf32>
    %790 = vector.broadcast %789 : vector<1x128xf32> to vector<8x128xf32>
    %791 = arith.addf %788, %790 : vector<8x128xf32>
    %792 = arith.mulf %48, %791 : vector<8x128xf32>
    %793 = arith.subf %792, %504 : vector<8x128xf32>
    %794 = math.exp %793 : vector<8x128xf32>
    %795 = arith.addf %781, %794 : vector<8x128xf32>
    %796 = vector.extract_strided_slice %714 {offsets = [0, 160], sizes = [8, 128], strides = [1, 1]} : vector<8x384xf32> to vector<8x128xf32>
    %797 = arith.mulf %794, %796 : vector<8x128xf32>
    %798 = arith.addf %784, %797 : vector<8x128xf32>
    %c20_159 = arith.constant 20 : index
    %c0_160 = arith.constant 0 : index
    %799 = vector.load %arg5[%c20_159, %c0_160] : memref<49x128xbf16, #tpu.memory_space<vmem>>, vector<1x128xbf16>
    %800 = vector.shape_cast %799 : vector<1x128xbf16> to vector<128xbf16>
    %801 = arith.extf %800 : vector<128xbf16> to vector<128xf32>
    %802 = vector.extract_strided_slice %712 {offsets = [0, 176], sizes = [8, 128], strides = [1, 1]} : vector<8x384xf32> to vector<8x128xf32>
    %803 = vector.shape_cast %801 : vector<128xf32> to vector<1x128xf32>
    %804 = vector.broadcast %803 : vector<1x128xf32> to vector<8x128xf32>
    %805 = arith.addf %802, %804 : vector<8x128xf32>
    %806 = arith.mulf %48, %805 : vector<8x128xf32>
    %807 = arith.subf %806, %504 : vector<8x128xf32>
    %808 = math.exp %807 : vector<8x128xf32>
    %809 = arith.addf %795, %808 : vector<8x128xf32>
    %810 = vector.extract_strided_slice %714 {offsets = [0, 176], sizes = [8, 128], strides = [1, 1]} : vector<8x384xf32> to vector<8x128xf32>
    %811 = arith.mulf %808, %810 : vector<8x128xf32>
    %812 = arith.addf %798, %811 : vector<8x128xf32>
    %c8_161 = arith.constant 8 : index
    %c0_162 = arith.constant 0 : index
    %813 = vector.load %arg9[%c8_161, %c0_162] : memref<24x384xbf16, #tpu.memory_space<vmem>>, vector<8x384xbf16>
    %814 = arith.extf %813 : vector<8x384xbf16> to vector<8x384xf32>
    %c8_163 = arith.constant 8 : index
    %c0_164 = arith.constant 0 : index
    %815 = vector.load %arg10[%c8_163, %c0_164] : memref<24x384xbf16, #tpu.memory_space<vmem>>, vector<8x384xbf16>
    %816 = arith.extf %815 : vector<8x384xbf16> to vector<8x384xf32>
    %c21_165 = arith.constant 21 : index
    %c0_166 = arith.constant 0 : index
    %817 = vector.load %arg5[%c21_165, %c0_166] : memref<49x128xbf16, #tpu.memory_space<vmem>>, vector<1x128xbf16>
    %818 = vector.shape_cast %817 : vector<1x128xbf16> to vector<128xbf16>
    %819 = arith.extf %818 : vector<128xbf16> to vector<128xf32>
    %820 = vector.extract_strided_slice %814 {offsets = [0, 80], sizes = [8, 128], strides = [1, 1]} : vector<8x384xf32> to vector<8x128xf32>
    %821 = vector.shape_cast %819 : vector<128xf32> to vector<1x128xf32>
    %822 = vector.broadcast %821 : vector<1x128xf32> to vector<8x128xf32>
    %823 = arith.addf %820, %822 : vector<8x128xf32>
    %824 = arith.mulf %48, %823 : vector<8x128xf32>
    %825 = arith.subf %824, %504 : vector<8x128xf32>
    %826 = math.exp %825 : vector<8x128xf32>
    %827 = arith.addf %809, %826 : vector<8x128xf32>
    %828 = vector.extract_strided_slice %816 {offsets = [0, 80], sizes = [8, 128], strides = [1, 1]} : vector<8x384xf32> to vector<8x128xf32>
    %829 = arith.mulf %826, %828 : vector<8x128xf32>
    %830 = arith.addf %812, %829 : vector<8x128xf32>
    %c22_167 = arith.constant 22 : index
    %c0_168 = arith.constant 0 : index
    %831 = vector.load %arg5[%c22_167, %c0_168] : memref<49x128xbf16, #tpu.memory_space<vmem>>, vector<1x128xbf16>
    %832 = vector.shape_cast %831 : vector<1x128xbf16> to vector<128xbf16>
    %833 = arith.extf %832 : vector<128xbf16> to vector<128xf32>
    %834 = vector.extract_strided_slice %814 {offsets = [0, 96], sizes = [8, 128], strides = [1, 1]} : vector<8x384xf32> to vector<8x128xf32>
    %835 = vector.shape_cast %833 : vector<128xf32> to vector<1x128xf32>
    %836 = vector.broadcast %835 : vector<1x128xf32> to vector<8x128xf32>
    %837 = arith.addf %834, %836 : vector<8x128xf32>
    %838 = arith.mulf %48, %837 : vector<8x128xf32>
    %839 = arith.subf %838, %504 : vector<8x128xf32>
    %840 = math.exp %839 : vector<8x128xf32>
    %841 = arith.addf %827, %840 : vector<8x128xf32>
    %842 = vector.extract_strided_slice %816 {offsets = [0, 96], sizes = [8, 128], strides = [1, 1]} : vector<8x384xf32> to vector<8x128xf32>
    %843 = arith.mulf %840, %842 : vector<8x128xf32>
    %844 = arith.addf %830, %843 : vector<8x128xf32>
    %c23_169 = arith.constant 23 : index
    %c0_170 = arith.constant 0 : index
    %845 = vector.load %arg5[%c23_169, %c0_170] : memref<49x128xbf16, #tpu.memory_space<vmem>>, vector<1x128xbf16>
    %846 = vector.shape_cast %845 : vector<1x128xbf16> to vector<128xbf16>
    %847 = arith.extf %846 : vector<128xbf16> to vector<128xf32>
    %848 = vector.extract_strided_slice %814 {offsets = [0, 112], sizes = [8, 128], strides = [1, 1]} : vector<8x384xf32> to vector<8x128xf32>
    %849 = vector.shape_cast %847 : vector<128xf32> to vector<1x128xf32>
    %850 = vector.broadcast %849 : vector<1x128xf32> to vector<8x128xf32>
    %851 = arith.addf %848, %850 : vector<8x128xf32>
    %852 = arith.mulf %48, %851 : vector<8x128xf32>
    %853 = arith.subf %852, %504 : vector<8x128xf32>
    %854 = math.exp %853 : vector<8x128xf32>
    %855 = arith.addf %841, %854 : vector<8x128xf32>
    %856 = vector.extract_strided_slice %816 {offsets = [0, 112], sizes = [8, 128], strides = [1, 1]} : vector<8x384xf32> to vector<8x128xf32>
    %857 = arith.mulf %854, %856 : vector<8x128xf32>
    %858 = arith.addf %844, %857 : vector<8x128xf32>
    %c24_171 = arith.constant 24 : index
    %c0_172 = arith.constant 0 : index
    %859 = vector.load %arg5[%c24_171, %c0_172] : memref<49x128xbf16, #tpu.memory_space<vmem>>, vector<1x128xbf16>
    %860 = vector.shape_cast %859 : vector<1x128xbf16> to vector<128xbf16>
    %861 = arith.extf %860 : vector<128xbf16> to vector<128xf32>
    %862 = vector.extract_strided_slice %814 {offsets = [0, 128], sizes = [8, 128], strides = [1, 1]} : vector<8x384xf32> to vector<8x128xf32>
    %863 = vector.shape_cast %861 : vector<128xf32> to vector<1x128xf32>
    %864 = vector.broadcast %863 : vector<1x128xf32> to vector<8x128xf32>
    %865 = arith.addf %862, %864 : vector<8x128xf32>
    %866 = arith.mulf %48, %865 : vector<8x128xf32>
    %867 = arith.subf %866, %504 : vector<8x128xf32>
    %868 = math.exp %867 : vector<8x128xf32>
    %869 = arith.addf %855, %868 : vector<8x128xf32>
    %870 = vector.extract_strided_slice %816 {offsets = [0, 128], sizes = [8, 128], strides = [1, 1]} : vector<8x384xf32> to vector<8x128xf32>
    %871 = arith.mulf %868, %870 : vector<8x128xf32>
    %872 = arith.addf %858, %871 : vector<8x128xf32>
    %c25_173 = arith.constant 25 : index
    %c0_174 = arith.constant 0 : index
    %873 = vector.load %arg5[%c25_173, %c0_174] : memref<49x128xbf16, #tpu.memory_space<vmem>>, vector<1x128xbf16>
    %874 = vector.shape_cast %873 : vector<1x128xbf16> to vector<128xbf16>
    %875 = arith.extf %874 : vector<128xbf16> to vector<128xf32>
    %876 = vector.extract_strided_slice %814 {offsets = [0, 144], sizes = [8, 128], strides = [1, 1]} : vector<8x384xf32> to vector<8x128xf32>
    %877 = vector.shape_cast %875 : vector<128xf32> to vector<1x128xf32>
    %878 = vector.broadcast %877 : vector<1x128xf32> to vector<8x128xf32>
    %879 = arith.addf %876, %878 : vector<8x128xf32>
    %880 = arith.mulf %48, %879 : vector<8x128xf32>
    %881 = arith.subf %880, %504 : vector<8x128xf32>
    %882 = math.exp %881 : vector<8x128xf32>
    %883 = arith.addf %869, %882 : vector<8x128xf32>
    %884 = vector.extract_strided_slice %816 {offsets = [0, 144], sizes = [8, 128], strides = [1, 1]} : vector<8x384xf32> to vector<8x128xf32>
    %885 = arith.mulf %882, %884 : vector<8x128xf32>
    %886 = arith.addf %872, %885 : vector<8x128xf32>
    %c26_175 = arith.constant 26 : index
    %c0_176 = arith.constant 0 : index
    %887 = vector.load %arg5[%c26_175, %c0_176] : memref<49x128xbf16, #tpu.memory_space<vmem>>, vector<1x128xbf16>
    %888 = vector.shape_cast %887 : vector<1x128xbf16> to vector<128xbf16>
    %889 = arith.extf %888 : vector<128xbf16> to vector<128xf32>
    %890 = vector.extract_strided_slice %814 {offsets = [0, 160], sizes = [8, 128], strides = [1, 1]} : vector<8x384xf32> to vector<8x128xf32>
    %891 = vector.shape_cast %889 : vector<128xf32> to vector<1x128xf32>
    %892 = vector.broadcast %891 : vector<1x128xf32> to vector<8x128xf32>
    %893 = arith.addf %890, %892 : vector<8x128xf32>
    %894 = arith.mulf %48, %893 : vector<8x128xf32>
    %895 = arith.subf %894, %504 : vector<8x128xf32>
    %896 = math.exp %895 : vector<8x128xf32>
    %897 = arith.addf %883, %896 : vector<8x128xf32>
    %898 = vector.extract_strided_slice %816 {offsets = [0, 160], sizes = [8, 128], strides = [1, 1]} : vector<8x384xf32> to vector<8x128xf32>
    %899 = arith.mulf %896, %898 : vector<8x128xf32>
    %900 = arith.addf %886, %899 : vector<8x128xf32>
    %c27_177 = arith.constant 27 : index
    %c0_178 = arith.constant 0 : index
    %901 = vector.load %arg5[%c27_177, %c0_178] : memref<49x128xbf16, #tpu.memory_space<vmem>>, vector<1x128xbf16>
    %902 = vector.shape_cast %901 : vector<1x128xbf16> to vector<128xbf16>
    %903 = arith.extf %902 : vector<128xbf16> to vector<128xf32>
    %904 = vector.extract_strided_slice %814 {offsets = [0, 176], sizes = [8, 128], strides = [1, 1]} : vector<8x384xf32> to vector<8x128xf32>
    %905 = vector.shape_cast %903 : vector<128xf32> to vector<1x128xf32>
    %906 = vector.broadcast %905 : vector<1x128xf32> to vector<8x128xf32>
    %907 = arith.addf %904, %906 : vector<8x128xf32>
    %908 = arith.mulf %48, %907 : vector<8x128xf32>
    %909 = arith.subf %908, %504 : vector<8x128xf32>
    %910 = math.exp %909 : vector<8x128xf32>
    %911 = arith.addf %897, %910 : vector<8x128xf32>
    %912 = vector.extract_strided_slice %816 {offsets = [0, 176], sizes = [8, 128], strides = [1, 1]} : vector<8x384xf32> to vector<8x128xf32>
    %913 = arith.mulf %910, %912 : vector<8x128xf32>
    %914 = arith.addf %900, %913 : vector<8x128xf32>
    %c9_179 = arith.constant 9 : index
    %c0_180 = arith.constant 0 : index
    %915 = vector.load %arg9[%c9_179, %c0_180] : memref<24x384xbf16, #tpu.memory_space<vmem>>, vector<8x384xbf16>
    %916 = arith.extf %915 : vector<8x384xbf16> to vector<8x384xf32>
    %c9_181 = arith.constant 9 : index
    %c0_182 = arith.constant 0 : index
    %917 = vector.load %arg10[%c9_181, %c0_182] : memref<24x384xbf16, #tpu.memory_space<vmem>>, vector<8x384xbf16>
    %918 = arith.extf %917 : vector<8x384xbf16> to vector<8x384xf32>
    %c28_183 = arith.constant 28 : index
    %c0_184 = arith.constant 0 : index
    %919 = vector.load %arg5[%c28_183, %c0_184] : memref<49x128xbf16, #tpu.memory_space<vmem>>, vector<1x128xbf16>
    %920 = vector.shape_cast %919 : vector<1x128xbf16> to vector<128xbf16>
    %921 = arith.extf %920 : vector<128xbf16> to vector<128xf32>
    %922 = vector.extract_strided_slice %916 {offsets = [0, 80], sizes = [8, 128], strides = [1, 1]} : vector<8x384xf32> to vector<8x128xf32>
    %923 = vector.shape_cast %921 : vector<128xf32> to vector<1x128xf32>
    %924 = vector.broadcast %923 : vector<1x128xf32> to vector<8x128xf32>
    %925 = arith.addf %922, %924 : vector<8x128xf32>
    %926 = arith.mulf %48, %925 : vector<8x128xf32>
    %927 = arith.subf %926, %504 : vector<8x128xf32>
    %928 = math.exp %927 : vector<8x128xf32>
    %929 = arith.addf %911, %928 : vector<8x128xf32>
    %930 = vector.extract_strided_slice %918 {offsets = [0, 80], sizes = [8, 128], strides = [1, 1]} : vector<8x384xf32> to vector<8x128xf32>
    %931 = arith.mulf %928, %930 : vector<8x128xf32>
    %932 = arith.addf %914, %931 : vector<8x128xf32>
    %c29_185 = arith.constant 29 : index
    %c0_186 = arith.constant 0 : index
    %933 = vector.load %arg5[%c29_185, %c0_186] : memref<49x128xbf16, #tpu.memory_space<vmem>>, vector<1x128xbf16>
    %934 = vector.shape_cast %933 : vector<1x128xbf16> to vector<128xbf16>
    %935 = arith.extf %934 : vector<128xbf16> to vector<128xf32>
    %936 = vector.extract_strided_slice %916 {offsets = [0, 96], sizes = [8, 128], strides = [1, 1]} : vector<8x384xf32> to vector<8x128xf32>
    %937 = vector.shape_cast %935 : vector<128xf32> to vector<1x128xf32>
    %938 = vector.broadcast %937 : vector<1x128xf32> to vector<8x128xf32>
    %939 = arith.addf %936, %938 : vector<8x128xf32>
    %940 = arith.mulf %48, %939 : vector<8x128xf32>
    %941 = arith.subf %940, %504 : vector<8x128xf32>
    %942 = math.exp %941 : vector<8x128xf32>
    %943 = arith.addf %929, %942 : vector<8x128xf32>
    %944 = vector.extract_strided_slice %918 {offsets = [0, 96], sizes = [8, 128], strides = [1, 1]} : vector<8x384xf32> to vector<8x128xf32>
    %945 = arith.mulf %942, %944 : vector<8x128xf32>
    %946 = arith.addf %932, %945 : vector<8x128xf32>
    %c30_187 = arith.constant 30 : index
    %c0_188 = arith.constant 0 : index
    %947 = vector.load %arg5[%c30_187, %c0_188] : memref<49x128xbf16, #tpu.memory_space<vmem>>, vector<1x128xbf16>
    %948 = vector.shape_cast %947 : vector<1x128xbf16> to vector<128xbf16>
    %949 = arith.extf %948 : vector<128xbf16> to vector<128xf32>
    %950 = vector.extract_strided_slice %916 {offsets = [0, 112], sizes = [8, 128], strides = [1, 1]} : vector<8x384xf32> to vector<8x128xf32>
    %951 = vector.shape_cast %949 : vector<128xf32> to vector<1x128xf32>
    %952 = vector.broadcast %951 : vector<1x128xf32> to vector<8x128xf32>
    %953 = arith.addf %950, %952 : vector<8x128xf32>
    %954 = arith.mulf %48, %953 : vector<8x128xf32>
    %955 = arith.subf %954, %504 : vector<8x128xf32>
    %956 = math.exp %955 : vector<8x128xf32>
    %957 = arith.addf %943, %956 : vector<8x128xf32>
    %958 = vector.extract_strided_slice %918 {offsets = [0, 112], sizes = [8, 128], strides = [1, 1]} : vector<8x384xf32> to vector<8x128xf32>
    %959 = arith.mulf %956, %958 : vector<8x128xf32>
    %960 = arith.addf %946, %959 : vector<8x128xf32>
    %c31_189 = arith.constant 31 : index
    %c0_190 = arith.constant 0 : index
    %961 = vector.load %arg5[%c31_189, %c0_190] : memref<49x128xbf16, #tpu.memory_space<vmem>>, vector<1x128xbf16>
    %962 = vector.shape_cast %961 : vector<1x128xbf16> to vector<128xbf16>
    %963 = arith.extf %962 : vector<128xbf16> to vector<128xf32>
    %964 = vector.extract_strided_slice %916 {offsets = [0, 128], sizes = [8, 128], strides = [1, 1]} : vector<8x384xf32> to vector<8x128xf32>
    %965 = vector.shape_cast %963 : vector<128xf32> to vector<1x128xf32>
    %966 = vector.broadcast %965 : vector<1x128xf32> to vector<8x128xf32>
    %967 = arith.addf %964, %966 : vector<8x128xf32>
    %968 = arith.mulf %48, %967 : vector<8x128xf32>
    %969 = arith.subf %968, %504 : vector<8x128xf32>
    %970 = math.exp %969 : vector<8x128xf32>
    %971 = arith.addf %957, %970 : vector<8x128xf32>
    %972 = vector.extract_strided_slice %918 {offsets = [0, 128], sizes = [8, 128], strides = [1, 1]} : vector<8x384xf32> to vector<8x128xf32>
    %973 = arith.mulf %970, %972 : vector<8x128xf32>
    %974 = arith.addf %960, %973 : vector<8x128xf32>
    %c32_191 = arith.constant 32 : index
    %c0_192 = arith.constant 0 : index
    %975 = vector.load %arg5[%c32_191, %c0_192] : memref<49x128xbf16, #tpu.memory_space<vmem>>, vector<1x128xbf16>
    %976 = vector.shape_cast %975 : vector<1x128xbf16> to vector<128xbf16>
    %977 = arith.extf %976 : vector<128xbf16> to vector<128xf32>
    %978 = vector.extract_strided_slice %916 {offsets = [0, 144], sizes = [8, 128], strides = [1, 1]} : vector<8x384xf32> to vector<8x128xf32>
    %979 = vector.shape_cast %977 : vector<128xf32> to vector<1x128xf32>
    %980 = vector.broadcast %979 : vector<1x128xf32> to vector<8x128xf32>
    %981 = arith.addf %978, %980 : vector<8x128xf32>
    %982 = arith.mulf %48, %981 : vector<8x128xf32>
    %983 = arith.subf %982, %504 : vector<8x128xf32>
    %984 = math.exp %983 : vector<8x128xf32>
    %985 = arith.addf %971, %984 : vector<8x128xf32>
    %986 = vector.extract_strided_slice %918 {offsets = [0, 144], sizes = [8, 128], strides = [1, 1]} : vector<8x384xf32> to vector<8x128xf32>
    %987 = arith.mulf %984, %986 : vector<8x128xf32>
    %988 = arith.addf %974, %987 : vector<8x128xf32>
    %c33_193 = arith.constant 33 : index
    %c0_194 = arith.constant 0 : index
    %989 = vector.load %arg5[%c33_193, %c0_194] : memref<49x128xbf16, #tpu.memory_space<vmem>>, vector<1x128xbf16>
    %990 = vector.shape_cast %989 : vector<1x128xbf16> to vector<128xbf16>
    %991 = arith.extf %990 : vector<128xbf16> to vector<128xf32>
    %992 = vector.extract_strided_slice %916 {offsets = [0, 160], sizes = [8, 128], strides = [1, 1]} : vector<8x384xf32> to vector<8x128xf32>
    %993 = vector.shape_cast %991 : vector<128xf32> to vector<1x128xf32>
    %994 = vector.broadcast %993 : vector<1x128xf32> to vector<8x128xf32>
    %995 = arith.addf %992, %994 : vector<8x128xf32>
    %996 = arith.mulf %48, %995 : vector<8x128xf32>
    %997 = arith.subf %996, %504 : vector<8x128xf32>
    %998 = math.exp %997 : vector<8x128xf32>
    %999 = arith.addf %985, %998 : vector<8x128xf32>
    %1000 = vector.extract_strided_slice %918 {offsets = [0, 160], sizes = [8, 128], strides = [1, 1]} : vector<8x384xf32> to vector<8x128xf32>
    %1001 = arith.mulf %998, %1000 : vector<8x128xf32>
    %1002 = arith.addf %988, %1001 : vector<8x128xf32>
    %c34_195 = arith.constant 34 : index
    %c0_196 = arith.constant 0 : index
    %1003 = vector.load %arg5[%c34_195, %c0_196] : memref<49x128xbf16, #tpu.memory_space<vmem>>, vector<1x128xbf16>
    %1004 = vector.shape_cast %1003 : vector<1x128xbf16> to vector<128xbf16>
    %1005 = arith.extf %1004 : vector<128xbf16> to vector<128xf32>
    %1006 = vector.extract_strided_slice %916 {offsets = [0, 176], sizes = [8, 128], strides = [1, 1]} : vector<8x384xf32> to vector<8x128xf32>
    %1007 = vector.shape_cast %1005 : vector<128xf32> to vector<1x128xf32>
    %1008 = vector.broadcast %1007 : vector<1x128xf32> to vector<8x128xf32>
    %1009 = arith.addf %1006, %1008 : vector<8x128xf32>
    %1010 = arith.mulf %48, %1009 : vector<8x128xf32>
    %1011 = arith.subf %1010, %504 : vector<8x128xf32>
    %1012 = math.exp %1011 : vector<8x128xf32>
    %1013 = arith.addf %999, %1012 : vector<8x128xf32>
    %1014 = vector.extract_strided_slice %918 {offsets = [0, 176], sizes = [8, 128], strides = [1, 1]} : vector<8x384xf32> to vector<8x128xf32>
    %1015 = arith.mulf %1012, %1014 : vector<8x128xf32>
    %1016 = arith.addf %1002, %1015 : vector<8x128xf32>
    %c10_197 = arith.constant 10 : index
    %c0_198 = arith.constant 0 : index
    %1017 = vector.load %arg9[%c10_197, %c0_198] : memref<24x384xbf16, #tpu.memory_space<vmem>>, vector<8x384xbf16>
    %1018 = arith.extf %1017 : vector<8x384xbf16> to vector<8x384xf32>
    %c10_199 = arith.constant 10 : index
    %c0_200 = arith.constant 0 : index
    %1019 = vector.load %arg10[%c10_199, %c0_200] : memref<24x384xbf16, #tpu.memory_space<vmem>>, vector<8x384xbf16>
    %1020 = arith.extf %1019 : vector<8x384xbf16> to vector<8x384xf32>
    %c35_201 = arith.constant 35 : index
    %c0_202 = arith.constant 0 : index
    %1021 = vector.load %arg5[%c35_201, %c0_202] : memref<49x128xbf16, #tpu.memory_space<vmem>>, vector<1x128xbf16>
    %1022 = vector.shape_cast %1021 : vector<1x128xbf16> to vector<128xbf16>
    %1023 = arith.extf %1022 : vector<128xbf16> to vector<128xf32>
    %1024 = vector.extract_strided_slice %1018 {offsets = [0, 80], sizes = [8, 128], strides = [1, 1]} : vector<8x384xf32> to vector<8x128xf32>
    %1025 = vector.shape_cast %1023 : vector<128xf32> to vector<1x128xf32>
    %1026 = vector.broadcast %1025 : vector<1x128xf32> to vector<8x128xf32>
    %1027 = arith.addf %1024, %1026 : vector<8x128xf32>
    %1028 = arith.mulf %48, %1027 : vector<8x128xf32>
    %1029 = arith.subf %1028, %504 : vector<8x128xf32>
    %1030 = math.exp %1029 : vector<8x128xf32>
    %1031 = arith.addf %1013, %1030 : vector<8x128xf32>
    %1032 = vector.extract_strided_slice %1020 {offsets = [0, 80], sizes = [8, 128], strides = [1, 1]} : vector<8x384xf32> to vector<8x128xf32>
    %1033 = arith.mulf %1030, %1032 : vector<8x128xf32>
    %1034 = arith.addf %1016, %1033 : vector<8x128xf32>
    %c36_203 = arith.constant 36 : index
    %c0_204 = arith.constant 0 : index
    %1035 = vector.load %arg5[%c36_203, %c0_204] : memref<49x128xbf16, #tpu.memory_space<vmem>>, vector<1x128xbf16>
    %1036 = vector.shape_cast %1035 : vector<1x128xbf16> to vector<128xbf16>
    %1037 = arith.extf %1036 : vector<128xbf16> to vector<128xf32>
    %1038 = vector.extract_strided_slice %1018 {offsets = [0, 96], sizes = [8, 128], strides = [1, 1]} : vector<8x384xf32> to vector<8x128xf32>
    %1039 = vector.shape_cast %1037 : vector<128xf32> to vector<1x128xf32>
    %1040 = vector.broadcast %1039 : vector<1x128xf32> to vector<8x128xf32>
    %1041 = arith.addf %1038, %1040 : vector<8x128xf32>
    %1042 = arith.mulf %48, %1041 : vector<8x128xf32>
    %1043 = arith.subf %1042, %504 : vector<8x128xf32>
    %1044 = math.exp %1043 : vector<8x128xf32>
    %1045 = arith.addf %1031, %1044 : vector<8x128xf32>
    %1046 = vector.extract_strided_slice %1020 {offsets = [0, 96], sizes = [8, 128], strides = [1, 1]} : vector<8x384xf32> to vector<8x128xf32>
    %1047 = arith.mulf %1044, %1046 : vector<8x128xf32>
    %1048 = arith.addf %1034, %1047 : vector<8x128xf32>
    %c37_205 = arith.constant 37 : index
    %c0_206 = arith.constant 0 : index
    %1049 = vector.load %arg5[%c37_205, %c0_206] : memref<49x128xbf16, #tpu.memory_space<vmem>>, vector<1x128xbf16>
    %1050 = vector.shape_cast %1049 : vector<1x128xbf16> to vector<128xbf16>
    %1051 = arith.extf %1050 : vector<128xbf16> to vector<128xf32>
    %1052 = vector.extract_strided_slice %1018 {offsets = [0, 112], sizes = [8, 128], strides = [1, 1]} : vector<8x384xf32> to vector<8x128xf32>
    %1053 = vector.shape_cast %1051 : vector<128xf32> to vector<1x128xf32>
    %1054 = vector.broadcast %1053 : vector<1x128xf32> to vector<8x128xf32>
    %1055 = arith.addf %1052, %1054 : vector<8x128xf32>
    %1056 = arith.mulf %48, %1055 : vector<8x128xf32>
    %1057 = arith.subf %1056, %504 : vector<8x128xf32>
    %1058 = math.exp %1057 : vector<8x128xf32>
    %1059 = arith.addf %1045, %1058 : vector<8x128xf32>
    %1060 = vector.extract_strided_slice %1020 {offsets = [0, 112], sizes = [8, 128], strides = [1, 1]} : vector<8x384xf32> to vector<8x128xf32>
    %1061 = arith.mulf %1058, %1060 : vector<8x128xf32>
    %1062 = arith.addf %1048, %1061 : vector<8x128xf32>
    %c38_207 = arith.constant 38 : index
    %c0_208 = arith.constant 0 : index
    %1063 = vector.load %arg5[%c38_207, %c0_208] : memref<49x128xbf16, #tpu.memory_space<vmem>>, vector<1x128xbf16>
    %1064 = vector.shape_cast %1063 : vector<1x128xbf16> to vector<128xbf16>
    %1065 = arith.extf %1064 : vector<128xbf16> to vector<128xf32>
    %1066 = vector.extract_strided_slice %1018 {offsets = [0, 128], sizes = [8, 128], strides = [1, 1]} : vector<8x384xf32> to vector<8x128xf32>
    %1067 = vector.shape_cast %1065 : vector<128xf32> to vector<1x128xf32>
    %1068 = vector.broadcast %1067 : vector<1x128xf32> to vector<8x128xf32>
    %1069 = arith.addf %1066, %1068 : vector<8x128xf32>
    %1070 = arith.mulf %48, %1069 : vector<8x128xf32>
    %1071 = arith.subf %1070, %504 : vector<8x128xf32>
    %1072 = math.exp %1071 : vector<8x128xf32>
    %1073 = arith.addf %1059, %1072 : vector<8x128xf32>
    %1074 = vector.extract_strided_slice %1020 {offsets = [0, 128], sizes = [8, 128], strides = [1, 1]} : vector<8x384xf32> to vector<8x128xf32>
    %1075 = arith.mulf %1072, %1074 : vector<8x128xf32>
    %1076 = arith.addf %1062, %1075 : vector<8x128xf32>
    %c39_209 = arith.constant 39 : index
    %c0_210 = arith.constant 0 : index
    %1077 = vector.load %arg5[%c39_209, %c0_210] : memref<49x128xbf16, #tpu.memory_space<vmem>>, vector<1x128xbf16>
    %1078 = vector.shape_cast %1077 : vector<1x128xbf16> to vector<128xbf16>
    %1079 = arith.extf %1078 : vector<128xbf16> to vector<128xf32>
    %1080 = vector.extract_strided_slice %1018 {offsets = [0, 144], sizes = [8, 128], strides = [1, 1]} : vector<8x384xf32> to vector<8x128xf32>
    %1081 = vector.shape_cast %1079 : vector<128xf32> to vector<1x128xf32>
    %1082 = vector.broadcast %1081 : vector<1x128xf32> to vector<8x128xf32>
    %1083 = arith.addf %1080, %1082 : vector<8x128xf32>
    %1084 = arith.mulf %48, %1083 : vector<8x128xf32>
    %1085 = arith.subf %1084, %504 : vector<8x128xf32>
    %1086 = math.exp %1085 : vector<8x128xf32>
    %1087 = arith.addf %1073, %1086 : vector<8x128xf32>
    %1088 = vector.extract_strided_slice %1020 {offsets = [0, 144], sizes = [8, 128], strides = [1, 1]} : vector<8x384xf32> to vector<8x128xf32>
    %1089 = arith.mulf %1086, %1088 : vector<8x128xf32>
    %1090 = arith.addf %1076, %1089 : vector<8x128xf32>
    %c40_211 = arith.constant 40 : index
    %c0_212 = arith.constant 0 : index
    %1091 = vector.load %arg5[%c40_211, %c0_212] : memref<49x128xbf16, #tpu.memory_space<vmem>>, vector<1x128xbf16>
    %1092 = vector.shape_cast %1091 : vector<1x128xbf16> to vector<128xbf16>
    %1093 = arith.extf %1092 : vector<128xbf16> to vector<128xf32>
    %1094 = vector.extract_strided_slice %1018 {offsets = [0, 160], sizes = [8, 128], strides = [1, 1]} : vector<8x384xf32> to vector<8x128xf32>
    %1095 = vector.shape_cast %1093 : vector<128xf32> to vector<1x128xf32>
    %1096 = vector.broadcast %1095 : vector<1x128xf32> to vector<8x128xf32>
    %1097 = arith.addf %1094, %1096 : vector<8x128xf32>
    %1098 = arith.mulf %48, %1097 : vector<8x128xf32>
    %1099 = arith.subf %1098, %504 : vector<8x128xf32>
    %1100 = math.exp %1099 : vector<8x128xf32>
    %1101 = arith.addf %1087, %1100 : vector<8x128xf32>
    %1102 = vector.extract_strided_slice %1020 {offsets = [0, 160], sizes = [8, 128], strides = [1, 1]} : vector<8x384xf32> to vector<8x128xf32>
    %1103 = arith.mulf %1100, %1102 : vector<8x128xf32>
    %1104 = arith.addf %1090, %1103 : vector<8x128xf32>
    %c41_213 = arith.constant 41 : index
    %c0_214 = arith.constant 0 : index
    %1105 = vector.load %arg5[%c41_213, %c0_214] : memref<49x128xbf16, #tpu.memory_space<vmem>>, vector<1x128xbf16>
    %1106 = vector.shape_cast %1105 : vector<1x128xbf16> to vector<128xbf16>
    %1107 = arith.extf %1106 : vector<128xbf16> to vector<128xf32>
    %1108 = vector.extract_strided_slice %1018 {offsets = [0, 176], sizes = [8, 128], strides = [1, 1]} : vector<8x384xf32> to vector<8x128xf32>
    %1109 = vector.shape_cast %1107 : vector<128xf32> to vector<1x128xf32>
    %1110 = vector.broadcast %1109 : vector<1x128xf32> to vector<8x128xf32>
    %1111 = arith.addf %1108, %1110 : vector<8x128xf32>
    %1112 = arith.mulf %48, %1111 : vector<8x128xf32>
    %1113 = arith.subf %1112, %504 : vector<8x128xf32>
    %1114 = math.exp %1113 : vector<8x128xf32>
    %1115 = arith.addf %1101, %1114 : vector<8x128xf32>
    %1116 = vector.extract_strided_slice %1020 {offsets = [0, 176], sizes = [8, 128], strides = [1, 1]} : vector<8x384xf32> to vector<8x128xf32>
    %1117 = arith.mulf %1114, %1116 : vector<8x128xf32>
    %1118 = arith.addf %1104, %1117 : vector<8x128xf32>
    %c11_215 = arith.constant 11 : index
    %c0_216 = arith.constant 0 : index
    %1119 = vector.load %arg9[%c11_215, %c0_216] : memref<24x384xbf16, #tpu.memory_space<vmem>>, vector<8x384xbf16>
    %1120 = arith.extf %1119 : vector<8x384xbf16> to vector<8x384xf32>
    %c11_217 = arith.constant 11 : index
    %c0_218 = arith.constant 0 : index
    %1121 = vector.load %arg10[%c11_217, %c0_218] : memref<24x384xbf16, #tpu.memory_space<vmem>>, vector<8x384xbf16>
    %1122 = arith.extf %1121 : vector<8x384xbf16> to vector<8x384xf32>
    %c42_219 = arith.constant 42 : index
    %c0_220 = arith.constant 0 : index
    %1123 = vector.load %arg5[%c42_219, %c0_220] : memref<49x128xbf16, #tpu.memory_space<vmem>>, vector<1x128xbf16>
    %1124 = vector.shape_cast %1123 : vector<1x128xbf16> to vector<128xbf16>
    %1125 = arith.extf %1124 : vector<128xbf16> to vector<128xf32>
    %1126 = vector.extract_strided_slice %1120 {offsets = [0, 80], sizes = [8, 128], strides = [1, 1]} : vector<8x384xf32> to vector<8x128xf32>
    %1127 = vector.shape_cast %1125 : vector<128xf32> to vector<1x128xf32>
    %1128 = vector.broadcast %1127 : vector<1x128xf32> to vector<8x128xf32>
    %1129 = arith.addf %1126, %1128 : vector<8x128xf32>
    %1130 = arith.mulf %48, %1129 : vector<8x128xf32>
    %1131 = arith.subf %1130, %504 : vector<8x128xf32>
    %1132 = math.exp %1131 : vector<8x128xf32>
    %1133 = arith.addf %1115, %1132 : vector<8x128xf32>
    %1134 = vector.extract_strided_slice %1122 {offsets = [0, 80], sizes = [8, 128], strides = [1, 1]} : vector<8x384xf32> to vector<8x128xf32>
    %1135 = arith.mulf %1132, %1134 : vector<8x128xf32>
    %1136 = arith.addf %1118, %1135 : vector<8x128xf32>
    %c43_221 = arith.constant 43 : index
    %c0_222 = arith.constant 0 : index
    %1137 = vector.load %arg5[%c43_221, %c0_222] : memref<49x128xbf16, #tpu.memory_space<vmem>>, vector<1x128xbf16>
    %1138 = vector.shape_cast %1137 : vector<1x128xbf16> to vector<128xbf16>
    %1139 = arith.extf %1138 : vector<128xbf16> to vector<128xf32>
    %1140 = vector.extract_strided_slice %1120 {offsets = [0, 96], sizes = [8, 128], strides = [1, 1]} : vector<8x384xf32> to vector<8x128xf32>
    %1141 = vector.shape_cast %1139 : vector<128xf32> to vector<1x128xf32>
    %1142 = vector.broadcast %1141 : vector<1x128xf32> to vector<8x128xf32>
    %1143 = arith.addf %1140, %1142 : vector<8x128xf32>
    %1144 = arith.mulf %48, %1143 : vector<8x128xf32>
    %1145 = arith.subf %1144, %504 : vector<8x128xf32>
    %1146 = math.exp %1145 : vector<8x128xf32>
    %1147 = arith.addf %1133, %1146 : vector<8x128xf32>
    %1148 = vector.extract_strided_slice %1122 {offsets = [0, 96], sizes = [8, 128], strides = [1, 1]} : vector<8x384xf32> to vector<8x128xf32>
    %1149 = arith.mulf %1146, %1148 : vector<8x128xf32>
    %1150 = arith.addf %1136, %1149 : vector<8x128xf32>
    %c44_223 = arith.constant 44 : index
    %c0_224 = arith.constant 0 : index
    %1151 = vector.load %arg5[%c44_223, %c0_224] : memref<49x128xbf16, #tpu.memory_space<vmem>>, vector<1x128xbf16>
    %1152 = vector.shape_cast %1151 : vector<1x128xbf16> to vector<128xbf16>
    %1153 = arith.extf %1152 : vector<128xbf16> to vector<128xf32>
    %1154 = vector.extract_strided_slice %1120 {offsets = [0, 112], sizes = [8, 128], strides = [1, 1]} : vector<8x384xf32> to vector<8x128xf32>
    %1155 = vector.shape_cast %1153 : vector<128xf32> to vector<1x128xf32>
    %1156 = vector.broadcast %1155 : vector<1x128xf32> to vector<8x128xf32>
    %1157 = arith.addf %1154, %1156 : vector<8x128xf32>
    %1158 = arith.mulf %48, %1157 : vector<8x128xf32>
    %1159 = arith.subf %1158, %504 : vector<8x128xf32>
    %1160 = math.exp %1159 : vector<8x128xf32>
    %1161 = arith.addf %1147, %1160 : vector<8x128xf32>
    %1162 = vector.extract_strided_slice %1122 {offsets = [0, 112], sizes = [8, 128], strides = [1, 1]} : vector<8x384xf32> to vector<8x128xf32>
    %1163 = arith.mulf %1160, %1162 : vector<8x128xf32>
    %1164 = arith.addf %1150, %1163 : vector<8x128xf32>
    %c45_225 = arith.constant 45 : index
    %c0_226 = arith.constant 0 : index
    %1165 = vector.load %arg5[%c45_225, %c0_226] : memref<49x128xbf16, #tpu.memory_space<vmem>>, vector<1x128xbf16>
    %1166 = vector.shape_cast %1165 : vector<1x128xbf16> to vector<128xbf16>
    %1167 = arith.extf %1166 : vector<128xbf16> to vector<128xf32>
    %1168 = vector.extract_strided_slice %1120 {offsets = [0, 128], sizes = [8, 128], strides = [1, 1]} : vector<8x384xf32> to vector<8x128xf32>
    %1169 = vector.shape_cast %1167 : vector<128xf32> to vector<1x128xf32>
    %1170 = vector.broadcast %1169 : vector<1x128xf32> to vector<8x128xf32>
    %1171 = arith.addf %1168, %1170 : vector<8x128xf32>
    %1172 = arith.mulf %48, %1171 : vector<8x128xf32>
    %1173 = arith.subf %1172, %504 : vector<8x128xf32>
    %1174 = math.exp %1173 : vector<8x128xf32>
    %1175 = arith.addf %1161, %1174 : vector<8x128xf32>
    %1176 = vector.extract_strided_slice %1122 {offsets = [0, 128], sizes = [8, 128], strides = [1, 1]} : vector<8x384xf32> to vector<8x128xf32>
    %1177 = arith.mulf %1174, %1176 : vector<8x128xf32>
    %1178 = arith.addf %1164, %1177 : vector<8x128xf32>
    %c46_227 = arith.constant 46 : index
    %c0_228 = arith.constant 0 : index
    %1179 = vector.load %arg5[%c46_227, %c0_228] : memref<49x128xbf16, #tpu.memory_space<vmem>>, vector<1x128xbf16>
    %1180 = vector.shape_cast %1179 : vector<1x128xbf16> to vector<128xbf16>
    %1181 = arith.extf %1180 : vector<128xbf16> to vector<128xf32>
    %1182 = vector.extract_strided_slice %1120 {offsets = [0, 144], sizes = [8, 128], strides = [1, 1]} : vector<8x384xf32> to vector<8x128xf32>
    %1183 = vector.shape_cast %1181 : vector<128xf32> to vector<1x128xf32>
    %1184 = vector.broadcast %1183 : vector<1x128xf32> to vector<8x128xf32>
    %1185 = arith.addf %1182, %1184 : vector<8x128xf32>
    %1186 = arith.mulf %48, %1185 : vector<8x128xf32>
    %1187 = arith.subf %1186, %504 : vector<8x128xf32>
    %1188 = math.exp %1187 : vector<8x128xf32>
    %1189 = arith.addf %1175, %1188 : vector<8x128xf32>
    %1190 = vector.extract_strided_slice %1122 {offsets = [0, 144], sizes = [8, 128], strides = [1, 1]} : vector<8x384xf32> to vector<8x128xf32>
    %1191 = arith.mulf %1188, %1190 : vector<8x128xf32>
    %1192 = arith.addf %1178, %1191 : vector<8x128xf32>
    %c47_229 = arith.constant 47 : index
    %c0_230 = arith.constant 0 : index
    %1193 = vector.load %arg5[%c47_229, %c0_230] : memref<49x128xbf16, #tpu.memory_space<vmem>>, vector<1x128xbf16>
    %1194 = vector.shape_cast %1193 : vector<1x128xbf16> to vector<128xbf16>
    %1195 = arith.extf %1194 : vector<128xbf16> to vector<128xf32>
    %1196 = vector.extract_strided_slice %1120 {offsets = [0, 160], sizes = [8, 128], strides = [1, 1]} : vector<8x384xf32> to vector<8x128xf32>
    %1197 = vector.shape_cast %1195 : vector<128xf32> to vector<1x128xf32>
    %1198 = vector.broadcast %1197 : vector<1x128xf32> to vector<8x128xf32>
    %1199 = arith.addf %1196, %1198 : vector<8x128xf32>
    %1200 = arith.mulf %48, %1199 : vector<8x128xf32>
    %1201 = arith.subf %1200, %504 : vector<8x128xf32>
    %1202 = math.exp %1201 : vector<8x128xf32>
    %1203 = arith.addf %1189, %1202 : vector<8x128xf32>
    %1204 = vector.extract_strided_slice %1122 {offsets = [0, 160], sizes = [8, 128], strides = [1, 1]} : vector<8x384xf32> to vector<8x128xf32>
    %1205 = arith.mulf %1202, %1204 : vector<8x128xf32>
    %1206 = arith.addf %1192, %1205 : vector<8x128xf32>
    %c48_231 = arith.constant 48 : index
    %c0_232 = arith.constant 0 : index
    %1207 = vector.load %arg5[%c48_231, %c0_232] : memref<49x128xbf16, #tpu.memory_space<vmem>>, vector<1x128xbf16>
    %1208 = vector.shape_cast %1207 : vector<1x128xbf16> to vector<128xbf16>
    %1209 = arith.extf %1208 : vector<128xbf16> to vector<128xf32>
    %1210 = vector.extract_strided_slice %1120 {offsets = [0, 176], sizes = [8, 128], strides = [1, 1]} : vector<8x384xf32> to vector<8x128xf32>
    %1211 = vector.shape_cast %1209 : vector<128xf32> to vector<1x128xf32>
    %1212 = vector.broadcast %1211 : vector<1x128xf32> to vector<8x128xf32>
    %1213 = arith.addf %1210, %1212 : vector<8x128xf32>
    %1214 = arith.mulf %48, %1213 : vector<8x128xf32>
    %1215 = arith.subf %1214, %504 : vector<8x128xf32>
    %1216 = math.exp %1215 : vector<8x128xf32>
    %1217 = arith.addf %1203, %1216 : vector<8x128xf32>
    %1218 = vector.extract_strided_slice %1122 {offsets = [0, 176], sizes = [8, 128], strides = [1, 1]} : vector<8x384xf32> to vector<8x128xf32>
    %1219 = arith.mulf %1216, %1218 : vector<8x128xf32>
    %1220 = arith.addf %1206, %1219 : vector<8x128xf32>
    %1221 = tpu.reciprocal %1217 {approx = true} : vector<8x128xf32> -> vector<8x128xf32>
    %c0_233 = arith.constant 0 : index
    %c0_234 = arith.constant 0 : index
    %1222 = vector.load %arg6[%c0_233, %c0_234] : memref<1x128xf32, #tpu.memory_space<vmem>>, vector<1x128xf32>
    %1223 = vector.shape_cast %1222 : vector<1x128xf32> to vector<128xf32>
    %1224 = vector.shape_cast %1223 : vector<128xf32> to vector<1x128xf32>
    %1225 = vector.broadcast %1224 : vector<1x128xf32> to vector<8x128xf32>
    %1226 = arith.mulf %1221, %1225 : vector<8x128xf32>
    %1227 = arith.mulf %1220, %1226 : vector<8x128xf32>
    %c0_235 = arith.constant 0 : index
    %c0_236 = arith.constant 0 : index
    %1228 = vector.load %arg7[%c0_235, %c0_236] : memref<1x128xf32, #tpu.memory_space<vmem>>, vector<1x128xf32>
    %1229 = vector.shape_cast %1228 : vector<1x128xf32> to vector<128xf32>
    %1230 = vector.shape_cast %1229 : vector<128xf32> to vector<1x128xf32>
    %1231 = vector.broadcast %1230 : vector<1x128xf32> to vector<8x128xf32>
    %1232 = arith.addf %1227, %1231 : vector<8x128xf32>
    %cst_237 = arith.constant 0.000000e+00 : f32
    %1233 = vector.broadcast %cst_237 : f32 to vector<8x128xf32>
    %1234 = arith.maximumf %1232, %1233 : vector<8x128xf32>
    %1235 = arith.truncf %1234 : vector<8x128xf32> to vector<8x128xbf16>
    %c0_238 = arith.constant 0 : index
    %c0_239 = arith.constant 0 : index
    %c0_240 = arith.constant 0 : index
    %1236 = vector.load %arg8[%c0_238, %c0_239, %c0_240] : memref<1x8x128xbf16, #tpu.memory_space<vmem>>, vector<1x8x128xbf16>
    %1237 = vector.shape_cast %1236 : vector<1x8x128xbf16> to vector<8x128xbf16>
    %1238 = vector.shape_cast %1235 : vector<8x128xbf16> to vector<1x8x128xbf16>
    tpu.vector_store %arg8[%c0_238, %c0_239, %c0_240], %1238 {strides = array<i32>} : memref<1x8x128xbf16, #tpu.memory_space<vmem>>, vector<1x8x128xbf16>,
    return
  }
  func.func @transform_0(%arg0: i32, %arg1: i32) -> (i32, i32, i32) {
    %c0_i32 = arith.constant 0 : i32
    %c0_i32_0 = arith.constant 0 : i32
    return %arg0, %arg1, %c0_i32 : i32, i32, i32
  }
  func.func @transform_3(%arg0: i32, %arg1: i32) -> (i32, i32) {
    %c0_i32 = arith.constant 0 : i32
    %c0_i32_0 = arith.constant 0 : i32
    %c0_i32_1 = arith.constant 0 : i32
    return %c0_i32, %c0_i32_0 : i32, i32
  }
  func.func @transform_4(%arg0: i32, %arg1: i32) -> (i32, i32) {
    %c0_i32 = arith.constant 0 : i32
    %c0_i32_0 = arith.constant 0 : i32
    %c0_i32_1 = arith.constant 0 : i32
    return %c0_i32, %c0_i32_0 : i32, i32
  }
  func.func @transform_5(%arg0: i32, %arg1: i32) -> (i32, i32) {
    %c0_i32 = arith.constant 0 : i32
    %c0_i32_0 = arith.constant 0 : i32
    %c0_i32_1 = arith.constant 0 : i32
    return %c0_i32, %c0_i32_0 : i32, i32
  }
  func.func @transform_6(%arg0: i32, %arg1: i32) -> (i32, i32, i32) {
    %c0_i32 = arith.constant 0 : i32
    %c0_i32_0 = arith.constant 0 : i32
    return %arg0, %arg1, %c0_i32 : i32, i32, i32
  }
}

</mosaic_0001>

<bundles_post_ra>
// kernel: tile.28
= control target key start
LH: loop header
LB: loop body
LE: loop exit
PB: predicated region body
PF: predicated region fallthrough
CT: control target
= control target key end

     0   :  { %s22_s0 = inlined_call_operand.vmem [shape: f32[16], index: 0, kind: input, shape index: {}]   ;;  %s23_s1 = inlined_call_operand.vmem [shape: f32[8,16], index: 1, kind: output, shape index: {}]  }
   0x1   :  { %v4_v0 = vld [vmem:[%s22_s0] ss:$0 sm:$0xff] }
   0x2   :  { %5 = vst [vmem:[%s23_s1] sm:$0xff] %v4_v0 }

// kernel: tile.29
= control target key start
LH: loop header
LB: loop body
LE: loop exit
PB: predicated region body
PF: predicated region fallthrough
CT: control target
= control target key end

     0   :  { %s67_s10 = smov 112   ;;  %s68_s11 = smov 80   ;;  %vm3_vm0 = vcmask 130048   ;;  %vm9_vm1 = vcmask 1048448   ;;  %vm15_vm2 = vcmask 917248   ;;  %vm21_vm3 = vcmask 786048   ;;  %s111_s0 = inlined_call_operand.vmem [shape: f32[8,16], index: 0, kind: input, shape index: {}]   ;;  %s112_s1 = inlined_call_operand.vmem [shape: f32[1,128], index: 1, kind: output, shape index: {}]  }
   0x1   :  { %v53_v0 = vld [vmem:[%s111_s0 + $0x7] sm:$0x1]   ;;  %v55_v1 = vld [vmem:[%s111_s0 + $0x5] sm:$0x1]   ;;  %v54_v2 = vld [vmem:[%s111_s0 + $0x6] sm:$0x1]  }
   0x2   :  { %7 = vrot.lane.b32.xlu0 %v53_v0, %s67_s10  ;;  %19 = vrot.lane.b32.xlu1 %v55_v1, %s68_s11  ;;  %v56_v3 = vld [vmem:[%s111_s0 + $0x4] sm:$0x1]   ;;  %v2_v4 = vld [vmem:[%s111_s0] sm:$0x1]   ;;  %s69_s18 = smov 96   ;;  %s70_s19 = smov 64  }
   0x3   :  { %4 = vst.msk [vmem:[#allocation0] sm:$0x1] %vm3_vm0, %v2_v4   ;;  %v57_v5 = vld [vmem:[%s111_s0 + $0x3] sm:$0x1]   ;;  %v58_v6 = vld [vmem:[%s111_s0 + $0x2] sm:$0x1]  }
   0x4   :  { %s71_s24 = smov 48   ;;  %s72_s25 = smov 32   ;;  %v59_v7 = vld [vmem:[%s111_s0 + $0x1] sm:$0x1]   ;;  %vm27_vm4 = vcmask 654848   ;;  %vm33_vm5 = vcmask 523648  }
   0x5   :  { %s73_s0 = smov 16   ;;  %vm39_vm6 = vcmask 392448   ;;  %vm45_vm7 = vcmask 261248  }
   0x6   :  { %13 = vrot.lane.b32.xlu0 %v54_v2, %s69_s18  ;;  %25 = vrot.lane.b32.xlu1 %v56_v3, %s70_s19 }
   0xa   :  { %31 = vrot.lane.b32.xlu0 %v57_v5, %s71_s24  ;;  %37 = vrot.lane.b32.xlu1 %v58_v6, %s72_s25 }
   0xe   :  { %43 = vrot.lane.b32.xlu0 %v59_v7, %s73_s0 }
  0x74   :  { %v8_v8 = vpop.permute.xlu0 %7   ;;  %v20_v9 = vpop.permute.xlu1 %19  }
  0x75   :  { %10 = vst.msk [vmem:[#allocation0] sm:$0x1] %vm9_vm1, %v8_v8  }
  0x78   :  { %v14_v10 = vpop.permute.xlu0 %13   ;;  %v26_v11 = vpop.permute.xlu1 %25  }
  0x79   :  { %16 = vst.msk [vmem:[#allocation0] sm:$0x1] %vm15_vm2, %v14_v10  }
  0x7a   :  { %22 = vst.msk [vmem:[#allocation0] sm:$0x1] %vm21_vm3, %v20_v9  }
  0x7b   :  { %28 = vst.msk [vmem:[#allocation0] sm:$0x1] %vm27_vm4, %v26_v11  }
  0x7c   :  { %v32_v12 = vpop.permute.xlu0 %31   ;;  %v38_v13 = vpop.permute.xlu1 %37  }
  0x7d   :  { %34 = vst.msk [vmem:[#allocation0] sm:$0x1] %vm33_vm5, %v32_v12  }
  0x7e   :  { %40 = vst.msk [vmem:[#allocation0] sm:$0x1] %vm39_vm6, %v38_v13  }
  0x80   :  { %v44_v14 = vpop.permute.xlu0 %43  }
  0x81   :  { %46 = vst.msk [vmem:[#allocation0] sm:$0x1] %vm45_vm7, %v44_v14  }
  0x88   :  { %v50_v15 = vld [vmem:[#allocation0] sm:$0x1] }
  0x89   :  { %52 = vst [vmem:[%s112_s1] sm:$0x1] %v50_v15 }

// kernel: bottleneck_forward.3
= control target key start
LH: loop header
LB: loop body
LE: loop exit
PB: predicated region body
PF: predicated region fallthrough
CT: control target
= control target key end

     0   :  { %vm88_vm0 = vcmask 130048   ;;  %vm489_vm1 = vcmask 125952   ;;  %s1134_s1 = inlined_call_operand.vmem [shape: bf16[16,16], index: 1, kind: input, shape index: {}]   ;;  %s1135_s0 = inlined_call_operand.vmem [shape: bf16[128,16], index: 0, kind: input, shape index: {}]   ;;  %s1136_s4 = inlined_call_operand.vmem [shape: bf16[16,48], index: 4, kind: input, shape index: {}]   ;;  %s1137_s2 = inlined_call_operand.vmem [shape: f32[1,16], index: 2, kind: input, shape index: {}]   ;;  %s1138_s3 = inlined_call_operand.vmem [shape: f32[1,16], index: 3, kind: input, shape index: {}]   ;;  %s1139_s5 = inlined_call_operand.vmem [shape: bf16[128,16], index: 5, kind: output, shape index: {0}]   ;;  %s1140_s7 = inlined_call_operand.vmem [shape: bf16[128,16], index: 7, kind: output, shape index: {2}]   ;;  %s1141_s6 = inlined_call_operand.vmem [shape: bf16[128,16], index: 6, kind: output, shape index: {1}]  }
   0x1   :  { %v762_v0 = vld [vmem:[%s1134_s1] sm:$0xff]   ;;  %v764_v2 = vld [vmem:[%s1135_s0 + $0x8] sm:$0xff]   ;;  %v765_v3 = vld [vmem:[%s1135_s0 + $0x10] sm:$0xff]  }
   0x2   :  { %v763_v1 = vld [vmem:[%s1135_s0] sm:$0xff]   ;;  %724 = vmatprep.subr.bf16.mxu0 %v762_v0  ;;  %v766_v4 = vld [vmem:[%s1135_s0 + $0x18] sm:$0xff]   ;;  %v768_v6 = vld [vmem:[%s1135_s0 + $0x28] sm:$0xff]  }
   0x3   :  { %725 = vmatpush3.bf16.msra.mxu0 %v762_v0  ;;  %726 = vmatprep.mubr.msk.bf16.mxu0 %vm88_vm0, %v763_v1  ;;  %v767_v5 = vld [vmem:[%s1135_s0 + $0x20] sm:$0xff]   ;;  %v769_v7 = vld [vmem:[%s1135_s0 + $0x30] sm:$0xff]   ;;  %v770_v8 = vld [vmem:[%s1135_s0 + $0x38] sm:$0xff]  }
   0x4   :  { %v771_v9 = vld [vmem:[%s1136_s4] sm:$0xff]   ;;  %s773_s4 = smov 112  }
   0x5   :  { %742 = vmatprep.subr.bf16.mxu1 %v771_v9  ;;  %v855_v10 = vld [vmem:[%s1137_s2] ss:$0 sm:$0xff] }
   0x6   :  { %727 = vmatmul.mubr.msk.bf16.vlgmr.msra.gmra.mrb[0].mxu0 %vm88_vm0, %v764_v2  ;;  %743 = vmatpush3.bf16.msra.mxu1 %v771_v9  ;;  %v860_v12 = vld [vmem:[%s1138_s3] ss:$0 sm:$0xff]  ;;  %s772_s3 = smov 96  }
   0x7   :  { %730 = vmatprep.mubr.msk.bf16.mxu0 %vm88_vm0, %v765_v3 }
   0xe   :  { %731 = vmatmul.mubr.msk.bf16.gmra.mrb[4].mxu0 %vm88_vm0, %v766_v4 }
   0xf   :  { %734 = vmatprep.mubr.msk.bf16.mxu0 %vm88_vm0, %v767_v5 }
  0x16   :  { %735 = vmatmul.mubr.msk.bf16.gmra.mrb[8].mxu0 %vm88_vm0, %v768_v6 }
  0x17   :  { %738 = vmatprep.mubr.msk.bf16.mxu0 %vm88_vm0, %v769_v7 }
  0x1e   :  { %739 = vmatmul.mubr.msk.bf16.gmra.mrb[12].mxu0 %vm88_vm0, %v770_v8 }
  0xd9   :  { %v728_v11 = vpop.f32.mrb[0].mxu0 }
  0xda   :  { %v219_v13 = vmul.f32 %v728_v11, %v855_v10  ;;  %v147_v14 = vpop.f32.mrb[1].mxu0 }
  0xdb   :  { %v217_v15 = vmul.f32 %v855_v10, %v147_v14  ;;  %v729_v16 = vpop.f32.mrb[2].mxu0 }
  0xdc   :  { %v242_v17 = vadd.f32 %v860_v12, %v219_v13  ;;  %v220_v18 = vmul.f32 %v729_v16, %v855_v10  ;;  %v150_v19 = vpop.f32.mrb[3].mxu0 }
  0xdd   :  { %v240_v20 = vadd.f32 %v860_v12, %v217_v15  ;;  %v218_v21 = vmul.f32 %v855_v10, %v150_v19 }
  0xde   :  { %v243_v22 = vadd.f32 %v860_v12, %v220_v18  ;;  %v258_v24 = vmax.f32 %v242_v17, 0.0 }
  0xdf   :  { %v241_v23 = vadd.f32 %v860_v12, %v218_v21  ;;  %v256_v26 = vmax.f32 %v240_v20, 0.0 }
  0xe0   :  { %v259_v25 = vmax.f32 %v243_v22, 0.0 }
  0xe1   :  { %v257_v27 = vmax.f32 %v241_v23, 0.0  ;;  %v732_v28 = vpop.f32.mrb[4].mxu0 }
  0xe2   :  { %v273_v29 = vpack.c.bf16 %v259_v25, %v258_v24  ;;  %v223_v30 = vmul.f32 %v732_v28, %v855_v10  ;;  %v163_v31 = vpop.f32.mrb[5].mxu0 }
  0xe3   :  { %v272_v32 = vpack.c.bf16 %v257_v27, %v256_v26  ;;  %v221_v33 = vmul.f32 %v855_v10, %v163_v31  ;;  %v733_v34 = vpop.f32.mrb[6].mxu0 }
  0xe4   :  { %281 = vst.msk [vmem:[#allocation2 + $0x8] sm:$0xff] %vm88_vm0, %v273_v29  ;;  %v246_v35 = vadd.f32 %v860_v12, %v223_v30  ;;  %v224_v36 = vmul.f32 %v733_v34, %v855_v10  ;;  %v166_v37 = vpop.f32.mrb[7].mxu0 }
  0xe5   :  { %280 = vst.msk [vmem:[#allocation2] sm:$0xff] %vm88_vm0, %v272_v32  ;;  %v244_v38 = vadd.f32 %v860_v12, %v221_v33  ;;  %v222_v39 = vmul.f32 %v855_v10, %v166_v37 }
  0xe6   :  { %v262_v40 = vmax.f32 %v246_v35, 0.0  ;;  %v247_v41 = vadd.f32 %v860_v12, %v224_v36 }
  0xe7   :  { %v260_v42 = vmax.f32 %v244_v38, 0.0  ;;  %v245_v43 = vadd.f32 %v860_v12, %v222_v39 }
  0xe8   :  { %v263_v44 = vmax.f32 %v247_v41, 0.0 }
  0xe9   :  { %v261_v45 = vmax.f32 %v245_v43, 0.0  ;;  %v736_v46 = vpop.f32.mrb[8].mxu0 }
  0xea   :  { %v275_v47 = vpack.c.bf16 %v263_v44, %v262_v40  ;;  %v227_v48 = vmul.f32 %v736_v46, %v855_v10  ;;  %v179_v49 = vpop.f32.mrb[9].mxu0 }
  0xeb   :  { %v274_v50 = vpack.c.bf16 %v261_v45, %v260_v42  ;;  %v225_v51 = vmul.f32 %v855_v10, %v179_v49  ;;  %v737_v52 = vpop.f32.mrb[10].mxu0  ;;  %v289_v57 = vld [vmem:[#allocation2 + $0x8] sm:$0xff] }
  0xec   :  { %283 = vst.msk [vmem:[#allocation2 + $0x18] sm:$0xff] %vm88_vm0, %v275_v47  ;;  %v288_v53 = vld [vmem:[#allocation2] sm:$0xff]  ;;  %v250_v54 = vadd.f32 %v860_v12, %v227_v48  ;;  %v228_v55 = vmul.f32 %v737_v52, %v855_v10  ;;  %v182_v56 = vpop.f32.mrb[11].mxu0 }
  0xed   :  { %282 = vst.msk [vmem:[#allocation2 + $0x10] sm:$0xff] %vm88_vm0, %v274_v50  ;;  %744 = vmatprep.mubr.msk.bf16.mxu1 %vm88_vm0, %v288_v53  ;;  %v248_v58 = vadd.f32 %v860_v12, %v225_v51  ;;  %v226_v59 = vmul.f32 %v855_v10, %v182_v56 }
  0xee   :  { %745 = vmatmul.mubr.msk.bf16.vlgmr.msra.gmra.mrb[0].mxu1 %vm88_vm0, %v289_v57  ;;  %v266_v60 = vmax.f32 %v250_v54, 0.0  ;;  %v251_v61 = vadd.f32 %v860_v12, %v228_v55 }
  0xef   :  { %v264_v62 = vmax.f32 %v248_v58, 0.0  ;;  %v249_v63 = vadd.f32 %v860_v12, %v226_v59 }
  0xf0   :  { %v267_v0 = vmax.f32 %v251_v61, 0.0 }
  0xf1   :  { %v265_v1 = vmax.f32 %v249_v63, 0.0  ;;  %v740_v2 = vpop.f32.mrb[12].mxu0 }
  0xf2   :  { %v277_v3 = vpack.c.bf16 %v267_v0, %v266_v60  ;;  %v231_v4 = vmul.f32 %v740_v2, %v855_v10  ;;  %v195_v5 = vpop.f32.mrb[13].mxu0 }
  0xf3   :  { %v276_v6 = vpack.c.bf16 %v265_v1, %v264_v62  ;;  %v291_v7 = vld [vmem:[#allocation2 + $0x18] sm:$0xff]  ;;  %v229_v8 = vmul.f32 %v855_v10, %v195_v5  ;;  %v741_v9 = vpop.f32.mrb[14].mxu0 }
  0xf4   :  { %285 = vst.msk [vmem:[#allocation2 + $0x28] sm:$0xff] %vm88_vm0, %v277_v3  ;;  %v290_v11 = vld [vmem:[#allocation2 + $0x10] sm:$0xff]  ;;  %v254_v13 = vadd.f32 %v860_v12, %v231_v4  ;;  %v232_v14 = vmul.f32 %v741_v9, %v855_v10  ;;  %v198_v15 = vpop.f32.mrb[15].mxu0 }
  0xf5   :  { %284 = vst.msk [vmem:[#allocation2 + $0x20] sm:$0xff] %vm88_vm0, %v276_v6  ;;  %748 = vmatprep.mubr.msk.bf16.mxu1 %vm88_vm0, %v290_v11  ;;  %v252_v16 = vadd.f32 %v860_v12, %v229_v8  ;;  %v230_v17 = vmul.f32 %v855_v10, %v198_v15 }
  0xf6   :  { %749 = vmatmul.mubr.msk.bf16.gmra.mrb[4].mxu1 %vm88_vm0, %v291_v7  ;;  %v270_v18 = vmax.f32 %v254_v13, 0.0  ;;  %v255_v19 = vadd.f32 %v860_v12, %v232_v14 }
  0xf7   :  { %v268_v20 = vmax.f32 %v252_v16, 0.0  ;;  %v253_v21 = vadd.f32 %v860_v12, %v230_v17 }
  0xf8   :  { %v271_v22 = vmax.f32 %v255_v19, 0.0 }
  0xf9   :  { %v269_v23 = vmax.f32 %v253_v21, 0.0 }
  0xfa   :  { %v279_v24 = vpack.c.bf16 %v271_v22, %v270_v18 }
  0xfb   :  { %v278_v25 = vpack.c.bf16 %v269_v23, %v268_v20  ;;  %v293_v26 = vld [vmem:[#allocation2 + $0x28] sm:$0xff] }
  0xfc   :  { %287 = vst.msk [vmem:[#allocation2 + $0x38] sm:$0xff] %vm88_vm0, %v279_v24  ;;  %v292_v27 = vld [vmem:[#allocation2 + $0x20] sm:$0xff] }
  0xfd   :  { %286 = vst.msk [vmem:[#allocation2 + $0x30] sm:$0xff] %vm88_vm0, %v278_v25  ;;  %752 = vmatprep.mubr.msk.bf16.mxu1 %vm88_vm0, %v292_v27 }
  0xfe   :  { %753 = vmatmul.mubr.msk.bf16.gmra.mrb[8].mxu1 %vm88_vm0, %v293_v26 }
 0x103   :  { %v295_v10 = vld [vmem:[#allocation2 + $0x38] sm:$0xff] }
 0x104   :  { %v294_v28 = vld [vmem:[#allocation2 + $0x30] sm:$0xff] }
 0x105   :  { %756 = vmatprep.mubr.msk.bf16.mxu1 %vm88_vm0, %v294_v28 }
 0x106   :  { %757 = vmatmul.mubr.msk.bf16.gmra.mrb[12].mxu1 %vm88_vm0, %v295_v10 }
 0x1c1   :  { %v746_v12 = vpop.f32.mrb[0].mxu1 }
 0x1c2   :  { %v692_v29 = vpack.c.bf16 %v746_v12, %v746_v12  ;;  %v362_v30 = vpop.f32.mrb[1].mxu1 }
 0x1c3   :  { %v690_v31 = vpack.c.bf16 %v362_v30, %v362_v30  ;;  %v747_v32 = vpop.f32.mrb[2].mxu1 }
 0x1c4   :  { %492 = vst.msk [vmem:[%s1139_s5 + $0x8] sm:$0xf] %vm489_vm1, %v692_v29  ;;  %v693_v33 = vpack.c.bf16 %v747_v32, %v747_v32  ;;  %574 = vrot.lane.b32.xlu0 %v692_v29, %s772_s3  ;;  %510 = vrot.lane.b32.xlu1 %v692_v29, %s773_s4  ;;  %v365_v34 = vpop.f32.mrb[3].mxu1 }
 0x1c5   :  { %490 = vst.msk [vmem:[%s1139_s5] sm:$0xf] %vm489_vm1, %v690_v31  ;;  %v691_v35 = vpack.c.bf16 %v365_v34, %v365_v34 }
 0x1c6   :  { %493 = vst.msk [vmem:[%s1139_s5 + $0xc] sm:$0xf] %vm489_vm1, %v693_v33 }
 0x1c7   :  { %491 = vst.msk [vmem:[%s1139_s5 + $0x4] sm:$0xf] %vm489_vm1, %v691_v35 }
 0x1c8   :  { %506 = vrot.lane.b32.xlu0 %v690_v31, %s773_s4  ;;  %512 = vrot.lane.b32.xlu1 %v693_v33, %s773_s4 }
 0x1c9   :  { %v750_v36 = vpop.f32.mrb[4].mxu1 }
 0x1ca   :  { %v696_v37 = vpack.c.bf16 %v750_v36, %v750_v36  ;;  %v378_v38 = vpop.f32.mrb[5].mxu1 }
 0x1cb   :  { %v694_v39 = vpack.c.bf16 %v378_v38, %v378_v38  ;;  %v751_v40 = vpop.f32.mrb[6].mxu1 }
 0x1cc   :  { %496 = vst.msk [vmem:[%s1139_s5 + $0x18] sm:$0xf] %vm489_vm1, %v696_v37  ;;  %v697_v41 = vpack.c.bf16 %v751_v40, %v751_v40  ;;  %570 = vrot.lane.b32.xlu0 %v690_v31, %s772_s3  ;;  %576 = vrot.lane.b32.xlu1 %v693_v33, %s772_s3  ;;  %v381_v42 = vpop.f32.mrb[7].mxu1 }
 0x1cd   :  { %494 = vst.msk [vmem:[%s1139_s5 + $0x10] sm:$0xf] %vm489_vm1, %v694_v39  ;;  %v695_v43 = vpack.c.bf16 %v381_v42, %v381_v42 }
 0x1ce   :  { %497 = vst.msk [vmem:[%s1139_s5 + $0x1c] sm:$0xf] %vm489_vm1, %v697_v41 }
 0x1cf   :  { %495 = vst.msk [vmem:[%s1139_s5 + $0x14] sm:$0xf] %vm489_vm1, %v695_v43 }
 0x1d0   :  { %572 = vrot.lane.b32.xlu1 %v691_v35, %s772_s3  ;;  %508 = vrot.lane.b32.xlu0 %v691_v35, %s773_s4 }
 0x1d1   :  { %v754_v44 = vpop.f32.mrb[8].mxu1 }
 0x1d2   :  { %v700_v45 = vpack.c.bf16 %v754_v44, %v754_v44  ;;  %v394_v46 = vpop.f32.mrb[9].mxu1 }
 0x1d3   :  { %v698_v47 = vpack.c.bf16 %v394_v46, %v394_v46  ;;  %v755_v48 = vpop.f32.mrb[10].mxu1 }
 0x1d4   :  { %518 = vrot.lane.b32.xlu0 %v696_v37, %s773_s4  ;;  %520 = vrot.lane.b32.xlu1 %v697_v41, %s773_s4  ;;  %500 = vst.msk [vmem:[%s1139_s5 + $0x28] sm:$0xf] %vm489_vm1, %v700_v45  ;;  %v701_v49 = vpack.c.bf16 %v755_v48, %v755_v48  ;;  %v397_v50 = vpop.f32.mrb[11].mxu1 }
 0x1d5   :  { %498 = vst.msk [vmem:[%s1139_s5 + $0x20] sm:$0xf] %vm489_vm1, %v698_v47  ;;  %v699_v51 = vpack.c.bf16 %v397_v50, %v397_v50 }
 0x1d6   :  { %501 = vst.msk [vmem:[%s1139_s5 + $0x2c] sm:$0xf] %vm489_vm1, %v701_v49 }
 0x1d7   :  { %499 = vst.msk [vmem:[%s1139_s5 + $0x24] sm:$0xf] %vm489_vm1, %v699_v51 }
 0x1d8   :  { %582 = vrot.lane.b32.xlu0 %v696_v37, %s772_s3  ;;  %584 = vrot.lane.b32.xlu1 %v697_v41, %s772_s3 }
 0x1d9   :  { %v758_v52 = vpop.f32.mrb[12].mxu1 }
 0x1da   :  { %v704_v53 = vpack.c.bf16 %v758_v52, %v758_v52  ;;  %v410_v54 = vpop.f32.mrb[13].mxu1 }
 0x1db   :  { %v702_v55 = vpack.c.bf16 %v410_v54, %v410_v54  ;;  %v759_v56 = vpop.f32.mrb[14].mxu1 }
 0x1dc   :  { %514 = vrot.lane.b32.xlu0 %v694_v39, %s773_s4  ;;  %516 = vrot.lane.b32.xlu1 %v695_v43, %s773_s4  ;;  %504 = vst.msk [vmem:[%s1139_s5 + $0x38] sm:$0xf] %vm489_vm1, %v704_v53  ;;  %v705_v57 = vpack.c.bf16 %v759_v56, %v759_v56  ;;  %v413_v58 = vpop.f32.mrb[15].mxu1 }
 0x1dd   :  { %502 = vst.msk [vmem:[%s1139_s5 + $0x30] sm:$0xf] %vm489_vm1, %v702_v55  ;;  %v703_v59 = vpack.c.bf16 %v413_v58, %v413_v58 }
 0x1de   :  { %505 = vst.msk [vmem:[%s1139_s5 + $0x3c] sm:$0xf] %vm489_vm1, %v705_v57 }
 0x1df   :  { %503 = vst.msk [vmem:[%s1139_s5 + $0x34] sm:$0xf] %vm489_vm1, %v703_v59 }
 0x1e0   :  { %578 = vrot.lane.b32.xlu0 %v694_v39, %s772_s3  ;;  %580 = vrot.lane.b32.xlu1 %v695_v43, %s772_s3 }
 0x1e4   :  { %526 = vrot.lane.b32.xlu0 %v700_v45, %s773_s4  ;;  %528 = vrot.lane.b32.xlu1 %v701_v49, %s773_s4 }
 0x1e8   :  { %590 = vrot.lane.b32.xlu0 %v700_v45, %s772_s3  ;;  %592 = vrot.lane.b32.xlu1 %v701_v49, %s772_s3 }
 0x1ec   :  { %522 = vrot.lane.b32.xlu0 %v698_v47, %s773_s4  ;;  %524 = vrot.lane.b32.xlu1 %v699_v51, %s773_s4 }
 0x1f0   :  { %586 = vrot.lane.b32.xlu0 %v698_v47, %s772_s3  ;;  %588 = vrot.lane.b32.xlu1 %v699_v51, %s772_s3 }
 0x1f4   :  { %534 = vrot.lane.b32.xlu0 %v704_v53, %s773_s4  ;;  %536 = vrot.lane.b32.xlu1 %v705_v57, %s773_s4 }
 0x1f8   :  { %530 = vrot.lane.b32.xlu0 %v702_v55, %s773_s4  ;;  %532 = vrot.lane.b32.xlu1 %v703_v59, %s773_s4 }
 0x1fc   :  { %594 = vrot.lane.b32.xlu0 %v702_v55, %s772_s3  ;;  %596 = vrot.lane.b32.xlu1 %v703_v59, %s772_s3 }
 0x200   :  { %598 = vrot.lane.b32.xlu0 %v704_v53, %s772_s3  ;;  %600 = vrot.lane.b32.xlu1 %v705_v57, %s772_s3 }
 0x236   :  { %v575_v60 = vpop.permute.xlu0 %574  ;;  %v511_v61 = vpop.permute.xlu1 %510 }
 0x237   :  { %620 = vst.msk [vmem:[%s1140_s7 + $0x8] sm:$0xf] %vm489_vm1, %v575_v60  ;;  %556 = vst.msk [vmem:[%s1141_s6 + $0x8] sm:$0xf] %vm489_vm1, %v511_v61 }
 0x23a   :  { %v507_v62 = vpop.permute.xlu0 %506  ;;  %v513_v63 = vpop.permute.xlu1 %512 }
 0x23b   :  { %554 = vst.msk [vmem:[%s1141_s6] sm:$0xf] %vm489_vm1, %v507_v62  ;;  %557 = vst.msk [vmem:[%s1141_s6 + $0xc] sm:$0xf] %vm489_vm1, %v513_v63 }
 0x23e   :  { %v571_v0 = vpop.permute.xlu0 %570  ;;  %v577_v1 = vpop.permute.xlu1 %576 }
 0x23f   :  { %618 = vst.msk [vmem:[%s1140_s7] sm:$0xf] %vm489_vm1, %v571_v0  ;;  %621 = vst.msk [vmem:[%s1140_s7 + $0xc] sm:$0xf] %vm489_vm1, %v577_v1 }
 0x242   :  { %v573_v2 = vpop.permute.xlu1 %572  ;;  %v509_v3 = vpop.permute.xlu0 %508 }
 0x243   :  { %619 = vst.msk [vmem:[%s1140_s7 + $0x4] sm:$0xf] %vm489_vm1, %v573_v2  ;;  %555 = vst.msk [vmem:[%s1141_s6 + $0x4] sm:$0xf] %vm489_vm1, %v509_v3 }
 0x246   :  { %v519_v4 = vpop.permute.xlu0 %518  ;;  %v521_v5 = vpop.permute.xlu1 %520 }
 0x247   :  { %560 = vst.msk [vmem:[%s1141_s6 + $0x18] sm:$0xf] %vm489_vm1, %v519_v4  ;;  %561 = vst.msk [vmem:[%s1141_s6 + $0x1c] sm:$0xf] %vm489_vm1, %v521_v5 }
 0x24a   :  { %v583_v6 = vpop.permute.xlu0 %582  ;;  %v585_v7 = vpop.permute.xlu1 %584 }
 0x24b   :  { %624 = vst.msk [vmem:[%s1140_s7 + $0x18] sm:$0xf] %vm489_vm1, %v583_v6  ;;  %625 = vst.msk [vmem:[%s1140_s7 + $0x1c] sm:$0xf] %vm489_vm1, %v585_v7 }
 0x24e   :  { %v515_v8 = vpop.permute.xlu0 %514  ;;  %v517_v9 = vpop.permute.xlu1 %516 }
 0x24f   :  { %558 = vst.msk [vmem:[%s1141_s6 + $0x10] sm:$0xf] %vm489_vm1, %v515_v8  ;;  %559 = vst.msk [vmem:[%s1141_s6 + $0x14] sm:$0xf] %vm489_vm1, %v517_v9 }
 0x252   :  { %v579_v11 = vpop.permute.xlu0 %578  ;;  %v581_v13 = vpop.permute.xlu1 %580 }
 0x253   :  { %622 = vst.msk [vmem:[%s1140_s7 + $0x10] sm:$0xf] %vm489_vm1, %v579_v11  ;;  %623 = vst.msk [vmem:[%s1140_s7 + $0x14] sm:$0xf] %vm489_vm1, %v581_v13 }
 0x256   :  { %v527_v14 = vpop.permute.xlu0 %526  ;;  %v529_v15 = vpop.permute.xlu1 %528 }
 0x257   :  { %564 = vst.msk [vmem:[%s1141_s6 + $0x28] sm:$0xf] %vm489_vm1, %v527_v14  ;;  %565 = vst.msk [vmem:[%s1141_s6 + $0x2c] sm:$0xf] %vm489_vm1, %v529_v15 }
 0x25a   :  { %v591_v16 = vpop.permute.xlu0 %590  ;;  %v593_v17 = vpop.permute.xlu1 %592 }
 0x25b   :  { %628 = vst.msk [vmem:[%s1140_s7 + $0x28] sm:$0xf] %vm489_vm1, %v591_v16  ;;  %629 = vst.msk [vmem:[%s1140_s7 + $0x2c] sm:$0xf] %vm489_vm1, %v593_v17 }
 0x25e   :  { %v523_v18 = vpop.permute.xlu0 %522  ;;  %v525_v19 = vpop.permute.xlu1 %524 }
 0x25f   :  { %562 = vst.msk [vmem:[%s1141_s6 + $0x20] sm:$0xf] %vm489_vm1, %v523_v18  ;;  %563 = vst.msk [vmem:[%s1141_s6 + $0x24] sm:$0xf] %vm489_vm1, %v525_v19 }
 0x262   :  { %v587_v20 = vpop.permute.xlu0 %586  ;;  %v589_v21 = vpop.permute.xlu1 %588 }
 0x263   :  { %626 = vst.msk [vmem:[%s1140_s7 + $0x20] sm:$0xf] %vm489_vm1, %v587_v20  ;;  %627 = vst.msk [vmem:[%s1140_s7 + $0x24] sm:$0xf] %vm489_vm1, %v589_v21 }
 0x266   :  { %v535_v22 = vpop.permute.xlu0 %534  ;;  %v537_v23 = vpop.permute.xlu1 %536 }
 0x267   :  { %568 = vst.msk [vmem:[%s1141_s6 + $0x38] sm:$0xf] %vm489_vm1, %v535_v22  ;;  %569 = vst.msk [vmem:[%s1141_s6 + $0x3c] sm:$0xf] %vm489_vm1, %v537_v23 }
 0x26a   :  { %v531_v24 = vpop.permute.xlu0 %530  ;;  %v533_v25 = vpop.permute.xlu1 %532 }
 0x26b   :  { %566 = vst.msk [vmem:[%s1141_s6 + $0x30] sm:$0xf] %vm489_vm1, %v531_v24  ;;  %567 = vst.msk [vmem:[%s1141_s6 + $0x34] sm:$0xf] %vm489_vm1, %v533_v25 }
 0x26e   :  { %v595_v26 = vpop.permute.xlu0 %594  ;;  %v597_v27 = vpop.permute.xlu1 %596 }
 0x26f   :  { %630 = vst.msk [vmem:[%s1140_s7 + $0x30] sm:$0xf] %vm489_vm1, %v595_v26  ;;  %631 = vst.msk [vmem:[%s1140_s7 + $0x34] sm:$0xf] %vm489_vm1, %v597_v27 }
 0x272   :  { %v599_v10 = vpop.permute.xlu0 %598  ;;  %v601_v28 = vpop.permute.xlu1 %600 }
 0x273   :  { %632 = vst.msk [vmem:[%s1140_s7 + $0x38] sm:$0xf] %vm489_vm1, %v599_v10  ;;  %633 = vst.msk [vmem:[%s1140_s7 + $0x3c] sm:$0xf] %vm489_vm1, %v601_v28 }

// kernel: bottleneck_forward.5
= control target key start
LH: loop header
LB: loop body
LE: loop exit
PB: predicated region body
PF: predicated region fallthrough
CT: control target
= control target key end

     0   :  { %vm95_vm0 = vcmask 130048   ;;  %s1022_s0 = inlined_call_operand.vmem [shape: bf16[128,16], index: 0, kind: input, shape index: {}]   ;;  %s1023_s1 = inlined_call_operand.vmem [shape: bf16[128,16], index: 1, kind: input, shape index: {}]   ;;  %s1024_s2 = inlined_call_operand.vmem [shape: bf16[16,64], index: 2, kind: input, shape index: {}]   ;;  %s1025_s3 = inlined_call_operand.vmem [shape: bf16[16,64], index: 3, kind: input, shape index: {}]   ;;  %s1026_s4 = inlined_call_operand.vmem [shape: f32[1,64], index: 4, kind: input, shape index: {}]   ;;  %s1027_s5 = inlined_call_operand.vmem [shape: f32[1,64], index: 5, kind: input, shape index: {}]   ;;  %s1028_s6 = inlined_call_operand.vmem [shape: f32[1,64], index: 6, kind: input, shape index: {}]   ;;  %s1029_s7 = inlined_call_operand.vmem [shape: f32[1,64], index: 7, kind: input, shape index: {}]   ;;  %s1030_s8 = inlined_call_operand.hbm [shape: bf16[128,64], index: 8, kind: output, shape index: {}]  }
   0x1   :  { %v750_v0 = vld [vmem:[%s1024_s2] sm:$0xff]   ;;  %v754_v4 = vld [vmem:[%s1022_s0 + $0x8] sm:$0xff]   ;;  %v756_v6 = vld [vmem:[%s1022_s0 + $0x10] sm:$0xff]  }
   0x2   :  { %v751_v1 = vld [vmem:[%s1025_s3] sm:$0xff]   ;;  %711 = vmatprep.subr.bf16.mxu0 %v750_v0  ;;  %v755_v5 = vld [vmem:[%s1023_s1 + $0x8] sm:$0xff]   ;;  %v757_v7 = vld [vmem:[%s1023_s1 + $0x10] sm:$0xff]  }
   0x3   :  { %v752_v2 = vld [vmem:[%s1022_s0] sm:$0xff]   ;;  %729 = vmatprep.subr.bf16.mxu1 %v751_v1  ;;  %712 = vmatpush3.bf16.msra.mxu0 %v750_v0  ;;  %v758_v8 = vld [vmem:[%s1022_s0 + $0x18] sm:$0xff]   ;;  %v762_v12 = vld [vmem:[%s1022_s0 + $0x28] sm:$0xff]  }
   0x4   :  { %v753_v3 = vld [vmem:[%s1023_s1] sm:$0xff]   ;;  %730 = vmatpush3.bf16.msra.mxu1 %v751_v1  ;;  %713 = vmatprep.mubr.msk.bf16.mxu0 %vm95_vm0, %v752_v2  ;;  %v759_v9 = vld [vmem:[%s1023_s1 + $0x18] sm:$0xff]  }
   0x5   :  { %731 = vmatprep.mubr.msk.bf16.mxu1 %vm95_vm0, %v753_v3  ;;  %v760_v10 = vld [vmem:[%s1022_s0 + $0x20] sm:$0xff]  }
   0x6   :  { %714 = vmatmul.mubr.msk.bf16.vlgmr.msra.gmra.mrb[0].mxu0 %vm95_vm0, %v754_v4  ;;  %v761_v11 = vld [vmem:[%s1023_s1 + $0x20] sm:$0xff]  }
   0x7   :  { %732 = vmatmul.mubr.msk.bf16.vlgmr.msra.gmra.mrb[0].mxu1 %vm95_vm0, %v755_v5  ;;  %717 = vmatprep.mubr.msk.bf16.mxu0 %vm95_vm0, %v756_v6 }
   0x8   :  { %735 = vmatprep.mubr.msk.bf16.mxu1 %vm95_vm0, %v757_v7 }
   0xe   :  { %718 = vmatmul.mubr.msk.bf16.gmra.mrb[4].mxu0 %vm95_vm0, %v758_v8 }
   0xf   :  { %736 = vmatmul.mubr.msk.bf16.gmra.mrb[4].mxu1 %vm95_vm0, %v759_v9  ;;  %721 = vmatprep.mubr.msk.bf16.mxu0 %vm95_vm0, %v760_v10 }
  0x10   :  { %739 = vmatprep.mubr.msk.bf16.mxu1 %vm95_vm0, %v761_v11 }
  0x11   :  { %13 = vsyncpa [#allocation3], 0  ;;  %v763_v13 = vld [vmem:[%s1023_s1 + $0x28] sm:$0xff]   ;;  %v764_v14 = vld [vmem:[%s1022_s0 + $0x30] sm:$0xff]   ;;  %vm590_vm1 = vcmask 519168  }
  0x12   :  { %v765_v15 = vld [vmem:[%s1023_s1 + $0x30] sm:$0xff]   ;;  %v766_v16 = vld [vmem:[%s1022_s0 + $0x38] sm:$0xff]   ;;  %v913_v18 = vld [vmem:[%s1026_s4] ss:$0 sm:$0xff]  ;;  %s792_s4 = smov [#allocation2]  }
  0x13   :  { %v767_v17 = vld [vmem:[%s1023_s1 + $0x38] sm:$0xff]   ;;  %v918_v19 = vld [vmem:[%s1028_s6] ss:$0 sm:$0xff] }
  0x14   :  { %v923_v21 = vld [vmem:[%s1027_s5] ss:$0 sm:$0xff]  ;;  %s612_s5 = sshll.u32 %s792_s4, 4  ;;  %s613_s5 = int_to_ptr.vmem [resolvable:$true] %s612_s5 }
  0x15   :  { %v929_v24 = vld [vmem:[%s1029_s7] ss:$0 sm:$0xff]  ;;  %s768_s6 = scalar_lea.vmem %s613_s5, 1024  ;;  %p773_p1 = scmp.lt.s32.totalorder %s613_s5, %s613_s5 }
  0x16   :  { %722 = vmatmul.mubr.msk.bf16.gmra.mrb[8].mxu0 %vm95_vm0, %v762_v12  ;;  %p769_p0 = scmp.ne.s32.totalorder %s613_s5, %s768_s6  ;;  %p774_p2 = scmp.lt.s32.totalorder %s768_s6, %s768_s6 }
  0x17   :  { %740 = vmatmul.mubr.msk.bf16.gmra.mrb[8].mxu1 %vm95_vm0, %v763_v13  ;;  %725 = vmatprep.mubr.msk.bf16.mxu0 %vm95_vm0, %v764_v14 }
  0x18   :  { %743 = vmatprep.mubr.msk.bf16.mxu1 %vm95_vm0, %v765_v15  ;;  %p775_p3 = por %p774_p2, %p773_p1 }
  0x1a   :  { %p776_p4 = pnand %p775_p3, %p769_p0 }
  0x1e   :  { %726 = vmatmul.mubr.msk.bf16.gmra.mrb[12].mxu0 %vm95_vm0, %v766_v16 }
  0x1f   :  { %744 = vmatmul.mubr.msk.bf16.gmra.mrb[12].mxu1 %vm95_vm0, %v767_v17 }
  0xd9   :  { %v715_v20 = vpop.f32.mrb[0].mxu0 }
  0xda   :  { %v226_v22 = vmul.f32 %v715_v20, %v913_v18  ;;  %v733_v23 = vpop.f32.mrb[0].mxu1  ;;  %v154_v25 = vpop.f32.mrb[1].mxu0 }
  0xdb   :  { %v457_v26 = vmul.f32 %v733_v23, %v918_v19  ;;  %v224_v27 = vmul.f32 %v913_v18, %v154_v25  ;;  %v385_v28 = vpop.f32.mrb[1].mxu1  ;;  %v716_v29 = vpop.f32.mrb[2].mxu0 }
  0xdc   :  { %v249_v30 = vadd.f32 %v923_v21, %v226_v22  ;;  %v455_v31 = vmul.f32 %v918_v19, %v385_v28  ;;  %v227_v32 = vmul.f32 %v716_v29, %v913_v18  ;;  %v734_v33 = vpop.f32.mrb[2].mxu1  ;;  %v157_v34 = vpop.f32.mrb[3].mxu0 }
  0xdd   :  { %v480_v35 = vadd.f32 %v929_v24, %v457_v26  ;;  %v247_v36 = vadd.f32 %v923_v21, %v224_v27  ;;  %v458_v37 = vmul.f32 %v734_v33, %v918_v19  ;;  %v225_v38 = vmul.f32 %v913_v18, %v157_v34  ;;  %v388_v39 = vpop.f32.mrb[3].mxu1 }
  0xde   :  { %v478_v40 = vadd.f32 %v929_v24, %v455_v31  ;;  %v250_v41 = vadd.f32 %v923_v21, %v227_v32  ;;  %v456_v42 = vmul.f32 %v918_v19, %v388_v39 }
  0xdf   :  { %v496_v43 = vadd.f32 %v480_v35, %v249_v30  ;;  %v481_v44 = vadd.f32 %v929_v24, %v458_v37  ;;  %v248_v45 = vadd.f32 %v923_v21, %v225_v38 }
  0xe0   :  { %v494_v46 = vadd.f32 %v478_v40, %v247_v36  ;;  %v479_v47 = vadd.f32 %v929_v24, %v456_v42 }
  0xe1   :  { %v512_v48 = vmax.f32 %v496_v43, 0.0  ;;  %v497_v49 = vadd.f32 %v481_v44, %v250_v41  ;;  %v719_v50 = vpop.f32.mrb[4].mxu0 }
  0xe2   :  { %v510_v51 = vmax.f32 %v494_v46, 0.0  ;;  %v495_v52 = vadd.f32 %v479_v47, %v248_v45  ;;  %v230_v53 = vmul.f32 %v719_v50, %v913_v18  ;;  %v737_v54 = vpop.f32.mrb[4].mxu1  ;;  %v170_v55 = vpop.f32.mrb[5].mxu0 }
  0xe3   :  { %v679_v56 = vpack.c.bf16 %v512_v48, %v512_v48  ;;  %v513_v57 = vmax.f32 %v497_v49, 0.0  ;;  %v461_v58 = vmul.f32 %v737_v54, %v918_v19  ;;  %v228_v59 = vmul.f32 %v913_v18, %v170_v55  ;;  %v401_v60 = vpop.f32.mrb[5].mxu1  ;;  %v720_v61 = vpop.f32.mrb[6].mxu0 }
  0xe4   :  { %v677_v62 = vpack.c.bf16 %v510_v51, %v510_v51  ;;  %v511_v63 = vmax.f32 %v495_v52, 0.0  ;;  %v253_v0 = vadd.f32 %v923_v21, %v230_v53  ;;  %v459_v1 = vmul.f32 %v918_v19, %v401_v60  ;;  %v738_v2 = vpop.f32.mrb[6].mxu1  ;;  %v173_v3 = vpop.f32.mrb[7].mxu0 }
  0xe5   :  { %593 = vst.msk [vmem:[#allocation2 + $0x8] sm:$0xf] %vm590_vm1, %v679_v56  ;;  %v680_v4 = vpack.c.bf16 %v513_v57, %v513_v57  ;;  %v484_v5 = vadd.f32 %v929_v24, %v461_v58  ;;  %v251_v6 = vadd.f32 %v923_v21, %v228_v59  ;;  %v231_v7 = vmul.f32 %v720_v61, %v913_v18  ;;  %v404_v8 = vpop.f32.mrb[7].mxu1 }
  0xe6   :  { %591 = vst.msk [vmem:[#allocation2] sm:$0xf] %vm590_vm1, %v677_v62  ;;  %v678_v9 = vpack.c.bf16 %v511_v63, %v511_v63  ;;  %v482_v10 = vadd.f32 %v929_v24, %v459_v1  ;;  %v462_v11 = vmul.f32 %v738_v2, %v918_v19  ;;  %v229_v12 = vmul.f32 %v913_v18, %v173_v3 }
  0xe7   :  { %594 = vst.msk [vmem:[#allocation2 + $0xc] sm:$0xf] %vm590_vm1, %v680_v4  ;;  %v500_v13 = vadd.f32 %v484_v5, %v253_v0  ;;  %v254_v14 = vadd.f32 %v923_v21, %v231_v7  ;;  %v460_v15 = vmul.f32 %v918_v19, %v404_v8 }
  0xe8   :  { %592 = vst.msk [vmem:[#allocation2 + $0x4] sm:$0xf] %vm590_vm1, %v678_v9  ;;  %v498_v16 = vadd.f32 %v482_v10, %v251_v6  ;;  %v485_v17 = vadd.f32 %v929_v24, %v462_v11  ;;  %v252_v20 = vadd.f32 %v923_v21, %v229_v12 }
  0xe9   :  { %v516_v22 = vmax.f32 %v500_v13, 0.0  ;;  %v483_v23 = vadd.f32 %v929_v24, %v460_v15  ;;  %v723_v25 = vpop.f32.mrb[8].mxu0 }
  0xea   :  { %v514_v26 = vmax.f32 %v498_v16, 0.0  ;;  %v501_v27 = vadd.f32 %v485_v17, %v254_v14  ;;  %v234_v28 = vmul.f32 %v723_v25, %v913_v18  ;;  %v741_v29 = vpop.f32.mrb[8].mxu1  ;;  %v186_v30 = vpop.f32.mrb[9].mxu0 }
  0xeb   :  { %v683_v31 = vpack.c.bf16 %v516_v22, %v516_v22  ;;  %v499_v32 = vadd.f32 %v483_v23, %v252_v20  ;;  %v465_v33 = vmul.f32 %v741_v29, %v918_v19  ;;  %v232_v34 = vmul.f32 %v913_v18, %v186_v30  ;;  %v417_v35 = vpop.f32.mrb[9].mxu1  ;;  %v724_v36 = vpop.f32.mrb[10].mxu0 }
  0xec   :  { %v681_v37 = vpack.c.bf16 %v514_v26, %v514_v26  ;;  %v517_v38 = vmax.f32 %v501_v27, 0.0  ;;  %v257_v39 = vadd.f32 %v923_v21, %v234_v28  ;;  %v463_v40 = vmul.f32 %v918_v19, %v417_v35  ;;  %v742_v41 = vpop.f32.mrb[10].mxu1  ;;  %v189_v42 = vpop.f32.mrb[11].mxu0 }
  0xed   :  { %597 = vst.msk [vmem:[#allocation2 + $0x18] sm:$0xf] %vm590_vm1, %v683_v31  ;;  %v515_v43 = vmax.f32 %v499_v32, 0.0  ;;  %v488_v44 = vadd.f32 %v929_v24, %v465_v33  ;;  %v255_v45 = vadd.f32 %v923_v21, %v232_v34  ;;  %v235_v46 = vmul.f32 %v724_v36, %v913_v18  ;;  %v420_v47 = vpop.f32.mrb[11].mxu1 }
  0xee   :  { %595 = vst.msk [vmem:[#allocation2 + $0x10] sm:$0xf] %vm590_vm1, %v681_v37  ;;  %v684_v48 = vpack.c.bf16 %v517_v38, %v517_v38  ;;  %v486_v49 = vadd.f32 %v929_v24, %v463_v40  ;;  %v466_v50 = vmul.f32 %v742_v41, %v918_v19  ;;  %v233_v51 = vmul.f32 %v913_v18, %v189_v42 }
  0xef   :  { %v682_v52 = vpack.c.bf16 %v515_v43, %v515_v43  ;;  %v504_v53 = vadd.f32 %v488_v44, %v257_v39  ;;  %v258_v54 = vadd.f32 %v923_v21, %v235_v46  ;;  %v464_v55 = vmul.f32 %v918_v19, %v420_v47 }
  0xf0   :  { %598 = vst.msk [vmem:[#allocation2 + $0x1c] sm:$0xf] %vm590_vm1, %v684_v48  ;;  %v502_v56 = vadd.f32 %v486_v49, %v255_v45  ;;  %v489_v57 = vadd.f32 %v929_v24, %v466_v50  ;;  %v256_v58 = vadd.f32 %v923_v21, %v233_v51 }
  0xf1   :  { %596 = vst.msk [vmem:[#allocation2 + $0x14] sm:$0xf] %vm590_vm1, %v682_v52  ;;  %v520_v59 = vmax.f32 %v504_v53, 0.0  ;;  %v487_v60 = vadd.f32 %v929_v24, %v464_v55  ;;  %v727_v61 = vpop.f32.mrb[12].mxu0 }
  0xf2   :  { %v518_v62 = vmax.f32 %v502_v56, 0.0  ;;  %v505_v63 = vadd.f32 %v489_v57, %v258_v54  ;;  %v238_v0 = vmul.f32 %v727_v61, %v913_v18  ;;  %v745_v1 = vpop.f32.mrb[12].mxu1  ;;  %v202_v2 = vpop.f32.mrb[13].mxu0 }
  0xf3   :  { %v687_v3 = vpack.c.bf16 %v520_v59, %v520_v59  ;;  %v503_v4 = vadd.f32 %v487_v60, %v256_v58  ;;  %v469_v5 = vmul.f32 %v745_v1, %v918_v19  ;;  %v236_v6 = vmul.f32 %v913_v18, %v202_v2  ;;  %v433_v7 = vpop.f32.mrb[13].mxu1  ;;  %v728_v8 = vpop.f32.mrb[14].mxu0 }
  0xf4   :  { %v685_v9 = vpack.c.bf16 %v518_v62, %v518_v62  ;;  %v521_v10 = vmax.f32 %v505_v63, 0.0  ;;  %v261_v11 = vadd.f32 %v923_v21, %v238_v0  ;;  %v467_v12 = vmul.f32 %v918_v19, %v433_v7  ;;  %v746_v13 = vpop.f32.mrb[14].mxu1  ;;  %v205_v14 = vpop.f32.mrb[15].mxu0 }
  0xf5   :  { %601 = vst.msk [vmem:[#allocation2 + $0x28] sm:$0xf] %vm590_vm1, %v687_v3  ;;  %v519_v15 = vmax.f32 %v503_v4, 0.0  ;;  %v492_v16 = vadd.f32 %v929_v24, %v469_v5  ;;  %v259_v17 = vadd.f32 %v923_v21, %v236_v6  ;;  %v239_v20 = vmul.f32 %v728_v8, %v913_v18  ;;  %v436_v22 = vpop.f32.mrb[15].mxu1 }
  0xf6   :  { %599 = vst.msk [vmem:[#allocation2 + $0x20] sm:$0xf] %vm590_vm1, %v685_v9  ;;  %v688_v23 = vpack.c.bf16 %v521_v10, %v521_v10  ;;  %v490_v25 = vadd.f32 %v929_v24, %v467_v12  ;;  %v470_v26 = vmul.f32 %v746_v13, %v918_v19  ;;  %v237_v27 = vmul.f32 %v913_v18, %v205_v14 }
  0xf7   :  { %v686_v28 = vpack.c.bf16 %v519_v15, %v519_v15  ;;  %v508_v29 = vadd.f32 %v492_v16, %v261_v11  ;;  %v262_v30 = vadd.f32 %v923_v21, %v239_v20  ;;  %v468_v31 = vmul.f32 %v918_v19, %v436_v22 }
  0xf8   :  { %602 = vst.msk [vmem:[#allocation2 + $0x2c] sm:$0xf] %vm590_vm1, %v688_v23  ;;  %v506_v32 = vadd.f32 %v490_v25, %v259_v17  ;;  %v493_v33 = vadd.f32 %v929_v24, %v470_v26  ;;  %v260_v34 = vadd.f32 %v923_v21, %v237_v27 }
  0xf9   :  { %600 = vst.msk [vmem:[#allocation2 + $0x24] sm:$0xf] %vm590_vm1, %v686_v28  ;;  %v524_v35 = vmax.f32 %v508_v29, 0.0  ;;  %v491_v36 = vadd.f32 %v929_v24, %v468_v31 }
  0xfa   :  { %v522_v37 = vmax.f32 %v506_v32, 0.0  ;;  %v509_v18 = vadd.f32 %v493_v33, %v262_v30 }
  0xfb   :  { %v691_v38 = vpack.c.bf16 %v524_v35, %v524_v35  ;;  %v507_v39 = vadd.f32 %v491_v36, %v260_v34 }
  0xfc   :  { %v689_v40 = vpack.c.bf16 %v522_v37, %v522_v37  ;;  %v525_v19 = vmax.f32 %v509_v18, 0.0 }
  0xfd   :  { %605 = vst.msk [vmem:[#allocation2 + $0x38] sm:$0xf] %vm590_vm1, %v691_v38  ;;  %v523_v41 = vmax.f32 %v507_v39, 0.0 }
  0xfe   :  { %603 = vst.msk [vmem:[#allocation2 + $0x30] sm:$0xf] %vm590_vm1, %v689_v40  ;;  %v692_v42 = vpack.c.bf16 %v525_v19, %v525_v19 }
  0xff   :  { %v690_v21 = vpack.c.bf16 %v523_v41, %v523_v41 }
 0x100   :  { %606 = vst.msk [vmem:[#allocation2 + $0x3c] sm:$0xf] %vm590_vm1, %v692_v42 }
 0x101   :  { %604 = vst.msk [vmem:[#allocation2 + $0x34] sm:$0xf] %vm590_vm1, %v690_v21 }
 0x102   :  { %779 = shalt.err (!%p776_p4)
}
 0x103   :  { %s780_s22 = scalar_lea.hbm %s1030_s8, 1024 }
 0x104   :  { %p781_p5 = scmp.ne.s32.totalorder %s1030_s8, %s780_s22  ;;  %p784_p6 = scmp.lt.u32.totalorder %s780_s22, %s1030_s8 }
 0x106   :  { %p786_p7 = pnand %p784_p6, %p781_p5 }
 0x108   :  { %789 = shalt.err (!%p786_p7)
}
 0x109   :  { %s793_s27 = smov 64   ;;  %s794_s28 = smov 4  }
 0x10a   :  { %618 = dma.vmem_to_hbm [thread:$0]  %s613_s5, 1024, %s1030_s8, [#allocation3], %s793_s27, %s793_s27, %s794_s28  }
 0x10b   :  { %790 = dma.done.wait [#allocation3], 1024  }
 0x10c   :  { %791 = vsyncadd [#allocation3], 4294966272 }
 0x10d   :  { %622 = vsyncpa [#allocation3], 1 }

// kernel: bottleneck_forward.4
= control target key start
LH: loop header
LB: loop body
LE: loop exit
PB: predicated region body
PF: predicated region fallthrough
CT: control target
= control target key end

     0   :  { %s3390_s21 = smov 0   ;;  %s3392_s22 = smov 0   ;;  %s5043_s0 = inlined_call_operand.vmem [shape: bf16[2,8,128], index: 0, kind: input, shape index: {}]   ;;  %s5044_s1 = inlined_call_operand.vmem [shape: bf16[2,8,128], index: 1, kind: input, shape index: {}]   ;;  %s5045_s2 = inlined_call_operand.vmem [shape: bf16[2,8,128], index: 2, kind: input, shape index: {}]   ;;  %s5046_s3 = inlined_call_operand.vmem [shape: bf16[49,128], index: 3, kind: input, shape index: {}]   ;;  %s5047_s4 = inlined_call_operand.vmem [shape: f32[1,128], index: 4, kind: input, shape index: {}]   ;;  %s5048_s5 = inlined_call_operand.vmem [shape: f32[1,128], index: 5, kind: input, shape index: {}]   ;;  %s5049_s6 = inlined_call_operand.vmem [shape: bf16[2,8,128], index: 6, kind: output, shape index: {}]  }
   0x1   :  { %s3394_s23 = smov 0  }
   0x2 LB: > { %s28_s24 = sadd.s32 1, %s3342_s22  ;;  %p2866_p0 = scmp.ge.s32.totalorder %s3346_s23, 1  ;;  %s3346_s23 = sphi %s3394_s23, %s16_s23   ;;  %s3342_s22 = sphi %s3392_s22, %s5111_s22   ;;  %s3338_s21 = sphi %s3390_s21, %s5110_s21  }
   0x3   : > { %p30_p1 = scmp.ge.s32.totalorder %s28_s24, 2  ;;  %p182_p2 = scmp.lt.s32.totalorder %s3346_s23, 3 }
   0x5   : > { %s5113_s24 = smov (%p30_p1, %s28_s24), 0  ;;  %p183_p3 = pnand %p2866_p0, %p182_p2 }
   0x7   : > { %186 = sbr.rel (%p183_p3) target bundleno = 603 (0x25b), region = 36 }
   0xe   : > { %p212_p4 = scmp.lt.s32.totalorder %s3338_s21, 1  ;;  %s2869_s25 = sshll.u32 %s3338_s21, 2 }
   0xf   : > { %s232_s28 = scalar_lea.vmem %s5044_s1, %s2869_s25 }
  0x10   : > { %s5115_s21 = smov (!%p212_p4, %s3338_s21), 1  ;;  %v251_v0 = vld [vmem:[%s232_s28] sm:$0xf] }
  0x11   : > { %252 = vst [vmem:[#allocation2 + $0x10] sm:$0xf] %v251_v0  ;;  %s2867_s29 = sshll.u32 %s5115_s21, 2 }
  0x12   : > { %s3414_s8 = scalar_lea.vmem %s5043_s0, %s2867_s29  ;;  %s3419_s11 = scalar_lea.vmem %s5049_s6, %s2867_s29 }
  0x13   : > { %277 = vsyncadd [#allocation4], 64  ;;  %s279_s14 = scalar_lea.vmem %s5045_s2, %s2869_s25 }
  0x14   : > { %v299_v1 = vld [vmem:[%s279_s14] sm:$0xf] }
  0x15   : > { %300 = vst [vmem:[#allocation3 + $0x10] sm:$0xf] %v299_v1 }
  0x16   : > { %325 = vsyncadd [#allocation4 + $0x3], 64  ;;  %v3348_v2 = vmov 0  }
  0x17   : > { %534 = vst [vmem:[#allocation2] sm:$0xf] %v3348_v2  ;;  %535 = vst [vmem:[#allocation2 + $0xc] sm:$0xf] %v3348_v2 }
  0x18   : > { %536 = vst [vmem:[#allocation2 + $0x18] sm:$0xf] %v3348_v2  ;;  %537 = vst [vmem:[#allocation2 + $0x8] sm:$0xf] %v3348_v2 }
  0x19   : > { %538 = vst [vmem:[#allocation2 + $0x14] sm:$0xf] %v3348_v2  ;;  %539 = vst [vmem:[#allocation2 + $0x20] sm:$0xf] %v3348_v2 }
  0x1a   : > { %540 = vst [vmem:[#allocation3] sm:$0xf] %v3348_v2  ;;  %541 = vst [vmem:[#allocation3 + $0xc] sm:$0xf] %v3348_v2 }
  0x1b   : > { %542 = vst [vmem:[#allocation3 + $0x18] sm:$0xf] %v3348_v2  ;;  %543 = vst [vmem:[#allocation3 + $0x8] sm:$0xf] %v3348_v2 }
  0x1c   : > { %544 = vst [vmem:[#allocation3 + $0x14] sm:$0xf] %v3348_v2  ;;  %545 = vst [vmem:[#allocation3 + $0x20] sm:$0xf] %v3348_v2 }
  0x1d   : > { %550 = vst [vmem:[#allocation2 + $0x4] sm:$0xf] %v3348_v2  ;;  %551 = vst [vmem:[#allocation3 + $0x4] sm:$0xf] %v3348_v2 }
  0x1e   : > { %552 = vst [vmem:[#allocation2 + $0x1c] sm:$0xf] %v3348_v2  ;;  %553 = vst [vmem:[#allocation3 + $0x1c] sm:$0xf] %v3348_v2 }
  0x1f   : > { %3332 = dma.done.wait [#allocation4], 64 }
  0x20   : > { %3333 = vsyncadd [#allocation4], 4294967232 }
  0x21   : > { %3334 = dma.done.wait [#allocation4 + $0x3], 64 }
  0x22   : > { %3335 = vsyncadd [#allocation4 + $0x3], 4294967232  ;;  %v592_v3 = vlaneseq  ;;  %v590_v12 = vld [vmem:[%s5046_s3] sm:$0x1]  ;;  %v765_v13 = vld [vmem:[%s5046_s3] sm:$0x8] }
  0x23   : > { %v834_v14 = vld [vmem:[%s5046_s3 + $0x4] sm:$0x1]  ;;  %v591_v15 = vunpack.c.l.bf16 %v590_v12  ;;  %v766_v16 = vunpack.c.l.bf16 %v765_v13  ;;  %v654_v18 = vld [vmem:[%s5046_s3] sm:$0x2]  ;;  %v701_v19 = vld [vmem:[%s5046_s3] sm:$0x4] }
  0x24   : > { %v593_v4 = vshrl.u32 %v592_v3, 7  ;;  %v835_v17 = vunpack.c.l.bf16 %v834_v14  ;;  %v896_v20 = vld [vmem:[%s5046_s3 + $0x4] sm:$0x2]  ;;  %v655_v21 = vunpack.c.l.bf16 %v654_v18  ;;  %v702_v22 = vunpack.c.l.bf16 %v701_v19  ;;  %v942_v29 = vld [vmem:[%s5046_s3 + $0x4] sm:$0x4]  ;;  %s3349_s20 = smov 80  }
  0x25   : > { %v897_v23 = vunpack.c.l.bf16 %v896_v20  ;;  %v1009_v34 = vld [vmem:[%s5046_s3 + $0x4] sm:$0x8]  ;;  %v1180_v35 = vld [vmem:[%s5046_s3 + $0x8] sm:$0x4]  ;;  %v1232_v36 = vld [vmem:[%s5046_s3 + $0x8] sm:$0x8]  ;;  %v943_v44 = vunpack.c.l.bf16 %v942_v29 }
  0x26   : > { %v3424_v5 = vsub.s32 0, %v593_v4  ;;  %v3426_v6 = vsub.s32 7, %v593_v4  ;;  %v3428_v7 = vsub.s32 1, %v593_v4  ;;  %v3430_v8 = vsub.s32 2, %v593_v4  ;;  %v1072_v41 = vld [vmem:[%s5046_s3 + $0x8] sm:$0x1] }
  0x27   : > { %v3432_v9 = vsub.s32 3, %v593_v4  ;;  %v3434_v10 = vsub.s32 4, %v593_v4  ;;  %v3436_v11 = vsub.s32 5, %v593_v4  ;;  %v3456_v24 = vsub.s32 6, %v593_v4  ;;  %v1118_v46 = vld [vmem:[%s5046_s3 + $0x8] sm:$0x2] }
  0x28   : > { %v595_v25 = vrot.slane %v591_v15, %v3424_v5  ;;  %v806_v26 = vrot.slane %v766_v16, %v3426_v6  ;;  %v626_v27 = vrot.slane %v591_v15, %v3428_v7  ;;  %v839_v28 = vrot.slane %v835_v17, %v3424_v5  ;;  %s3350_s21 = smov 96   ;;  %v1274_v54 = vld [vmem:[%s5046_s3 + $0xc] sm:$0x1]  ;;  %s3351_s27 = smov 112   ;;  %v1303_v0 = vld [vmem:[%s5046_s3 + $0xc] sm:$0x2] }
  0x29   : > { %v659_v30 = vrot.slane %v655_v21, %v3430_v8  ;;  %v3467_v31 = vrot.slane %v655_v21, %v3432_v9  ;;  %v869_v32 = vrot.slane %v835_v17, %v3428_v7  ;;  %v706_v33 = vrot.slane %v702_v22, %v3434_v10  ;;  %s3352_s28 = smov 16   ;;  %v1418_v1 = vld [vmem:[%s5046_s3 + $0xc] sm:$0x8]  ;;  %s3353_s10 = smov 32   ;;  %v1355_v17 = vld [vmem:[%s5046_s3 + $0xc] sm:$0x4] }
  0x2a   : > { %v2920_v37 = vpack.i.bf16 %v806_v26, %v595_v25  ;;  %v2925_v38 = vpack.i.bf16 %v839_v28, %v626_v27  ;;  %v3481_v39 = vrot.slane %v897_v23, %v3430_v8  ;;  %v915_v40 = vrot.slane %v897_v23, %v3432_v9  ;;  %s3354_s12 = smov 48   ;;  %v1526_v18 = vld [vmem:[%s5046_s3 + $0x10] sm:$0x2]  ;;  %v1594_v20 = vld [vmem:[%s5046_s3 + $0x10] sm:$0x4] }
  0x2b   : > { %v2930_v42 = vpack.i.bf16 %v869_v32, %v659_v30  ;;  %v737_v43 = vrot.slane %v702_v22, %v3436_v11  ;;  %v770_v45 = vrot.slane %v766_v16, %v3456_v24  ;;  %v1010_v48 = vunpack.c.l.bf16 %v1009_v34  ;;  %v1656_v21 = vld [vmem:[%s5046_s3 + $0x10] sm:$0x8] }
  0x2c   : > { %2921 = vrot.lane.b32.xlu0 %v2920_v37, %s3349_s20  ;;  %2926 = vrot.lane.b32.xlu1 %v2925_v38, %s3350_s21  ;;  %v2935_v47 = vpack.i.bf16 %v915_v40, %v706_v33  ;;  %v1181_v49 = vunpack.c.l.bf16 %v1180_v35  ;;  %v1233_v50 = vunpack.c.l.bf16 %v1232_v36  ;;  %v947_v51 = vrot.slane %v943_v44, %v3434_v10  ;;  %v1832_v35 = vld [vmem:[%s5046_s3 + $0x14] sm:$0x4] }
  0x2d   : > { %v977_v52 = vrot.slane %v943_v44, %v3436_v11  ;;  %v1073_v53 = vunpack.c.l.bf16 %v1072_v41  ;;  %v1119_v55 = vunpack.c.l.bf16 %v1118_v46  ;;  %v1014_v56 = vrot.slane %v1010_v48, %v3456_v24  ;;  %v1464_v41 = vld [vmem:[%s5046_s3 + $0x10] sm:$0x1]  ;;  %v1702_v46 = vld [vmem:[%s5046_s3 + $0x14] sm:$0x1] }
  0x2e   : > { %v1215_v57 = vrot.slane %v1181_v49, %v3436_v11  ;;  %v1045_v58 = vrot.slane %v1010_v48, %v3426_v6  ;;  %v2940_v60 = vpack.i.bf16 %v947_v51, %v737_v43  ;;  %v1237_v62 = vrot.slane %v1233_v50, %v3456_v24 }
  0x2f   : > { %v3503_v59 = vrot.slane %v1073_v53, %v3428_v7  ;;  %v2945_v61 = vpack.i.bf16 %v977_v52, %v770_v45  ;;  %v1275_v63 = vunpack.c.l.bf16 %v1274_v54  ;;  %v1077_v2 = vrot.slane %v1073_v53, %v3424_v5 }
  0x30   : > { %2931 = vrot.lane.b32.xlu0 %v2930_v42, %s3351_s27  ;;  %2936 = vrot.lane.b32.xlu1 %v2935_v47, %s3352_s28  ;;  %v1257_v3 = vrot.slane %v1233_v50, %v3426_v6  ;;  %v2950_v12 = vpack.i.bf16 %v1215_v57, %v1014_v56  ;;  %v1304_v13 = vunpack.c.l.bf16 %v1303_v0  ;;  %v2955_v14 = vpack.i.bf16 %v1237_v62, %v1045_v58  ;;  %v1769_v62 = vld [vmem:[%s5046_s3 + $0x14] sm:$0x2] }
  0x31   : > { %v3517_v4 = vrot.slane %v1275_v63, %v3424_v5  ;;  %v1123_v15 = vrot.slane %v1119_v55, %v3430_v8  ;;  %v1286_v16 = vrot.slane %v1275_v63, %v3428_v7  ;;  %v1419_v19 = vunpack.c.l.bf16 %v1418_v1 }
  0x32   : > { %v2960_v22 = vpack.i.bf16 %v1257_v3, %v1077_v2  ;;  %v1153_v23 = vrot.slane %v1119_v55, %v3432_v9  ;;  %v1308_v26 = vrot.slane %v1304_v13, %v3430_v8  ;;  %v1185_v27 = vrot.slane %v1181_v49, %v3434_v10  ;;  %v1878_v2 = vld [vmem:[%s5046_s3 + $0x14] sm:$0x8] }
  0x33   : > { %v3537_v25 = vrot.slane %v1419_v19, %v3426_v6  ;;  %v1356_v28 = vunpack.c.l.bf16 %v1355_v17  ;;  %v1527_v29 = vunpack.c.l.bf16 %v1526_v18  ;;  %v2965_v30 = vpack.i.bf16 %v1286_v16, %v1123_v15  ;;  %v1940_v15 = vld [vmem:[%s5046_s3 + $0x18] sm:$0x1] }
  0x34   : > { %2941 = vrot.lane.b32.xlu0 %v2940_v60, %s3353_s10  ;;  %2946 = vrot.lane.b32.xlu1 %v2945_v61, %s3354_s12  ;;  %v1328_v32 = vrot.slane %v1304_v13, %v3432_v9  ;;  %v1595_v33 = vunpack.c.l.bf16 %v1594_v20  ;;  %v1657_v34 = vunpack.c.l.bf16 %v1656_v21  ;;  %v2970_v37 = vpack.i.bf16 %v1308_v26, %v1153_v23 }
  0x35   : > { %v1360_v38 = vrot.slane %v1356_v28, %v3434_v10  ;;  %v1566_v40 = vrot.slane %v1527_v29, %v3432_v9  ;;  %v1833_v42 = vunpack.c.l.bf16 %v1832_v35  ;;  %v1391_v44 = vrot.slane %v1356_v28, %v3436_v11  ;;  %v580_v28 = vld [vmem:[#allocation2] sm:$0xcc] }
  0x36   : > { %v3548_v36 = vrot.slane %v1657_v34, %v3456_v24  ;;  %v2975_v43 = vpack.i.bf16 %v1328_v32, %v1185_v27  ;;  %v1599_v45 = vrot.slane %v1595_v33, %v3434_v10  ;;  %v1465_v48 = vunpack.c.l.bf16 %v1464_v41 }
  0x37   : > { %v3563_v47 = vrot.slane %v1833_v42, %v3436_v11  ;;  %v2980_v49 = vpack.i.bf16 %v1566_v40, %v1360_v38  ;;  %v1423_v50 = vrot.slane %v1419_v19, %v3456_v24  ;;  %v1629_v51 = vrot.slane %v1595_v33, %v3436_v11  ;;  %v1004_v19 = vld [vmem:[#allocation2 + $0xc] sm:$0xff] }
  0x38   : > { %2951 = vrot.lane.b32.xlu0 %v2950_v12, %s3349_s20  ;;  %2956 = vrot.lane.b32.xlu1 %v2955_v14, %s3350_s21  ;;  %v1703_v52 = vunpack.c.l.bf16 %v1702_v46  ;;  %v2985_v53 = vpack.i.bf16 %v1599_v45, %v1391_v44  ;;  %v1469_v54 = vrot.slane %v1465_v48, %v3424_v5  ;;  %v1675_v55 = vrot.slane %v1657_v34, %v3426_v6 }
  0x39   : > { %v2990_v56 = vpack.i.bf16 %v1629_v51, %v1423_v50  ;;  %v1499_v57 = vrot.slane %v1465_v48, %v3428_v7  ;;  %v1531_v60 = vrot.slane %v1527_v29, %v3430_v8  ;;  %v1770_v0 = vunpack.c.l.bf16 %v1769_v62  ;;  %v582_v29 = vld [vmem:[#allocation2 + $0xc] sm:$0x77] }
  0x3a   : > { %v1707_v58 = vrot.slane %v1703_v52, %v3424_v5  ;;  %v2995_v11 = vpack.i.bf16 %v1675_v55, %v1469_v54  ;;  %v1737_v61 = vrot.slane %v1703_v52, %v3428_v7  ;;  %v1879_v12 = vunpack.c.l.bf16 %v1878_v2  ;;  %v581_v55 = vld [vmem:[#allocation2 + $0x8] sm:$0xc] }
  0x3b   : > { %v1774_v3 = vrot.slane %v1770_v0, %v3430_v8  ;;  %v1805_v7 = vrot.slane %v1770_v0, %v3432_v9  ;;  %v1837_v13 = vrot.slane %v1833_v42, %v3434_v10  ;;  %v1941_v16 = vunpack.c.l.bf16 %v1940_v15 }
  0x3c   : > { %2961 = vrot.lane.b32.xlu0 %v2960_v22, %s3351_s27  ;;  %2966 = vrot.lane.b32.xlu1 %v2965_v30, %s3352_s28  ;;  %v3000_v63 = vpack.i.bf16 %v1707_v58, %v1499_v57  ;;  %v3005_v1 = vpack.i.bf16 %v1737_v61, %v1531_v60  ;;  %v1913_v14 = vrot.slane %v1879_v12, %v3426_v6  ;;  %v3614_v21 = vunpack.c.h.bf16 %v1004_v19  ;;  %v1005_v30 = vld [vmem:[#allocation2 + $0x14] sm:$0xf] }
  0x3d   : > { %v1883_v8 = vrot.slane %v1879_v12, %v3456_v24  ;;  %v1945_v9 = vrot.slane %v1941_v16, %v3424_v5  ;;  %v3616_v22 = vunpack.c.l.bf16 %v1004_v19  ;;  %v3631_v38 = vunpack.c.h.bf16 %v580_v28 }
  0x3e   : > { %v3633_v40 = vunpack.c.h.bf16 %v582_v29  ;;  %v3640_v44 = vunpack.c.l.bf16 %v1005_v30  ;;  %v3651_v54 = vunpack.c.l.bf16 %v582_v29  ;;  %vm608_vm0 = vcmask 1042432  }
  0x3f   : > { %vm819_vm1 = vcmask 1041408   ;;  %vm1027_vm2 = vcmask 1040384   ;;  %vm1373_vm3 = vcmask 1046528   ;;  %vm1579_vm4 = vcmask 1045504  }
  0x40   : > { %2971 = vrot.lane.b32.xlu0 %v2970_v37, %s3353_s10  ;;  %2976 = vrot.lane.b32.xlu1 %v2975_v43, %s3354_s12  ;;  %vm1787_vm5 = vcmask 1044480   ;;  %vm619_vm6 = vcmask 392192   ;;  %vm649_vm7 = vcmask 261120   ;;  %vm682_vm8 = vcmask 130048  }
  0x41   : > { %vm729_vm9 = vcmask 916480   ;;  %vm760_vm10 = vcmask 785408   ;;  %vm793_vm11 = vcmask 654336  }
  0x44   : > { %2981 = vrot.lane.b32.xlu1 %v2980_v49, %s3349_s20  ;;  %2986 = vrot.lane.b32.xlu0 %v2985_v53, %s3350_s21  ;;  %v584_v53 = vunpack.c.l.bf16 %v580_v28 }
  0x48   : > { %2991 = vrot.lane.b32.xlu1 %v2990_v56, %s3351_s27  ;;  %2996 = vrot.lane.b32.xlu0 %v2995_v11, %s3352_s28  ;;  %v583_v56 = vld [vmem:[#allocation2 + $0x14] sm:$0x7] }
  0x49   : > { %v3659_v0 = vunpack.c.l.bf16 %v583_v56 }
  0x4c   : > { %3001 = vrot.lane.b32.xlu1 %v3000_v63, %s3353_s10  ;;  %3006 = vrot.lane.b32.xlu0 %v3005_v1, %s3354_s12  ;;  %v586_v63 = vunpack.c.l.bf16 %v581_v55 }
  0x50   : > { %1776 = vrot.lane.b32.xlu1 %v1774_v3, %s3349_s20  ;;  %1807 = vrot.lane.b32.xlu0 %v1805_v7, %s3350_s21 }
  0x54   : > { %1839 = vrot.lane.b32.xlu1 %v1837_v13, %s3351_s27  ;;  %1915 = vrot.lane.b32.xlu0 %v1913_v14, %s3353_s10 }
  0x58   : > { %1885 = vrot.lane.b32.xlu1 %v1883_v8, %s3352_s28 }
  0x5c   : > { %1947 = vrot.lane.b32.xlu1 %v1945_v9, %s3354_s12 }
  0x9e   : > { %v3602_v10 = vpop.permute.xlu0 %2921  ;;  %v3604_v6 = vpop.permute.xlu1 %2926 }
  0x9f   : > { %v2923_v34 = vunpack.i.l.bf16 %v3602_v10  ;;  %v2928_v45 = vunpack.i.l.bf16 %v3604_v6 }
  0xa1   : > { %v601_v48 = vadd.f32 %v2923_v34, %v3631_v38  ;;  %v603_v49 = vadd.f32 %v2923_v34, %v3633_v40  ;;  %v632_v52 = vadd.f32 %v2928_v45, %v3631_v38  ;;  %v634_v60 = vadd.f32 %v2928_v45, %v3633_v40 }
  0xa2   : > { %v3606_v17 = vpop.permute.xlu0 %2931  ;;  %v3608_v18 = vpop.permute.xlu1 %2936  ;;  %v600_v2 = vadd.f32 %v2923_v34, %v584_v53  ;;  %v602_v3 = vadd.f32 %v2923_v34, %v3651_v54 }
  0xa3   : > { %v2933_v57 = vunpack.i.l.bf16 %v3606_v17  ;;  %v612_v58 = vrot.slane %v601_v48, 5  ;;  %v613_v11 = vrot.slane %v603_v49, 5  ;;  %v2938_v62 = vunpack.i.l.bf16 %v3608_v18  ;;  %v798_v49 = vld [vmem:[#allocation2] sm:$0x88] }
  0xa4   : > { %v642_v1 = vrot.slane %v632_v52, 5  ;;  %v643_v12 = vrot.slane %v634_v60, 5  ;;  %v609_v19 = vrot.slane %v600_v2, 5 }
  0xa5   : > { %v614_v7 = vsel %vm608_vm0, %v612_v58, %v613_v11  ;;  %v664_v13 = vadd.f32 %v2933_v57, %v584_v53  ;;  %v666_v14 = vadd.f32 %v2933_v57, %v3651_v54  ;;  %v712_v16 = vadd.f32 %v2938_v62, %v586_v63 }
  0xa6   : > { %v3610_v20 = vpop.permute.xlu0 %2941  ;;  %v3612_v24 = vpop.permute.xlu1 %2946  ;;  %v714_v9 = vadd.f32 %v2938_v62, %v3659_v0  ;;  %v644_v28 = vsel %vm608_vm0, %v642_v1, %v643_v12  ;;  %v665_v48 = vadd.f32 %v2933_v57, %v3631_v38  ;;  %v3683_v58 = vunpack.c.h.bf16 %v798_v49 }
  0xa7   : > { %v2943_v8 = vunpack.i.l.bf16 %v3610_v20  ;;  %v672_v29 = vrot.slane %v664_v13, 5  ;;  %v673_v30 = vrot.slane %v666_v14, 5 }
  0xa8   : > { %v723_v34 = vrot.slane %v714_v9, 5  ;;  %v675_v60 = vrot.slane %v665_v48, 5 }
  0xa9   : > { %v745_v9 = vadd.f32 %v2943_v8, %v3659_v0 }
  0xaa   : > { %v3618_v5 = vpop.permute.xlu0 %2951  ;;  %v3620_v23 = vpop.permute.xlu1 %2956 }
  0xab   : > { %v2954_v26 = vunpack.i.h.bf16 %v3618_v5  ;;  %v2959_v27 = vunpack.i.h.bf16 %v3620_v23 }
  0xad   : > { %v1221_v32 = vadd.f32 %v2954_v26, %v3614_v21  ;;  %v1220_v33 = vadd.f32 %v2954_v26, %v3616_v22  ;;  %v1242_v43 = vadd.f32 %v2959_v27, %v3616_v22  ;;  %v1243_v51 = vadd.f32 %v2959_v27, %v3614_v21 }
  0xae   : > { %v3627_v35 = vpop.permute.xlu0 %2961  ;;  %v3629_v37 = vpop.permute.xlu1 %2966  ;;  %v631_v26 = vadd.f32 %v2928_v45, %v584_v53  ;;  %v633_v27 = vadd.f32 %v2928_v45, %v3651_v54  ;;  %v667_v45 = vadd.f32 %v2933_v57, %v3633_v40  ;;  %v2924_v53 = vunpack.i.h.bf16 %v3602_v10 }
  0xaf   : > { %v2964_v41 = vunpack.i.h.bf16 %v3627_v35  ;;  %1226 = vrot.lane.b32.xlu1 %v1221_v32, %s3354_s12  ;;  %1224 = vrot.lane.b32.xlu0 %v1220_v33, %s3354_s12  ;;  %v2969_v42 = vunpack.i.h.bf16 %v3629_v37  ;;  %v610_v32 = vrot.slane %v602_v3, 5  ;;  %v722_v33 = vrot.slane %v712_v16, 5 }
  0xb0   : > { %v711_v3 = vadd.f32 %v2938_v62, %v3631_v38  ;;  %v2929_v10 = vunpack.i.h.bf16 %v3604_v6  ;;  %v812_v13 = vadd.f32 %v2924_v53, %v3683_v58  ;;  %v743_v16 = vadd.f32 %v2943_v8, %v586_v63 }
  0xb1   : > { %v1263_v46 = vadd.f32 %v2964_v41, %v3614_v21  ;;  %v1292_v50 = vadd.f32 %v2969_v42, %v3640_v44  ;;  %v1262_v61 = vadd.f32 %v2964_v41, %v3616_v22  ;;  %v1291_v15 = vadd.f32 %v2969_v42, %v3614_v21 }
  0xb2   : > { %v742_v41 = vadd.f32 %v2943_v8, %v3631_v38  ;;  %v744_v42 = vadd.f32 %v2943_v8, %v3633_v40  ;;  %v611_v52 = vsel %vm608_vm0, %v609_v19, %v610_v32  ;;  %v724_v11 = vsel %vm608_vm0, %v722_v33, %v723_v34  ;;  %v799_v34 = vld [vmem:[#allocation2 + $0x8] sm:$0x8] }
  0xb3   : > { %1268 = vrot.lane.b32.xlu1 %v1263_v46, %s3352_s28  ;;  %1246 = vrot.lane.b32.xlu0 %v1242_v43, %s3353_s10  ;;  %v639_v43 = vrot.slane %v631_v26, 5  ;;  %v640_v46 = vrot.slane %v633_v27, 5  ;;  %v2934_v6 = vunpack.i.h.bf16 %v3606_v17  ;;  %v754_v33 = vrot.slane %v745_v9, 5 }
  0xb4   : > { %v750_v55 = vrot.slane %v742_v41, 5  ;;  %v751_v56 = vrot.slane %v744_v42, 5  ;;  %v2939_v17 = vunpack.i.h.bf16 %v3608_v18  ;;  %v2944_v18 = vunpack.i.h.bf16 %v3610_v20 }
  0xb5   : > { %v641_v57 = vsel %vm608_vm0, %v639_v43, %v640_v46  ;;  %v3707_v46 = vunpack.c.l.bf16 %v798_v49  ;;  %v877_v49 = vadd.f32 %v2934_v6, %v3633_v40  ;;  %v2949_v20 = vunpack.i.h.bf16 %v3612_v24 }
  0xb6   : > { %v752_v12 = vsel %vm608_vm0, %v750_v55, %v751_v56 }
  0xb7   : > { %1297 = vrot.lane.b32.xlu1 %v1292_v50, %s3351_s27  ;;  %1248 = vrot.lane.b32.xlu0 %v1243_v51, %s3353_s10  ;;  %v2948_v50 = vunpack.i.l.bf16 %v3612_v24  ;;  %v674_v51 = vsel %vm608_vm0, %v672_v29, %v673_v30  ;;  %v845_v29 = vadd.f32 %v2929_v10, %v3683_v58  ;;  %v847_v30 = vadd.f32 %v2929_v10, %v3633_v40 }
  0xb8   : > { %v2953_v24 = vunpack.i.l.bf16 %v3618_v5  ;;  %v2958_v5 = vunpack.i.l.bf16 %v3620_v23  ;;  %v2963_v23 = vunpack.i.l.bf16 %v3627_v35 }
  0xb9   : > { %v776_v1 = vadd.f32 %v2948_v50, %v586_v63  ;;  %v778_v2 = vadd.f32 %v2948_v50, %v3659_v0  ;;  %v753_v63 = vrot.slane %v743_v16, 5  ;;  %v775_v8 = vadd.f32 %v2948_v50, %v3631_v38 }
  0xba   : > { %v777_v43 = vadd.f32 %v2948_v50, %v3633_v40  ;;  %v855_v48 = vrot.slane %v845_v29, 6 }
  0xbb   : > { %1266 = vrot.lane.b32.xlu0 %v1262_v61, %s3352_s28  ;;  %617 = vrot.lane.b32.xlu1 %v614_v7, %s3354_s12  ;;  %v676_v61 = vrot.slane %v667_v45, 5  ;;  %v713_v7 = vadd.f32 %v2938_v62, %v3633_v40  ;;  %v786_v19 = vrot.slane %v776_v1, 5  ;;  %v787_v26 = vrot.slane %v778_v2, 5 }
  0xbc   : > { %v719_v62 = vrot.slane %v711_v3, 5  ;;  %v856_v45 = vrot.slane %v847_v30, 6  ;;  %v755_v55 = vsel %vm608_vm0, %v753_v63, %v754_v33  ;;  %v783_v56 = vrot.slane %v775_v8, 5 }
  0xbd   : > { %v677_v14 = vsel %vm608_vm0, %v675_v60, %v676_v61  ;;  %v720_v27 = vrot.slane %v713_v7, 5  ;;  %v788_v41 = vsel %vm608_vm0, %v786_v19, %v787_v26  ;;  %v784_v50 = vrot.slane %v777_v43, 5 }
  0xbe   : > { %v813_v60 = vadd.f32 %v2924_v53, %v3651_v54  ;;  %v857_v61 = vsel %vm819_vm1, %v855_v48, %v856_v45  ;;  %v923_v3 = vadd.f32 %v2939_v17, %v3659_v0  ;;  %v844_v7 = vadd.f32 %v2929_v10, %v3707_v46 }
  0xbf   : > { %1295 = vrot.lane.b32.xlu0 %v1291_v15, %s3351_s27  ;;  %647 = vrot.lane.b32.xlu1 %v644_v28, %s3353_s10  ;;  %v814_v15 = vadd.f32 %v2924_v53, %v3633_v40  ;;  %v823_v28 = vrot.slane %v812_v13, 6  ;;  %v721_v42 = vsel %vm608_vm0, %v719_v62, %v720_v27  ;;  %v785_v13 = vsel %vm608_vm0, %v783_v56, %v784_v50 }
  0xc0   : > { %v955_v19 = vadd.f32 %v2944_v18, %v3659_v0  ;;  %v932_v26 = vrot.slane %v923_v3, 6  ;;  %v852_v62 = vrot.slane %v844_v7, 6  ;;  %v876_v30 = vadd.f32 %v2934_v6, %v3651_v54 }
  0xc1   : > { %v824_v32 = vrot.slane %v814_v15, 6  ;;  %v821_v15 = vrot.slane %v813_v60, 6  ;;  %v985_v43 = vadd.f32 %v2949_v20, %v3659_v0  ;;  %v1019_v45 = vadd.f32 %v2953_v24, %v3707_v46 }
  0xc2   : > { %v964_v63 = vrot.slane %v955_v19, 6  ;;  %v952_v56 = vadd.f32 %v2944_v18, %v3683_v58  ;;  %v954_v0 = vadd.f32 %v2944_v18, %v3633_v40  ;;  %v1051_v60 = vadd.f32 %v2958_v5, %v3683_v58 }
  0xc3   : > { %678 = vrot.lane.b32.xlu1 %v674_v51, %s3352_s28  ;;  %615 = vrot.lane.b32.xlu0 %v611_v52, %s3354_s12  ;;  %v3712_v51 = vunpack.c.l.bf16 %v799_v34  ;;  %v825_v52 = vsel %vm819_vm1, %v823_v28, %v824_v32 }
  0xc4   : > { %v961_v3 = vrot.slane %v954_v0, 6  ;;  %v1061_v35 = vrot.slane %v1051_v60, 7  ;;  %v1085_v0 = vadd.f32 %v2963_v23, %v3614_v21 }
  0xc5   : > { %v921_v1 = vadd.f32 %v2939_v17, %v3712_v51  ;;  %v953_v9 = vadd.f32 %v2944_v18, %v3712_v51  ;;  %v982_v18 = vadd.f32 %v2949_v20, %v3683_v58 }
  0xc7   : > { %727 = vrot.lane.b32.xlu1 %v724_v11, %s3351_s27  ;;  %645 = vrot.lane.b32.xlu0 %v641_v57, %s3353_s10  ;;  %v875_v11 = vadd.f32 %v2934_v6, %v3683_v58  ;;  %v811_v57 = vadd.f32 %v2924_v53, %v3707_v46  ;;  %v886_v53 = vrot.slane %v877_v49, 6  ;;  %v931_v16 = vrot.slane %v921_v1, 6 }
  0xc8   : > { %v963_v32 = vrot.slane %v953_v9, 6  ;;  %v990_v19 = vrot.slane %v982_v18, 6 }
  0xc9   : > { %v885_v2 = vrot.slane %v875_v11, 6  ;;  %v933_v33 = vsel %vm819_vm1, %v931_v16, %v932_v26  ;;  %v3771_v26 = vpop.permute.xlu0 %2971 }
  0xca   : > { %v965_v48 = vsel %vm819_vm1, %v963_v32, %v964_v63 }
  0xcb   : > { %756 = vrot.lane.b32.xlu1 %v752_v12, %s3350_s21  ;;  %680 = vrot.lane.b32.xlu0 %v677_v14, %s3352_s28  ;;  %v846_v12 = vadd.f32 %v2929_v10, %v3651_v54  ;;  %v820_v14 = vrot.slane %v811_v57, 6  ;;  %v874_v10 = vadd.f32 %v2934_v6, %v3707_v46  ;;  %v887_v28 = vsel %vm819_vm1, %v885_v2, %v886_v53 }
  0xcc   : > { %v920_v54 = vadd.f32 %v2939_v17, %v3683_v58  ;;  %v922_v6 = vadd.f32 %v2939_v17, %v3633_v40  ;;  %v994_v17 = vrot.slane %v985_v43, 6  ;;  %v1028_v57 = vrot.slane %v1019_v45, 7 }
  0xcd   : > { %v853_v27 = vrot.slane %v846_v12, 6  ;;  %v822_v29 = vsel %vm819_vm1, %v820_v14, %v821_v15  ;;  %v882_v34 = vrot.slane %v874_v10, 6  ;;  %v960_v2 = vrot.slane %v952_v56, 6 }
  0xce   : > { %v928_v50 = vrot.slane %v920_v54, 6  ;;  %v929_v49 = vrot.slane %v922_v6, 6  ;;  %v1082_v14 = vadd.f32 %v2963_v23, %v3707_v46  ;;  %v2968_v15 = vunpack.i.l.bf16 %v3629_v37 }
  0xcf   : > { %791 = vrot.lane.b32.xlu1 %v788_v41, %s3349_s20  ;;  %725 = vrot.lane.b32.xlu0 %v721_v42, %s3351_s27  ;;  %v854_v8 = vsel %vm819_vm1, %v852_v62, %v853_v27  ;;  %v983_v41 = vadd.f32 %v2949_v20, %v3712_v51  ;;  %v883_v42 = vrot.slane %v876_v30, 6  ;;  %v962_v9 = vsel %vm819_vm1, %v960_v2, %v961_v3  ;;  %v3780_v30 = vpop.permute.xlu1 %2976 }
  0xd0   : > { %v930_v12 = vsel %vm819_vm1, %v928_v50, %v929_v49  ;;  %v1020_v27 = vadd.f32 %v2953_v24, %v3683_v58  ;;  %v1022_v10 = vadd.f32 %v2953_v24, %v3614_v21  ;;  %v1129_v32 = vadd.f32 %v2968_v15, %v3712_v51 }
  0xd1   : > { %v884_v11 = vsel %vm819_vm1, %v882_v34, %v883_v42  ;;  %v1131_v63 = vadd.f32 %v2968_v15, %v3640_v44  ;;  %v2978_v43 = vunpack.i.l.bf16 %v3780_v30  ;;  %v1083_v56 = vadd.f32 %v2963_v23, %v3683_v58 }
  0xd2   : > { %v1032_v42 = vrot.slane %v1022_v10, 7  ;;  %v1128_v2 = vadd.f32 %v2968_v15, %v3683_v58  ;;  %v3818_v10 = vpop.permute.xlu0 %2986 }
  0xd3   : > { %828 = vrot.lane.b32.xlu1 %v825_v52, %s3354_s12  ;;  %758 = vrot.lane.b32.xlu0 %v755_v55, %s3350_s21  ;;  %v993_v52 = vrot.slane %v983_v41, 6  ;;  %v1021_v55 = vadd.f32 %v2953_v24, %v3616_v22  ;;  %v1031_v41 = vrot.slane %v1020_v27, 7  ;;  %v1140_v45 = vrot.slane %v1131_v63, 7 }
  0xd4   : > { %v2988_v63 = vunpack.i.l.bf16 %v3818_v10 }
  0xd5   : > { %v1029_v1 = vrot.slane %v1021_v55, 7  ;;  %v995_v7 = vsel %vm819_vm1, %v993_v52, %v994_v17  ;;  %v1033_v55 = vsel %vm1027_vm2, %v1031_v41, %v1032_v42  ;;  %v1193_v17 = vadd.f32 %v2978_v43, %v3640_v44 }
  0xd7   : > { %860 = vrot.lane.b32.xlu1 %v857_v61, %s3353_s10  ;;  %789 = vrot.lane.b32.xlu0 %v785_v13, %s3349_s20  ;;  %v1053_v61 = vadd.f32 %v2958_v5, %v3614_v21  ;;  %v984_v13 = vadd.f32 %v2949_v20, %v3633_v40  ;;  %v1030_v16 = vsel %vm1027_vm2, %v1028_v57, %v1029_v1  ;;  %v1094_v1 = vrot.slane %v1085_v0, 7 }
  0xd8   : > { %v1084_v20 = vadd.f32 %v2963_v23, %v3616_v22  ;;  %v1130_v23 = vadd.f32 %v2968_v15, %v3614_v21  ;;  %v1202_v18 = vrot.slane %v1193_v17, 7 }
  0xd9   : > { %v1062_v53 = vrot.slane %v1053_v61, 7  ;;  %v991_v62 = vrot.slane %v984_v13, 6  ;;  %v1093_v61 = vrot.slane %v1083_v56, 7  ;;  %v3807_v13 = vpop.permute.xlu1 %2981 }
  0xda   : > { %v1091_v34 = vrot.slane %v1084_v20, 7 }
  0xdb   : > { %890 = vrot.lane.b32.xlu1 %v887_v28, %s3352_s28  ;;  %826 = vrot.lane.b32.xlu0 %v822_v29, %s3354_s12  ;;  %v1063_v37 = vsel %vm1027_vm2, %v1061_v35, %v1062_v53  ;;  %v2973_v28 = vunpack.i.l.bf16 %v3771_v26  ;;  %v1090_v29 = vrot.slane %v1082_v14, 7  ;;  %v992_v24 = vsel %vm819_vm1, %v990_v19, %v991_v62 }
  0xdc   : > { %v1095_v14 = vsel %vm1027_vm2, %v1093_v61, %v1094_v1  ;;  %v2983_v62 = vunpack.i.l.bf16 %v3807_v13 }
  0xdd   : > { %v1158_v54 = vadd.f32 %v2973_v28, %v3683_v58  ;;  %v1160_v6 = vadd.f32 %v2973_v28, %v3614_v21  ;;  %v1159_v35 = vadd.f32 %v2973_v28, %v3712_v51  ;;  %v1161_v53 = vadd.f32 %v2973_v28, %v3640_v44 }
  0xde   : > { %v2974_v28 = vunpack.i.h.bf16 %v3771_v26  ;;  %v2979_v26 = vunpack.i.h.bf16 %v3780_v30  ;;  %v1397_v30 = vadd.f32 %v2988_v63, %v3614_v21 }
  0xdf   : > { %936 = vrot.lane.b32.xlu1 %v933_v33, %s3351_s27  ;;  %858 = vrot.lane.b32.xlu0 %v854_v8, %s3353_s10  ;;  %v1050_v33 = vadd.f32 %v2958_v5, %v3707_v46  ;;  %v1052_v8 = vadd.f32 %v2958_v5, %v3616_v22  ;;  %v1092_v5 = vsel %vm1027_vm2, %v1090_v29, %v1091_v34  ;;  %v1166_v50 = vrot.slane %v1158_v54, 7  ;;  %v3823_v29 = vpop.permute.xlu1 %2991 }
  0xe0   : > { %v1167_v49 = vrot.slane %v1160_v6, 7  ;;  %v1169_v20 = vrot.slane %v1159_v35, 7  ;;  %v1170_v27 = vrot.slane %v1161_v53, 7  ;;  %v1314_v42 = vadd.f32 %v2974_v28, %v3640_v44 }
  0xe1   : > { %v1058_v46 = vrot.slane %v1050_v33, 7  ;;  %v1059_v52 = vrot.slane %v1052_v8, 7  ;;  %v1366_v33 = vadd.f32 %v2983_v62, %v3614_v21  ;;  %v1334_v0 = vadd.f32 %v2979_v26, %v3640_v44 }
  0xe2   : > { %v1171_v8 = vsel %vm1027_vm2, %v1169_v20, %v1170_v27  ;;  %v1407_v1 = vrot.slane %v1397_v30, 1 }
  0xe3   : > { %968 = vrot.lane.b32.xlu1 %v965_v48, %s3350_s21  ;;  %888 = vrot.lane.b32.xlu0 %v884_v11, %s3352_s28  ;;  %v1139_v48 = vrot.slane %v1129_v32, 7  ;;  %v1191_v11 = vadd.f32 %v2978_v43, %v3712_v51  ;;  %v1060_v60 = vsel %vm1027_vm2, %v1058_v46, %v1059_v52  ;;  %v1190_v51 = vadd.f32 %v2978_v43, %v3683_v58  ;;  %v3837_v6 = vpop.permute.xlu1 %3001  ;;  %v1348_v46 = vld [vmem:[#allocation2 + $0x20] sm:$0x1] }
  0xe4   : > { %v1377_v54 = vrot.slane %v1366_v33, 1  ;;  %v3847_v17 = vunpack.c.l.bf16 %v1348_v46  ;;  %v2984_v46 = vunpack.i.h.bf16 %v3807_v13  ;;  %v2989_v13 = vunpack.i.h.bf16 %v3818_v10 }
  0xe5   : > { %v1141_v57 = vsel %vm1027_vm2, %v1139_v48, %v1140_v45  ;;  %v1201_v3 = vrot.slane %v1191_v11, 7  ;;  %v1346_v45 = vld [vmem:[#allocation2 + $0x14] sm:$0xf] }
  0xe6   : > { %v1351_v11 = vunpack.c.l.bf16 %v1346_v45 }
  0xe7   : > { %998 = vrot.lane.b32.xlu1 %v995_v7, %s3349_s20  ;;  %934 = vrot.lane.b32.xlu0 %v930_v12, %s3351_s27  ;;  %v1347_v7 = vld [vmem:[#allocation2 + $0x18] sm:$0x11]  ;;  %v1168_v12 = vsel %vm1027_vm2, %v1166_v50, %v1167_v49  ;;  %v1203_v19 = vsel %vm1027_vm2, %v1201_v3, %v1202_v18  ;;  %v3858_v3 = vpop.permute.xlu1 %1776  ;;  %v3003_v18 = vunpack.i.l.bf16 %v3837_v6 }
  0xe8   : > { %v3812_v15 = vunpack.c.h.bf16 %v1347_v7  ;;  %v3839_v48 = vunpack.c.l.bf16 %v1347_v7 }
  0xea   : > { %v1368_v41 = vadd.f32 %v2983_v62, %v3812_v15  ;;  %v1399_v56 = vadd.f32 %v2988_v63, %v3812_v15  ;;  %v1398_v20 = vadd.f32 %v2988_v63, %v3839_v48 }
  0xeb   : > { %1034 = vrot.lane.b32.xlu1 %v1030_v16, %s3354_s12  ;;  %966 = vrot.lane.b32.xlu0 %v962_v9, %s3350_s21  ;;  %v1136_v16 = vrot.slane %v1128_v2, 7  ;;  %v1137_v9 = vrot.slane %v1130_v23, 7  ;;  %v1367_v2 = vadd.f32 %v2983_v62, %v3839_v48  ;;  %v1313_v23 = vadd.f32 %v2974_v28, %v3614_v21 }
  0xec   : > { %v1408_v44 = vrot.slane %v1399_v56, 1  ;;  %v1505_v28 = vadd.f32 %v3003_v18, %v1351_v11 }
  0xed   : > { %v1138_v32 = vsel %vm1027_vm2, %v1136_v16, %v1137_v9 }
  0xee   : > { %v1409_v53 = vsel %vm1373_vm3, %v1407_v1, %v1408_v44 }
  0xef   : > { %1066 = vrot.lane.b32.xlu1 %v1063_v37, %s3353_s10  ;;  %996 = vrot.lane.b32.xlu0 %v992_v24, %s3349_s20  ;;  %v1192_v37 = vadd.f32 %v2978_v43, %v3614_v21  ;;  %v1198_v24 = vrot.slane %v1190_v51, 7  ;;  %v2993_v43 = vunpack.i.l.bf16 %v3823_v29 }
  0xf1   : > { %v1199_v34 = vrot.slane %v1192_v37, 7  ;;  %v1429_v49 = vadd.f32 %v2993_v43, %v3614_v21  ;;  %v3873_v37 = vpop.permute.xlu1 %1839 }
  0xf3   : > { %1096 = vrot.lane.b32.xlu1 %v1092_v5, %s3352_s28  ;;  %1036 = vrot.lane.b32.xlu0 %v1033_v55, %s3354_s12  ;;  %v1200_v52 = vsel %vm1027_vm2, %v1198_v24, %v1199_v34  ;;  %v1378_v5 = vrot.slane %v1368_v41, 1  ;;  %v3842_v55 = vpop.permute.xlu0 %2996  ;;  %v1439_v7 = vrot.slane %v1429_v49, 1  ;;  %v1507_v34 = vadd.f32 %v3003_v18, %v3847_v17 }
  0xf4   : > { %v2998_v50 = vunpack.i.l.bf16 %v3842_v55 }
  0xf5   : > { %v1379_v61 = vsel %vm1373_vm3, %v1377_v54, %v1378_v5  ;;  %v1430_v54 = vadd.f32 %v2993_v43, %v3839_v48  ;;  %v1515_v5 = vrot.slane %v1505_v28, 1  ;;  %v1516_v30 = vrot.slane %v1507_v34, 1 }
  0xf6   : > { %v1475_v16 = vadd.f32 %v2998_v50, %v1351_v11  ;;  %v1477_v9 = vadd.f32 %v2998_v50, %v3847_v17  ;;  %v1476_v1 = vadd.f32 %v2998_v50, %v3812_v15  ;;  %v1607_v28 = vadd.f32 %v2989_v13, %v3812_v15 }
  0xf7   : > { %1144 = vrot.lane.b32.xlu1 %v1141_v57, %s3351_s27  ;;  %1064 = vrot.lane.b32.xlu0 %v1060_v60, %s3353_s10  ;;  %v1431_v57 = vadd.f32 %v2993_v43, %v3812_v15  ;;  %v1365_v60 = vadd.f32 %v2983_v62, %v3616_v22  ;;  %v1396_v62 = vadd.f32 %v2988_v63, %v3616_v22  ;;  %v3868_v27 = vpop.permute.xlu0 %3006 }
  0xf8   : > { %v1486_v24 = vrot.slane %v1477_v9, 1  ;;  %v3008_v63 = vunpack.i.l.bf16 %v3868_v27  ;;  %v1517_v44 = vsel %vm1373_vm3, %v1515_v5, %v1516_v30 }
  0xf9   : > { %v1374_v35 = vrot.slane %v1365_v60, 1  ;;  %v1404_v41 = vrot.slane %v1396_v62, 1 }
  0xfa   : > { %v1539_v60 = vadd.f32 %v3008_v63, %v3847_v17  ;;  %v1538_v34 = vadd.f32 %v3008_v63, %v3812_v15 }
  0xfb   : > { %1172 = vrot.lane.b32.xlu1 %v1168_v12, %s3350_s21  ;;  %1098 = vrot.lane.b32.xlu0 %v1095_v14, %s3352_s28  ;;  %v1440_v12 = vrot.slane %v1431_v57, 1  ;;  %v1375_v14 = vrot.slane %v1367_v2, 1  ;;  %v3889_v49 = vpop.permute.xlu0 %1807  ;;  %v1437_v57 = vrot.slane %v1430_v54, 1  ;;  %v2999_v54 = vunpack.i.h.bf16 %v3842_v55 }
  0xfd   : > { %v1441_v51 = vsel %vm1373_vm3, %v1439_v7, %v1440_v12  ;;  %v1376_v33 = vsel %vm1373_vm3, %v1374_v35, %v1375_v14  ;;  %v1504_v7 = vadd.f32 %v3003_v18, %v3614_v21  ;;  %v1506_v12 = vadd.f32 %v3003_v18, %v3812_v15 }
  0xfe   : > { %v1483_v14 = vrot.slane %v1476_v1, 1 }
  0xff   : > { %1206 = vrot.lane.b32.xlu1 %v1203_v19, %s3349_s20  ;;  %1142 = vrot.lane.b32.xlu0 %v1138_v32, %s3351_s27  ;;  %v1333_v19 = vadd.f32 %v2979_v26, %v3614_v21  ;;  %v1558_v32 = vld [vmem:[#allocation2 + $0xc] sm:$0xee]  ;;  %v1405_v26 = vrot.slane %v1398_v20, 1  ;;  %v3910_v9 = vpop.permute.xlu0 %1915  ;;  %v1512_v20 = vrot.slane %v1504_v7, 1 }
 0x100   : > { %v3880_v45 = vunpack.c.h.bf16 %v1558_v32 }
 0x101   : > { %v1406_v56 = vsel %vm1373_vm3, %v1404_v41, %v1405_v26  ;;  %v3918_v41 = vunpack.c.l.bf16 %v1558_v32 }
 0x102   : > { %v1572_v2 = vadd.f32 %v2984_v46, %v3880_v45  ;;  %v1605_v18 = vadd.f32 %v2989_v13, %v3880_v45  ;;  %v1662_v26 = vadd.f32 %v3548_v36, %v3880_v45 }
 0x103   : > { %1319 = vrot.lane.b32.xlu1 %v1314_v42, %s3350_s21  ;;  %1174 = vrot.lane.b32.xlu0 %v1171_v8, %s3350_s21  ;;  %v1485_v8 = vrot.slane %v1475_v16, 1  ;;  %v1428_v42 = vadd.f32 %v2993_v43, %v3616_v22  ;;  %v1537_v43 = vadd.f32 %v3008_v63, %v1351_v11  ;;  %v3904_v16 = vunpack.i.h.bf16 %v3823_v29 }
 0x104   : > { %v1536_v29 = vadd.f32 %v3008_v63, %v3614_v21  ;;  %v1615_v5 = vrot.slane %v1605_v18, 2  ;;  %v1666_v1 = vrot.slane %v1662_v26, 2  ;;  %v3009_v18 = vunpack.i.h.bf16 %v3868_v27 }
 0x105   : > { %v1436_v22 = vrot.slane %v1428_v42, 1  ;;  %v1547_v11 = vrot.slane %v1537_v43, 1  ;;  %v1663_v42 = vadd.f32 %v3548_v36, %v3812_v15  ;;  %v1635_v36 = vadd.f32 %v3904_v16, %v3880_v45 }
 0x106   : > { %v1544_v43 = vrot.slane %v1536_v29, 1  ;;  %v1637_v55 = vadd.f32 %v3904_v16, %v3812_v15  ;;  %v1634_v27 = vadd.f32 %v3904_v16, %v3918_v41 }
 0x107   : > { %1339 = vrot.lane.b32.xlu1 %v1334_v0, %s3349_s20  ;;  %1204 = vrot.lane.b32.xlu0 %v1200_v52, %s3349_s20  ;;  %v1487_v52 = vsel %vm1373_vm3, %v1485_v8, %v1486_v24  ;;  %v3887_v0 = vpop.permute.xlu1 %1885  ;;  %v1438_v35 = vsel %vm1373_vm3, %v1436_v22, %v1437_v57  ;;  %v1616_v22 = vrot.slane %v1607_v28, 2  ;;  %v1545_v57 = vrot.slane %v1538_v34, 1 }
 0x108   : > { %v1667_v7 = vrot.slane %v1663_v42, 2 }
 0x10a   : > { %v3966_v26 = vsel %vm1579_vm4, %v1666_v1, %v1667_v7 }
 0x10b   : > { %1382 = vrot.lane.b32.xlu1 %v1379_v61, %s3354_s12  ;;  %1317 = vrot.lane.b32.xlu0 %v1313_v23, %s3350_s21  ;;  %v1474_v61 = vadd.f32 %v2998_v50, %v3614_v21  ;;  %v1574_v23 = vadd.f32 %v2984_v46, %v3812_v15  ;;  %v1548_v50 = vrot.slane %v1539_v60, 1  ;;  %v3908_v10 = vpop.permute.xlu1 %1947  ;;  %v1571_v60 = vadd.f32 %v2984_v46, %v3918_v41 }
 0x10d   : > { %v1584_v62 = vrot.slane %v1574_v23, 2  ;;  %v1549_v8 = vsel %vm1373_vm3, %v1547_v11, %v1548_v50  ;;  %v1683_v23 = vadd.f32 %v2999_v54, %v3847_v17  ;;  %v1604_v11 = vadd.f32 %v2989_v13, %v3918_v41 }
 0x10e   : > { %v1645_v50 = vrot.slane %v1635_v36, 2 }
 0x10f   : > { %1412 = vrot.lane.b32.xlu1 %v1409_v53, %s3353_s10  ;;  %1337 = vrot.lane.b32.xlu0 %v1333_v19, %s3349_s20  ;;  %v1482_v53 = vrot.slane %v1474_v61, 1  ;;  %v1583_v19 = vrot.slane %v1572_v2, 2  ;;  %v1573_v61 = vadd.f32 %v2984_v46, %v3839_v48  ;;  %v1617_v46 = vsel %vm1579_vm4, %v1615_v5, %v1616_v22 }
 0x110   : > { %v1692_v28 = vrot.slane %v1683_v23, 2  ;;  %v1612_v29 = vrot.slane %v1604_v11, 2  ;;  %v1636_v5 = vadd.f32 %v3904_v16, %v3839_v48  ;;  %v1745_v16 = vadd.f32 %v3009_v18, %v3847_v17 }
 0x111   : > { %v1484_v24 = vsel %vm1373_vm3, %v1482_v53, %v1483_v14  ;;  %v1606_v53 = vadd.f32 %v2989_v13, %v3839_v48  ;;  %v1546_v14 = vsel %vm1373_vm3, %v1544_v43, %v1545_v57  ;;  %v1682_v23 = vadd.f32 %v2999_v54, %v3812_v15 }
 0x112   : > { %v1643_v48 = vrot.slane %v1636_v5, 2  ;;  %v1780_v11 = vadd.f32 %v3858_v3, %v3880_v45  ;;  %v1744_v5 = vadd.f32 %v3009_v18, %v3812_v15 }
 0x113   : > { %1444 = vrot.lane.b32.xlu1 %v1441_v51, %s3352_s28  ;;  %1380 = vrot.lane.b32.xlu0 %v1376_v33, %s3354_s12  ;;  %v1513_v51 = vrot.slane %v1506_v12, 1  ;;  %v1559_v33 = vld [vmem:[#allocation2 + $0x14] sm:$0xe] }
 0x114   : > { %v3928_v30 = vunpack.c.l.bf16 %v1559_v33 }
 0x116   : > { %v1681_v2 = vadd.f32 %v2999_v54, %v3928_v30  ;;  %v1743_v1 = vadd.f32 %v3009_v18, %v3928_v30 }
 0x117   : > { %1490 = vrot.lane.b32.xlu1 %v1487_v52, %s3351_s27  ;;  %1410 = vrot.lane.b32.xlu0 %v1406_v56, %s3353_s10  ;;  %v1585_v52 = vsel %vm1579_vm4, %v1583_v19, %v1584_v62  ;;  %v1514_v56 = vsel %vm1373_vm3, %v1512_v20, %v1513_v51  ;;  %v1646_v19 = vrot.slane %v1637_v55, 2  ;;  %v1581_v62 = vrot.slane %v1573_v61, 2  ;;  %v1764_v20 = vld [vmem:[#allocation2 + $0x18] sm:$0x33] }
 0x118   : > { %v1691_v51 = vrot.slane %v1681_v2, 2  ;;  %v1642_v61 = vrot.slane %v1634_v27, 2  ;;  %v1680_v2 = vadd.f32 %v2999_v54, %v3880_v45 }
 0x119   : > { %v1647_v42 = vsel %vm1579_vm4, %v1645_v50, %v1646_v19 }
 0x11a   : > { %v1693_v22 = vsel %vm1579_vm4, %v1691_v51, %v1692_v28  ;;  %v1644_v19 = vsel %vm1579_vm4, %v1642_v61, %v1643_v48  ;;  %v1689_v51 = vrot.slane %v1682_v23, 2  ;;  %v1791_v28 = vrot.slane %v1780_v11, 3 }
 0x11b   : > { %1520 = vrot.lane.b32.xlu1 %v1517_v44, %s3350_s21  ;;  %1442 = vrot.lane.b32.xlu0 %v1438_v35, %s3352_s28  ;;  %v3004_v44 = vunpack.i.h.bf16 %v3837_v6  ;;  %v1580_v6 = vrot.slane %v1571_v60, 2  ;;  %v692_v61 = vadd.f32 %v3467_v31, %v3633_v40 }
 0x11d   : > { %v1713_v33 = vadd.f32 %v3004_v44, %v3928_v30  ;;  %v1715_v34 = vadd.f32 %v3004_v44, %v3847_v17  ;;  %v1714_v50 = vadd.f32 %v3004_v44, %v3812_v15 }
 0x11f   : > { %1552 = vrot.lane.b32.xlu1 %v1549_v8, %s3349_s20  ;;  %1488 = vrot.lane.b32.xlu0 %v1484_v24, %s3351_s27  ;;  %v1613_v24 = vrot.slane %v1606_v53, 2  ;;  %v1723_v43 = vrot.slane %v1713_v33, 2  ;;  %v1724_v60 = vrot.slane %v1715_v34, 2 }
 0x121   : > { %v3930_v63 = vpop.permute.xlu1 %1226  ;;  %v3932_v32 = vpop.permute.xlu0 %1224  ;;  %v1614_v55 = vsel %vm1579_vm4, %v1612_v29, %v1613_v24  ;;  %v1725_v54 = vsel %vm1579_vm4, %v1723_v43, %v1724_v60  ;;  %v1811_v24 = vadd.f32 %v3889_v49, %v3880_v45  ;;  %v691_v60 = vadd.f32 %v3467_v31, %v3631_v38 }
 0x122   : > { %v1779_v31 = vadd.f32 %v3858_v3, %v3918_v41 }
 0x123   : > { %1588 = vrot.lane.b32.xlu1 %v1585_v52, %s3354_s12  ;;  %1518 = vrot.lane.b32.xlu0 %v1514_v56, %s3350_s21  ;;  %v1582_v52 = vsel %vm1579_vm4, %v1580_v6, %v1581_v62  ;;  %v3972_v56 = vunpack.c.h.bf16 %v1764_v20  ;;  %v1754_v6 = vrot.slane %v1745_v16, 2  ;;  %v1688_v62 = vrot.slane %v1680_v2, 2  ;;  %v1765_v2 = vld [vmem:[#allocation2 + $0x20] sm:$0x3] }
 0x125   : > { %v3947_v12 = vpop.permute.xlu1 %1268  ;;  %v3949_v35 = vpop.permute.xlu0 %1246  ;;  %v1782_v7 = vadd.f32 %v3858_v3, %v3972_v56  ;;  %v1813_v34 = vadd.f32 %v3889_v49, %v3972_v56  ;;  %v1690_v43 = vsel %vm1579_vm4, %v1688_v62, %v1689_v51  ;;  %v1845_v38 = vadd.f32 %v3873_v37, %v3972_v56 }
 0x126   : > { %v695_v62 = vrot.slane %v691_v60, 5  ;;  %v696_v51 = vrot.slane %v692_v61, 5  ;;  %v1919_v61 = vadd.f32 %v3910_v9, %v3928_v30 }
 0x127   : > { %1620 = vrot.lane.b32.xlu1 %v1617_v46, %s3353_s10  ;;  %1550 = vrot.lane.b32.xlu0 %v1546_v14, %s3349_s20  ;;  %v1712_v46 = vadd.f32 %v3004_v44, %v3880_v45  ;;  %v1753_v14 = vrot.slane %v1743_v1, 2  ;;  %v1792_v29 = vrot.slane %v1782_v7, 3  ;;  %v1721_v44 = vrot.slane %v1714_v50, 2 }
 0x128   : > { %v1822_v16 = vrot.slane %v1813_v34, 3  ;;  %v1751_v7 = vrot.slane %v1744_v5, 2 }
 0x129   : > { %v3958_v8 = vpop.permute.xlu1 %1297  ;;  %v3960_v13 = vpop.permute.xlu0 %1248  ;;  %v1720_v33 = vrot.slane %v1712_v46, 2  ;;  %v1793_v1 = vsel %vm1787_vm5, %v1791_v28, %v1792_v29  ;;  %v1843_v46 = vadd.f32 %v3873_v37, %v3880_v45  ;;  %v1889_v29 = vadd.f32 %v3887_v0, %v3928_v30 }
 0x12b   : > { %1650 = vrot.lane.b32.xlu1 %v1647_v42, %s3352_s28  ;;  %1586 = vrot.lane.b32.xlu0 %v1582_v52, %s3354_s12  ;;  %v1742_v52 = vadd.f32 %v3009_v18, %v3880_v45  ;;  %v1722_v48 = vsel %vm1579_vm4, %v1720_v33, %v1721_v44  ;;  %v1821_v18 = vrot.slane %v1811_v24, 3  ;;  %v1853_v24 = vrot.slane %v1843_v46, 3 }
 0x12c   : > { %v1842_v46 = vadd.f32 %v3873_v37, %v3918_v41 }
 0x12d   : > { %v3977_v36 = vpop.permute.xlu0 %1266  ;;  %v3979_v57 = vpop.permute.xlu1 %617  ;;  %v1750_v11 = vrot.slane %v1742_v52, 2  ;;  %v1823_v28 = vsel %vm1787_vm5, %v1821_v18, %v1822_v16  ;;  %v1788_v52 = vrot.slane %v1779_v31, 3  ;;  %v4051_v16 = vld [vmem:[#allocation3 + $0xc] sm:$0x77]  ;;  %v4062_v31 = vadd.f32 %v3908_v10, %v3928_v30 }
 0x12f   : > { %1696 = vrot.lane.b32.xlu1 %v1693_v22, %s3351_s27  ;;  %1618 = vrot.lane.b32.xlu0 %v1614_v55, %s3353_s10  ;;  %v1755_v22 = vsel %vm1579_vm4, %v1753_v14, %v1754_v6  ;;  %v1766_v55 = vunpack.c.l.bf16 %v1764_v20  ;;  %v578_v6 = vld [vmem:[%s3414_s8] sm:$0xf]  ;;  %v1752_v44 = vsel %vm1579_vm4, %v1750_v11, %v1751_v7 }
 0x130   : > { %v4044_v60 = vunpack.c.l.bf16 %v578_v6 }
 0x131   : > { %v3994_v53 = vpop.permute.xlu0 %1295  ;;  %v3996_v17 = vpop.permute.xlu1 %647  ;;  %v1781_v50 = vadd.f32 %v3858_v3, %v1766_v55  ;;  %v1812_v14 = vadd.f32 %v3889_v49, %v1766_v55 }
 0x133   : > { %1728 = vrot.lane.b32.xlu1 %v1725_v54, %s3350_s21  ;;  %1648 = vrot.lane.b32.xlu0 %v1644_v19, %s3352_s28  ;;  %v1810_v54 = vadd.f32 %v3889_v49, %v3918_v41  ;;  %v1768_v19 = vunpack.c.l.bf16 %v1765_v2  ;;  %v1854_v49 = vrot.slane %v1845_v38, 3  ;;  %v1789_v5 = vrot.slane %v1781_v50, 3 }
 0x134   : > { %v1844_v38 = vadd.f32 %v3873_v37, %v1766_v55  ;;  %v697_v50 = vsel %vm608_vm0, %v695_v62, %v696_v51  ;;  %v1979_v55 = vunpack.c.l.bf16 %v4051_v16 }
 0x135   : > { %v4006_v27 = vpop.permute.xlu1 %678  ;;  %v4008_v42 = vpop.permute.xlu0 %615  ;;  %v1891_v34 = vadd.f32 %v3887_v0, %v1768_v19  ;;  %v1921_v18 = vadd.f32 %v3910_v9, %v1768_v19  ;;  %v1953_v41 = vadd.f32 %v3908_v10, %v1768_v19  ;;  %v1961_v19 = vrot.slane %v4062_v31, 3 }
 0x137   : > { %1758 = vrot.lane.b32.xlu1 %v1755_v22, %s3349_s20  ;;  %1694 = vrot.lane.b32.xlu0 %v1690_v43, %s3351_s27  ;;  %v1818_v22 = vrot.slane %v1810_v54, 3  ;;  %v1819_v43 = vrot.slane %v1812_v14, 3  ;;  %v1900_v7 = vrot.slane %v1891_v34, 3  ;;  %v1855_v54 = vsel %vm1787_vm5, %v1853_v24, %v1854_v49 }
 0x138   : > { %v1790_v14 = vsel %vm1787_vm5, %v1788_v52, %v1789_v5  ;;  %v1930_v62 = vrot.slane %v1921_v18, 3  ;;  %v1850_v52 = vrot.slane %v1842_v46, 3  ;;  %v1851_v5 = vrot.slane %v1844_v38, 3 }
 0x139   : > { %v4022_v23 = vpop.permute.xlu1 %727  ;;  %v646_v20 = vpop.permute.xlu0 %645  ;;  %v1820_v6 = vsel %vm1787_vm5, %v1818_v22, %v1819_v43  ;;  %v4079_v22 = vld [vmem:[#allocation3 + $0x14] sm:$0x7]  ;;  %v1888_v43 = vadd.f32 %v3887_v0, %v3880_v45 }
 0x13a   : > { %v650_v30 = vsel %vm649_vm7, %v646_v20, %v3996_v17  ;;  %v620_v17 = vsel %vm619_vm6, %v4008_v42, %v3979_v57  ;;  %v1991_v57 = vrot.slane %v1979_v55, 5 }
 0x13b   : > { %1796 = vrot.lane.b32.xlu1 %v1793_v1, %s3354_s12  ;;  %1726 = vrot.lane.b32.xlu0 %v1722_v48, %s3350_s21  ;;  %v1972_v1 = vld [vmem:[#allocation3] sm:$0xcc]  ;;  %v1899_v48 = vrot.slane %v1889_v29, 3  ;;  %v1980_v29 = vunpack.c.h.bf16 %v4051_v16 }
 0x13c   : > { %v1976_v37 = vunpack.c.l.bf16 %v1972_v1  ;;  %v1977_v51 = vunpack.c.h.bf16 %v1972_v1  ;;  %v4091_v1 = vmul.f32 %v650_v30, %v4044_v60 }
 0x13d   : > { %v4040_v33 = vpop.permute.xlu1 %756  ;;  %v681_v3 = vpop.permute.xlu0 %680  ;;  %v1901_v34 = vsel %vm1787_vm5, %v1899_v48, %v1900_v7  ;;  %v1962_v48 = vrot.slane %v1953_v41, 3  ;;  %v1981_v7 = vunpack.c.l.bf16 %v4079_v22  ;;  %v1852_v41 = vsel %vm1787_vm5, %v1850_v52, %v1851_v5  ;;  %v4127_v52 = vld [vmem:[#allocation3] sm:$0x88] }
 0x13e   : > { %v683_v20 = vsel %vm682_vm8, %v4006_v27, %v681_v3  ;;  %v1990_v18 = vrot.slane %v1976_v37, 5  ;;  %v1993_v42 = vrot.slane %v1977_v51, 5  ;;  %v1994_v27 = vrot.slane %v1980_v29, 5 }
 0x13f   : > { %1826 = vrot.lane.b32.xlu1 %v1823_v28, %s3353_s10  ;;  %1756 = vrot.lane.b32.xlu0 %v1752_v44, %s3349_s20  ;;  %v1929_v28 = vrot.slane %v1919_v61, 3  ;;  %v1973_v44 = vld [vmem:[#allocation3 + $0x8] sm:$0xc]  ;;  %v1890_v61 = vadd.f32 %v3887_v0, %v3972_v56  ;;  %v4101_v0 = vmul.f32 %v620_v17, %v4044_v60  ;;  %v4104_v46 = vmul.f32 %v683_v20, %v4044_v60 }
 0x140   : > { %v1978_v3 = vunpack.c.l.bf16 %v1973_v44  ;;  %v1896_v37 = vrot.slane %v1888_v43, 3  ;;  %v4117_v44 = vmul.f32 %v697_v50, %v4044_v60  ;;  %v1963_v20 = vsel %vm1787_vm5, %v1961_v19, %v1962_v48 }
 0x141   : > { %v4053_v2 = vpop.permute.xlu1 %791  ;;  %v4055_v11 = vpop.permute.xlu0 %725  ;;  %v1897_v30 = vrot.slane %v1890_v61, 3  ;;  %v653_v51 = vmax.f32 %v4101_v0, %v4091_v1  ;;  %v2078_v48 = vunpack.c.l.bf16 %v4127_v52 }
 0x143   : > { %1858 = vrot.lane.b32.xlu1 %v1855_v54, %s3352_s28  ;;  %1794 = vrot.lane.b32.xlu0 %v1790_v14, %s3354_s12  ;;  %v1918_v54 = vadd.f32 %v3910_v9, %v3880_v45  ;;  %v1920_v14 = vadd.f32 %v3910_v9, %v3972_v56  ;;  %v1992_v9 = vsel %vm608_vm0, %v1990_v18, %v1991_v57 }
 0x144   : > { %v686_v5 = vmax.f32 %v653_v51, %v4104_v46  ;;  %v730_v18 = vsel %vm729_vm9, %v4055_v11, %v4022_v23  ;;  %v1898_v57 = vsel %vm1787_vm5, %v1896_v37, %v1897_v30  ;;  %v902_v37 = vadd.f32 %v3481_v39, %v3683_v58  ;;  %v4156_v30 = vld [vmem:[#allocation3 + $0x8] sm:$0x8] }
 0x145   : > { %v4075_v24 = vpop.permute.xlu1 %828  ;;  %v759_v49 = vpop.permute.xlu0 %758  ;;  %v1926_v43 = vrot.slane %v1918_v54, 3  ;;  %v1927_v61 = vrot.slane %v1920_v14, 3 }
 0x146   : > { %v761_v23 = vsel %vm760_vm10, %v4040_v33, %v759_v49  ;;  %v700_v54 = vmax.f32 %v686_v5, %v4117_v44 }
 0x147   : > { %1904 = vrot.lane.b32.xlu1 %v1901_v34, %s3351_s27  ;;  %1824 = vrot.lane.b32.xlu0 %v1820_v6, %s3353_s10  ;;  %v1931_v6 = vsel %vm1787_vm5, %v1929_v28, %v1930_v62  ;;  %v4123_v28 = vsel %vm608_vm0, %v1993_v42, %v1994_v27  ;;  %v2041_v62 = vrot.slane %v1978_v3, 5  ;;  %v2042_v34 = vrot.slane %v1981_v7, 5 }
 0x148   : > { %5066 = vst [vmem:[#allocation13_spill] sm:$0xff] %v4123_v28  ;;  %v1950_v42 = vadd.f32 %v3908_v10, %v3880_v45  ;;  %v1952_v27 = vadd.f32 %v3908_v10, %v3972_v56  ;;  %v4142_v19 = vpack.i.bf16 %v4123_v28, %v1992_v9  ;;  %v2079_v3 = vunpack.c.h.bf16 %v4127_v52 }
 0x149   : > { %v4106_v38 = vpop.permute.xlu1 %860  ;;  %v790_v31 = vpop.permute.xlu0 %789  ;;  %v2043_v11 = vsel %vm608_vm0, %v2041_v62, %v2042_v34  ;;  %v4151_v10 = vmul.f32 %v730_v18, %v4044_v60  ;;  %v903_v9 = vadd.f32 %v3481_v39, %v3633_v40  ;;  %v4163_v62 = vmul.f32 %v761_v23, %v4044_v60 }
 0x14a   : > { %v794_v33 = vsel %vm793_vm11, %v790_v31, %v4053_v2  ;;  %v1958_v49 = vrot.slane %v1950_v42, 3  ;;  %v1959_v51 = vrot.slane %v1952_v27, 3  ;;  %v2091_v34 = vrot.slane %v1980_v29, 6 }
 0x14b   : > { %1934 = vrot.lane.b32.xlu1 %v1931_v6, %s3350_s21  ;;  %1856 = vrot.lane.b32.xlu0 %v1852_v41, %s3352_s28  ;;  %v1928_v41 = vsel %vm1787_vm5, %v1926_v43, %v1927_v61  ;;  %v3025_v5 = vpack.i.bf16 %v2043_v11, %v4123_v28  ;;  %v2087_v2 = vrot.slane %v2078_v48, 6  ;;  %v2088_v39 = vrot.slane %v1979_v55, 6 }
 0x14c   : > { %v2090_v40 = vrot.slane %v2079_v3, 6  ;;  %v733_v29 = vmax.f32 %v700_v54, %v4151_v10  ;;  %v4180_v43 = vmul.f32 %v794_v33, %v4044_v60  ;;  %v1960_v27 = vsel %vm1787_vm5, %v1958_v49, %v1959_v51  ;;  %v2172_v33 = vld [vmem:[#allocation3 + $0xc] sm:$0xff] }
 0x14d   : > { %v891_v50 = vpop.permute.xlu1 %890  ;;  %v827_v17 = vpop.permute.xlu0 %826  ;;  %v2089_v11 = vsel %vm819_vm1, %v2087_v2, %v2088_v39 }
 0x14e   : > { %v830_v31 = vsel %vm619_vm6, %v827_v17, %v4075_v24  ;;  %v907_v24 = vrot.slane %v903_v9, 6  ;;  %v764_v16 = vmax.f32 %v733_v29, %v4163_v62  ;;  %v2138_v17 = vrot.slane %v1981_v7, 6 }
 0x14f   : > { %1966 = vrot.lane.b32.xlu1 %v1963_v20, %s3349_s20  ;;  %1902 = vrot.lane.b32.xlu0 %v1898_v57, %s3351_s27  ;;  %v2080_v20 = vunpack.c.l.bf16 %v4156_v30  ;;  %v906_v57 = vrot.slane %v902_v37, 6  ;;  %v4187_v55 = vmul.f32 %v830_v31, %v4044_v60  ;;  %v4212_v9 = vunpack.c.l.bf16 %v2172_v33 }
 0x151   : > { %v937_v14 = vpop.permute.xlu1 %936  ;;  %v859_v6 = vpop.permute.xlu0 %858  ;;  %v2137_v54 = vrot.slane %v2080_v20, 6  ;;  %v908_v49 = vsel %vm819_vm1, %v906_v57, %v907_v24  ;;  %v2186_v57 = vrot.slane %v2079_v3, 7  ;;  %v2233_v52 = vrot.slane %v2080_v20, 7 }
 0x152   : > { %v862_v42 = vsel %vm649_vm7, %v859_v6, %v4106_v38  ;;  %v4196_v38 = vsel %vm819_vm1, %v2090_v40, %v2091_v34  ;;  %v797_v6 = vmax.f32 %v764_v16, %v4180_v43  ;;  %v4214_v34 = vunpack.c.h.bf16 %v2172_v33  ;;  %v4217_v40 = vld [vmem:[#allocation3 + $0x14] sm:$0xf] }
 0x153   : > { %3016 = vrot.lane.b32.xlu1 %v4142_v19, %s3353_s10  ;;  %1932 = vrot.lane.b32.xlu0 %v1928_v41, %s3350_s21  ;;  %5067 = vst [vmem:[#allocation14_spill] sm:$0xff] %v4196_v38  ;;  %v4200_v41 = vmul.f32 %v862_v42, %v4044_v60  ;;  %v2139_v51 = vsel %vm819_vm1, %v2137_v54, %v2138_v17  ;;  %v2184_v16 = vrot.slane %v4212_v9, 7 }
 0x154   : > { %v833_v22 = vmax.f32 %v797_v6, %v4187_v55  ;;  %5068 = vst [vmem:[#allocation15_spill] sm:$0xff] %v4214_v34  ;;  %v4220_v29 = vmul.f32 %v908_v49, %v4044_v60  ;;  %v3055_v42 = vpack.i.bf16 %v2139_v51, %v4196_v38  ;;  %v2187_v17 = vrot.slane %v4214_v34, 7 }
 0x155   : > { %v969_v61 = vpop.permute.xlu1 %968  ;;  %v889_v18 = vpop.permute.xlu0 %888  ;;  %v1109_v20 = vadd.f32 %v3503_v59, %v3614_v21 }
 0x156   : > { %v892_v23 = vsel %vm682_vm8, %v889_v18, %v891_v50  ;;  %v3045_v50 = vpack.i.bf16 %v4196_v38, %v2089_v11  ;;  %v865_v2 = vmax.f32 %v833_v22, %v4200_v41 }
 0x157   : > { %3026 = vrot.lane.b32.xlu1 %v3025_v5, %s3351_s27  ;;  %1964 = vrot.lane.b32.xlu0 %v1960_v27, %s3349_s20  ;;  %v4205_v7 = vmul.f32 %v892_v23, %v4044_v60  ;;  %v2183_v27 = vrot.slane %v2078_v48, 7  ;;  %v2176_v23 = vunpack.c.l.bf16 %v4217_v40 }
 0x159   : > { %v999_v37 = vpop.permute.xlu1 %998  ;;  %v935_v30 = vpop.permute.xlu0 %934  ;;  %v895_v18 = vmax.f32 %v865_v2, %v4205_v7 }
 0x15a   : > { %v938_v24 = vsel %vm729_vm9, %v935_v30, %v937_v14  ;;  %v2185_v14 = vsel %vm1027_vm2, %v2183_v27, %v2184_v16  ;;  %v4243_v30 = vsel %vm1027_vm2, %v2186_v57, %v2187_v17  ;;  %v1113_v16 = vrot.slane %v1109_v20, 7 }
 0x15b   : > { %3036 = vrot.lane.b32.xlu1 %v3025_v5, %s3349_s20  ;;  %3011 = vrot.lane.b32.xlu0 %v4142_v19, %s3354_s12  ;;  %v911_v6 = vmax.f32 %v895_v18, %v4220_v29  ;;  %5069 = vst [vmem:[#allocation16_spill] sm:$0xff] %v4243_v30 }
 0x15d   : > { %v1035_v31 = vpop.permute.xlu1 %1034  ;;  %v967_v39 = vpop.permute.xlu0 %966 }
 0x15e   : > { %v970_v54 = vsel %vm760_vm10, %v967_v39, %v969_v61  ;;  %v2234_v61 = vrot.slane %v2176_v23, 7  ;;  %v3075_v39 = vpack.i.bf16 %v4243_v30, %v2185_v14 }
 0x15f   : > { %3046 = vrot.lane.b32.xlu1 %v3045_v50, %s3353_s10  ;;  %3021 = vrot.lane.b32.xlu0 %v4142_v19, %s3352_s28  ;;  %v4236_v19 = vmul.f32 %v938_v24, %v4044_v60  ;;  %v4248_v33 = vmul.f32 %v970_v54, %v4044_v60 }
 0x160   : > { %v2235_v18 = vsel %vm1027_vm2, %v2233_v52, %v2234_v61 }
 0x161   : > { %v1067_v11 = vpop.permute.xlu1 %1066  ;;  %v997_v3 = vpop.permute.xlu0 %996  ;;  %v3085_v54 = vpack.i.bf16 %v2235_v18, %v4243_v30  ;;  %v3105_v18 = vpack.i.bf16 %v4214_v34, %v4212_v9 }
 0x162   : > { %v1000_v48 = vsel %vm793_vm11, %v997_v3, %v999_v37  ;;  %v941_v37 = vmax.f32 %v911_v6, %v4236_v19 }
 0x163   : > { %3056 = vrot.lane.b32.xlu1 %v3055_v42, %s3351_s27  ;;  %3031 = vrot.lane.b32.xlu0 %v3025_v5, %s3350_s21  ;;  %v1108_v5 = vadd.f32 %v3503_v59, %v3683_v58  ;;  %v4257_v2 = vmul.f32 %v1000_v48, %v4044_v60 }
 0x165   : > { %v1097_v49 = vpop.permute.xlu1 %1096  ;;  %v1037_v22 = vpop.permute.xlu0 %1036  ;;  %v1112_v24 = vrot.slane %v1108_v5, 7 }
 0x166   : > { %v1038_v51 = vsel %vm619_vm6, %v1035_v31, %v1037_v22  ;;  %v973_v31 = vmax.f32 %v941_v37, %v4248_v33  ;;  %v4288_v37 = vld [vmem:[#allocation3 + $0x18] sm:$0x11] }
 0x167   : > { %3066 = vrot.lane.b32.xlu1 %v3055_v42, %s3349_s20  ;;  %3041 = vrot.lane.b32.xlu0 %v3045_v50, %s3354_s12  ;;  %v4265_v58 = vmul.f32 %v1038_v51, %v4044_v60 }
 0x168   : > { %v1003_v17 = vmax.f32 %v973_v31, %v4257_v2  ;;  %v2354_v31 = vunpack.c.h.bf16 %v4288_v37 }
 0x169   : > { %v1145_v57 = vpop.permute.xlu1 %1144  ;;  %v1065_v59 = vpop.permute.xlu0 %1064 }
 0x16a   : > { %v1068_v27 = vsel %vm649_vm7, %v1065_v59, %v1067_v11  ;;  %v1041_v6 = vmax.f32 %v1003_v17, %v4265_v58  ;;  %v1114_v11 = vsel %vm1027_vm2, %v1112_v24, %v1113_v16  ;;  %v2347_v59 = vld [vmem:[#allocation3 + $0x14] sm:$0xf]  ;;  %v4303_v17 = vld [vmem:[#allocation3 + $0x20] sm:$0x1] }
 0x16b   : > { %v4270_v3 = vmul.f32 %v1068_v27, %v4044_v60  ;;  %3076 = vrot.lane.b32.xlu1 %v3075_v39, %s3353_s10  ;;  %3051 = vrot.lane.b32.xlu0 %v3045_v50, %s3352_s28  ;;  %v4286_v20 = vmul.f32 %v1114_v11, %v4044_v60  ;;  %v2364_v11 = vrot.slane %v4212_v9, 1 }
 0x16d   : > { %v1173_v52 = vpop.permute.xlu1 %1172  ;;  %v1099_v48 = vpop.permute.xlu0 %1098  ;;  %v1071_v61 = vmax.f32 %v1041_v6, %v4270_v3 }
 0x16e   : > { %v1100_v14 = vsel %vm682_vm8, %v1097_v49, %v1099_v48 }
 0x16f   : > { %v4280_v22 = vmul.f32 %v1100_v14, %v4044_v60  ;;  %3086 = vrot.lane.b32.xlu1 %v3085_v54, %s3351_s27  ;;  %3061 = vrot.lane.b32.xlu0 %v3055_v42, %s3350_s21  ;;  %v2353_v42 = vunpack.c.l.bf16 %v4288_v37  ;;  %v3115_v14 = vpack.i.bf16 %v2176_v23, %v4214_v34  ;;  %v2368_v37 = vrot.slane %v2354_v31, 1 }
 0x171   : > { %v1103_v50 = vmax.f32 %v1071_v61, %v4280_v22  ;;  %v1207_v51 = vpop.permute.xlu1 %1206  ;;  %v1143_v5 = vpop.permute.xlu0 %1142  ;;  %v2352_v61 = vunpack.c.l.bf16 %v2347_v59 }
 0x172   : > { %v1146_v49 = vsel %vm729_vm9, %v1143_v5, %v1145_v57  ;;  %v2367_v5 = vrot.slane %v4214_v34, 1 }
 0x173   : > { %3096 = vrot.lane.b32.xlu1 %v3085_v54, %s3349_s20  ;;  %3071 = vrot.lane.b32.xlu0 %v3075_v39, %s3354_s12  ;;  %v1117_v27 = vmax.f32 %v1103_v50, %v4286_v20  ;;  %v4299_v24 = vmul.f32 %v1146_v49, %v4044_v60  ;;  %v2365_v50 = vrot.slane %v2353_v42, 1  ;;  %v2415_v59 = vrot.slane %v2352_v61, 1 }
 0x175   : > { %v4301_v16 = vpop.permute.xlu1 %1319  ;;  %v1175_v57 = vpop.permute.xlu0 %1174  ;;  %v1149_v49 = vmax.f32 %v1117_v27, %v4299_v24  ;;  %v1250_v27 = vsel %vm649_vm7, %v3949_v35, %v3960_v13  ;;  %v1270_v35 = vsel %vm682_vm8, %v3977_v36, %v3947_v12 }
 0x176   : > { %v1176_v6 = vsel %vm760_vm10, %v1173_v52, %v1175_v57  ;;  %v2355_v52 = vunpack.c.l.bf16 %v4303_v17  ;;  %v2366_v17 = vsel %vm1373_vm3, %v2364_v11, %v2365_v50  ;;  %v4349_v13 = vmul.f32 %v1250_v27, %v4044_v60 }
 0x177   : > { %v4307_v48 = vmul.f32 %v1176_v6, %v4044_v60  ;;  %3106 = vrot.lane.b32.xlu1 %v3105_v18, %s3353_s10  ;;  %3081 = vrot.lane.b32.xlu0 %v3075_v39, %s3352_s28  ;;  %v1228_v39 = vsel %vm619_vm6, %v3932_v32, %v3930_v63  ;;  %v4335_v63 = vsel %vm1373_vm3, %v2367_v5, %v2368_v37 }
 0x178   : > { %5070 = vst [vmem:[#allocation17_spill] sm:$0xff] %v4335_v63  ;;  %v2416_v32 = vrot.slane %v2355_v52, 1 }
 0x179   : > { %v4318_v57 = vpop.permute.xlu1 %1339  ;;  %v1205_v6 = vpop.permute.xlu0 %1204  ;;  %v1179_v9 = vmax.f32 %v1149_v49, %v4307_v48  ;;  %v1280_v49 = vadd.f32 %v3517_v4, %v3614_v21  ;;  %v3135_v4 = vpack.i.bf16 %v4335_v63, %v2366_v17 }
 0x17a   : > { %v1208_v40 = vsel %vm793_vm11, %v1205_v6, %v1207_v51  ;;  %v4337_v51 = vld [vmem:[#allocation3 + $0xc] sm:$0xee]  ;;  %v4342_v6 = vmul.f32 %v1228_v39, %v4044_v60  ;;  %v2417_v5 = vsel %vm1373_vm3, %v2415_v59, %v2416_v32  ;;  %v4359_v39 = vmul.f32 %v1270_v35, %v4044_v60 }
 0x17b   : > { %v4326_v23 = vmul.f32 %v1208_v40, %v4044_v60  ;;  %3116 = vrot.lane.b32.xlu1 %v3115_v14, %s3351_s27  ;;  %3091 = vrot.lane.b32.xlu0 %v3085_v54, %s3350_s21  ;;  %v2452_v50 = vunpack.c.l.bf16 %v4337_v51  ;;  %v2453_v37 = vunpack.c.h.bf16 %v4337_v51  ;;  %v4363_v36 = vmul.f32 %v1280_v49, %v4044_v60 }
 0x17c   : > { %v3145_v59 = vpack.i.bf16 %v2417_v5, %v4335_v63  ;;  %v2462_v32 = vrot.slane %v2353_v42, 2  ;;  %v1299_v51 = vsel %vm729_vm9, %v3994_v53, %v3958_v8  ;;  %v2465_v35 = vrot.slane %v2354_v31, 2 }
 0x17d   : > { %v1211_v54 = vmax.f32 %v1179_v9, %v4326_v23  ;;  %v1383_v61 = vpop.permute.xlu1 %1382  ;;  %v1318_v40 = vpop.permute.xlu0 %1317  ;;  %5071 = vst [vmem:[#allocation18_spill] sm:$0xff] %v4363_v36  ;;  %v2461_v17 = vrot.slane %v2452_v50, 2  ;;  %v2464_v49 = vrot.slane %v2453_v37, 2  ;;  %v2512_v31 = vrot.slane %v2355_v52, 2 }
 0x17e   : > { %v1321_v42 = vsel %vm760_vm10, %v1318_v40, %v4301_v16 }
 0x17f   : > { %v1231_v11 = vmax.f32 %v1211_v54, %v4342_v6  ;;  %3126 = vrot.lane.b32.xlu1 %v3115_v14, %s3349_s20  ;;  %3101 = vrot.lane.b32.xlu0 %v3105_v18, %s3354_s12  ;;  %v2451_v54 = vld [vmem:[#allocation3 + $0x14] sm:$0xe]  ;;  %v4382_v8 = vsel %vm1579_vm4, %v2464_v49, %v2465_v35  ;;  %v4386_v63 = vmul.f32 %v1321_v42, %v4044_v60  ;;  %v2547_v49 = vld [vmem:[#allocation3 + $0x20] sm:$0x3]  ;;  %v2560_v42 = vrot.slane %v2453_v37, 3 }
 0x180   : > { %5073 = vst [vmem:[#allocation20_spill] sm:$0xff] %v4382_v8  ;;  %v1454_v37 = vadd.f32 %v3537_v25, %v3614_v21 }
 0x181   : > { %v1253_v12 = vmax.f32 %v1231_v11, %v4349_v13  ;;  %v1413_v9 = vpop.permute.xlu1 %1412  ;;  %v1338_v27 = vpop.permute.xlu0 %1337  ;;  %v2454_v11 = vunpack.c.l.bf16 %v2451_v54  ;;  %5074 = vst [vmem:[#allocation21_spill] sm:$0xff] %v4386_v63 }
 0x182   : > { %v1341_v16 = vsel %vm793_vm11, %v1338_v27, %v4318_v57  ;;  %v2557_v57 = vrot.slane %v2452_v50, 3 }
 0x183   : > { %v1273_v34 = vmax.f32 %v1253_v12, %v4359_v39  ;;  %3136 = vrot.lane.b32.xlu1 %v3135_v4, %s3353_s10  ;;  %3111 = vrot.lane.b32.xlu0 %v3105_v18, %s3352_s28  ;;  %v4374_v12 = vmul.f32 %v1299_v51, %v4044_v60  ;;  %v2463_v18 = vsel %vm1579_vm4, %v2461_v17, %v2462_v32  ;;  %v2511_v53 = vrot.slane %v2454_v11, 2  ;;  %v2546_v51 = vld [vmem:[#allocation3 + $0x18] sm:$0x33] }
 0x184   : > { %v2548_v52 = vunpack.c.l.bf16 %v2546_v51  ;;  %v2549_v17 = vunpack.c.h.bf16 %v2546_v51  ;;  %v2550_v51 = vunpack.c.l.bf16 %v2547_v49 }
 0x185   : > { %v1282_v30 = vmax.f32 %v1273_v34, %v4363_v36  ;;  %v1445_v38 = vpop.permute.xlu1 %1444  ;;  %v1381_v28 = vpop.permute.xlu0 %1380  ;;  %5072 = vst [vmem:[#allocation19_spill] sm:$0xff] %v4374_v12  ;;  %v2513_v40 = vsel %vm1579_vm4, %v2511_v53, %v2512_v31 }
 0x186   : > { %v1384_v27 = vsel %vm619_vm6, %v1381_v28, %v1383_v61  ;;  %v2558_v53 = vrot.slane %v2548_v52, 3  ;;  %v2561_v31 = vrot.slane %v2549_v17, 3  ;;  %v2607_v28 = vrot.slane %v2454_v11, 3 }
 0x187   : > { %3146 = vrot.lane.b32.xlu1 %v3145_v59, %s3351_s27  ;;  %3121 = vrot.lane.b32.xlu0 %v3115_v14, %s3350_s21  ;;  %v1302_v34 = vmax.f32 %v1282_v30, %v4374_v12  ;;  %v3165_v14 = vpack.i.bf16 %v4382_v8, %v2463_v18  ;;  %v4396_v12 = vmul.f32 %v1341_v16, %v4044_v60  ;;  %v2608_v52 = vrot.slane %v2550_v51, 3 }
 0x188   : > { %v3175_v18 = vpack.i.bf16 %v2513_v40, %v4382_v8  ;;  %v1455_v16 = vadd.f32 %v3537_v25, %v3812_v15  ;;  %v2559_v50 = vsel %vm1787_vm5, %v2557_v57, %v2558_v53  ;;  %v4415_v40 = vsel %vm1787_vm5, %v2560_v42, %v2561_v31 }
 0x189   : > { %v1491_v5 = vpop.permute.xlu1 %1490  ;;  %v1411_v54 = vpop.permute.xlu0 %1410  ;;  %v1324_v30 = vmax.f32 %v1302_v34, %v4386_v63  ;;  %5075 = vst [vmem:[#allocation22_spill] sm:$0xff] %v4415_v40 }
 0x18a   : > { %v1414_v61 = vsel %vm649_vm7, %v1411_v54, %v1413_v9  ;;  %v1459_v49 = vrot.slane %v1455_v16, 1  ;;  %v3195_v9 = vpack.i.bf16 %v4415_v40, %v2559_v50 }
 0x18b   : > { %3156 = vrot.lane.b32.xlu1 %v3145_v59, %s3349_s20  ;;  %3131 = vrot.lane.b32.xlu0 %v3135_v4, %s3354_s12  ;;  %v1344_v34 = vmax.f32 %v1324_v30, %v4396_v12  ;;  %v1458_v30 = vrot.slane %v1454_v37, 1 }
 0x18d   : > { %v1521_v32 = vpop.permute.xlu1 %1520  ;;  %v1443_v35 = vpop.permute.xlu0 %1442 }
 0x18e   : > { %v1446_v15 = vsel %vm682_vm8, %v1443_v35, %v1445_v38  ;;  %v1460_v35 = vsel %vm1373_vm3, %v1458_v30, %v1459_v49 }
 0x18f   : > { %3166 = vrot.lane.b32.xlu1 %v3165_v14, %s3353_s10  ;;  %3141 = vrot.lane.b32.xlu0 %v3135_v4, %s3352_s28  ;;  %v4408_v4 = vmul.f32 %v1384_v27, %v4044_v60  ;;  %v4420_v27 = vmul.f32 %v1414_v61, %v4044_v60  ;;  %v4428_v54 = vmul.f32 %v1446_v15, %v4044_v60 }
 0x190   : > { %v4436_v31 = vmul.f32 %v1460_v35, %v4044_v60 }
 0x191   : > { %v1553_v63 = vpop.permute.xlu1 %1552  ;;  %v1489_v36 = vpop.permute.xlu0 %1488  ;;  %v1387_v21 = vmax.f32 %v1344_v34, %v4408_v4 }
 0x192   : > { %v1492_v37 = vsel %vm729_vm9, %v1489_v36, %v1491_v5 }
 0x193   : > { %3176 = vrot.lane.b32.xlu1 %v3175_v18, %s3351_s27  ;;  %3151 = vrot.lane.b32.xlu0 %v3145_v59, %s3350_s21  ;;  %v2609_v59 = vsel %vm1787_vm5, %v2607_v28, %v2608_v52  ;;  %v1417_v11 = vmax.f32 %v1387_v21, %v4420_v27 }
 0x194   : > { %v3205_v57 = vpack.i.bf16 %v2609_v59, %v4415_v40 }
 0x195   : > { %v1589_v17 = vpop.permute.xlu1 %1588  ;;  %v1519_v25 = vpop.permute.xlu0 %1518  ;;  %v1449_v53 = vmax.f32 %v1417_v11, %v4428_v54 }
 0x196   : > { %v1522_v16 = vsel %vm760_vm10, %v1519_v25, %v1521_v32 }
 0x197   : > { %3186 = vrot.lane.b32.xlu1 %v3175_v18, %s3349_s20  ;;  %3161 = vrot.lane.b32.xlu0 %v3165_v14, %s3354_s12  ;;  %v1463_v28 = vmax.f32 %v1449_v53, %v4436_v31  ;;  %v4448_v21 = vmul.f32 %v1522_v16, %v4044_v60 }
 0x199   : > { %v1621_v42 = vpop.permute.xlu1 %1620  ;;  %v1551_v38 = vpop.permute.xlu0 %1550 }
 0x19a   : > { %v1554_v52 = vsel %vm793_vm11, %v1551_v38, %v1553_v63 }
 0x19b   : > { %3196 = vrot.lane.b32.xlu1 %v3195_v9, %s3353_s10  ;;  %3171 = vrot.lane.b32.xlu0 %v3165_v14, %s3352_s28  ;;  %v4444_v14 = vmul.f32 %v1492_v37, %v4044_v60  ;;  %v4455_v32 = vmul.f32 %v1554_v52, %v4044_v60  ;;  %v4477_v37 = vmul.f32 %v3966_v26, %v4044_v60 }
 0x19d   : > { %v1651_v51 = vpop.permute.xlu1 %1650  ;;  %v1587_v34 = vpop.permute.xlu0 %1586  ;;  %v1495_v5 = vmax.f32 %v1463_v28, %v4444_v14 }
 0x19e   : > { %v1590_v36 = vsel %vm619_vm6, %v1587_v34, %v1589_v17 }
 0x19f   : > { %3206 = vrot.lane.b32.xlu1 %v3205_v57, %s3351_s27  ;;  %3181 = vrot.lane.b32.xlu0 %v3175_v18, %s3350_s21  ;;  %v1525_v63 = vmax.f32 %v1495_v5, %v4448_v21  ;;  %v4460_v30 = vmul.f32 %v1590_v36, %v4044_v60  ;;  %v1868_v5 = vadd.f32 %v3563_v47, %v3880_v45 }
 0x1a1   : > { %v1697_v61 = vpop.permute.xlu1 %1696  ;;  %v1619_v50 = vpop.permute.xlu0 %1618  ;;  %v1557_v17 = vmax.f32 %v1525_v63, %v4455_v32 }
 0x1a2   : > { %v1622_v15 = vsel %vm649_vm7, %v1619_v50, %v1621_v42 }
 0x1a3   : > { %3216 = vrot.lane.b32.xlu1 %v3205_v57, %s3349_s20  ;;  %3191 = vrot.lane.b32.xlu0 %v3195_v9, %s3354_s12  ;;  %v4466_v59 = vmul.f32 %v1622_v15, %v4044_v60  ;;  %v1593_v35 = vmax.f32 %v1557_v17, %v4460_v30 }
 0x1a5   : > { %v1729_v18 = vpop.permute.xlu1 %1728  ;;  %v1649_v25 = vpop.permute.xlu0 %1648  ;;  %v1625_v53 = vmax.f32 %v1593_v35, %v4466_v59 }
 0x1a6   : > { %v1652_v49 = vsel %vm682_vm8, %v1649_v25, %v1651_v51  ;;  %v1869_v25 = vadd.f32 %v3563_v47, %v3972_v56 }
 0x1a7   : > { %3201 = vrot.lane.b32.xlu0 %v3195_v9, %s3352_s28  ;;  %v4470_v42 = vmul.f32 %v1652_v49, %v4044_v60 }
 0x1a8   : > { %v1873_v35 = vrot.slane %v1869_v25, 3 }
 0x1a9   : > { %v1759_v11 = vpop.permute.xlu1 %1758  ;;  %v1695_v38 = vpop.permute.xlu0 %1694  ;;  %v1655_v51 = vmax.f32 %v1625_v53, %v4470_v42 }
 0x1aa   : > { %v1698_v16 = vsel %vm729_vm9, %v1695_v38, %v1697_v61  ;;  %v1872_v38 = vrot.slane %v1868_v5, 3 }
 0x1ab   : > { %3211 = vrot.lane.b32.xlu0 %v3205_v57, %s3350_s21  ;;  %v1671_v36 = vmax.f32 %v1655_v51, %v4477_v37  ;;  %v4483_v57 = vmul.f32 %v1698_v16, %v4044_v60 }
 0x1ad   : > { %v1797_v34 = vpop.permute.xlu1 %1796  ;;  %v1727_v9 = vpop.permute.xlu0 %1726 }
 0x1ae   : > { %v1730_v52 = vsel %vm760_vm10, %v1727_v9, %v1729_v18  ;;  %v1701_v18 = vmax.f32 %v1671_v36, %v4483_v57  ;;  %v1874_v9 = vsel %vm1787_vm5, %v1872_v38, %v1873_v35 }
 0x1af   : > { %v4491_v15 = vmul.f32 %v1730_v52, %v4044_v60 }
 0x1b1   : > { %v1827_v28 = vpop.permute.xlu1 %1826  ;;  %v1757_v50 = vpop.permute.xlu0 %1756  ;;  %v1733_v45 = vmax.f32 %v1701_v18, %v4491_v15 }
 0x1b2   : > { %v1760_v26 = vsel %vm793_vm11, %v1757_v50, %v1759_v11 }
 0x1b3   : > { %v4496_v49 = vmul.f32 %v1760_v26, %v4044_v60 }
 0x1b5   : > { %v1795_v61 = vpop.permute.xlu0 %1794  ;;  %v1859_v17 = vpop.permute.xlu1 %1858  ;;  %v1763_v53 = vmax.f32 %v1733_v45, %v4496_v49 }
 0x1b6   : > { %v1798_v63 = vsel %vm619_vm6, %v1795_v61, %v1797_v34 }
 0x1b7   : > { %v4500_v47 = vmul.f32 %v1798_v63, %v4044_v60 }
 0x1b9   : > { %v1825_v56 = vpop.permute.xlu0 %1824  ;;  %v1801_v51 = vmax.f32 %v1763_v53, %v4500_v47  ;;  %v1905_v16 = vpop.permute.xlu1 %1904 }
 0x1ba   : > { %v1828_v11 = vsel %vm649_vm7, %v1825_v56, %v1827_v28  ;;  %v4515_v28 = vmul.f32 %v1874_v9, %v4044_v60 }
 0x1bb   : > { %v4505_v34 = vmul.f32 %v1828_v11, %v4044_v60 }
 0x1bc   : > { %5078 = vst [vmem:[#allocation25_spill] sm:$0xff] %v4515_v28 }
 0x1bd   : > { %5076 = vst [vmem:[#allocation23_spill] sm:$0xff] %v4505_v34  ;;  %v1857_v50 = vpop.permute.xlu0 %1856  ;;  %v1831_v36 = vmax.f32 %v1801_v51, %v4505_v34  ;;  %v1935_v63 = vpop.permute.xlu1 %1934 }
 0x1be   : > { %v1860_v52 = vsel %vm682_vm8, %v1857_v50, %v1859_v17 }
 0x1bf   : > { %v4512_v5 = vmul.f32 %v1860_v52, %v4044_v60 }
 0x1c1   : > { %5077 = vst [vmem:[#allocation24_spill] sm:$0xff] %v4512_v5  ;;  %v1863_v25 = vmax.f32 %v1831_v36, %v4512_v5  ;;  %v1903_v26 = vpop.permute.xlu0 %1902  ;;  %v1967_v56 = vpop.permute.xlu1 %1966 }
 0x1c2   : > { %v1906_v61 = vsel %vm729_vm9, %v1903_v26, %v1905_v16 }
 0x1c3   : > { %v1877_v18 = vmax.f32 %v1863_v25, %v4515_v28  ;;  %v4521_v38 = vmul.f32 %v1906_v61, %v4044_v60 }
 0x1c5   : > { %5079 = vst [vmem:[#allocation26_spill] sm:$0xff] %v4521_v38  ;;  %v1933_v17 = vpop.permute.xlu0 %1932  ;;  %v1909_v11 = vmax.f32 %v1877_v18, %v4521_v38 }
 0x1c6   : > { %v1936_v35 = vsel %vm760_vm10, %v1933_v17, %v1935_v63  ;;  %v3017_v63 = vpop.permute.xlu1 %3016 }
 0x1c7   : > { %v4525_v45 = vmul.f32 %v1936_v35, %v4044_v60 }
 0x1c9   : > { %5080 = vst [vmem:[#allocation27_spill] sm:$0xff] %v4525_v45  ;;  %v1965_v53 = vpop.permute.xlu0 %1964  ;;  %v1939_v51 = vmax.f32 %v1909_v11, %v4525_v45 }
 0x1ca   : > { %v1968_v9 = vsel %vm793_vm11, %v1965_v53, %v1967_v56  ;;  %v4554_v11 = vpop.permute.xlu1 %3026 }
 0x1cb   : > { %v4531_v16 = vmul.f32 %v1968_v9, %v4044_v60 }
 0x1cd   : > { %5081 = vst [vmem:[#allocation28_spill] sm:$0xff] %v4531_v16  ;;  %v4534_v50 = vmax.f32 %v1939_v51, %v4531_v16  ;;  %v4542_v26 = vpop.permute.xlu0 %3011  ;;  %v5084_v16 = vld [vmem:[#allocation21_spill] sm:$0xff] }
 0x1cf   : > { %v1982_v52 = vsub.f32 %v4101_v0, %v4534_v50  ;;  %v2004_v36 = vsub.f32 %v4091_v1, %v4534_v50  ;;  %v2016_v25 = vsub.f32 %v4104_v46, %v4534_v50  ;;  %v2028_v61 = vsub.f32 %v4117_v44, %v4534_v50 }
 0x1d0   : > { %v2035_v35 = vsub.f32 %v4151_v10, %v4534_v50  ;;  %v2052_v1 = vsub.f32 %v4163_v62, %v4534_v50  ;;  %v2064_v44 = vsub.f32 %v4180_v43, %v4534_v50  ;;  %v2081_v10 = vsub.f32 %v4187_v55, %v4534_v50 }
 0x1d1   : > { %v1983_v60 = vmul.f32 1.442695, %v1982_v52  ;;  %v2005_v18 = vmul.f32 1.442695, %v2004_v36  ;;  %v2017_v17 = vmul.f32 1.442695, %v2016_v25  ;;  %v4550_v56 = vpop.permute.xlu0 %3021  ;;  %v2101_v51 = vsub.f32 %v4200_v41, %v4534_v50  ;;  %v4566_v25 = vpop.permute.xlu1 %3036 }
 0x1d2   : > { %v2029_v0 = vmul.f32 1.442695, %v2028_v61  ;;  %v2036_v46 = vmul.f32 1.442695, %v2035_v35  ;;  %v2053_v53 = vmul.f32 1.442695, %v2052_v1  ;;  %v2113_v36 = vsub.f32 %v4205_v7, %v4534_v50 }
 0x1d3   : > { %3220 = vpow2.f32 %v1983_v60  ;;  %v2065_v9 = vmul.f32 1.442695, %v2064_v44  ;;  %v2082_v52 = vmul.f32 1.442695, %v2081_v10  ;;  %v2102_v55 = vmul.f32 1.442695, %v2101_v51 }
 0x1d4   : > { %3222 = vpow2.f32 %v2005_v18  ;;  %v2125_v60 = vsub.f32 %v4220_v29, %v4534_v50  ;;  %v2132_v7 = vsub.f32 %v4236_v19, %v4534_v50  ;;  %v2148_v29 = vsub.f32 %v4248_v33, %v4534_v50 }
 0x1d5   : > { %3224 = vpow2.f32 %v2017_v17  ;;  %v4560_v62 = vpop.permute.xlu0 %3031  ;;  %v2114_v17 = vmul.f32 1.442695, %v2113_v36  ;;  %v3019_v44 = vunpack.i.h.bf16 %v3017_v63 }
 0x1d6   : > { %3226 = vpow2.f32 %v2029_v0  ;;  %v2133_v19 = vmul.f32 1.442695, %v2132_v7  ;;  %v2149_v33 = vmul.f32 1.442695, %v2148_v29 }
 0x1d7   : > { %3228 = vpow2.f32 %v2036_v46  ;;  %v2126_v46 = vmul.f32 1.442695, %v2125_v60 }
 0x1d8   : > { %3230 = vpow2.f32 %v2053_v53  ;;  %v3018_v53 = vunpack.i.l.bf16 %v3017_v63 }
 0x1d9   : > { %3232 = vpow2.f32 %v2065_v9  ;;  %v4579_v0 = vpop.permute.xlu0 %3041  ;;  %v4586_v9 = vpop.permute.xlu1 %3046 }
 0x1da   : > { %3234 = vpow2.f32 %v2082_v52  ;;  %v2160_v52 = vsub.f32 %v4257_v2, %v4534_v50  ;;  %v2197_v2 = vsub.f32 %v4270_v3, %v4534_v50  ;;  %v3013_v3 = vunpack.i.l.bf16 %v4542_v26 }
 0x1db   : > { %3236 = vpow2.f32 %v2102_v55  ;;  %v2177_v55 = vsub.f32 %v4265_v58, %v4534_v50  ;;  %v3028_v58 = vunpack.i.l.bf16 %v4554_v11 }
 0x1dc   : > { %3238 = vpow2.f32 %v2114_v17  ;;  %v3029_v17 = vunpack.i.h.bf16 %v4554_v11  ;;  %v2209_v11 = vsub.f32 %v4280_v22, %v4534_v50  ;;  %v2228_v22 = vsub.f32 %v4299_v24, %v4534_v50 }
 0x1dd   : > { %v4564_v43 = vpop.eup %3220  ;;  %3240 = vpow2.f32 %v2126_v46  ;;  %v2161_v46 = vmul.f32 1.442695, %v2160_v52  ;;  %v4616_v63 = vpop.permute.xlu1 %3056 }
 0x1de   : > { %v4568_v61 = vpop.eup %3222  ;;  %3242 = vpow2.f32 %v2133_v19  ;;  %v2210_v24 = vmul.f32 1.442695, %v2209_v11 }
 0x1df   : > { %v2007_v41 = vadd.f32 %v4568_v61, %v4564_v43  ;;  %v4574_v18 = vpop.eup %3224  ;;  %3244 = vpow2.f32 %v2149_v33  ;;  %v2221_v33 = vsub.f32 %v4286_v20, %v4534_v50 }
 0x1e0   : > { %v4581_v1 = vpop.eup %3226  ;;  %3246 = vpow2.f32 %v2161_v46  ;;  %v3039_v46 = vunpack.i.h.bf16 %v4566_v25 }
 0x1e1   : > { %v2019_v35 = vadd.f32 %v4574_v18, %v2007_v41  ;;  %v4588_v51 = vpop.eup %3228  ;;  %v2012_v41 = vsel %vm649_vm7, %v3018_v53, %v3019_v44  ;;  %v2178_v53 = vmul.f32 1.442695, %v2177_v55  ;;  %v4657_v28 = vpop.permute.xlu1 %3066 }
 0x1e2   : > { %v4595_v60 = vpop.eup %3230 }
 0x1e3   : > { %v2031_v10 = vadd.f32 %v4581_v1, %v2019_v35  ;;  %v4604_v35 = vpop.permute.xlu0 %3051  ;;  %3248 = vpow2.f32 %v2178_v53  ;;  %v2222_v53 = vmul.f32 1.442695, %v2221_v33 }
 0x1e5   : > { %v2038_v36 = vadd.f32 %v4588_v51, %v2031_v10  ;;  %v4606_v10 = vpop.eup %3232 }
 0x1e6   : > { %v4618_v40 = vpop.eup %3234 }
 0x1e7   : > { %v2055_v7 = vadd.f32 %v4595_v60, %v2038_v36  ;;  %v3014_v36 = vunpack.i.h.bf16 %v4542_v26  ;;  %v4629_v29 = vpop.eup %3236  ;;  %v2256_v26 = vsub.f32 %v4326_v23, %v4534_v50 }
 0x1e8   : > { %v4646_v20 = vpop.eup %3238 }
 0x1e9   : > { %v2067_v44 = vadd.f32 %v4606_v10, %v2055_v7  ;;  %v2198_v7 = vmul.f32 1.442695, %v2197_v2  ;;  %v2244_v2 = vsub.f32 %v4307_v48, %v4534_v50  ;;  %v2048_v48 = vsel %vm729_vm9, %v3028_v58, %v3029_v17  ;;  %v4659_v5 = vpop.eup %3240 }
 0x1ea   : > { %v2229_v58 = vmul.f32 1.442695, %v2228_v22  ;;  %v2000_v23 = vsel %vm619_vm6, %v3013_v3, %v3014_v36  ;;  %v4668_v19 = vpop.eup %3242  ;;  %v2014_v22 = vmul.f32 %v4568_v61, %v2012_v41  ;;  %v5082_v3 = vld [vmem:[#allocation18_spill] sm:$0xff]  ;;  %v4688_v61 = vpop.permute.xlu1 %3076 }
 0x1eb   : > { %v2084_v55 = vadd.f32 %v4618_v40, %v2067_v44  ;;  %v4644_v44 = vpop.permute.xlu0 %3061  ;;  %3250 = vpow2.f32 %v2198_v7  ;;  %v2245_v45 = vmul.f32 1.442695, %v2244_v2  ;;  %v2280_v7 = vsub.f32 %v4349_v13, %v4534_v50  ;;  %v4679_v36 = vpop.eup %3244 }
 0x1ec   : > { %3252 = vpow2.f32 %v2210_v24  ;;  %v2002_v33 = vmul.f32 %v4564_v43, %v2000_v23  ;;  %v2304_v2 = vsub.f32 %v5082_v3, %v4534_v50  ;;  %v3024_v13 = vunpack.i.h.bf16 %v4550_v56  ;;  %v4690_v41 = vpop.eup %3246 }
 0x1ed   : > { %v2104_v52 = vadd.f32 %v4629_v29, %v2084_v55  ;;  %v3038_v55 = vunpack.i.l.bf16 %v4566_v25  ;;  %v2257_v25 = vmul.f32 1.442695, %v2256_v26  ;;  %3254 = vpow2.f32 %v2222_v53 }
 0x1ee   : > { %v3023_v43 = vunpack.i.l.bf16 %v4550_v56  ;;  %v2015_v23 = vadd.f32 %v2014_v22, %v2002_v33  ;;  %3256 = vpow2.f32 %v2229_v58  ;;  %v2281_v53 = vmul.f32 1.442695, %v2280_v7  ;;  %v4699_v33 = vpop.eup %3248 }
 0x1ef   : > { %v2116_v8 = vadd.f32 %v4646_v20, %v2104_v52  ;;  %v2268_v52 = vsub.f32 %v4342_v6, %v4534_v50  ;;  %v4677_v6 = vpop.permute.xlu0 %3071  ;;  %v2322_v3 = vsub.f32 %v5084_v16, %v4534_v50  ;;  %3258 = vpow2.f32 %v2245_v45 }
 0x1f0   : > { %v2024_v38 = vsel %vm682_vm8, %v3023_v43, %v3024_v13  ;;  %v2305_v22 = vmul.f32 1.442695, %v2304_v2  ;;  %v3034_v58 = vunpack.i.h.bf16 %v4560_v62  ;;  %v3033_v7 = vunpack.i.l.bf16 %v4560_v62  ;;  %v5085_v43 = vld [vmem:[#allocation13_spill] sm:$0xff] }
 0x1f1   : > { %v2128_v17 = vadd.f32 %v4659_v5, %v2116_v8  ;;  %v2292_v8 = vsub.f32 %v4359_v39, %v4534_v50  ;;  %v2269_v26 = vmul.f32 1.442695, %v2268_v52  ;;  %v2026_v52 = vmul.f32 %v4574_v18, %v2024_v38 }
 0x1f2   : > { %3260 = vpow2.f32 %v2257_v25  ;;  %v2323_v38 = vmul.f32 1.442695, %v2322_v3  ;;  %v2356_v45 = vsub.f32 %v4408_v4, %v4534_v50  ;;  %v2060_v18 = vsel %vm760_vm10, %v3033_v7, %v3034_v58 }
 0x1f3   : > { %v2135_v11 = vadd.f32 %v4668_v19, %v2128_v17  ;;  %v5083_v17 = vld [vmem:[#allocation19_spill] sm:$0xff]  ;;  %v2293_v34 = vmul.f32 1.442695, %v2292_v8  ;;  %v2027_v13 = vadd.f32 %v2026_v52, %v2015_v23  ;;  %v2033_v8 = vmul.f32 %v4581_v1, %v5085_v43  ;;  %v4715_v23 = vpop.permute.xlu1 %3086 }
 0x1f4   : > { %v2310_v39 = vsub.f32 %v5083_v17, %v4534_v50  ;;  %3262 = vpow2.f32 %v2269_v26  ;;  %v3049_v25 = vunpack.i.h.bf16 %v4586_v9  ;;  %v3048_v3 = vunpack.i.l.bf16 %v4586_v9 }
 0x1f5   : > { %v2151_v24 = vadd.f32 %v4679_v36, %v2135_v11  ;;  %v2334_v11 = vsub.f32 %v4396_v12, %v4534_v50  ;;  %v4708_v12 = vpop.eup %3250  ;;  %v2034_v2 = vadd.f32 %v2033_v8, %v2027_v13  ;;  %v3044_v4 = vunpack.i.h.bf16 %v4579_v0 }
 0x1f6   : > { %v2311_v17 = vmul.f32 1.442695, %v2310_v39  ;;  %v2050_v39 = vmul.f32 %v4588_v51, %v2048_v48  ;;  %v4717_v1 = vpop.eup %3252  ;;  %v2062_v26 = vmul.f32 %v4595_v60, %v2060_v18  ;;  %v3043_v7 = vunpack.i.l.bf16 %v4579_v0 }
 0x1f7   : > { %v2163_v56 = vadd.f32 %v4690_v41, %v2151_v24  ;;  %v4706_v24 = vpop.permute.xlu0 %3081  ;;  %v4726_v51 = vpop.eup %3254  ;;  %3264 = vpow2.f32 %v2281_v53  ;;  %v2335_v48 = vmul.f32 1.442695, %v2334_v11  ;;  %v2109_v0 = vsel %vm649_vm7, %v3048_v3, %v3049_v25 }
 0x1f8   : > { %v2051_v58 = vadd.f32 %v2050_v39, %v2034_v2  ;;  %v4736_v60 = vpop.eup %3256  ;;  %3266 = vpow2.f32 %v2293_v34  ;;  %v2097_v53 = vsel %vm619_vm6, %v3043_v7, %v3044_v4  ;;  %v4745_v18 = vpop.permute.xlu1 %3096  ;;  %v3059_v34 = vunpack.i.h.bf16 %v4616_v63 }
 0x1f9   : > { %v2180_v16 = vadd.f32 %v4699_v33, %v2163_v56  ;;  %v2072_v56 = vsel %vm793_vm11, %v3038_v55, %v3039_v46  ;;  %v2378_v46 = vsub.f32 %v4420_v27, %v4534_v50  ;;  %v2390_v55 = vsub.f32 %v4428_v54, %v4534_v50 }
 0x1fa   : > { %v2074_v13 = vmul.f32 %v4606_v10, %v2072_v56  ;;  %v2063_v43 = vadd.f32 %v2062_v26, %v2051_v58  ;;  %v3054_v27 = vunpack.i.h.bf16 %v4604_v35  ;;  %v2402_v54 = vsub.f32 %v4436_v31, %v4534_v50 }
 0x1fb   : > { %v2200_v62 = vadd.f32 %v4708_v12, %v2180_v16  ;;  %v2357_v16 = vmul.f32 1.442695, %v2356_v45  ;;  %v4734_v8 = vpop.permute.xlu0 %3091  ;;  %v2099_v10 = vmul.f32 %v4618_v40, %v2097_v53  ;;  %3268 = vpow2.f32 %v2305_v22 }
 0x1fc   : > { %v2075_v45 = vadd.f32 %v2074_v13, %v2063_v43  ;;  %v3058_v2 = vunpack.i.l.bf16 %v4616_v63  ;;  %v3053_v39 = vunpack.i.l.bf16 %v4604_v35  ;;  %v2409_v25 = vsub.f32 %v4444_v14, %v4534_v50 }
 0x1fd   : > { %v2212_v52 = vadd.f32 %v4717_v1, %v2200_v62  ;;  %v4747_v62 = vpop.eup %3258  ;;  %v2111_v31 = vmul.f32 %v4629_v29, %v2109_v0  ;;  %3270 = vpow2.f32 %v2311_v17  ;;  %v3064_v22 = vunpack.i.h.bf16 %v4644_v44  ;;  %v5086_v0 = vld [vmem:[#allocation14_spill] sm:$0xff] }
 0x1fe   : > { %v2100_v3 = vadd.f32 %v2099_v10, %v2075_v45  ;;  %v4756_v40 = vpop.eup %3260  ;;  %v2121_v4 = vsel %vm682_vm8, %v3053_v39, %v3054_v27  ;;  %v2379_v58 = vmul.f32 1.442695, %v2378_v46  ;;  %3272 = vpow2.f32 %v2323_v38  ;;  %v4773_v46 = vpop.permute.xlu1 %3106 }
 0x1ff   : > { %v2224_v9 = vadd.f32 %v4726_v51, %v2212_v52  ;;  %v3063_v52 = vunpack.i.l.bf16 %v4644_v44  ;;  %v4761_v63 = vpop.eup %3262  ;;  %v2123_v14 = vmul.f32 %v4646_v20, %v2121_v4  ;;  %v4765_v7 = vpop.permute.xlu0 %3101  ;;  %v2144_v29 = vsel %vm729_vm9, %v3058_v2, %v3059_v34 }
 0x200   : > { %v2112_v26 = vadd.f32 %v2111_v31, %v2100_v3  ;;  %v3069_v17 = vunpack.i.h.bf16 %v4657_v28  ;;  %v2391_v44 = vmul.f32 1.442695, %v2390_v55  ;;  %v2130_v53 = vmul.f32 %v4659_v5, %v5086_v0 }
 0x201   : > { %v2231_v11 = vadd.f32 %v4736_v60, %v2224_v9  ;;  %v3068_v9 = vunpack.i.l.bf16 %v4657_v28  ;;  %v4775_v27 = vpop.eup %3264  ;;  %3274 = vpow2.f32 %v2335_v48  ;;  %v2156_v20 = vsel %vm760_vm10, %v3063_v52, %v3064_v22 }
 0x202   : > { %v2124_v43 = vadd.f32 %v2123_v14, %v2112_v26  ;;  %v3074_v38 = vunpack.i.h.bf16 %v4677_v6  ;;  %v2403_v45 = vmul.f32 1.442695, %v2402_v54  ;;  %v2146_v55 = vmul.f32 %v4668_v19, %v2144_v29  ;;  %v4782_v34 = vpop.eup %3266 }
 0x203   : > { %v2247_v56 = vadd.f32 %v4747_v62, %v2231_v11  ;;  %v3073_v11 = vunpack.i.l.bf16 %v4677_v6  ;;  %3276 = vpow2.f32 %v2357_v16  ;;  %v2168_v5 = vsel %vm793_vm11, %v3068_v9, %v3069_v17  ;;  %v4791_v31 = vpop.permute.xlu0 %3111 }
 0x204   : > { %v2131_v10 = vadd.f32 %v2130_v53, %v2124_v43  ;;  %v3079_v2 = vunpack.i.h.bf16 %v4688_v61  ;;  %v3078_v48 = vunpack.i.l.bf16 %v4688_v61  ;;  %v2426_v6 = vsub.f32 %v4448_v21, %v4534_v50 }
 0x205   : > { %v2259_v35 = vadd.f32 %v4756_v40, %v2247_v56  ;;  %v2158_v54 = vmul.f32 %v4679_v36, %v2156_v20  ;;  %v4793_v19 = vpop.eup %3268  ;;  %3278 = vpow2.f32 %v2379_v58  ;;  %v2193_v16 = vsel %vm619_vm6, %v3073_v11, %v3074_v38 }
 0x206   : > { %v2147_v56 = vadd.f32 %v2146_v55, %v2131_v10  ;;  %v3084_v3 = vunpack.i.h.bf16 %v4706_v24  ;;  %v3083_v4 = vunpack.i.l.bf16 %v4706_v24  ;;  %v2410_v22 = vmul.f32 1.442695, %v2409_v25 }
 0x207   : > { %v2271_v13 = vadd.f32 %v4761_v63, %v2259_v35  ;;  %v2170_v52 = vmul.f32 %v4690_v41, %v2168_v5  ;;  %v4800_v35 = vpop.permute.xlu1 %3116  ;;  %v4802_v36 = vpop.eup %3270  ;;  %3280 = vpow2.f32 %v2391_v44  ;;  %v2438_v58 = vsub.f32 %v4455_v32, %v4534_v50 }
 0x208   : > { %v2159_v21 = vadd.f32 %v2158_v54, %v2147_v56  ;;  %v2455_v26 = vsub.f32 %v4460_v30, %v4534_v50  ;;  %v2205_v14 = vsel %vm649_vm7, %v3078_v48, %v3079_v2  ;;  %v2427_v29 = vmul.f32 1.442695, %v2426_v6  ;;  %v4811_v17 = vpop.eup %3272  ;;  %v4820_v53 = vpop.permute.xlu0 %3121  ;;  %v5087_v6 = vld [vmem:[#allocation16_spill] sm:$0xff] }
 0x209   : > { %v2283_v28 = vadd.f32 %v4775_v27, %v2271_v13  ;;  %v2195_v41 = vmul.f32 %v4699_v33, %v2193_v16  ;;  %3282 = vpow2.f32 %v2403_v45  ;;  %v3089_v9 = vunpack.i.h.bf16 %v4715_v23 }
 0x20a   : > { %v2171_v25 = vadd.f32 %v2170_v52, %v2159_v21  ;;  %v3088_v13 = vunpack.i.l.bf16 %v4715_v23  ;;  %v2217_v32 = vsel %vm682_vm8, %v3083_v4, %v3084_v3  ;;  %v2475_v30 = vsub.f32 %v4466_v59, %v4534_v50 }
 0x20b   : > { %v2295_v39 = vadd.f32 %v4782_v34, %v2283_v28  ;;  %v2207_v43 = vmul.f32 %v4708_v12, %v2205_v14  ;;  %v4822_v33 = vpop.eup %3274  ;;  %3284 = vpow2.f32 %v2410_v22  ;;  %v2439_v20 = vmul.f32 1.442695, %v2438_v58  ;;  %v4828_v59 = vpop.permute.xlu1 %3126 }
 0x20c   : > { %v2196_v0 = vadd.f32 %v2195_v41, %v2171_v25  ;;  %v3094_v38 = vunpack.i.h.bf16 %v4734_v8  ;;  %v3093_v23 = vunpack.i.l.bf16 %v4734_v8  ;;  %v2456_v28 = vmul.f32 1.442695, %v2455_v26  ;;  %v4848_v21 = vpop.permute.xlu0 %3131 }
 0x20d   : > { %v2307_v61 = vadd.f32 %v4793_v19, %v2295_v39  ;;  %v2219_v55 = vmul.f32 %v4717_v1, %v2217_v32  ;;  %v4830_v12 = vpop.eup %3276  ;;  %3286 = vpow2.f32 %v2427_v29  ;;  %v2240_v10 = vsel %vm729_vm9, %v3088_v13, %v3089_v9 }
 0x20e   : > { %v2208_v45 = vadd.f32 %v2207_v43, %v2196_v0  ;;  %v3099_v5 = vunpack.i.h.bf16 %v4745_v18  ;;  %v3098_v2 = vunpack.i.l.bf16 %v4745_v18  ;;  %v2476_v8 = vmul.f32 1.442695, %v2475_v30 }
 0x20f   : > { %v2313_v24 = vadd.f32 %v4802_v36, %v2307_v61  ;;  %v2226_v56 = vmul.f32 %v4726_v51, %v5087_v6  ;;  %v4838_v54 = vpop.eup %3278  ;;  %3288 = vpow2.f32 %v2439_v20  ;;  %v2252_v1 = vsel %vm760_vm10, %v3093_v23, %v3094_v38  ;;  %v4860_v25 = vpop.permute.xlu1 %3136 }
 0x210   : > { %v2220_v39 = vadd.f32 %v2219_v55, %v2208_v45  ;;  %v3104_v16 = vunpack.i.h.bf16 %v4765_v7  ;;  %v3103_v3 = vunpack.i.l.bf16 %v4765_v7  ;;  %v5088_v18 = vsub.f32 %v4470_v42, %v4534_v50 }
 0x211   : > { %v2325_v44 = vadd.f32 %v4811_v17, %v2313_v24  ;;  %v2242_v22 = vmul.f32 %v4736_v60, %v2240_v10  ;;  %v4850_v51 = vpop.eup %3280  ;;  %3290 = vpow2.f32 %v2456_v28  ;;  %v2264_v58 = vsel %vm793_vm11, %v3098_v2, %v3099_v5 }
 0x212   : > { %v2488_v61 = vmul.f32 1.442695, %v5088_v18  ;;  %v2227_v52 = vadd.f32 %v2226_v56, %v2220_v39  ;;  %v3109_v26 = vunpack.i.h.bf16 %v4773_v46  ;;  %v3108_v7 = vunpack.i.l.bf16 %v4773_v46 }
 0x213   : > { %v2337_v11 = vadd.f32 %v4822_v33, %v2325_v44  ;;  %v5089_v42 = vsub.f32 %v4477_v37, %v4534_v50  ;;  %v2254_v60 = vmul.f32 %v4747_v62, %v2252_v1  ;;  %v4862_v41 = vpop.eup %3282  ;;  %3292 = vpow2.f32 %v2476_v8  ;;  %v4889_v2 = vpop.permute.xlu1 %3146 }
 0x214   : > { %v2243_v29 = vadd.f32 %v2242_v22, %v2227_v52  ;;  %v2276_v9 = vsel %vm619_vm6, %v3103_v3, %v3104_v16  ;;  %v3114_v13 = vunpack.i.h.bf16 %v4791_v31  ;;  %v3113_v46 = vunpack.i.l.bf16 %v4791_v31 }
 0x215   : > { %v2359_v48 = vadd.f32 %v4830_v12, %v2337_v11  ;;  %v2500_v24 = vmul.f32 1.442695, %v5089_v42  ;;  %v2266_v44 = vmul.f32 %v4756_v40, %v2264_v58  ;;  %v4869_v30 = vpop.eup %3284  ;;  %3294 = vpow2.f32 %v2488_v61  ;;  %v4880_v40 = vpop.permute.xlu0 %3141  ;;  %v5094_v61 = vld [vmem:[#allocation23_spill] sm:$0xff] }
 0x216   : > { %v2255_v37 = vadd.f32 %v2254_v60, %v2243_v29  ;;  %v5090_v62 = vsub.f32 %v4483_v57, %v4534_v50  ;;  %v2288_v0 = vsel %vm649_vm7, %v3108_v7, %v3109_v26  ;;  %v5091_v38 = vsub.f32 %v4491_v15, %v4534_v50  ;;  %v5096_v58 = vld [vmem:[#allocation15_spill] sm:$0xff]  ;;  %v5097_v29 = vld [vmem:[#allocation24_spill] sm:$0xff] }
 0x217   : > { %v2381_v4 = vadd.f32 %v4838_v54, %v2359_v48  ;;  %v2278_v11 = vmul.f32 %v4761_v63, %v2276_v9  ;;  %v4882_v28 = vpop.eup %3286  ;;  %3296 = vpow2.f32 %v2500_v24  ;;  %v3119_v45 = vunpack.i.h.bf16 %v4800_v35 }
 0x218   : > { %v2507_v43 = vmul.f32 1.442695, %v5090_v62  ;;  %v2523_v31 = vmul.f32 1.442695, %v5091_v38  ;;  %v2267_v23 = vadd.f32 %v2266_v44, %v2255_v37  ;;  %v3118_v57 = vunpack.i.l.bf16 %v4800_v35 }
 0x219   : > { %v2393_v14 = vadd.f32 %v4850_v51, %v2381_v4  ;;  %v2300_v55 = vsel %vm682_vm8, %v3113_v46, %v3114_v13  ;;  %v2290_v5 = vmul.f32 %v4775_v27, %v2288_v0  ;;  %v4891_v48 = vpop.eup %3288  ;;  %v5092_v63 = vsub.f32 %v4496_v49, %v4534_v50  ;;  %v4926_v46 = vpop.permute.xlu1 %3156 }
 0x21a   : > { %v2279_v15 = vadd.f32 %v2278_v11, %v2267_v23  ;;  %3298 = vpow2.f32 %v2507_v43  ;;  %v3124_v39 = vunpack.i.h.bf16 %v4820_v53  ;;  %v3123_v35 = vunpack.i.l.bf16 %v4820_v53  ;;  %v5099_v43 = vld [vmem:[#allocation25_spill] sm:$0xff] }
 0x21b   : > { %v2405_v32 = vadd.f32 %v4862_v41, %v2393_v14  ;;  %v2535_v8 = vmul.f32 1.442695, %v5092_v63  ;;  %v5093_v56 = vsub.f32 %v4500_v47, %v4534_v50  ;;  %v2302_v16 = vmul.f32 %v4782_v34, %v2300_v55  ;;  %v4903_v3 = vpop.eup %3290  ;;  %v4914_v34 = vpop.permute.xlu0 %3151 }
 0x21c   : > { %v2291_v1 = vadd.f32 %v2290_v5, %v2279_v15  ;;  %3300 = vpow2.f32 %v2523_v31  ;;  %v2318_v4 = vsel %vm729_vm9, %v3118_v57, %v3119_v45  ;;  %v3129_v49 = vunpack.i.h.bf16 %v4828_v59  ;;  %v5101_v15 = vld [vmem:[#allocation26_spill] sm:$0xff] }
 0x21d   : > { %v2412_v20 = vadd.f32 %v4869_v30, %v2405_v32  ;;  %v2552_v27 = vmul.f32 1.442695, %v5093_v56  ;;  %v3128_v18 = vunpack.i.l.bf16 %v4828_v59  ;;  %v5095_v22 = vsub.f32 %v5094_v61, %v4534_v50  ;;  %v4916_v7 = vpop.eup %3292 }
 0x21e   : > { %v2303_v47 = vadd.f32 %v2302_v16, %v2291_v1  ;;  %v2308_v26 = vmul.f32 %v4793_v19, %v5096_v58  ;;  %3302 = vpow2.f32 %v2535_v8  ;;  %v2330_v14 = vsel %vm760_vm10, %v3123_v35, %v3124_v39  ;;  %v5103_v35 = vld [vmem:[#allocation27_spill] sm:$0xff] }
 0x21f   : > { %v2429_v10 = vadd.f32 %v4882_v28, %v2412_v20  ;;  %v2572_v52 = vmul.f32 1.442695, %v5095_v22  ;;  %v3134_v42 = vunpack.i.h.bf16 %v4848_v21  ;;  %v3133_v59 = vunpack.i.l.bf16 %v4848_v21  ;;  %v4928_v32 = vpop.eup %3294 }
 0x220   : > { %v5098_v60 = vsub.f32 %v5097_v29, %v4534_v50  ;;  %v2320_v13 = vmul.f32 %v4802_v36, %v2318_v4  ;;  %v2309_v19 = vadd.f32 %v2308_v26, %v2303_v47  ;;  %3304 = vpow2.f32 %v2552_v27  ;;  %v3167_v27 = vpop.permute.xlu1 %3166 }
 0x221   : > { %v2441_v6 = vadd.f32 %v4891_v48, %v2429_v10  ;;  %v2342_v44 = vsel %vm793_vm11, %v3128_v18, %v3129_v49  ;;  %v3139_v37 = vunpack.i.h.bf16 %v4860_v25  ;;  %v3138_v21 = vunpack.i.l.bf16 %v4860_v25  ;;  %v4938_v31 = vpop.eup %3296  ;;  %v3162_v10 = vpop.permute.xlu0 %3161 }
 0x222   : > { %v2584_v9 = vmul.f32 1.442695, %v5098_v60  ;;  %v5100_v0 = vsub.f32 %v5099_v43, %v4534_v50  ;;  %v2321_v38 = vadd.f32 %v2320_v13, %v2309_v19  ;;  %v2332_v36 = vmul.f32 %v4811_v17, %v2330_v14  ;;  %v5107_v13 = vld [vmem:[#allocation17_spill] sm:$0xff] }
 0x223   : > { %v2458_v53 = vadd.f32 %v4903_v3, %v2441_v6  ;;  %3306 = vpow2.f32 %v2572_v52  ;;  %v2374_v23 = vsel %vm619_vm6, %v3133_v59, %v3134_v42  ;;  %v3144_v11 = vunpack.i.h.bf16 %v4880_v40  ;;  %v5105_v52 = vld [vmem:[#allocation28_spill] sm:$0xff] }
 0x224   : > { %v2596_v20 = vmul.f32 1.442695, %v5100_v0  ;;  %v3143_v45 = vunpack.i.l.bf16 %v4880_v40  ;;  %v2344_v57 = vmul.f32 %v4822_v33, %v2342_v44  ;;  %v2333_v55 = vadd.f32 %v2332_v36, %v2321_v38  ;;  %v4945_v5 = vpop.eup %3298  ;;  %v3177_v19 = vpop.permute.xlu1 %3176 }
 0x225   : > { %v2478_v24 = vadd.f32 %v4916_v7, %v2458_v53  ;;  %3308 = vpow2.f32 %v2584_v9  ;;  %v5102_v17 = vsub.f32 %v5101_v15, %v4534_v50  ;;  %v2386_v8 = vsel %vm649_vm7, %v3138_v21, %v3139_v37  ;;  %v3172_v59 = vpop.permute.xlu0 %3171 }
 0x226   : > { %v5104_v40 = vsub.f32 %v5103_v35, %v4534_v50  ;;  %v2345_v56 = vadd.f32 %v2344_v57, %v2333_v55  ;;  %v2376_v33 = vmul.f32 %v4830_v12, %v2374_v23  ;;  %v4956_v1 = vpop.eup %3300  ;;  %3310 = vpow2.f32 %v2596_v20 }
 0x227   : > { %v2490_v62 = vadd.f32 %v4928_v32, %v2478_v24  ;;  %v2603_v63 = vmul.f32 1.442695, %v5102_v17  ;;  %v3149_v16 = vunpack.i.h.bf16 %v4889_v2  ;;  %v3148_v4 = vunpack.i.l.bf16 %v4889_v2 }
 0x228   : > { %v2619_v6 = vmul.f32 1.442695, %v5104_v40  ;;  %v2398_v49 = vsel %vm682_vm8, %v3143_v45, %v3144_v11  ;;  %v2388_v53 = vmul.f32 %v4838_v54, %v2386_v8  ;;  %v2377_v61 = vadd.f32 %v2376_v33, %v2345_v56  ;;  %v4963_v22 = vpop.eup %3302 }
 0x229   : > { %v2502_v25 = vadd.f32 %v4938_v31, %v2490_v62  ;;  %3312 = vpow2.f32 %v2603_v63  ;;  %v5106_v12 = vsub.f32 %v5105_v52, %v4534_v50  ;;  %v3154_v58 = vunpack.i.h.bf16 %v4914_v34  ;;  %v3182_v45 = vpop.permute.xlu0 %3181  ;;  %v3187_v63 = vpop.permute.xlu1 %3186 }
 0x22a   : > { %v3153_v26 = vunpack.i.l.bf16 %v4914_v34  ;;  %v2389_v14 = vadd.f32 %v2388_v53, %v2377_v61  ;;  %v2400_v42 = vmul.f32 %v4850_v51, %v2398_v49  ;;  %v4972_v24 = vpop.eup %3304  ;;  %3314 = vpow2.f32 %v2619_v6 }
 0x22b   : > { %v2509_v39 = vadd.f32 %v4945_v5, %v2502_v25  ;;  %v2631_v47 = vmul.f32 1.442695, %v5106_v12  ;;  %v2422_v54 = vsel %vm729_vm9, %v3148_v4, %v3149_v16  ;;  %v3159_v29 = vunpack.i.h.bf16 %v4926_v46 }
 0x22c   : > { %v3158_v50 = vunpack.i.l.bf16 %v4926_v46  ;;  %v2401_v9 = vadd.f32 %v2400_v42, %v2389_v14  ;;  %v2407_v34 = vmul.f32 %v4862_v41, %v5107_v13  ;;  %v2434_v51 = vsel %vm760_vm10, %v3153_v26, %v3154_v58  ;;  %v5108_v42 = vld [vmem:[#allocation20_spill] sm:$0xff] }
 0x22d   : > { %v2525_v18 = vadd.f32 %v4956_v1, %v2509_v39  ;;  %v4980_v44 = vpop.eup %3306  ;;  %3316 = vpow2.f32 %v2631_v47  ;;  %v3164_v37 = vunpack.i.h.bf16 %v3162_v10  ;;  %v3163_v21 = vunpack.i.l.bf16 %v3162_v10  ;;  %v3192_v49 = vpop.permute.xlu0 %3191 }
 0x22e   : > { %v2424_v43 = vmul.f32 %v4869_v30, %v2422_v54  ;;  %v2408_v0 = vadd.f32 %v2407_v34, %v2401_v9  ;;  %v2446_v20 = vsel %vm793_vm11, %v3158_v50, %v3159_v29  ;;  %v3169_v38 = vunpack.i.h.bf16 %v3167_v27  ;;  %v3197_v12 = vpop.permute.xlu1 %3196 }
 0x22f   : > { %v2537_v2 = vadd.f32 %v4963_v22, %v2525_v18  ;;  %v4985_v46 = vpop.eup %3308  ;;  %v3168_v36 = vunpack.i.l.bf16 %v3167_v27  ;;  %v2436_v11 = vmul.f32 %v4882_v28, %v2434_v51  ;;  %v2471_v57 = vsel %vm619_vm6, %v3163_v21, %v3164_v37 }
 0x230   : > { %v2425_v23 = vadd.f32 %v2424_v43, %v2408_v0  ;;  %v4990_v25 = vpop.eup %3310  ;;  %v3174_v55 = vunpack.i.h.bf16 %v3172_v59  ;;  %v3173_v10 = vunpack.i.l.bf16 %v3172_v59  ;;  %v2448_v15 = vmul.f32 %v4891_v48, %v2446_v20 }
 0x231   : > { %v2554_v60 = vadd.f32 %v4972_v24, %v2537_v2  ;;  %v2483_v39 = vsel %vm649_vm7, %v3168_v36, %v3169_v38  ;;  %v2473_v40 = vmul.f32 %v4903_v3, %v2471_v57  ;;  %v3179_v56 = vunpack.i.h.bf16 %v3177_v19  ;;  %v3202_v9 = vpop.permute.xlu0 %3201 }
 0x232   : > { %v2437_v17 = vadd.f32 %v2436_v11, %v2425_v23  ;;  %v3178_v33 = vunpack.i.l.bf16 %v3177_v19  ;;  %v2495_v27 = vsel %vm682_vm8, %v3173_v10, %v3174_v55  ;;  %v2485_v48 = vmul.f32 %v4916_v7, %v2483_v39  ;;  %v3207_v19 = vpop.permute.xlu1 %3206 }
 0x233   : > { %v2574_v62 = vadd.f32 %v4980_v44, %v2554_v60  ;;  %v4995_v8 = vpop.eup %3312  ;;  %v3184_v53 = vunpack.i.h.bf16 %v3182_v45  ;;  %v3183_v61 = vunpack.i.l.bf16 %v3182_v45  ;;  %v2497_v3 = vmul.f32 %v4928_v32, %v2495_v27 }
 0x234   : > { %v2449_v28 = vadd.f32 %v2448_v15, %v2437_v17  ;;  %v5000_v6 = vpop.eup %3314  ;;  %v2518_v58 = vsel %vm729_vm9, %v3178_v33, %v3179_v56  ;;  %v3189_v26 = vunpack.i.h.bf16 %v3187_v63  ;;  %v3188_v2 = vunpack.i.l.bf16 %v3187_v63 }
 0x235   : > { %v2586_v41 = vadd.f32 %v4985_v46, %v2574_v62  ;;  %v2504_v59 = vmul.f32 %v4938_v31, %v5108_v42  ;;  %v2530_v7 = vsel %vm760_vm10, %v3183_v61, %v3184_v53  ;;  %v3194_v54 = vunpack.i.h.bf16 %v3192_v49  ;;  %v3212_v36 = vpop.permute.xlu0 %3211 }
 0x236   : > { %v2474_v4 = vadd.f32 %v2473_v40, %v2449_v28  ;;  %v3193_v29 = vunpack.i.l.bf16 %v3192_v49  ;;  %v2520_v50 = vmul.f32 %v4945_v5, %v2518_v58  ;;  %v2542_v13 = vsel %vm793_vm11, %v3188_v2, %v3189_v26  ;;  %v3217_v45 = vpop.permute.xlu1 %3216 }
 0x237   : > { %v2598_v30 = vadd.f32 %v4990_v25, %v2586_v41  ;;  %v3317_v18 = vpop.eup %3316  ;;  %v3199_v34 = vunpack.i.h.bf16 %v3197_v12  ;;  %v3198_v32 = vunpack.i.l.bf16 %v3197_v12  ;;  %v2532_v37 = vmul.f32 %v4956_v1, %v2530_v7 }
 0x238   : > { %v2486_v47 = vadd.f32 %v2485_v48, %v2474_v4  ;;  %v2567_v21 = vsel %vm619_vm6, %v3193_v29, %v3194_v54  ;;  %v3204_v62 = vunpack.i.h.bf16 %v3202_v9  ;;  %v3203_v31 = vunpack.i.l.bf16 %v3202_v9 }
 0x239   : > { %v2605_v35 = vadd.f32 %v4995_v8, %v2598_v30  ;;  %v2544_v43 = vmul.f32 %v4963_v22, %v2542_v13  ;;  %v2579_v5 = vsel %vm649_vm7, %v3198_v32, %v3199_v34  ;;  %v2569_v38 = vmul.f32 %v4972_v24, %v2567_v21  ;;  %v5109_v24 = vld [vmem:[#allocation22_spill] sm:$0xff] }
 0x23a   : > { %v2498_v14 = vadd.f32 %v2497_v3, %v2486_v47  ;;  %v3209_v41 = vunpack.i.h.bf16 %v3207_v19  ;;  %v3208_v23 = vunpack.i.l.bf16 %v3207_v19  ;;  %v2591_v11 = vsel %vm682_vm8, %v3203_v31, %v3204_v62 }
 0x23b   : > { %v2621_v16 = vadd.f32 %v5000_v6, %v2605_v35  ;;  %v2581_v1 = vmul.f32 %v4980_v44, %v2579_v5  ;;  %v3214_v55 = vunpack.i.h.bf16 %v3212_v36  ;;  %v3213_v10 = vunpack.i.l.bf16 %v3212_v36 }
 0x23c   : > { %v2505_v60 = vadd.f32 %v2504_v59, %v2498_v14  ;;  %v2593_v22 = vmul.f32 %v4985_v46, %v2591_v11  ;;  %v2614_v15 = vsel %vm729_vm9, %v3208_v23, %v3209_v41  ;;  %v3219_v17 = vunpack.i.h.bf16 %v3217_v45  ;;  %v2875_v46 = vld [vmem:[%s5047_s4] ss:$0 sm:$0xff] }
 0x23d   : > { %v2633_v52 = vadd.f32 %v3317_v18, %v2621_v16  ;;  %v3218_v63 = vunpack.i.l.bf16 %v3217_v45  ;;  %v2600_v35 = vmul.f32 %v4990_v25, %v5109_v24  ;;  %v2626_v28 = vsel %vm760_vm10, %v3213_v10, %v3214_v55 }
 0x23e   : > { %v2521_v51 = vadd.f32 %v2520_v50, %v2505_v60  ;;  %v2616_v40 = vmul.f32 %v4995_v8, %v2614_v15  ;;  %v2628_v16 = vmul.f32 %v5000_v6, %v2626_v28  ;;  %v2876_v8 = vld [vmem:[%s5048_s5] ss:$0 sm:$0xff] }
 0x23f   : > { %3318 = vrcp.f32 %v2633_v52  ;;  %v2638_v33 = vsel %vm793_vm11, %v3218_v63, %v3219_v17 }
 0x240   : > { %v2533_v0 = vadd.f32 %v2532_v37, %v2521_v51  ;;  %v2640_v48 = vmul.f32 %v3317_v18, %v2638_v33 }
 0x242   : > { %v2545_v20 = vadd.f32 %v2544_v43, %v2533_v0 }
 0x244   : > { %v2570_v57 = vadd.f32 %v2569_v38, %v2545_v20 }
 0x246   : > { %v2582_v30 = vadd.f32 %v2581_v1, %v2570_v57 }
 0x248   : > { %v2594_v39 = vadd.f32 %v2593_v22, %v2582_v30 }
 0x249   : > { %v3319_v56 = vpop.eup %3318 }
 0x24a   : > { %v2601_v44 = vadd.f32 %v2600_v35, %v2594_v39  ;;  %v2650_v49 = vmul.f32 %v3319_v56, %v2875_v46 }
 0x24c   : > { %v2617_v27 = vadd.f32 %v2616_v40, %v2601_v44 }
 0x24e   : > { %v2629_v4 = vadd.f32 %v2628_v16, %v2617_v27 }
 0x250   : > { %v2641_v25 = vadd.f32 %v2640_v48, %v2629_v4 }
 0x252   : > { %v2651_v53 = vmul.f32 %v2650_v49, %v2641_v25 }
 0x254   : > { %v2659_v61 = vadd.f32 %v2876_v8, %v2651_v53 }
 0x256   : > { %v2660_v52 = vmax.f32 %v2659_v61, 0.0 }
 0x258   : > { %v2661_v12 = vpack.c.bf16 %v2660_v52, %v2660_v52 }
 0x25a   : > { %2662 = vst [vmem:[%s3419_s11] sm:$0xf] %v2661_v12 }
 0x25b PF: > { %s16_s23 = sadd.s32 1, %s3346_s23   ;;  %s5110_s21 = smov %s3342_s22 }
 0x25c   : > { %p13_p5 = scmp.ge.s32.totalorder %s16_s23, 4   ;;  %s5111_s22 = smov %s5113_s24 }
 0x25e   :  { %15 = sbr.rel (!%p13_p5) target bundleno = 2 (0x2), region = 352 }
 0x265   :  { %2688 = vsyncmov [#allocation4] }
 0x268   :  { %s2689_s28 = vpop.sfrf %2688 }
 0x269   :  { %p2879_p6 = scmp.ne.s32.totalorder %s2689_s28, 0 }
 0x26b   :  { %2693 = shalt.err (%p2879_p6)  }
 0x26c   :  { %2695 = vsyncmov [#allocation4 + $0x1] }
 0x26f   :  { %s2696_s10 = vpop.sfrf %2695 }
 0x270   :  { %p2880_p7 = scmp.ne.s32.totalorder %s2696_s10, 0 }
 0x272   :  { %2700 = shalt.err (%p2880_p7)  }
 0x273   :  { %2702 = vsyncmov [#allocation4 + $0x2] }
 0x276   :  { %s2703_s11 = vpop.sfrf %2702 }
 0x277   :  { %p2881_p8 = scmp.ne.s32.totalorder %s2703_s11, 0 }
 0x279   :  { %2707 = shalt.err (%p2881_p8)  }
 0x27a   :  { %2709 = vsyncmov [#allocation4 + $0x3] }
 0x27d   :  { %s2710_s12 = vpop.sfrf %2709 }
 0x27e   :  { %p2882_p9 = scmp.ne.s32.totalorder %s2710_s12, 0 }
 0x280   :  { %2714 = shalt.err (%p2882_p9)  }
 0x281   :  { %2716 = vsyncmov [#allocation4 + $0x4] }
 0x284   :  { %s2717_s24 = vpop.sfrf %2716 }
 0x285   :  { %p2883_p10 = scmp.ne.s32.totalorder %s2717_s24, 0 }
 0x287   :  { %2721 = shalt.err (%p2883_p10)  }
 0x288   :  { %2723 = vsyncmov [#allocation4 + $0x5] }
 0x28b   :  { %s2724_s0 = vpop.sfrf %2723 }
 0x28c   :  { %p2884_p11 = scmp.ne.s32.totalorder %s2724_s0, 0 }
 0x28e   :  { %2728 = shalt.err (%p2884_p11)  }

</bundles_post_ra>
